<compile_context>
chip_gen: v6e
topology: v6e:2x2x1
jax: 0.10.0
libtpu: 0.0.40
codegen_flags: <defaults>
</compile_context>

<pallas_src>
import math
from functools import partial

import jax
import jax.numpy as jnp
from jax.experimental import pallas as pl
from jax.experimental.pallas import tpu as pltpu

_LN_EPS = 1e-5

_ENC_LAYER_REFS = 16   # sa(8) + ln1(2) + ffn(4) + ln2(2)
_DEC_LAYER_REFS = 26   # sa(8) + ln1(2) + ca(8) + ln2(2) + ffn(4) + ln3(2)


# ---------------------------------------------------------------------------
# In-kernel building blocks (operate on loaded values; loops are trace-time)
# ---------------------------------------------------------------------------

def _layer_norm(y, g, b, eps=_LN_EPS):
    """LayerNorm over the last dim; statistics kept in f32."""
    mu = jnp.mean(y, axis=-1, keepdims=True)
    var = jnp.mean(jnp.square(y - mu), axis=-1, keepdims=True)
    return (y - mu) * jax.lax.rsqrt(var + eps) * g + b


def _ffn(x, w1, b1, w2, b2):
    """linear2(relu(linear1(x))); bf16 MXU inputs, f32 accumulation."""
    h = jnp.dot(x.astype(jnp.bfloat16), w1,
                preferred_element_type=jnp.float32) + b1
    h = jnp.maximum(h, 0.0)
    return jnp.dot(h.astype(jnp.bfloat16), w2,
                   preferred_element_type=jnp.float32) + b2


def _mha(out_sc, xq, xkv, *, B, Sq, Sk,
         wq_ref, bq_ref, wk_ref, bk_ref, wv_ref, bv_ref, wo_ref, bo_ref):
    """Multi-head attention + output projection, written into out_sc [B*Sq, D].

    Per-head weights are stacked on a leading head axis (wq/wk/wv: [H, D, dh],
    wo: [H, dh, D]); the 1/sqrt(dh) scale is pre-folded into wq/bq.  Only
    8-aligned row slicing is used; the head concat is replaced by summing the
    per-head out-projections (concat_h(o_h) @ Wo == sum_h o_h @ Wo_h).
    """
    H = wq_ref.shape[0]
    D = wo_ref.shape[2]
    xq_b = xq.astype(jnp.bfloat16)
    xkv_b = xkv.astype(jnp.bfloat16)
    acc = [jnp.zeros((Sq, D), jnp.float32) for _ in range(B)]
    for h in range(H):
        q_h = jnp.dot(xq_b, wq_ref[h], preferred_element_type=jnp.float32) + bq_ref[h]
        k_h = jnp.dot(xkv_b, wk_ref[h], preferred_element_type=jnp.float32) + bk_ref[h]
        v_h = jnp.dot(xkv_b, wv_ref[h], preferred_element_type=jnp.float32) + bv_ref[h]
        wo_h = wo_ref[h]                                         # [dh, D] bf16
        for b in range(B):
            qs = q_h[b * Sq:(b + 1) * Sq].astype(jnp.bfloat16)   # [Sq, dh]
            ks = k_h[b * Sk:(b + 1) * Sk].astype(jnp.bfloat16)   # [Sk, dh]
            vs = v_h[b * Sk:(b + 1) * Sk].astype(jnp.bfloat16)   # [Sk, dh]
            # scores = q @ k^T (contract head dim of both), f32 accumulate.
            s = jax.lax.dot_general(qs, ks, (((1,), (1,)), ((), ())),
                                    preferred_element_type=jnp.float32)
            m = jnp.max(s, axis=-1, keepdims=True)
            p = jnp.exp(s - m)
            p = p * pl.reciprocal(jnp.sum(p, axis=-1, keepdims=True), approx=True)
            o = jnp.dot(p.astype(jnp.bfloat16), vs,
                        preferred_element_type=jnp.float32)      # [Sq, dh]
            acc[b] = acc[b] + jnp.dot(o.astype(jnp.bfloat16), wo_h,
                                      preferred_element_type=jnp.float32)
    bo = bo_ref[...]                                             # [1, D] f32
    for b in range(B):
        out_sc[pl.ds(b * Sq, Sq), :] = acc[b] + bo


# ---------------------------------------------------------------------------
# Fused Pallas kernels (one pallas_call for the WHOLE encoder / decoder stack)
# ---------------------------------------------------------------------------

def _make_encoder_stack_kernel(B, S, nlayers):
    """PE add + `nlayers` post-norm encoder layers + final LayerNorm."""
    n_in = 2 + nlayers * _ENC_LAYER_REFS + 2

    def kernel(*refs):
        assert len(refs) == n_in + 2  # + out_ref + scratch
        x_ref, pe_ref = refs[0], refs[1]
        idx = 2
        layers = []
        for _ in range(nlayers):
            layers.append(refs[idx:idx + _ENC_LAYER_REFS])
            idx += _ENC_LAYER_REFS
        fg, fb = refs[idx], refs[idx + 1]
        o_ref, attn_sc = refs[n_in], refs[n_in + 1]

        x = x_ref[...] + pe_ref[...]                             # [B*S, D] f32
        for (wq, bq, wk, bk, wv, bv, wo, bo,
             ln1g, ln1b, w1, b1, w2, b2, ln2g, ln2b) in layers:
            _mha(attn_sc, x, x, B=B, Sq=S, Sk=S,
                 wq_ref=wq, bq_ref=bq, wk_ref=wk, bk_ref=bk,
                 wv_ref=wv, bv_ref=bv, wo_ref=wo, bo_ref=bo)
            x = _layer_norm(x + attn_sc[...], ln1g[...], ln1b[...])
            ff = _ffn(x, w1[...], b1[...], w2[...], b2[...])
            x = _layer_norm(x + ff, ln2g[...], ln2b[...])
        o_ref[...] = _layer_norm(x, fg[...], fb[...])            # encoder norm

    return kernel


def _make_decoder_stack_kernel(B, S_tgt, S_src, nlayers):
    """`nlayers` post-norm decoder layers + final LayerNorm + fc_out (padded)."""
    n_in = 2 + nlayers * _DEC_LAYER_REFS + 4

    def kernel(*refs):
        assert len(refs) == n_in + 2  # + out_ref + scratch
        y_ref, mem_ref = refs[0], refs[1]
        idx = 2
        layers = []
        for _ in range(nlayers):
            layers.append(refs[idx:idx + _DEC_LAYER_REFS])
            idx += _DEC_LAYER_REFS
        fg, fb, fw, fbias = refs[idx], refs[idx + 1], refs[idx + 2], refs[idx + 3]
        o_ref, attn_sc = refs[n_in], refs[n_in + 1]

        y = y_ref[...]                                           # [B*S_tgt, D]
        mem = mem_ref[...]                                       # [B*S_src, D]
        for (swq, sbq, swk, sbk, swv, sbv, swo, sbo, ln1g, ln1b,
             cwq, cbq, cwk, cbk, cwv, cbv, cwo, cbo, ln2g, ln2b,
             w1, b1, w2, b2, ln3g, ln3b) in layers:
            _mha(attn_sc, y, y, B=B, Sq=S_tgt, Sk=S_tgt,
                 wq_ref=swq, bq_ref=sbq, wk_ref=swk, bk_ref=sbk,
                 wv_ref=swv, bv_ref=sbv, wo_ref=swo, bo_ref=sbo)
            y = _layer_norm(y + attn_sc[...], ln1g[...], ln1b[...])
            _mha(attn_sc, y, mem, B=B, Sq=S_tgt, Sk=S_src,
                 wq_ref=cwq, bq_ref=cbq, wk_ref=cwk, bk_ref=cbk,
                 wv_ref=cwv, bv_ref=cbv, wo_ref=cwo, bo_ref=cbo)
            y = _layer_norm(y + attn_sc[...], ln2g[...], ln2b[...])
            ff = _ffn(y, w1[...], b1[...], w2[...], b2[...])
            y = _layer_norm(y + ff, ln3g[...], ln3b[...])
        y = _layer_norm(y, fg[...], fb[...])                     # decoder norm
        # fc_out, lane-padded to a multiple of 128 → unmasked full-lane store.
        o_ref[...] = jnp.dot(y.astype(jnp.bfloat16), fw[...],
                             preferred_element_type=jnp.float32) + fbias[...]

    return kernel


# ---------------------------------------------------------------------------
# Python wrappers (single-invocation pallas_calls; everything fits in VMEM)
# ---------------------------------------------------------------------------

def _flat_attn(a):
    return [a["wq"], a["bq"], a["wk"], a["bk"], a["wv"], a["bv"], a["wo"], a["bo"]]


def encoder_stack(x, pe_bc, layers, final_g, final_b, *, B, S):
    N, D = x.shape
    flat = [x, pe_bc]
    for lp in layers:
        flat += _flat_attn(lp["sa"])
        flat += [lp["ln1_g"], lp["ln1_b"],
                 lp["w1"], lp["b1"], lp["w2"], lp["b2"],
                 lp["ln2_g"], lp["ln2_b"]]
    flat += [final_g, final_b]
    return pl.pallas_call(
        _make_encoder_stack_kernel(B, S, len(layers)),
        out_shape=jax.ShapeDtypeStruct((N, D), jnp.float32),
        scratch_shapes=[pltpu.VMEM((N, D), jnp.float32)],
    )(*flat)


def decoder_stack(y, memory, layers, final_g, final_b, fc_w, fc_b,
                  *, B, S_tgt, S_src):
    N, D = y.shape
    C_pad = fc_w.shape[-1]
    flat = [y, memory]
    for lp in layers:
        flat += _flat_attn(lp["sa"])
        flat += [lp["ln1_g"], lp["ln1_b"]]
        flat += _flat_attn(lp["ca"])
        flat += [lp["ln2_g"], lp["ln2_b"],
                 lp["w1"], lp["b1"], lp["w2"], lp["b2"],
                 lp["ln3_g"], lp["ln3_b"]]
    flat += [final_g, final_b, fc_w, fc_b]
    return pl.pallas_call(
        _make_decoder_stack_kernel(B, S_tgt, S_src, len(layers)),
        out_shape=jax.ShapeDtypeStruct((N, C_pad), jnp.float32),
        scratch_shapes=[pltpu.VMEM((N, D), jnp.float32)],
    )(*flat)


# ---------------------------------------------------------------------------
# Forward pass (glue in plain JAX, all hot-path compute in the 2 fused kernels)
# ---------------------------------------------------------------------------

def transformer_model_forward(kp, src_tokens, trg, *, channels):
    B, S_src = src_tokens.shape
    S_tgt = trg.shape[1]
    D = kp["embedding"].shape[-1]

    # Embedding lookup is a gather -> plain JAX glue.
    emb = kp["embedding"][src_tokens]                      # [B, S_src, D]
    # Reference quirk: with batch-first x, pe[:x.size(0)] == pe[:B] broadcast
    # over the sequence dim.  Tiny [B*S, D] slab, added inside the kernel.
    pe_bc = jnp.broadcast_to(kp["pe"][:B][:, None, :],
                             (B, S_src, D)).reshape(B * S_src, D)

    # Encoder: PE add + all layers + final LayerNorm in ONE pallas_call.
    x = emb.reshape(B * S_src, D)
    memory = encoder_stack(x, pe_bc, kp["enc_layers"],
                           kp["enc_norm_g"], kp["enc_norm_b"], B=B, S=S_src)

    # Decoder: all layers + final LayerNorm + fc_out in ONE pallas_call.
    y = trg.astype(jnp.float32).reshape(B * S_tgt, D)
    out_pad = decoder_stack(y, memory, kp["dec_layers"],
                            kp["dec_norm_g"], kp["dec_norm_b"],
                            kp["fc_w"], kp["fc_b"],
                            B=B, S_tgt=S_tgt, S_src=S_src)
    return out_pad.reshape(B, S_tgt, -1)[:, :, :channels]


# ---------------------------------------------------------------------------
# Parameter initialization (PyTorch layout) + one-time kernel-layout prep
# ---------------------------------------------------------------------------

def init_torch_params(key, ntoken, d_model, d_ff, nlayers, channels, max_len=64):
    """Deterministic params in PyTorch ([out, in]) layout, shapes as in __init__."""
    keys = iter(jax.random.split(key, 256))

    def w(shape, scale=0.05):
        return jax.random.normal(next(keys), shape, jnp.float32) * scale

    def attn_params():
        return dict(in_proj_w=w((3 * d_model, d_model)),
                    in_proj_b=jnp.zeros((3 * d_model,), jnp.float32),
                    out_w=w((d_model, d_model)),
                    out_b=jnp.zeros((d_model,), jnp.float32))

    def enc_layer_params():
        return dict(self_attn=attn_params(),
                    ff_w1=w((d_ff, d_model)), ff_b1=jnp.zeros((d_ff,), jnp.float32),
                    ff_w2=w((d_model, d_ff)), ff_b2=jnp.zeros((d_model,), jnp.float32),
                    ln1_g=jnp.ones((d_model,), jnp.float32), ln1_b=jnp.zeros((d_model,), jnp.float32),
                    ln2_g=jnp.ones((d_model,), jnp.float32), ln2_b=jnp.zeros((d_model,), jnp.float32))

    def dec_layer_params():
        p = enc_layer_params()
        p["cross_attn"] = attn_params()
        p["ln3_g"] = jnp.ones((d_model,), jnp.float32)
        p["ln3_b"] = jnp.zeros((d_model,), jnp.float32)
        return p

    # PositionalEncoding buffer (interleaved sin/cos).
    position = jnp.arange(max_len, dtype=jnp.float32)[:, None]
    div_term = jnp.exp(jnp.arange(0, d_model, 2, dtype=jnp.float32)
                       * (-math.log(10000.0) / d_model))
    pe = jnp.zeros((max_len, d_model), jnp.float32)
    pe = pe.at[:, 0::2].set(jnp.sin(position * div_term))
    pe = pe.at[:, 1::2].set(jnp.cos(position * div_term))

    return dict(
        embedding=w((ntoken, d_model), 0.1),
        pe=pe,
        enc_layers=[enc_layer_params() for _ in range(nlayers)],
        dec_layers=[dec_layer_params() for _ in range(nlayers)],
        enc_norm_g=jnp.ones((d_model,), jnp.float32),
        enc_norm_b=jnp.zeros((d_model,), jnp.float32),
        dec_norm_g=jnp.ones((d_model,), jnp.float32),
        dec_norm_b=jnp.zeros((d_model,), jnp.float32),
        fc_w=w((channels, d_model)),
        fc_b=jnp.zeros((channels,), jnp.float32),
    )


def prepare_params(tp, nhead):
    """One-time conversion to kernel-ready layout:
       * matmul weights pre-transposed to [in, out], per-head stacked, bf16;
       * 1/sqrt(dh) folded into the q projection weight + bias;
       * biases / LayerNorm params kept f32 as [1, N] (or [H, 1, dh]);
       * fc_out weights/bias zero-padded to a multiple of 128 output lanes."""
    d_model = tp["embedding"].shape[-1]
    H = nhead
    dh = d_model // H
    scale = 1.0 / math.sqrt(dh)

    def vec(v):
        return v.reshape(1, -1).astype(jnp.float32)

    def attn(p):
        wq, wk, wv = jnp.split(p["in_proj_w"], 3, axis=0)     # each [D, D] torch layout
        bq, bk, bv = jnp.split(p["in_proj_b"], 3, axis=0)

        def w_heads(wt, s=1.0):
            # torch [D_out, D_in] -> [D_in, D_out] -> [H, D_in, dh]
            return (wt.T.reshape(d_model, H, dh).transpose(1, 0, 2) * s).astype(jnp.bfloat16)

        def b_heads(bt, s=1.0):
            return (bt * s).reshape(H, 1, dh).astype(jnp.float32)

        return dict(
            wq=w_heads(wq, scale), bq=b_heads(bq, scale),
            wk=w_heads(wk), bk=b_heads(bk),
            wv=w_heads(wv), bv=b_heads(bv),
            wo=p["out_w"].T.reshape(H, dh, d_model).astype(jnp.bfloat16),
            bo=vec(p["out_b"]),
        )

    def ffn_p(p):
        return dict(w1=p["ff_w1"].T.astype(jnp.bfloat16), b1=vec(p["ff_b1"]),
                    w2=p["ff_w2"].T.astype(jnp.bfloat16), b2=vec(p["ff_b2"]))

    def enc_layer(p):
        d = dict(sa=attn(p["self_attn"]),
                 ln1_g=vec(p["ln1_g"]), ln1_b=vec(p["ln1_b"]),
                 ln2_g=vec(p["ln2_g"]), ln2_b=vec(p["ln2_b"]))
        d.update(ffn_p(p))
        return d

    def dec_layer(p):
        d = dict(sa=attn(p["self_attn"]), ca=attn(p["cross_attn"]),
                 ln1_g=vec(p["ln1_g"]), ln1_b=vec(p["ln1_b"]),
                 ln2_g=vec(p["ln2_g"]), ln2_b=vec(p["ln2_b"]),
                 ln3_g=vec(p["ln3_g"]), ln3_b=vec(p["ln3_b"]))
        d.update(ffn_p(p))
        return d

    # fc_out: [channels, D] torch -> [D, C_pad] bf16 with zero lane padding.
    C = tp["fc_w"].shape[0]
    C_pad = 128 * pl.cdiv(C, 128)
    fc_w = jnp.pad(tp["fc_w"].T, ((0, 0), (0, C_pad - C))).astype(jnp.bfloat16)
    fc_b = jnp.pad(tp["fc_b"], (0, C_pad - C)).reshape(1, -1).astype(jnp.float32)

    return dict(
        embedding=tp["embedding"].astype(jnp.float32),
        pe=tp["pe"].astype(jnp.float32),
        enc_layers=[enc_layer(p) for p in tp["enc_layers"]],
        dec_layers=[dec_layer(p) for p in tp["dec_layers"]],
        enc_norm_g=vec(tp["enc_norm_g"]), enc_norm_b=vec(tp["enc_norm_b"]),
        dec_norm_g=vec(tp["dec_norm_g"]), dec_norm_b=vec(tp["dec_norm_b"]),
        fc_w=fc_w,
        fc_b=fc_b,
    )


# ---------------------------------------------------------------------------

if __name__ == "__main__":
    ntoken = 50
    d_model = 32          # d_model == d_hid (required by the reference forward)
    d_ff = d_model        # dim_feedforward = d_hid
    nhead = 2
    nlayers = 2
    channels = 16
    B, S_src, S_tgt = 2, 8, 8

    key = jax.random.PRNGKey(0)
    k_param, k_src, k_trg = jax.random.split(key, 3)
    torch_params = init_torch_params(k_param, ntoken, d_model, d_ff, nlayers, channels)
    params = prepare_params(torch_params, nhead)

    src_tokens = jax.random.randint(k_src, (B, S_src), 1, ntoken, dtype=jnp.int32)
    trg = jax.random.normal(k_trg, (B, S_tgt, d_model), jnp.float32)

    fwd = jax.jit(partial(transformer_model_forward, channels=channels))
    out = jax.block_until_ready(fwd(params, src_tokens, trg))

    assert out.shape == (B, S_tgt, channels), out.shape
    assert bool(jnp.all(jnp.isfinite(out)))
    print("KERNEL_OK")
</pallas_src>

<mosaic_0001>
module attributes {stable_mosaic.version = 11 : i64} {
  func.func @kernel(%arg0: memref<16x32xf32, #tpu.memory_space<vmem>>, %arg1: memref<16x32xf32, #tpu.memory_space<vmem>>, %arg2: memref<2x32x16xbf16, #tpu.memory_space<vmem>>, %arg3: memref<2x1x16xf32, #tpu.memory_space<vmem>>, %arg4: memref<2x32x16xbf16, #tpu.memory_space<vmem>>, %arg5: memref<2x1x16xf32, #tpu.memory_space<vmem>>, %arg6: memref<2x32x16xbf16, #tpu.memory_space<vmem>>, %arg7: memref<2x1x16xf32, #tpu.memory_space<vmem>>, %arg8: memref<2x16x32xbf16, #tpu.memory_space<vmem>>, %arg9: memref<1x32xf32, #tpu.memory_space<vmem>>, %arg10: memref<1x32xf32, #tpu.memory_space<vmem>>, %arg11: memref<1x32xf32, #tpu.memory_space<vmem>>, %arg12: memref<32x32xbf16, #tpu.memory_space<vmem>>, %arg13: memref<1x32xf32, #tpu.memory_space<vmem>>, %arg14: memref<32x32xbf16, #tpu.memory_space<vmem>>, %arg15: memref<1x32xf32, #tpu.memory_space<vmem>>, %arg16: memref<1x32xf32, #tpu.memory_space<vmem>>, %arg17: memref<1x32xf32, #tpu.memory_space<vmem>>, %arg18: memref<2x32x16xbf16, #tpu.memory_space<vmem>>, %arg19: memref<2x1x16xf32, #tpu.memory_space<vmem>>, %arg20: memref<2x32x16xbf16, #tpu.memory_space<vmem>>, %arg21: memref<2x1x16xf32, #tpu.memory_space<vmem>>, %arg22: memref<2x32x16xbf16, #tpu.memory_space<vmem>>, %arg23: memref<2x1x16xf32, #tpu.memory_space<vmem>>, %arg24: memref<2x16x32xbf16, #tpu.memory_space<vmem>>, %arg25: memref<1x32xf32, #tpu.memory_space<vmem>>, %arg26: memref<1x32xf32, #tpu.memory_space<vmem>>, %arg27: memref<1x32xf32, #tpu.memory_space<vmem>>, %arg28: memref<32x32xbf16, #tpu.memory_space<vmem>>, %arg29: memref<1x32xf32, #tpu.memory_space<vmem>>, %arg30: memref<32x32xbf16, #tpu.memory_space<vmem>>, %arg31: memref<1x32xf32, #tpu.memory_space<vmem>>, %arg32: memref<1x32xf32, #tpu.memory_space<vmem>>, %arg33: memref<1x32xf32, #tpu.memory_space<vmem>>, %arg34: memref<1x32xf32, #tpu.memory_space<vmem>>, %arg35: memref<1x32xf32, #tpu.memory_space<vmem>>, %arg36: memref<16x32xf32, #tpu.memory_space<vmem>>, %arg37: memref<16x32xf32, #tpu.memory_space<vmem>>) attributes {dimension_semantics = [], scalar_prefetch = 0 : i64, scratch_operands = 1 : i64, tpu.core_type = #tpu.core_type<tc>} {
    %c0 = arith.constant 0 : index
    %c0_0 = arith.constant 0 : index
    %0 = vector.load %arg0[%c0, %c0_0] : memref<16x32xf32, #tpu.memory_space<vmem>>, vector<16x32xf32>
    %c0_1 = arith.constant 0 : index
    %c0_2 = arith.constant 0 : index
    %1 = vector.load %arg1[%c0_1, %c0_2] : memref<16x32xf32, #tpu.memory_space<vmem>>, vector<16x32xf32>
    %2 = arith.addf %0, %1 : vector<16x32xf32>
    %3 = arith.truncf %2 : vector<16x32xf32> to vector<16x32xbf16>
    %4 = arith.truncf %2 : vector<16x32xf32> to vector<16x32xbf16>
    %cst = arith.constant 0.000000e+00 : f32
    %5 = vector.broadcast %cst : f32 to vector<8x32xf32>
    %cst_3 = arith.constant 0.000000e+00 : f32
    %6 = vector.broadcast %cst_3 : f32 to vector<8x32xf32>
    %c0_4 = arith.constant 0 : index
    %c0_5 = arith.constant 0 : index
    %c0_6 = arith.constant 0 : index
    %7 = vector.load %arg2[%c0_4, %c0_5, %c0_6] : memref<2x32x16xbf16, #tpu.memory_space<vmem>>, vector<1x32x16xbf16>
    %8 = vector.shape_cast %7 : vector<1x32x16xbf16> to vector<32x16xbf16>
    %cst_7 = arith.constant dense<0.000000e+00> : vector<16x16xf32>
    %9 = tpu.matmul %3, %8, %cst_7 {dimension_numbers = #tpu.dot_dimension_numbers<[1], [0], [0], [1], [0, 0, 1, 1], [], []>} : vector<16x32xbf16>, vector<32x16xbf16>, vector<16x16xf32> -> vector<16x16xf32>
    %c0_8 = arith.constant 0 : index
    %c0_9 = arith.constant 0 : index
    %c0_10 = arith.constant 0 : index
    %10 = vector.load %arg3[%c0_8, %c0_9, %c0_10] : memref<2x1x16xf32, #tpu.memory_space<vmem>>, vector<1x1x16xf32>
    %11 = vector.shape_cast %10 : vector<1x1x16xf32> to vector<1x16xf32>
    %12 = vector.broadcast %11 : vector<1x16xf32> to vector<16x16xf32>
    %13 = arith.addf %9, %12 : vector<16x16xf32>
    %c0_11 = arith.constant 0 : index
    %c0_12 = arith.constant 0 : index
    %c0_13 = arith.constant 0 : index
    %14 = vector.load %arg4[%c0_11, %c0_12, %c0_13] : memref<2x32x16xbf16, #tpu.memory_space<vmem>>, vector<1x32x16xbf16>
    %15 = vector.shape_cast %14 : vector<1x32x16xbf16> to vector<32x16xbf16>
    %cst_14 = arith.constant dense<0.000000e+00> : vector<16x16xf32>
    %16 = tpu.matmul %4, %15, %cst_14 {dimension_numbers = #tpu.dot_dimension_numbers<[1], [0], [0], [1], [0, 0, 1, 1], [], []>} : vector<16x32xbf16>, vector<32x16xbf16>, vector<16x16xf32> -> vector<16x16xf32>
    %c0_15 = arith.constant 0 : index
    %c0_16 = arith.constant 0 : index
    %c0_17 = arith.constant 0 : index
    %17 = vector.load %arg5[%c0_15, %c0_16, %c0_17] : memref<2x1x16xf32, #tpu.memory_space<vmem>>, vector<1x1x16xf32>
    %18 = vector.shape_cast %17 : vector<1x1x16xf32> to vector<1x16xf32>
    %19 = vector.broadcast %18 : vector<1x16xf32> to vector<16x16xf32>
    %20 = arith.addf %16, %19 : vector<16x16xf32>
    %c0_18 = arith.constant 0 : index
    %c0_19 = arith.constant 0 : index
    %c0_20 = arith.constant 0 : index
    %21 = vector.load %arg6[%c0_18, %c0_19, %c0_20] : memref<2x32x16xbf16, #tpu.memory_space<vmem>>, vector<1x32x16xbf16>
    %22 = vector.shape_cast %21 : vector<1x32x16xbf16> to vector<32x16xbf16>
    %cst_21 = arith.constant dense<0.000000e+00> : vector<16x16xf32>
    %23 = tpu.matmul %4, %22, %cst_21 {dimension_numbers = #tpu.dot_dimension_numbers<[1], [0], [0], [1], [0, 0, 1, 1], [], []>} : vector<16x32xbf16>, vector<32x16xbf16>, vector<16x16xf32> -> vector<16x16xf32>
    %c0_22 = arith.constant 0 : index
    %c0_23 = arith.constant 0 : index
    %c0_24 = arith.constant 0 : index
    %24 = vector.load %arg7[%c0_22, %c0_23, %c0_24] : memref<2x1x16xf32, #tpu.memory_space<vmem>>, vector<1x1x16xf32>
    %25 = vector.shape_cast %24 : vector<1x1x16xf32> to vector<1x16xf32>
    %26 = vector.broadcast %25 : vector<1x16xf32> to vector<16x16xf32>
    %27 = arith.addf %23, %26 : vector<16x16xf32>
    %c0_25 = arith.constant 0 : index
    %c0_26 = arith.constant 0 : index
    %c0_27 = arith.constant 0 : index
    %28 = vector.load %arg8[%c0_25, %c0_26, %c0_27] : memref<2x16x32xbf16, #tpu.memory_space<vmem>>, vector<1x16x32xbf16>
    %29 = vector.shape_cast %28 : vector<1x16x32xbf16> to vector<16x32xbf16>
    %30 = vector.extract_strided_slice %13 {offsets = [0, 0], sizes = [8, 16], strides = [1, 1]} : vector<16x16xf32> to vector<8x16xf32>
    %31 = arith.truncf %30 : vector<8x16xf32> to vector<8x16xbf16>
    %32 = vector.extract_strided_slice %20 {offsets = [0, 0], sizes = [8, 16], strides = [1, 1]} : vector<16x16xf32> to vector<8x16xf32>
    %33 = arith.truncf %32 : vector<8x16xf32> to vector<8x16xbf16>
    %34 = vector.extract_strided_slice %27 {offsets = [0, 0], sizes = [8, 16], strides = [1, 1]} : vector<16x16xf32> to vector<8x16xf32>
    %35 = arith.truncf %34 : vector<8x16xf32> to vector<8x16xbf16>
    %cst_28 = arith.constant dense<0.000000e+00> : vector<8x8xf32>
    %36 = tpu.matmul %31, %33, %cst_28 {dimension_numbers = #tpu.dot_dimension_numbers<[1], [1], [0], [0], [0, 0, 1, 0], [], []>} : vector<8x16xbf16>, vector<8x16xbf16>, vector<8x8xf32> -> vector<8x8xf32>
    %cst_29 = arith.constant dense<0xFF800000> : vector<8xf32>
    %37 = vector.multi_reduction <maximumf>, %36, %cst_29 [1] : vector<8x8xf32> to vector<8xf32>
    %38 = vector.shape_cast %37 : vector<8xf32> to vector<8x1xf32>
    %39 = vector.broadcast %38 : vector<8x1xf32> to vector<8x8xf32>
    %40 = arith.subf %36, %39 : vector<8x8xf32>
    %41 = math.exp %40 : vector<8x8xf32>
    %cst_30 = arith.constant dense<0.000000e+00> : vector<8xf32>
    %42 = vector.multi_reduction <add>, %41, %cst_30 [1] : vector<8x8xf32> to vector<8xf32>
    %43 = vector.shape_cast %42 : vector<8xf32> to vector<8x1xf32>
    %44 = tpu.reciprocal %43 {approx = true} : vector<8x1xf32> -> vector<8x1xf32>
    %45 = vector.broadcast %44 : vector<8x1xf32> to vector<8x8xf32>
    %46 = arith.mulf %41, %45 : vector<8x8xf32>
    %47 = arith.truncf %46 : vector<8x8xf32> to vector<8x8xbf16>
    %cst_31 = arith.constant dense<0.000000e+00> : vector<8x16xf32>
    %48 = tpu.matmul %47, %35, %cst_31 {dimension_numbers = #tpu.dot_dimension_numbers<[1], [0], [0], [1], [0, 0, 1, 1], [], []>} : vector<8x8xbf16>, vector<8x16xbf16>, vector<8x16xf32> -> vector<8x16xf32>
    %49 = arith.truncf %48 : vector<8x16xf32> to vector<8x16xbf16>
    %cst_32 = arith.constant dense<0.000000e+00> : vector<8x32xf32>
    %50 = tpu.matmul %49, %29, %cst_32 {dimension_numbers = #tpu.dot_dimension_numbers<[1], [0], [0], [1], [0, 0, 1, 1], [], []>} : vector<8x16xbf16>, vector<16x32xbf16>, vector<8x32xf32> -> vector<8x32xf32>
    %51 = arith.addf %5, %50 : vector<8x32xf32>
    %52 = vector.extract_strided_slice %13 {offsets = [8, 0], sizes = [8, 16], strides = [1, 1]} : vector<16x16xf32> to vector<8x16xf32>
    %53 = arith.truncf %52 : vector<8x16xf32> to vector<8x16xbf16>
    %54 = vector.extract_strided_slice %20 {offsets = [8, 0], sizes = [8, 16], strides = [1, 1]} : vector<16x16xf32> to vector<8x16xf32>
    %55 = arith.truncf %54 : vector<8x16xf32> to vector<8x16xbf16>
    %56 = vector.extract_strided_slice %27 {offsets = [8, 0], sizes = [8, 16], strides = [1, 1]} : vector<16x16xf32> to vector<8x16xf32>
    %57 = arith.truncf %56 : vector<8x16xf32> to vector<8x16xbf16>
    %cst_33 = arith.constant dense<0.000000e+00> : vector<8x8xf32>
    %58 = tpu.matmul %53, %55, %cst_33 {dimension_numbers = #tpu.dot_dimension_numbers<[1], [1], [0], [0], [0, 0, 1, 0], [], []>} : vector<8x16xbf16>, vector<8x16xbf16>, vector<8x8xf32> -> vector<8x8xf32>
    %cst_34 = arith.constant dense<0xFF800000> : vector<8xf32>
    %59 = vector.multi_reduction <maximumf>, %58, %cst_34 [1] : vector<8x8xf32> to vector<8xf32>
    %60 = vector.shape_cast %59 : vector<8xf32> to vector<8x1xf32>
    %61 = vector.broadcast %60 : vector<8x1xf32> to vector<8x8xf32>
    %62 = arith.subf %58, %61 : vector<8x8xf32>
    %63 = math.exp %62 : vector<8x8xf32>
    %cst_35 = arith.constant dense<0.000000e+00> : vector<8xf32>
    %64 = vector.multi_reduction <add>, %63, %cst_35 [1] : vector<8x8xf32> to vector<8xf32>
    %65 = vector.shape_cast %64 : vector<8xf32> to vector<8x1xf32>
    %66 = tpu.reciprocal %65 {approx = true} : vector<8x1xf32> -> vector<8x1xf32>
    %67 = vector.broadcast %66 : vector<8x1xf32> to vector<8x8xf32>
    %68 = arith.mulf %63, %67 : vector<8x8xf32>
    %69 = arith.truncf %68 : vector<8x8xf32> to vector<8x8xbf16>
    %cst_36 = arith.constant dense<0.000000e+00> : vector<8x16xf32>
    %70 = tpu.matmul %69, %57, %cst_36 {dimension_numbers = #tpu.dot_dimension_numbers<[1], [0], [0], [1], [0, 0, 1, 1], [], []>} : vector<8x8xbf16>, vector<8x16xbf16>, vector<8x16xf32> -> vector<8x16xf32>
    %71 = arith.truncf %70 : vector<8x16xf32> to vector<8x16xbf16>
    %cst_37 = arith.constant dense<0.000000e+00> : vector<8x32xf32>
    %72 = tpu.matmul %71, %29, %cst_37 {dimension_numbers = #tpu.dot_dimension_numbers<[1], [0], [0], [1], [0, 0, 1, 1], [], []>} : vector<8x16xbf16>, vector<16x32xbf16>, vector<8x32xf32> -> vector<8x32xf32>
    %73 = arith.addf %6, %72 : vector<8x32xf32>
    %c1 = arith.constant 1 : index
    %c0_38 = arith.constant 0 : index
    %c0_39 = arith.constant 0 : index
    %74 = vector.load %arg2[%c1, %c0_38, %c0_39] : memref<2x32x16xbf16, #tpu.memory_space<vmem>>, vector<1x32x16xbf16>
    %75 = vector.shape_cast %74 : vector<1x32x16xbf16> to vector<32x16xbf16>
    %cst_40 = arith.constant dense<0.000000e+00> : vector<16x16xf32>
    %76 = tpu.matmul %3, %75, %cst_40 {dimension_numbers = #tpu.dot_dimension_numbers<[1], [0], [0], [1], [0, 0, 1, 1], [], []>} : vector<16x32xbf16>, vector<32x16xbf16>, vector<16x16xf32> -> vector<16x16xf32>
    %c1_41 = arith.constant 1 : index
    %c0_42 = arith.constant 0 : index
    %c0_43 = arith.constant 0 : index
    %77 = vector.load %arg3[%c1_41, %c0_42, %c0_43] : memref<2x1x16xf32, #tpu.memory_space<vmem>>, vector<1x1x16xf32>
    %78 = vector.shape_cast %77 : vector<1x1x16xf32> to vector<1x16xf32>
    %79 = vector.broadcast %78 : vector<1x16xf32> to vector<16x16xf32>
    %80 = arith.addf %76, %79 : vector<16x16xf32>
    %c1_44 = arith.constant 1 : index
    %c0_45 = arith.constant 0 : index
    %c0_46 = arith.constant 0 : index
    %81 = vector.load %arg4[%c1_44, %c0_45, %c0_46] : memref<2x32x16xbf16, #tpu.memory_space<vmem>>, vector<1x32x16xbf16>
    %82 = vector.shape_cast %81 : vector<1x32x16xbf16> to vector<32x16xbf16>
    %cst_47 = arith.constant dense<0.000000e+00> : vector<16x16xf32>
    %83 = tpu.matmul %4, %82, %cst_47 {dimension_numbers = #tpu.dot_dimension_numbers<[1], [0], [0], [1], [0, 0, 1, 1], [], []>} : vector<16x32xbf16>, vector<32x16xbf16>, vector<16x16xf32> -> vector<16x16xf32>
    %c1_48 = arith.constant 1 : index
    %c0_49 = arith.constant 0 : index
    %c0_50 = arith.constant 0 : index
    %84 = vector.load %arg5[%c1_48, %c0_49, %c0_50] : memref<2x1x16xf32, #tpu.memory_space<vmem>>, vector<1x1x16xf32>
    %85 = vector.shape_cast %84 : vector<1x1x16xf32> to vector<1x16xf32>
    %86 = vector.broadcast %85 : vector<1x16xf32> to vector<16x16xf32>
    %87 = arith.addf %83, %86 : vector<16x16xf32>
    %c1_51 = arith.constant 1 : index
    %c0_52 = arith.constant 0 : index
    %c0_53 = arith.constant 0 : index
    %88 = vector.load %arg6[%c1_51, %c0_52, %c0_53] : memref<2x32x16xbf16, #tpu.memory_space<vmem>>, vector<1x32x16xbf16>
    %89 = vector.shape_cast %88 : vector<1x32x16xbf16> to vector<32x16xbf16>
    %cst_54 = arith.constant dense<0.000000e+00> : vector<16x16xf32>
    %90 = tpu.matmul %4, %89, %cst_54 {dimension_numbers = #tpu.dot_dimension_numbers<[1], [0], [0], [1], [0, 0, 1, 1], [], []>} : vector<16x32xbf16>, vector<32x16xbf16>, vector<16x16xf32> -> vector<16x16xf32>
    %c1_55 = arith.constant 1 : index
    %c0_56 = arith.constant 0 : index
    %c0_57 = arith.constant 0 : index
    %91 = vector.load %arg7[%c1_55, %c0_56, %c0_57] : memref<2x1x16xf32, #tpu.memory_space<vmem>>, vector<1x1x16xf32>
    %92 = vector.shape_cast %91 : vector<1x1x16xf32> to vector<1x16xf32>
    %93 = vector.broadcast %92 : vector<1x16xf32> to vector<16x16xf32>
    %94 = arith.addf %90, %93 : vector<16x16xf32>
    %c1_58 = arith.constant 1 : index
    %c0_59 = arith.constant 0 : index
    %c0_60 = arith.constant 0 : index
    %95 = vector.load %arg8[%c1_58, %c0_59, %c0_60] : memref<2x16x32xbf16, #tpu.memory_space<vmem>>, vector<1x16x32xbf16>
    %96 = vector.shape_cast %95 : vector<1x16x32xbf16> to vector<16x32xbf16>
    %97 = vector.extract_strided_slice %80 {offsets = [0, 0], sizes = [8, 16], strides = [1, 1]} : vector<16x16xf32> to vector<8x16xf32>
    %98 = arith.truncf %97 : vector<8x16xf32> to vector<8x16xbf16>
    %99 = vector.extract_strided_slice %87 {offsets = [0, 0], sizes = [8, 16], strides = [1, 1]} : vector<16x16xf32> to vector<8x16xf32>
    %100 = arith.truncf %99 : vector<8x16xf32> to vector<8x16xbf16>
    %101 = vector.extract_strided_slice %94 {offsets = [0, 0], sizes = [8, 16], strides = [1, 1]} : vector<16x16xf32> to vector<8x16xf32>
    %102 = arith.truncf %101 : vector<8x16xf32> to vector<8x16xbf16>
    %cst_61 = arith.constant dense<0.000000e+00> : vector<8x8xf32>
    %103 = tpu.matmul %98, %100, %cst_61 {dimension_numbers = #tpu.dot_dimension_numbers<[1], [1], [0], [0], [0, 0, 1, 0], [], []>} : vector<8x16xbf16>, vector<8x16xbf16>, vector<8x8xf32> -> vector<8x8xf32>
    %cst_62 = arith.constant dense<0xFF800000> : vector<8xf32>
    %104 = vector.multi_reduction <maximumf>, %103, %cst_62 [1] : vector<8x8xf32> to vector<8xf32>
    %105 = vector.shape_cast %104 : vector<8xf32> to vector<8x1xf32>
    %106 = vector.broadcast %105 : vector<8x1xf32> to vector<8x8xf32>
    %107 = arith.subf %103, %106 : vector<8x8xf32>
    %108 = math.exp %107 : vector<8x8xf32>
    %cst_63 = arith.constant dense<0.000000e+00> : vector<8xf32>
    %109 = vector.multi_reduction <add>, %108, %cst_63 [1] : vector<8x8xf32> to vector<8xf32>
    %110 = vector.shape_cast %109 : vector<8xf32> to vector<8x1xf32>
    %111 = tpu.reciprocal %110 {approx = true} : vector<8x1xf32> -> vector<8x1xf32>
    %112 = vector.broadcast %111 : vector<8x1xf32> to vector<8x8xf32>
    %113 = arith.mulf %108, %112 : vector<8x8xf32>
    %114 = arith.truncf %113 : vector<8x8xf32> to vector<8x8xbf16>
    %cst_64 = arith.constant dense<0.000000e+00> : vector<8x16xf32>
    %115 = tpu.matmul %114, %102, %cst_64 {dimension_numbers = #tpu.dot_dimension_numbers<[1], [0], [0], [1], [0, 0, 1, 1], [], []>} : vector<8x8xbf16>, vector<8x16xbf16>, vector<8x16xf32> -> vector<8x16xf32>
    %116 = arith.truncf %115 : vector<8x16xf32> to vector<8x16xbf16>
    %cst_65 = arith.constant dense<0.000000e+00> : vector<8x32xf32>
    %117 = tpu.matmul %116, %96, %cst_65 {dimension_numbers = #tpu.dot_dimension_numbers<[1], [0], [0], [1], [0, 0, 1, 1], [], []>} : vector<8x16xbf16>, vector<16x32xbf16>, vector<8x32xf32> -> vector<8x32xf32>
    %118 = arith.addf %51, %117 : vector<8x32xf32>
    %119 = vector.extract_strided_slice %80 {offsets = [8, 0], sizes = [8, 16], strides = [1, 1]} : vector<16x16xf32> to vector<8x16xf32>
    %120 = arith.truncf %119 : vector<8x16xf32> to vector<8x16xbf16>
    %121 = vector.extract_strided_slice %87 {offsets = [8, 0], sizes = [8, 16], strides = [1, 1]} : vector<16x16xf32> to vector<8x16xf32>
    %122 = arith.truncf %121 : vector<8x16xf32> to vector<8x16xbf16>
    %123 = vector.extract_strided_slice %94 {offsets = [8, 0], sizes = [8, 16], strides = [1, 1]} : vector<16x16xf32> to vector<8x16xf32>
    %124 = arith.truncf %123 : vector<8x16xf32> to vector<8x16xbf16>
    %cst_66 = arith.constant dense<0.000000e+00> : vector<8x8xf32>
    %125 = tpu.matmul %120, %122, %cst_66 {dimension_numbers = #tpu.dot_dimension_numbers<[1], [1], [0], [0], [0, 0, 1, 0], [], []>} : vector<8x16xbf16>, vector<8x16xbf16>, vector<8x8xf32> -> vector<8x8xf32>
    %cst_67 = arith.constant dense<0xFF800000> : vector<8xf32>
    %126 = vector.multi_reduction <maximumf>, %125, %cst_67 [1] : vector<8x8xf32> to vector<8xf32>
    %127 = vector.shape_cast %126 : vector<8xf32> to vector<8x1xf32>
    %128 = vector.broadcast %127 : vector<8x1xf32> to vector<8x8xf32>
    %129 = arith.subf %125, %128 : vector<8x8xf32>
    %130 = math.exp %129 : vector<8x8xf32>
    %cst_68 = arith.constant dense<0.000000e+00> : vector<8xf32>
    %131 = vector.multi_reduction <add>, %130, %cst_68 [1] : vector<8x8xf32> to vector<8xf32>
    %132 = vector.shape_cast %131 : vector<8xf32> to vector<8x1xf32>
    %133 = tpu.reciprocal %132 {approx = true} : vector<8x1xf32> -> vector<8x1xf32>
    %134 = vector.broadcast %133 : vector<8x1xf32> to vector<8x8xf32>
    %135 = arith.mulf %130, %134 : vector<8x8xf32>
    %136 = arith.truncf %135 : vector<8x8xf32> to vector<8x8xbf16>
    %cst_69 = arith.constant dense<0.000000e+00> : vector<8x16xf32>
    %137 = tpu.matmul %136, %124, %cst_69 {dimension_numbers = #tpu.dot_dimension_numbers<[1], [0], [0], [1], [0, 0, 1, 1], [], []>} : vector<8x8xbf16>, vector<8x16xbf16>, vector<8x16xf32> -> vector<8x16xf32>
    %138 = arith.truncf %137 : vector<8x16xf32> to vector<8x16xbf16>
    %cst_70 = arith.constant dense<0.000000e+00> : vector<8x32xf32>
    %139 = tpu.matmul %138, %96, %cst_70 {dimension_numbers = #tpu.dot_dimension_numbers<[1], [0], [0], [1], [0, 0, 1, 1], [], []>} : vector<8x16xbf16>, vector<16x32xbf16>, vector<8x32xf32> -> vector<8x32xf32>
    %140 = arith.addf %73, %139 : vector<8x32xf32>
    %c0_71 = arith.constant 0 : index
    %c0_72 = arith.constant 0 : index
    %141 = vector.load %arg9[%c0_71, %c0_72] : memref<1x32xf32, #tpu.memory_space<vmem>>, vector<1x32xf32>
    %142 = vector.broadcast %141 : vector<1x32xf32> to vector<8x32xf32>
    %143 = arith.addf %118, %142 : vector<8x32xf32>
    %c0_73 = arith.constant 0 : index
    %c0_74 = arith.constant 0 : index
    %144 = vector.load %arg37[%c0_73, %c0_74] : memref<16x32xf32, #tpu.memory_space<vmem>>, vector<8x32xf32>
    tpu.vector_store %arg37[%c0_73, %c0_74], %143 {strides = array<i32>} : memref<16x32xf32, #tpu.memory_space<vmem>>, vector<8x32xf32>,
    %145 = vector.broadcast %141 : vector<1x32xf32> to vector<8x32xf32>
    %146 = arith.addf %140, %145 : vector<8x32xf32>
    %c8 = arith.constant 8 : index
    %c0_75 = arith.constant 0 : index
    %147 = vector.load %arg37[%c8, %c0_75] : memref<16x32xf32, #tpu.memory_space<vmem>>, vector<8x32xf32>
    tpu.vector_store %arg37[%c8, %c0_75], %146 {strides = array<i32>} : memref<16x32xf32, #tpu.memory_space<vmem>>, vector<8x32xf32>,
    %c0_76 = arith.constant 0 : index
    %c0_77 = arith.constant 0 : index
    %148 = vector.load %arg37[%c0_76, %c0_77] : memref<16x32xf32, #tpu.memory_space<vmem>>, vector<16x32xf32>
    %149 = arith.addf %2, %148 : vector<16x32xf32>
    %c0_78 = arith.constant 0 : index
    %c0_79 = arith.constant 0 : index
    %150 = vector.load %arg10[%c0_78, %c0_79] : memref<1x32xf32, #tpu.memory_space<vmem>>, vector<1x32xf32>
    %c0_80 = arith.constant 0 : index
    %c0_81 = arith.constant 0 : index
    %151 = vector.load %arg11[%c0_80, %c0_81] : memref<1x32xf32, #tpu.memory_space<vmem>>, vector<1x32xf32>
    %cst_82 = arith.constant dense<0.000000e+00> : vector<16xf32>
    %152 = vector.multi_reduction <add>, %149, %cst_82 [1] : vector<16x32xf32> to vector<16xf32>
    %153 = vector.shape_cast %152 : vector<16xf32> to vector<16x1xf32>
    %cst_83 = arith.constant 3.200000e+01 : f32
    %154 = vector.broadcast %cst_83 : f32 to vector<16x1xf32>
    %155 = arith.divf %153, %154 : vector<16x1xf32>
    %156 = vector.broadcast %155 : vector<16x1xf32> to vector<16x32xf32>
    %157 = arith.subf %149, %156 : vector<16x32xf32>
    %158 = arith.mulf %157, %157 : vector<16x32xf32>
    %cst_84 = arith.constant dense<0.000000e+00> : vector<16xf32>
    %159 = vector.multi_reduction <add>, %158, %cst_84 [1] : vector<16x32xf32> to vector<16xf32>
    %160 = vector.shape_cast %159 : vector<16xf32> to vector<16x1xf32>
    %cst_85 = arith.constant 3.200000e+01 : f32
    %161 = vector.broadcast %cst_85 : f32 to vector<16x1xf32>
    %162 = arith.divf %160, %161 : vector<16x1xf32>
    %163 = vector.broadcast %155 : vector<16x1xf32> to vector<16x32xf32>
    %164 = arith.subf %149, %163 : vector<16x32xf32>
    %cst_86 = arith.constant 9.99999974E-6 : f32
    %165 = vector.broadcast %cst_86 : f32 to vector<16x1xf32>
    %166 = arith.addf %162, %165 : vector<16x1xf32>
    %167 = math.rsqrt %166 : vector<16x1xf32>
    %168 = vector.broadcast %167 : vector<16x1xf32> to vector<16x32xf32>
    %169 = arith.mulf %164, %168 : vector<16x32xf32>
    %170 = vector.broadcast %150 : vector<1x32xf32> to vector<16x32xf32>
    %171 = arith.mulf %169, %170 : vector<16x32xf32>
    %172 = vector.broadcast %151 : vector<1x32xf32> to vector<16x32xf32>
    %173 = arith.addf %171, %172 : vector<16x32xf32>
    %c0_87 = arith.constant 0 : index
    %c0_88 = arith.constant 0 : index
    %174 = vector.load %arg12[%c0_87, %c0_88] : memref<32x32xbf16, #tpu.memory_space<vmem>>, vector<32x32xbf16>
    %c0_89 = arith.constant 0 : index
    %c0_90 = arith.constant 0 : index
    %175 = vector.load %arg13[%c0_89, %c0_90] : memref<1x32xf32, #tpu.memory_space<vmem>>, vector<1x32xf32>
    %c0_91 = arith.constant 0 : index
    %c0_92 = arith.constant 0 : index
    %176 = vector.load %arg14[%c0_91, %c0_92] : memref<32x32xbf16, #tpu.memory_space<vmem>>, vector<32x32xbf16>
    %c0_93 = arith.constant 0 : index
    %c0_94 = arith.constant 0 : index
    %177 = vector.load %arg15[%c0_93, %c0_94] : memref<1x32xf32, #tpu.memory_space<vmem>>, vector<1x32xf32>
    %178 = arith.truncf %173 : vector<16x32xf32> to vector<16x32xbf16>
    %cst_95 = arith.constant dense<0.000000e+00> : vector<16x32xf32>
    %179 = tpu.matmul %178, %174, %cst_95 {dimension_numbers = #tpu.dot_dimension_numbers<[1], [0], [0], [1], [0, 0, 1, 1], [], []>} : vector<16x32xbf16>, vector<32x32xbf16>, vector<16x32xf32> -> vector<16x32xf32>
    %180 = vector.broadcast %175 : vector<1x32xf32> to vector<16x32xf32>
    %181 = arith.addf %179, %180 : vector<16x32xf32>
    %cst_96 = arith.constant 0.000000e+00 : f32
    %182 = vector.broadcast %cst_96 : f32 to vector<16x32xf32>
    %183 = arith.maximumf %181, %182 : vector<16x32xf32>
    %184 = arith.truncf %183 : vector<16x32xf32> to vector<16x32xbf16>
    %cst_97 = arith.constant dense<0.000000e+00> : vector<16x32xf32>
    %185 = tpu.matmul %184, %176, %cst_97 {dimension_numbers = #tpu.dot_dimension_numbers<[1], [0], [0], [1], [0, 0, 1, 1], [], []>} : vector<16x32xbf16>, vector<32x32xbf16>, vector<16x32xf32> -> vector<16x32xf32>
    %186 = vector.broadcast %177 : vector<1x32xf32> to vector<16x32xf32>
    %187 = arith.addf %185, %186 : vector<16x32xf32>
    %188 = arith.addf %173, %187 : vector<16x32xf32>
    %c0_98 = arith.constant 0 : index
    %c0_99 = arith.constant 0 : index
    %189 = vector.load %arg16[%c0_98, %c0_99] : memref<1x32xf32, #tpu.memory_space<vmem>>, vector<1x32xf32>
    %c0_100 = arith.constant 0 : index
    %c0_101 = arith.constant 0 : index
    %190 = vector.load %arg17[%c0_100, %c0_101] : memref<1x32xf32, #tpu.memory_space<vmem>>, vector<1x32xf32>
    %cst_102 = arith.constant dense<0.000000e+00> : vector<16xf32>
    %191 = vector.multi_reduction <add>, %188, %cst_102 [1] : vector<16x32xf32> to vector<16xf32>
    %192 = vector.shape_cast %191 : vector<16xf32> to vector<16x1xf32>
    %cst_103 = arith.constant 3.200000e+01 : f32
    %193 = vector.broadcast %cst_103 : f32 to vector<16x1xf32>
    %194 = arith.divf %192, %193 : vector<16x1xf32>
    %195 = vector.broadcast %194 : vector<16x1xf32> to vector<16x32xf32>
    %196 = arith.subf %188, %195 : vector<16x32xf32>
    %197 = arith.mulf %196, %196 : vector<16x32xf32>
    %cst_104 = arith.constant dense<0.000000e+00> : vector<16xf32>
    %198 = vector.multi_reduction <add>, %197, %cst_104 [1] : vector<16x32xf32> to vector<16xf32>
    %199 = vector.shape_cast %198 : vector<16xf32> to vector<16x1xf32>
    %cst_105 = arith.constant 3.200000e+01 : f32
    %200 = vector.broadcast %cst_105 : f32 to vector<16x1xf32>
    %201 = arith.divf %199, %200 : vector<16x1xf32>
    %202 = vector.broadcast %194 : vector<16x1xf32> to vector<16x32xf32>
    %203 = arith.subf %188, %202 : vector<16x32xf32>
    %cst_106 = arith.constant 9.99999974E-6 : f32
    %204 = vector.broadcast %cst_106 : f32 to vector<16x1xf32>
    %205 = arith.addf %201, %204 : vector<16x1xf32>
    %206 = math.rsqrt %205 : vector<16x1xf32>
    %207 = vector.broadcast %206 : vector<16x1xf32> to vector<16x32xf32>
    %208 = arith.mulf %203, %207 : vector<16x32xf32>
    %209 = vector.broadcast %189 : vector<1x32xf32> to vector<16x32xf32>
    %210 = arith.mulf %208, %209 : vector<16x32xf32>
    %211 = vector.broadcast %190 : vector<1x32xf32> to vector<16x32xf32>
    %212 = arith.addf %210, %211 : vector<16x32xf32>
    %213 = arith.truncf %212 : vector<16x32xf32> to vector<16x32xbf16>
    %214 = arith.truncf %212 : vector<16x32xf32> to vector<16x32xbf16>
    %cst_107 = arith.constant 0.000000e+00 : f32
    %215 = vector.broadcast %cst_107 : f32 to vector<8x32xf32>
    %cst_108 = arith.constant 0.000000e+00 : f32
    %216 = vector.broadcast %cst_108 : f32 to vector<8x32xf32>
    %c0_109 = arith.constant 0 : index
    %c0_110 = arith.constant 0 : index
    %c0_111 = arith.constant 0 : index
    %217 = vector.load %arg18[%c0_109, %c0_110, %c0_111] : memref<2x32x16xbf16, #tpu.memory_space<vmem>>, vector<1x32x16xbf16>
    %218 = vector.shape_cast %217 : vector<1x32x16xbf16> to vector<32x16xbf16>
    %cst_112 = arith.constant dense<0.000000e+00> : vector<16x16xf32>
    %219 = tpu.matmul %213, %218, %cst_112 {dimension_numbers = #tpu.dot_dimension_numbers<[1], [0], [0], [1], [0, 0, 1, 1], [], []>} : vector<16x32xbf16>, vector<32x16xbf16>, vector<16x16xf32> -> vector<16x16xf32>
    %c0_113 = arith.constant 0 : index
    %c0_114 = arith.constant 0 : index
    %c0_115 = arith.constant 0 : index
    %220 = vector.load %arg19[%c0_113, %c0_114, %c0_115] : memref<2x1x16xf32, #tpu.memory_space<vmem>>, vector<1x1x16xf32>
    %221 = vector.shape_cast %220 : vector<1x1x16xf32> to vector<1x16xf32>
    %222 = vector.broadcast %221 : vector<1x16xf32> to vector<16x16xf32>
    %223 = arith.addf %219, %222 : vector<16x16xf32>
    %c0_116 = arith.constant 0 : index
    %c0_117 = arith.constant 0 : index
    %c0_118 = arith.constant 0 : index
    %224 = vector.load %arg20[%c0_116, %c0_117, %c0_118] : memref<2x32x16xbf16, #tpu.memory_space<vmem>>, vector<1x32x16xbf16>
    %225 = vector.shape_cast %224 : vector<1x32x16xbf16> to vector<32x16xbf16>
    %cst_119 = arith.constant dense<0.000000e+00> : vector<16x16xf32>
    %226 = tpu.matmul %214, %225, %cst_119 {dimension_numbers = #tpu.dot_dimension_numbers<[1], [0], [0], [1], [0, 0, 1, 1], [], []>} : vector<16x32xbf16>, vector<32x16xbf16>, vector<16x16xf32> -> vector<16x16xf32>
    %c0_120 = arith.constant 0 : index
    %c0_121 = arith.constant 0 : index
    %c0_122 = arith.constant 0 : index
    %227 = vector.load %arg21[%c0_120, %c0_121, %c0_122] : memref<2x1x16xf32, #tpu.memory_space<vmem>>, vector<1x1x16xf32>
    %228 = vector.shape_cast %227 : vector<1x1x16xf32> to vector<1x16xf32>
    %229 = vector.broadcast %228 : vector<1x16xf32> to vector<16x16xf32>
    %230 = arith.addf %226, %229 : vector<16x16xf32>
    %c0_123 = arith.constant 0 : index
    %c0_124 = arith.constant 0 : index
    %c0_125 = arith.constant 0 : index
    %231 = vector.load %arg22[%c0_123, %c0_124, %c0_125] : memref<2x32x16xbf16, #tpu.memory_space<vmem>>, vector<1x32x16xbf16>
    %232 = vector.shape_cast %231 : vector<1x32x16xbf16> to vector<32x16xbf16>
    %cst_126 = arith.constant dense<0.000000e+00> : vector<16x16xf32>
    %233 = tpu.matmul %214, %232, %cst_126 {dimension_numbers = #tpu.dot_dimension_numbers<[1], [0], [0], [1], [0, 0, 1, 1], [], []>} : vector<16x32xbf16>, vector<32x16xbf16>, vector<16x16xf32> -> vector<16x16xf32>
    %c0_127 = arith.constant 0 : index
    %c0_128 = arith.constant 0 : index
    %c0_129 = arith.constant 0 : index
    %234 = vector.load %arg23[%c0_127, %c0_128, %c0_129] : memref<2x1x16xf32, #tpu.memory_space<vmem>>, vector<1x1x16xf32>
    %235 = vector.shape_cast %234 : vector<1x1x16xf32> to vector<1x16xf32>
    %236 = vector.broadcast %235 : vector<1x16xf32> to vector<16x16xf32>
    %237 = arith.addf %233, %236 : vector<16x16xf32>
    %c0_130 = arith.constant 0 : index
    %c0_131 = arith.constant 0 : index
    %c0_132 = arith.constant 0 : index
    %238 = vector.load %arg24[%c0_130, %c0_131, %c0_132] : memref<2x16x32xbf16, #tpu.memory_space<vmem>>, vector<1x16x32xbf16>
    %239 = vector.shape_cast %238 : vector<1x16x32xbf16> to vector<16x32xbf16>
    %240 = vector.extract_strided_slice %223 {offsets = [0, 0], sizes = [8, 16], strides = [1, 1]} : vector<16x16xf32> to vector<8x16xf32>
    %241 = arith.truncf %240 : vector<8x16xf32> to vector<8x16xbf16>
    %242 = vector.extract_strided_slice %230 {offsets = [0, 0], sizes = [8, 16], strides = [1, 1]} : vector<16x16xf32> to vector<8x16xf32>
    %243 = arith.truncf %242 : vector<8x16xf32> to vector<8x16xbf16>
    %244 = vector.extract_strided_slice %237 {offsets = [0, 0], sizes = [8, 16], strides = [1, 1]} : vector<16x16xf32> to vector<8x16xf32>
    %245 = arith.truncf %244 : vector<8x16xf32> to vector<8x16xbf16>
    %cst_133 = arith.constant dense<0.000000e+00> : vector<8x8xf32>
    %246 = tpu.matmul %241, %243, %cst_133 {dimension_numbers = #tpu.dot_dimension_numbers<[1], [1], [0], [0], [0, 0, 1, 0], [], []>} : vector<8x16xbf16>, vector<8x16xbf16>, vector<8x8xf32> -> vector<8x8xf32>
    %cst_134 = arith.constant dense<0xFF800000> : vector<8xf32>
    %247 = vector.multi_reduction <maximumf>, %246, %cst_134 [1] : vector<8x8xf32> to vector<8xf32>
    %248 = vector.shape_cast %247 : vector<8xf32> to vector<8x1xf32>
    %249 = vector.broadcast %248 : vector<8x1xf32> to vector<8x8xf32>
    %250 = arith.subf %246, %249 : vector<8x8xf32>
    %251 = math.exp %250 : vector<8x8xf32>
    %cst_135 = arith.constant dense<0.000000e+00> : vector<8xf32>
    %252 = vector.multi_reduction <add>, %251, %cst_135 [1] : vector<8x8xf32> to vector<8xf32>
    %253 = vector.shape_cast %252 : vector<8xf32> to vector<8x1xf32>
    %254 = tpu.reciprocal %253 {approx = true} : vector<8x1xf32> -> vector<8x1xf32>
    %255 = vector.broadcast %254 : vector<8x1xf32> to vector<8x8xf32>
    %256 = arith.mulf %251, %255 : vector<8x8xf32>
    %257 = arith.truncf %256 : vector<8x8xf32> to vector<8x8xbf16>
    %cst_136 = arith.constant dense<0.000000e+00> : vector<8x16xf32>
    %258 = tpu.matmul %257, %245, %cst_136 {dimension_numbers = #tpu.dot_dimension_numbers<[1], [0], [0], [1], [0, 0, 1, 1], [], []>} : vector<8x8xbf16>, vector<8x16xbf16>, vector<8x16xf32> -> vector<8x16xf32>
    %259 = arith.truncf %258 : vector<8x16xf32> to vector<8x16xbf16>
    %cst_137 = arith.constant dense<0.000000e+00> : vector<8x32xf32>
    %260 = tpu.matmul %259, %239, %cst_137 {dimension_numbers = #tpu.dot_dimension_numbers<[1], [0], [0], [1], [0, 0, 1, 1], [], []>} : vector<8x16xbf16>, vector<16x32xbf16>, vector<8x32xf32> -> vector<8x32xf32>
    %261 = arith.addf %215, %260 : vector<8x32xf32>
    %262 = vector.extract_strided_slice %223 {offsets = [8, 0], sizes = [8, 16], strides = [1, 1]} : vector<16x16xf32> to vector<8x16xf32>
    %263 = arith.truncf %262 : vector<8x16xf32> to vector<8x16xbf16>
    %264 = vector.extract_strided_slice %230 {offsets = [8, 0], sizes = [8, 16], strides = [1, 1]} : vector<16x16xf32> to vector<8x16xf32>
    %265 = arith.truncf %264 : vector<8x16xf32> to vector<8x16xbf16>
    %266 = vector.extract_strided_slice %237 {offsets = [8, 0], sizes = [8, 16], strides = [1, 1]} : vector<16x16xf32> to vector<8x16xf32>
    %267 = arith.truncf %266 : vector<8x16xf32> to vector<8x16xbf16>
    %cst_138 = arith.constant dense<0.000000e+00> : vector<8x8xf32>
    %268 = tpu.matmul %263, %265, %cst_138 {dimension_numbers = #tpu.dot_dimension_numbers<[1], [1], [0], [0], [0, 0, 1, 0], [], []>} : vector<8x16xbf16>, vector<8x16xbf16>, vector<8x8xf32> -> vector<8x8xf32>
    %cst_139 = arith.constant dense<0xFF800000> : vector<8xf32>
    %269 = vector.multi_reduction <maximumf>, %268, %cst_139 [1] : vector<8x8xf32> to vector<8xf32>
    %270 = vector.shape_cast %269 : vector<8xf32> to vector<8x1xf32>
    %271 = vector.broadcast %270 : vector<8x1xf32> to vector<8x8xf32>
    %272 = arith.subf %268, %271 : vector<8x8xf32>
    %273 = math.exp %272 : vector<8x8xf32>
    %cst_140 = arith.constant dense<0.000000e+00> : vector<8xf32>
    %274 = vector.multi_reduction <add>, %273, %cst_140 [1] : vector<8x8xf32> to vector<8xf32>
    %275 = vector.shape_cast %274 : vector<8xf32> to vector<8x1xf32>
    %276 = tpu.reciprocal %275 {approx = true} : vector<8x1xf32> -> vector<8x1xf32>
    %277 = vector.broadcast %276 : vector<8x1xf32> to vector<8x8xf32>
    %278 = arith.mulf %273, %277 : vector<8x8xf32>
    %279 = arith.truncf %278 : vector<8x8xf32> to vector<8x8xbf16>
    %cst_141 = arith.constant dense<0.000000e+00> : vector<8x16xf32>
    %280 = tpu.matmul %279, %267, %cst_141 {dimension_numbers = #tpu.dot_dimension_numbers<[1], [0], [0], [1], [0, 0, 1, 1], [], []>} : vector<8x8xbf16>, vector<8x16xbf16>, vector<8x16xf32> -> vector<8x16xf32>
    %281 = arith.truncf %280 : vector<8x16xf32> to vector<8x16xbf16>
    %cst_142 = arith.constant dense<0.000000e+00> : vector<8x32xf32>
    %282 = tpu.matmul %281, %239, %cst_142 {dimension_numbers = #tpu.dot_dimension_numbers<[1], [0], [0], [1], [0, 0, 1, 1], [], []>} : vector<8x16xbf16>, vector<16x32xbf16>, vector<8x32xf32> -> vector<8x32xf32>
    %283 = arith.addf %216, %282 : vector<8x32xf32>
    %c1_143 = arith.constant 1 : index
    %c0_144 = arith.constant 0 : index
    %c0_145 = arith.constant 0 : index
    %284 = vector.load %arg18[%c1_143, %c0_144, %c0_145] : memref<2x32x16xbf16, #tpu.memory_space<vmem>>, vector<1x32x16xbf16>
    %285 = vector.shape_cast %284 : vector<1x32x16xbf16> to vector<32x16xbf16>
    %cst_146 = arith.constant dense<0.000000e+00> : vector<16x16xf32>
    %286 = tpu.matmul %213, %285, %cst_146 {dimension_numbers = #tpu.dot_dimension_numbers<[1], [0], [0], [1], [0, 0, 1, 1], [], []>} : vector<16x32xbf16>, vector<32x16xbf16>, vector<16x16xf32> -> vector<16x16xf32>
    %c1_147 = arith.constant 1 : index
    %c0_148 = arith.constant 0 : index
    %c0_149 = arith.constant 0 : index
    %287 = vector.load %arg19[%c1_147, %c0_148, %c0_149] : memref<2x1x16xf32, #tpu.memory_space<vmem>>, vector<1x1x16xf32>
    %288 = vector.shape_cast %287 : vector<1x1x16xf32> to vector<1x16xf32>
    %289 = vector.broadcast %288 : vector<1x16xf32> to vector<16x16xf32>
    %290 = arith.addf %286, %289 : vector<16x16xf32>
    %c1_150 = arith.constant 1 : index
    %c0_151 = arith.constant 0 : index
    %c0_152 = arith.constant 0 : index
    %291 = vector.load %arg20[%c1_150, %c0_151, %c0_152] : memref<2x32x16xbf16, #tpu.memory_space<vmem>>, vector<1x32x16xbf16>
    %292 = vector.shape_cast %291 : vector<1x32x16xbf16> to vector<32x16xbf16>
    %cst_153 = arith.constant dense<0.000000e+00> : vector<16x16xf32>
    %293 = tpu.matmul %214, %292, %cst_153 {dimension_numbers = #tpu.dot_dimension_numbers<[1], [0], [0], [1], [0, 0, 1, 1], [], []>} : vector<16x32xbf16>, vector<32x16xbf16>, vector<16x16xf32> -> vector<16x16xf32>
    %c1_154 = arith.constant 1 : index
    %c0_155 = arith.constant 0 : index
    %c0_156 = arith.constant 0 : index
    %294 = vector.load %arg21[%c1_154, %c0_155, %c0_156] : memref<2x1x16xf32, #tpu.memory_space<vmem>>, vector<1x1x16xf32>
    %295 = vector.shape_cast %294 : vector<1x1x16xf32> to vector<1x16xf32>
    %296 = vector.broadcast %295 : vector<1x16xf32> to vector<16x16xf32>
    %297 = arith.addf %293, %296 : vector<16x16xf32>
    %c1_157 = arith.constant 1 : index
    %c0_158 = arith.constant 0 : index
    %c0_159 = arith.constant 0 : index
    %298 = vector.load %arg22[%c1_157, %c0_158, %c0_159] : memref<2x32x16xbf16, #tpu.memory_space<vmem>>, vector<1x32x16xbf16>
    %299 = vector.shape_cast %298 : vector<1x32x16xbf16> to vector<32x16xbf16>
    %cst_160 = arith.constant dense<0.000000e+00> : vector<16x16xf32>
    %300 = tpu.matmul %214, %299, %cst_160 {dimension_numbers = #tpu.dot_dimension_numbers<[1], [0], [0], [1], [0, 0, 1, 1], [], []>} : vector<16x32xbf16>, vector<32x16xbf16>, vector<16x16xf32> -> vector<16x16xf32>
    %c1_161 = arith.constant 1 : index
    %c0_162 = arith.constant 0 : index
    %c0_163 = arith.constant 0 : index
    %301 = vector.load %arg23[%c1_161, %c0_162, %c0_163] : memref<2x1x16xf32, #tpu.memory_space<vmem>>, vector<1x1x16xf32>
    %302 = vector.shape_cast %301 : vector<1x1x16xf32> to vector<1x16xf32>
    %303 = vector.broadcast %302 : vector<1x16xf32> to vector<16x16xf32>
    %304 = arith.addf %300, %303 : vector<16x16xf32>
    %c1_164 = arith.constant 1 : index
    %c0_165 = arith.constant 0 : index
    %c0_166 = arith.constant 0 : index
    %305 = vector.load %arg24[%c1_164, %c0_165, %c0_166] : memref<2x16x32xbf16, #tpu.memory_space<vmem>>, vector<1x16x32xbf16>
    %306 = vector.shape_cast %305 : vector<1x16x32xbf16> to vector<16x32xbf16>
    %307 = vector.extract_strided_slice %290 {offsets = [0, 0], sizes = [8, 16], strides = [1, 1]} : vector<16x16xf32> to vector<8x16xf32>
    %308 = arith.truncf %307 : vector<8x16xf32> to vector<8x16xbf16>
    %309 = vector.extract_strided_slice %297 {offsets = [0, 0], sizes = [8, 16], strides = [1, 1]} : vector<16x16xf32> to vector<8x16xf32>
    %310 = arith.truncf %309 : vector<8x16xf32> to vector<8x16xbf16>
    %311 = vector.extract_strided_slice %304 {offsets = [0, 0], sizes = [8, 16], strides = [1, 1]} : vector<16x16xf32> to vector<8x16xf32>
    %312 = arith.truncf %311 : vector<8x16xf32> to vector<8x16xbf16>
    %cst_167 = arith.constant dense<0.000000e+00> : vector<8x8xf32>
    %313 = tpu.matmul %308, %310, %cst_167 {dimension_numbers = #tpu.dot_dimension_numbers<[1], [1], [0], [0], [0, 0, 1, 0], [], []>} : vector<8x16xbf16>, vector<8x16xbf16>, vector<8x8xf32> -> vector<8x8xf32>
    %cst_168 = arith.constant dense<0xFF800000> : vector<8xf32>
    %314 = vector.multi_reduction <maximumf>, %313, %cst_168 [1] : vector<8x8xf32> to vector<8xf32>
    %315 = vector.shape_cast %314 : vector<8xf32> to vector<8x1xf32>
    %316 = vector.broadcast %315 : vector<8x1xf32> to vector<8x8xf32>
    %317 = arith.subf %313, %316 : vector<8x8xf32>
    %318 = math.exp %317 : vector<8x8xf32>
    %cst_169 = arith.constant dense<0.000000e+00> : vector<8xf32>
    %319 = vector.multi_reduction <add>, %318, %cst_169 [1] : vector<8x8xf32> to vector<8xf32>
    %320 = vector.shape_cast %319 : vector<8xf32> to vector<8x1xf32>
    %321 = tpu.reciprocal %320 {approx = true} : vector<8x1xf32> -> vector<8x1xf32>
    %322 = vector.broadcast %321 : vector<8x1xf32> to vector<8x8xf32>
    %323 = arith.mulf %318, %322 : vector<8x8xf32>
    %324 = arith.truncf %323 : vector<8x8xf32> to vector<8x8xbf16>
    %cst_170 = arith.constant dense<0.000000e+00> : vector<8x16xf32>
    %325 = tpu.matmul %324, %312, %cst_170 {dimension_numbers = #tpu.dot_dimension_numbers<[1], [0], [0], [1], [0, 0, 1, 1], [], []>} : vector<8x8xbf16>, vector<8x16xbf16>, vector<8x16xf32> -> vector<8x16xf32>
    %326 = arith.truncf %325 : vector<8x16xf32> to vector<8x16xbf16>
    %cst_171 = arith.constant dense<0.000000e+00> : vector<8x32xf32>
    %327 = tpu.matmul %326, %306, %cst_171 {dimension_numbers = #tpu.dot_dimension_numbers<[1], [0], [0], [1], [0, 0, 1, 1], [], []>} : vector<8x16xbf16>, vector<16x32xbf16>, vector<8x32xf32> -> vector<8x32xf32>
    %328 = arith.addf %261, %327 : vector<8x32xf32>
    %329 = vector.extract_strided_slice %290 {offsets = [8, 0], sizes = [8, 16], strides = [1, 1]} : vector<16x16xf32> to vector<8x16xf32>
    %330 = arith.truncf %329 : vector<8x16xf32> to vector<8x16xbf16>
    %331 = vector.extract_strided_slice %297 {offsets = [8, 0], sizes = [8, 16], strides = [1, 1]} : vector<16x16xf32> to vector<8x16xf32>
    %332 = arith.truncf %331 : vector<8x16xf32> to vector<8x16xbf16>
    %333 = vector.extract_strided_slice %304 {offsets = [8, 0], sizes = [8, 16], strides = [1, 1]} : vector<16x16xf32> to vector<8x16xf32>
    %334 = arith.truncf %333 : vector<8x16xf32> to vector<8x16xbf16>
    %cst_172 = arith.constant dense<0.000000e+00> : vector<8x8xf32>
    %335 = tpu.matmul %330, %332, %cst_172 {dimension_numbers = #tpu.dot_dimension_numbers<[1], [1], [0], [0], [0, 0, 1, 0], [], []>} : vector<8x16xbf16>, vector<8x16xbf16>, vector<8x8xf32> -> vector<8x8xf32>
    %cst_173 = arith.constant dense<0xFF800000> : vector<8xf32>
    %336 = vector.multi_reduction <maximumf>, %335, %cst_173 [1] : vector<8x8xf32> to vector<8xf32>
    %337 = vector.shape_cast %336 : vector<8xf32> to vector<8x1xf32>
    %338 = vector.broadcast %337 : vector<8x1xf32> to vector<8x8xf32>
    %339 = arith.subf %335, %338 : vector<8x8xf32>
    %340 = math.exp %339 : vector<8x8xf32>
    %cst_174 = arith.constant dense<0.000000e+00> : vector<8xf32>
    %341 = vector.multi_reduction <add>, %340, %cst_174 [1] : vector<8x8xf32> to vector<8xf32>
    %342 = vector.shape_cast %341 : vector<8xf32> to vector<8x1xf32>
    %343 = tpu.reciprocal %342 {approx = true} : vector<8x1xf32> -> vector<8x1xf32>
    %344 = vector.broadcast %343 : vector<8x1xf32> to vector<8x8xf32>
    %345 = arith.mulf %340, %344 : vector<8x8xf32>
    %346 = arith.truncf %345 : vector<8x8xf32> to vector<8x8xbf16>
    %cst_175 = arith.constant dense<0.000000e+00> : vector<8x16xf32>
    %347 = tpu.matmul %346, %334, %cst_175 {dimension_numbers = #tpu.dot_dimension_numbers<[1], [0], [0], [1], [0, 0, 1, 1], [], []>} : vector<8x8xbf16>, vector<8x16xbf16>, vector<8x16xf32> -> vector<8x16xf32>
    %348 = arith.truncf %347 : vector<8x16xf32> to vector<8x16xbf16>
    %cst_176 = arith.constant dense<0.000000e+00> : vector<8x32xf32>
    %349 = tpu.matmul %348, %306, %cst_176 {dimension_numbers = #tpu.dot_dimension_numbers<[1], [0], [0], [1], [0, 0, 1, 1], [], []>} : vector<8x16xbf16>, vector<16x32xbf16>, vector<8x32xf32> -> vector<8x32xf32>
    %350 = arith.addf %283, %349 : vector<8x32xf32>
    %c0_177 = arith.constant 0 : index
    %c0_178 = arith.constant 0 : index
    %351 = vector.load %arg25[%c0_177, %c0_178] : memref<1x32xf32, #tpu.memory_space<vmem>>, vector<1x32xf32>
    %352 = vector.broadcast %351 : vector<1x32xf32> to vector<8x32xf32>
    %353 = arith.addf %328, %352 : vector<8x32xf32>
    %c0_179 = arith.constant 0 : index
    %c0_180 = arith.constant 0 : index
    %354 = vector.load %arg37[%c0_179, %c0_180] : memref<16x32xf32, #tpu.memory_space<vmem>>, vector<8x32xf32>
    tpu.vector_store %arg37[%c0_179, %c0_180], %353 {strides = array<i32>} : memref<16x32xf32, #tpu.memory_space<vmem>>, vector<8x32xf32>,
    %355 = vector.broadcast %351 : vector<1x32xf32> to vector<8x32xf32>
    %356 = arith.addf %350, %355 : vector<8x32xf32>
    %c8_181 = arith.constant 8 : index
    %c0_182 = arith.constant 0 : index
    %357 = vector.load %arg37[%c8_181, %c0_182] : memref<16x32xf32, #tpu.memory_space<vmem>>, vector<8x32xf32>
    tpu.vector_store %arg37[%c8_181, %c0_182], %356 {strides = array<i32>} : memref<16x32xf32, #tpu.memory_space<vmem>>, vector<8x32xf32>,
    %c0_183 = arith.constant 0 : index
    %c0_184 = arith.constant 0 : index
    %358 = vector.load %arg37[%c0_183, %c0_184] : memref<16x32xf32, #tpu.memory_space<vmem>>, vector<16x32xf32>
    %359 = arith.addf %212, %358 : vector<16x32xf32>
    %c0_185 = arith.constant 0 : index
    %c0_186 = arith.constant 0 : index
    %360 = vector.load %arg26[%c0_185, %c0_186] : memref<1x32xf32, #tpu.memory_space<vmem>>, vector<1x32xf32>
    %c0_187 = arith.constant 0 : index
    %c0_188 = arith.constant 0 : index
    %361 = vector.load %arg27[%c0_187, %c0_188] : memref<1x32xf32, #tpu.memory_space<vmem>>, vector<1x32xf32>
    %cst_189 = arith.constant dense<0.000000e+00> : vector<16xf32>
    %362 = vector.multi_reduction <add>, %359, %cst_189 [1] : vector<16x32xf32> to vector<16xf32>
    %363 = vector.shape_cast %362 : vector<16xf32> to vector<16x1xf32>
    %cst_190 = arith.constant 3.200000e+01 : f32
    %364 = vector.broadcast %cst_190 : f32 to vector<16x1xf32>
    %365 = arith.divf %363, %364 : vector<16x1xf32>
    %366 = vector.broadcast %365 : vector<16x1xf32> to vector<16x32xf32>
    %367 = arith.subf %359, %366 : vector<16x32xf32>
    %368 = arith.mulf %367, %367 : vector<16x32xf32>
    %cst_191 = arith.constant dense<0.000000e+00> : vector<16xf32>
    %369 = vector.multi_reduction <add>, %368, %cst_191 [1] : vector<16x32xf32> to vector<16xf32>
    %370 = vector.shape_cast %369 : vector<16xf32> to vector<16x1xf32>
    %cst_192 = arith.constant 3.200000e+01 : f32
    %371 = vector.broadcast %cst_192 : f32 to vector<16x1xf32>
    %372 = arith.divf %370, %371 : vector<16x1xf32>
    %373 = vector.broadcast %365 : vector<16x1xf32> to vector<16x32xf32>
    %374 = arith.subf %359, %373 : vector<16x32xf32>
    %cst_193 = arith.constant 9.99999974E-6 : f32
    %375 = vector.broadcast %cst_193 : f32 to vector<16x1xf32>
    %376 = arith.addf %372, %375 : vector<16x1xf32>
    %377 = math.rsqrt %376 : vector<16x1xf32>
    %378 = vector.broadcast %377 : vector<16x1xf32> to vector<16x32xf32>
    %379 = arith.mulf %374, %378 : vector<16x32xf32>
    %380 = vector.broadcast %360 : vector<1x32xf32> to vector<16x32xf32>
    %381 = arith.mulf %379, %380 : vector<16x32xf32>
    %382 = vector.broadcast %361 : vector<1x32xf32> to vector<16x32xf32>
    %383 = arith.addf %381, %382 : vector<16x32xf32>
    %c0_194 = arith.constant 0 : index
    %c0_195 = arith.constant 0 : index
    %384 = vector.load %arg28[%c0_194, %c0_195] : memref<32x32xbf16, #tpu.memory_space<vmem>>, vector<32x32xbf16>
    %c0_196 = arith.constant 0 : index
    %c0_197 = arith.constant 0 : index
    %385 = vector.load %arg29[%c0_196, %c0_197] : memref<1x32xf32, #tpu.memory_space<vmem>>, vector<1x32xf32>
    %c0_198 = arith.constant 0 : index
    %c0_199 = arith.constant 0 : index
    %386 = vector.load %arg30[%c0_198, %c0_199] : memref<32x32xbf16, #tpu.memory_space<vmem>>, vector<32x32xbf16>
    %c0_200 = arith.constant 0 : index
    %c0_201 = arith.constant 0 : index
    %387 = vector.load %arg31[%c0_200, %c0_201] : memref<1x32xf32, #tpu.memory_space<vmem>>, vector<1x32xf32>
    %388 = arith.truncf %383 : vector<16x32xf32> to vector<16x32xbf16>
    %cst_202 = arith.constant dense<0.000000e+00> : vector<16x32xf32>
    %389 = tpu.matmul %388, %384, %cst_202 {dimension_numbers = #tpu.dot_dimension_numbers<[1], [0], [0], [1], [0, 0, 1, 1], [], []>} : vector<16x32xbf16>, vector<32x32xbf16>, vector<16x32xf32> -> vector<16x32xf32>
    %390 = vector.broadcast %385 : vector<1x32xf32> to vector<16x32xf32>
    %391 = arith.addf %389, %390 : vector<16x32xf32>
    %cst_203 = arith.constant 0.000000e+00 : f32
    %392 = vector.broadcast %cst_203 : f32 to vector<16x32xf32>
    %393 = arith.maximumf %391, %392 : vector<16x32xf32>
    %394 = arith.truncf %393 : vector<16x32xf32> to vector<16x32xbf16>
    %cst_204 = arith.constant dense<0.000000e+00> : vector<16x32xf32>
    %395 = tpu.matmul %394, %386, %cst_204 {dimension_numbers = #tpu.dot_dimension_numbers<[1], [0], [0], [1], [0, 0, 1, 1], [], []>} : vector<16x32xbf16>, vector<32x32xbf16>, vector<16x32xf32> -> vector<16x32xf32>
    %396 = vector.broadcast %387 : vector<1x32xf32> to vector<16x32xf32>
    %397 = arith.addf %395, %396 : vector<16x32xf32>
    %398 = arith.addf %383, %397 : vector<16x32xf32>
    %c0_205 = arith.constant 0 : index
    %c0_206 = arith.constant 0 : index
    %399 = vector.load %arg32[%c0_205, %c0_206] : memref<1x32xf32, #tpu.memory_space<vmem>>, vector<1x32xf32>
    %c0_207 = arith.constant 0 : index
    %c0_208 = arith.constant 0 : index
    %400 = vector.load %arg33[%c0_207, %c0_208] : memref<1x32xf32, #tpu.memory_space<vmem>>, vector<1x32xf32>
    %cst_209 = arith.constant dense<0.000000e+00> : vector<16xf32>
    %401 = vector.multi_reduction <add>, %398, %cst_209 [1] : vector<16x32xf32> to vector<16xf32>
    %402 = vector.shape_cast %401 : vector<16xf32> to vector<16x1xf32>
    %cst_210 = arith.constant 3.200000e+01 : f32
    %403 = vector.broadcast %cst_210 : f32 to vector<16x1xf32>
    %404 = arith.divf %402, %403 : vector<16x1xf32>
    %405 = vector.broadcast %404 : vector<16x1xf32> to vector<16x32xf32>
    %406 = arith.subf %398, %405 : vector<16x32xf32>
    %407 = arith.mulf %406, %406 : vector<16x32xf32>
    %cst_211 = arith.constant dense<0.000000e+00> : vector<16xf32>
    %408 = vector.multi_reduction <add>, %407, %cst_211 [1] : vector<16x32xf32> to vector<16xf32>
    %409 = vector.shape_cast %408 : vector<16xf32> to vector<16x1xf32>
    %cst_212 = arith.constant 3.200000e+01 : f32
    %410 = vector.broadcast %cst_212 : f32 to vector<16x1xf32>
    %411 = arith.divf %409, %410 : vector<16x1xf32>
    %412 = vector.broadcast %404 : vector<16x1xf32> to vector<16x32xf32>
    %413 = arith.subf %398, %412 : vector<16x32xf32>
    %cst_213 = arith.constant 9.99999974E-6 : f32
    %414 = vector.broadcast %cst_213 : f32 to vector<16x1xf32>
    %415 = arith.addf %411, %414 : vector<16x1xf32>
    %416 = math.rsqrt %415 : vector<16x1xf32>
    %417 = vector.broadcast %416 : vector<16x1xf32> to vector<16x32xf32>
    %418 = arith.mulf %413, %417 : vector<16x32xf32>
    %419 = vector.broadcast %399 : vector<1x32xf32> to vector<16x32xf32>
    %420 = arith.mulf %418, %419 : vector<16x32xf32>
    %421 = vector.broadcast %400 : vector<1x32xf32> to vector<16x32xf32>
    %422 = arith.addf %420, %421 : vector<16x32xf32>
    %c0_214 = arith.constant 0 : index
    %c0_215 = arith.constant 0 : index
    %423 = vector.load %arg34[%c0_214, %c0_215] : memref<1x32xf32, #tpu.memory_space<vmem>>, vector<1x32xf32>
    %c0_216 = arith.constant 0 : index
    %c0_217 = arith.constant 0 : index
    %424 = vector.load %arg35[%c0_216, %c0_217] : memref<1x32xf32, #tpu.memory_space<vmem>>, vector<1x32xf32>
    %cst_218 = arith.constant dense<0.000000e+00> : vector<16xf32>
    %425 = vector.multi_reduction <add>, %422, %cst_218 [1] : vector<16x32xf32> to vector<16xf32>
    %426 = vector.shape_cast %425 : vector<16xf32> to vector<16x1xf32>
    %cst_219 = arith.constant 3.200000e+01 : f32
    %427 = vector.broadcast %cst_219 : f32 to vector<16x1xf32>
    %428 = arith.divf %426, %427 : vector<16x1xf32>
    %429 = vector.broadcast %428 : vector<16x1xf32> to vector<16x32xf32>
    %430 = arith.subf %422, %429 : vector<16x32xf32>
    %431 = arith.mulf %430, %430 : vector<16x32xf32>
    %cst_220 = arith.constant dense<0.000000e+00> : vector<16xf32>
    %432 = vector.multi_reduction <add>, %431, %cst_220 [1] : vector<16x32xf32> to vector<16xf32>
    %433 = vector.shape_cast %432 : vector<16xf32> to vector<16x1xf32>
    %cst_221 = arith.constant 3.200000e+01 : f32
    %434 = vector.broadcast %cst_221 : f32 to vector<16x1xf32>
    %435 = arith.divf %433, %434 : vector<16x1xf32>
    %436 = vector.broadcast %428 : vector<16x1xf32> to vector<16x32xf32>
    %437 = arith.subf %422, %436 : vector<16x32xf32>
    %cst_222 = arith.constant 9.99999974E-6 : f32
    %438 = vector.broadcast %cst_222 : f32 to vector<16x1xf32>
    %439 = arith.addf %435, %438 : vector<16x1xf32>
    %440 = math.rsqrt %439 : vector<16x1xf32>
    %441 = vector.broadcast %440 : vector<16x1xf32> to vector<16x32xf32>
    %442 = arith.mulf %437, %441 : vector<16x32xf32>
    %443 = vector.broadcast %423 : vector<1x32xf32> to vector<16x32xf32>
    %444 = arith.mulf %442, %443 : vector<16x32xf32>
    %445 = vector.broadcast %424 : vector<1x32xf32> to vector<16x32xf32>
    %446 = arith.addf %444, %445 : vector<16x32xf32>
    %c0_223 = arith.constant 0 : index
    %c0_224 = arith.constant 0 : index
    %447 = vector.load %arg36[%c0_223, %c0_224] : memref<16x32xf32, #tpu.memory_space<vmem>>, vector<16x32xf32>
    tpu.vector_store %arg36[%c0_223, %c0_224], %446 {strides = array<i32>} : memref<16x32xf32, #tpu.memory_space<vmem>>, vector<16x32xf32>,
    return
  }
}

module attributes {stable_mosaic.version = 11 : i64} {
  func.func @kernel(%arg0: memref<16x32xf32, #tpu.memory_space<vmem>>, %arg1: memref<16x32xf32, #tpu.memory_space<vmem>>, %arg2: memref<2x32x16xbf16, #tpu.memory_space<vmem>>, %arg3: memref<2x1x16xf32, #tpu.memory_space<vmem>>, %arg4: memref<2x32x16xbf16, #tpu.memory_space<vmem>>, %arg5: memref<2x1x16xf32, #tpu.memory_space<vmem>>, %arg6: memref<2x32x16xbf16, #tpu.memory_space<vmem>>, %arg7: memref<2x1x16xf32, #tpu.memory_space<vmem>>, %arg8: memref<2x16x32xbf16, #tpu.memory_space<vmem>>, %arg9: memref<1x32xf32, #tpu.memory_space<vmem>>, %arg10: memref<1x32xf32, #tpu.memory_space<vmem>>, %arg11: memref<1x32xf32, #tpu.memory_space<vmem>>, %arg12: memref<2x32x16xbf16, #tpu.memory_space<vmem>>, %arg13: memref<2x1x16xf32, #tpu.memory_space<vmem>>, %arg14: memref<2x32x16xbf16, #tpu.memory_space<vmem>>, %arg15: memref<2x1x16xf32, #tpu.memory_space<vmem>>, %arg16: memref<2x32x16xbf16, #tpu.memory_space<vmem>>, %arg17: memref<2x1x16xf32, #tpu.memory_space<vmem>>, %arg18: memref<2x16x32xbf16, #tpu.memory_space<vmem>>, %arg19: memref<1x32xf32, #tpu.memory_space<vmem>>, %arg20: memref<1x32xf32, #tpu.memory_space<vmem>>, %arg21: memref<1x32xf32, #tpu.memory_space<vmem>>, %arg22: memref<32x32xbf16, #tpu.memory_space<vmem>>, %arg23: memref<1x32xf32, #tpu.memory_space<vmem>>, %arg24: memref<32x32xbf16, #tpu.memory_space<vmem>>, %arg25: memref<1x32xf32, #tpu.memory_space<vmem>>, %arg26: memref<1x32xf32, #tpu.memory_space<vmem>>, %arg27: memref<1x32xf32, #tpu.memory_space<vmem>>, %arg28: memref<2x32x16xbf16, #tpu.memory_space<vmem>>, %arg29: memref<2x1x16xf32, #tpu.memory_space<vmem>>, %arg30: memref<2x32x16xbf16, #tpu.memory_space<vmem>>, %arg31: memref<2x1x16xf32, #tpu.memory_space<vmem>>, %arg32: memref<2x32x16xbf16, #tpu.memory_space<vmem>>, %arg33: memref<2x1x16xf32, #tpu.memory_space<vmem>>, %arg34: memref<2x16x32xbf16, #tpu.memory_space<vmem>>, %arg35: memref<1x32xf32, #tpu.memory_space<vmem>>, %arg36: memref<1x32xf32, #tpu.memory_space<vmem>>, %arg37: memref<1x32xf32, #tpu.memory_space<vmem>>, %arg38: memref<2x32x16xbf16, #tpu.memory_space<vmem>>, %arg39: memref<2x1x16xf32, #tpu.memory_space<vmem>>, %arg40: memref<2x32x16xbf16, #tpu.memory_space<vmem>>, %arg41: memref<2x1x16xf32, #tpu.memory_space<vmem>>, %arg42: memref<2x32x16xbf16, #tpu.memory_space<vmem>>, %arg43: memref<2x1x16xf32, #tpu.memory_space<vmem>>, %arg44: memref<2x16x32xbf16, #tpu.memory_space<vmem>>, %arg45: memref<1x32xf32, #tpu.memory_space<vmem>>, %arg46: memref<1x32xf32, #tpu.memory_space<vmem>>, %arg47: memref<1x32xf32, #tpu.memory_space<vmem>>, %arg48: memref<32x32xbf16, #tpu.memory_space<vmem>>, %arg49: memref<1x32xf32, #tpu.memory_space<vmem>>, %arg50: memref<32x32xbf16, #tpu.memory_space<vmem>>, %arg51: memref<1x32xf32, #tpu.memory_space<vmem>>, %arg52: memref<1x32xf32, #tpu.memory_space<vmem>>, %arg53: memref<1x32xf32, #tpu.memory_space<vmem>>, %arg54: memref<1x32xf32, #tpu.memory_space<vmem>>, %arg55: memref<1x32xf32, #tpu.memory_space<vmem>>, %arg56: memref<32x128xbf16, #tpu.memory_space<vmem>>, %arg57: memref<1x128xf32, #tpu.memory_space<vmem>>, %arg58: memref<16x128xf32, #tpu.memory_space<vmem>>, %arg59: memref<16x32xf32, #tpu.memory_space<vmem>>) attributes {dimension_semantics = [], scalar_prefetch = 0 : i64, scratch_operands = 1 : i64, tpu.core_type = #tpu.core_type<tc>} {
    %c0 = arith.constant 0 : index
    %c0_0 = arith.constant 0 : index
    %0 = vector.load %arg0[%c0, %c0_0] : memref<16x32xf32, #tpu.memory_space<vmem>>, vector<16x32xf32>
    %c0_1 = arith.constant 0 : index
    %c0_2 = arith.constant 0 : index
    %1 = vector.load %arg1[%c0_1, %c0_2] : memref<16x32xf32, #tpu.memory_space<vmem>>, vector<16x32xf32>
    %2 = arith.truncf %0 : vector<16x32xf32> to vector<16x32xbf16>
    %3 = arith.truncf %0 : vector<16x32xf32> to vector<16x32xbf16>
    %cst = arith.constant 0.000000e+00 : f32
    %4 = vector.broadcast %cst : f32 to vector<8x32xf32>
    %cst_3 = arith.constant 0.000000e+00 : f32
    %5 = vector.broadcast %cst_3 : f32 to vector<8x32xf32>
    %c0_4 = arith.constant 0 : index
    %c0_5 = arith.constant 0 : index
    %c0_6 = arith.constant 0 : index
    %6 = vector.load %arg2[%c0_4, %c0_5, %c0_6] : memref<2x32x16xbf16, #tpu.memory_space<vmem>>, vector<1x32x16xbf16>
    %7 = vector.shape_cast %6 : vector<1x32x16xbf16> to vector<32x16xbf16>
    %cst_7 = arith.constant dense<0.000000e+00> : vector<16x16xf32>
    %8 = tpu.matmul %2, %7, %cst_7 {dimension_numbers = #tpu.dot_dimension_numbers<[1], [0], [0], [1], [0, 0, 1, 1], [], []>} : vector<16x32xbf16>, vector<32x16xbf16>, vector<16x16xf32> -> vector<16x16xf32>
    %c0_8 = arith.constant 0 : index
    %c0_9 = arith.constant 0 : index
    %c0_10 = arith.constant 0 : index
    %9 = vector.load %arg3[%c0_8, %c0_9, %c0_10] : memref<2x1x16xf32, #tpu.memory_space<vmem>>, vector<1x1x16xf32>
    %10 = vector.shape_cast %9 : vector<1x1x16xf32> to vector<1x16xf32>
    %11 = vector.broadcast %10 : vector<1x16xf32> to vector<16x16xf32>
    %12 = arith.addf %8, %11 : vector<16x16xf32>
    %c0_11 = arith.constant 0 : index
    %c0_12 = arith.constant 0 : index
    %c0_13 = arith.constant 0 : index
    %13 = vector.load %arg4[%c0_11, %c0_12, %c0_13] : memref<2x32x16xbf16, #tpu.memory_space<vmem>>, vector<1x32x16xbf16>
    %14 = vector.shape_cast %13 : vector<1x32x16xbf16> to vector<32x16xbf16>
    %cst_14 = arith.constant dense<0.000000e+00> : vector<16x16xf32>
    %15 = tpu.matmul %3, %14, %cst_14 {dimension_numbers = #tpu.dot_dimension_numbers<[1], [0], [0], [1], [0, 0, 1, 1], [], []>} : vector<16x32xbf16>, vector<32x16xbf16>, vector<16x16xf32> -> vector<16x16xf32>
    %c0_15 = arith.constant 0 : index
    %c0_16 = arith.constant 0 : index
    %c0_17 = arith.constant 0 : index
    %16 = vector.load %arg5[%c0_15, %c0_16, %c0_17] : memref<2x1x16xf32, #tpu.memory_space<vmem>>, vector<1x1x16xf32>
    %17 = vector.shape_cast %16 : vector<1x1x16xf32> to vector<1x16xf32>
    %18 = vector.broadcast %17 : vector<1x16xf32> to vector<16x16xf32>
    %19 = arith.addf %15, %18 : vector<16x16xf32>
    %c0_18 = arith.constant 0 : index
    %c0_19 = arith.constant 0 : index
    %c0_20 = arith.constant 0 : index
    %20 = vector.load %arg6[%c0_18, %c0_19, %c0_20] : memref<2x32x16xbf16, #tpu.memory_space<vmem>>, vector<1x32x16xbf16>
    %21 = vector.shape_cast %20 : vector<1x32x16xbf16> to vector<32x16xbf16>
    %cst_21 = arith.constant dense<0.000000e+00> : vector<16x16xf32>
    %22 = tpu.matmul %3, %21, %cst_21 {dimension_numbers = #tpu.dot_dimension_numbers<[1], [0], [0], [1], [0, 0, 1, 1], [], []>} : vector<16x32xbf16>, vector<32x16xbf16>, vector<16x16xf32> -> vector<16x16xf32>
    %c0_22 = arith.constant 0 : index
    %c0_23 = arith.constant 0 : index
    %c0_24 = arith.constant 0 : index
    %23 = vector.load %arg7[%c0_22, %c0_23, %c0_24] : memref<2x1x16xf32, #tpu.memory_space<vmem>>, vector<1x1x16xf32>
    %24 = vector.shape_cast %23 : vector<1x1x16xf32> to vector<1x16xf32>
    %25 = vector.broadcast %24 : vector<1x16xf32> to vector<16x16xf32>
    %26 = arith.addf %22, %25 : vector<16x16xf32>
    %c0_25 = arith.constant 0 : index
    %c0_26 = arith.constant 0 : index
    %c0_27 = arith.constant 0 : index
    %27 = vector.load %arg8[%c0_25, %c0_26, %c0_27] : memref<2x16x32xbf16, #tpu.memory_space<vmem>>, vector<1x16x32xbf16>
    %28 = vector.shape_cast %27 : vector<1x16x32xbf16> to vector<16x32xbf16>
    %29 = vector.extract_strided_slice %12 {offsets = [0, 0], sizes = [8, 16], strides = [1, 1]} : vector<16x16xf32> to vector<8x16xf32>
    %30 = arith.truncf %29 : vector<8x16xf32> to vector<8x16xbf16>
    %31 = vector.extract_strided_slice %19 {offsets = [0, 0], sizes = [8, 16], strides = [1, 1]} : vector<16x16xf32> to vector<8x16xf32>
    %32 = arith.truncf %31 : vector<8x16xf32> to vector<8x16xbf16>
    %33 = vector.extract_strided_slice %26 {offsets = [0, 0], sizes = [8, 16], strides = [1, 1]} : vector<16x16xf32> to vector<8x16xf32>
    %34 = arith.truncf %33 : vector<8x16xf32> to vector<8x16xbf16>
    %cst_28 = arith.constant dense<0.000000e+00> : vector<8x8xf32>
    %35 = tpu.matmul %30, %32, %cst_28 {dimension_numbers = #tpu.dot_dimension_numbers<[1], [1], [0], [0], [0, 0, 1, 0], [], []>} : vector<8x16xbf16>, vector<8x16xbf16>, vector<8x8xf32> -> vector<8x8xf32>
    %cst_29 = arith.constant dense<0xFF800000> : vector<8xf32>
    %36 = vector.multi_reduction <maximumf>, %35, %cst_29 [1] : vector<8x8xf32> to vector<8xf32>
    %37 = vector.shape_cast %36 : vector<8xf32> to vector<8x1xf32>
    %38 = vector.broadcast %37 : vector<8x1xf32> to vector<8x8xf32>
    %39 = arith.subf %35, %38 : vector<8x8xf32>
    %40 = math.exp %39 : vector<8x8xf32>
    %cst_30 = arith.constant dense<0.000000e+00> : vector<8xf32>
    %41 = vector.multi_reduction <add>, %40, %cst_30 [1] : vector<8x8xf32> to vector<8xf32>
    %42 = vector.shape_cast %41 : vector<8xf32> to vector<8x1xf32>
    %43 = tpu.reciprocal %42 {approx = true} : vector<8x1xf32> -> vector<8x1xf32>
    %44 = vector.broadcast %43 : vector<8x1xf32> to vector<8x8xf32>
    %45 = arith.mulf %40, %44 : vector<8x8xf32>
    %46 = arith.truncf %45 : vector<8x8xf32> to vector<8x8xbf16>
    %cst_31 = arith.constant dense<0.000000e+00> : vector<8x16xf32>
    %47 = tpu.matmul %46, %34, %cst_31 {dimension_numbers = #tpu.dot_dimension_numbers<[1], [0], [0], [1], [0, 0, 1, 1], [], []>} : vector<8x8xbf16>, vector<8x16xbf16>, vector<8x16xf32> -> vector<8x16xf32>
    %48 = arith.truncf %47 : vector<8x16xf32> to vector<8x16xbf16>
    %cst_32 = arith.constant dense<0.000000e+00> : vector<8x32xf32>
    %49 = tpu.matmul %48, %28, %cst_32 {dimension_numbers = #tpu.dot_dimension_numbers<[1], [0], [0], [1], [0, 0, 1, 1], [], []>} : vector<8x16xbf16>, vector<16x32xbf16>, vector<8x32xf32> -> vector<8x32xf32>
    %50 = arith.addf %4, %49 : vector<8x32xf32>
    %51 = vector.extract_strided_slice %12 {offsets = [8, 0], sizes = [8, 16], strides = [1, 1]} : vector<16x16xf32> to vector<8x16xf32>
    %52 = arith.truncf %51 : vector<8x16xf32> to vector<8x16xbf16>
    %53 = vector.extract_strided_slice %19 {offsets = [8, 0], sizes = [8, 16], strides = [1, 1]} : vector<16x16xf32> to vector<8x16xf32>
    %54 = arith.truncf %53 : vector<8x16xf32> to vector<8x16xbf16>
    %55 = vector.extract_strided_slice %26 {offsets = [8, 0], sizes = [8, 16], strides = [1, 1]} : vector<16x16xf32> to vector<8x16xf32>
    %56 = arith.truncf %55 : vector<8x16xf32> to vector<8x16xbf16>
    %cst_33 = arith.constant dense<0.000000e+00> : vector<8x8xf32>
    %57 = tpu.matmul %52, %54, %cst_33 {dimension_numbers = #tpu.dot_dimension_numbers<[1], [1], [0], [0], [0, 0, 1, 0], [], []>} : vector<8x16xbf16>, vector<8x16xbf16>, vector<8x8xf32> -> vector<8x8xf32>
    %cst_34 = arith.constant dense<0xFF800000> : vector<8xf32>
    %58 = vector.multi_reduction <maximumf>, %57, %cst_34 [1] : vector<8x8xf32> to vector<8xf32>
    %59 = vector.shape_cast %58 : vector<8xf32> to vector<8x1xf32>
    %60 = vector.broadcast %59 : vector<8x1xf32> to vector<8x8xf32>
    %61 = arith.subf %57, %60 : vector<8x8xf32>
    %62 = math.exp %61 : vector<8x8xf32>
    %cst_35 = arith.constant dense<0.000000e+00> : vector<8xf32>
    %63 = vector.multi_reduction <add>, %62, %cst_35 [1] : vector<8x8xf32> to vector<8xf32>
    %64 = vector.shape_cast %63 : vector<8xf32> to vector<8x1xf32>
    %65 = tpu.reciprocal %64 {approx = true} : vector<8x1xf32> -> vector<8x1xf32>
    %66 = vector.broadcast %65 : vector<8x1xf32> to vector<8x8xf32>
    %67 = arith.mulf %62, %66 : vector<8x8xf32>
    %68 = arith.truncf %67 : vector<8x8xf32> to vector<8x8xbf16>
    %cst_36 = arith.constant dense<0.000000e+00> : vector<8x16xf32>
    %69 = tpu.matmul %68, %56, %cst_36 {dimension_numbers = #tpu.dot_dimension_numbers<[1], [0], [0], [1], [0, 0, 1, 1], [], []>} : vector<8x8xbf16>, vector<8x16xbf16>, vector<8x16xf32> -> vector<8x16xf32>
    %70 = arith.truncf %69 : vector<8x16xf32> to vector<8x16xbf16>
    %cst_37 = arith.constant dense<0.000000e+00> : vector<8x32xf32>
    %71 = tpu.matmul %70, %28, %cst_37 {dimension_numbers = #tpu.dot_dimension_numbers<[1], [0], [0], [1], [0, 0, 1, 1], [], []>} : vector<8x16xbf16>, vector<16x32xbf16>, vector<8x32xf32> -> vector<8x32xf32>
    %72 = arith.addf %5, %71 : vector<8x32xf32>
    %c1 = arith.constant 1 : index
    %c0_38 = arith.constant 0 : index
    %c0_39 = arith.constant 0 : index
    %73 = vector.load %arg2[%c1, %c0_38, %c0_39] : memref<2x32x16xbf16, #tpu.memory_space<vmem>>, vector<1x32x16xbf16>
    %74 = vector.shape_cast %73 : vector<1x32x16xbf16> to vector<32x16xbf16>
    %cst_40 = arith.constant dense<0.000000e+00> : vector<16x16xf32>
    %75 = tpu.matmul %2, %74, %cst_40 {dimension_numbers = #tpu.dot_dimension_numbers<[1], [0], [0], [1], [0, 0, 1, 1], [], []>} : vector<16x32xbf16>, vector<32x16xbf16>, vector<16x16xf32> -> vector<16x16xf32>
    %c1_41 = arith.constant 1 : index
    %c0_42 = arith.constant 0 : index
    %c0_43 = arith.constant 0 : index
    %76 = vector.load %arg3[%c1_41, %c0_42, %c0_43] : memref<2x1x16xf32, #tpu.memory_space<vmem>>, vector<1x1x16xf32>
    %77 = vector.shape_cast %76 : vector<1x1x16xf32> to vector<1x16xf32>
    %78 = vector.broadcast %77 : vector<1x16xf32> to vector<16x16xf32>
    %79 = arith.addf %75, %78 : vector<16x16xf32>
    %c1_44 = arith.constant 1 : index
    %c0_45 = arith.constant 0 : index
    %c0_46 = arith.constant 0 : index
    %80 = vector.load %arg4[%c1_44, %c0_45, %c0_46] : memref<2x32x16xbf16, #tpu.memory_space<vmem>>, vector<1x32x16xbf16>
    %81 = vector.shape_cast %80 : vector<1x32x16xbf16> to vector<32x16xbf16>
    %cst_47 = arith.constant dense<0.000000e+00> : vector<16x16xf32>
    %82 = tpu.matmul %3, %81, %cst_47 {dimension_numbers = #tpu.dot_dimension_numbers<[1], [0], [0], [1], [0, 0, 1, 1], [], []>} : vector<16x32xbf16>, vector<32x16xbf16>, vector<16x16xf32> -> vector<16x16xf32>
    %c1_48 = arith.constant 1 : index
    %c0_49 = arith.constant 0 : index
    %c0_50 = arith.constant 0 : index
    %83 = vector.load %arg5[%c1_48, %c0_49, %c0_50] : memref<2x1x16xf32, #tpu.memory_space<vmem>>, vector<1x1x16xf32>
    %84 = vector.shape_cast %83 : vector<1x1x16xf32> to vector<1x16xf32>
    %85 = vector.broadcast %84 : vector<1x16xf32> to vector<16x16xf32>
    %86 = arith.addf %82, %85 : vector<16x16xf32>
    %c1_51 = arith.constant 1 : index
    %c0_52 = arith.constant 0 : index
    %c0_53 = arith.constant 0 : index
    %87 = vector.load %arg6[%c1_51, %c0_52, %c0_53] : memref<2x32x16xbf16, #tpu.memory_space<vmem>>, vector<1x32x16xbf16>
    %88 = vector.shape_cast %87 : vector<1x32x16xbf16> to vector<32x16xbf16>
    %cst_54 = arith.constant dense<0.000000e+00> : vector<16x16xf32>
    %89 = tpu.matmul %3, %88, %cst_54 {dimension_numbers = #tpu.dot_dimension_numbers<[1], [0], [0], [1], [0, 0, 1, 1], [], []>} : vector<16x32xbf16>, vector<32x16xbf16>, vector<16x16xf32> -> vector<16x16xf32>
    %c1_55 = arith.constant 1 : index
    %c0_56 = arith.constant 0 : index
    %c0_57 = arith.constant 0 : index
    %90 = vector.load %arg7[%c1_55, %c0_56, %c0_57] : memref<2x1x16xf32, #tpu.memory_space<vmem>>, vector<1x1x16xf32>
    %91 = vector.shape_cast %90 : vector<1x1x16xf32> to vector<1x16xf32>
    %92 = vector.broadcast %91 : vector<1x16xf32> to vector<16x16xf32>
    %93 = arith.addf %89, %92 : vector<16x16xf32>
    %c1_58 = arith.constant 1 : index
    %c0_59 = arith.constant 0 : index
    %c0_60 = arith.constant 0 : index
    %94 = vector.load %arg8[%c1_58, %c0_59, %c0_60] : memref<2x16x32xbf16, #tpu.memory_space<vmem>>, vector<1x16x32xbf16>
    %95 = vector.shape_cast %94 : vector<1x16x32xbf16> to vector<16x32xbf16>
    %96 = vector.extract_strided_slice %79 {offsets = [0, 0], sizes = [8, 16], strides = [1, 1]} : vector<16x16xf32> to vector<8x16xf32>
    %97 = arith.truncf %96 : vector<8x16xf32> to vector<8x16xbf16>
    %98 = vector.extract_strided_slice %86 {offsets = [0, 0], sizes = [8, 16], strides = [1, 1]} : vector<16x16xf32> to vector<8x16xf32>
    %99 = arith.truncf %98 : vector<8x16xf32> to vector<8x16xbf16>
    %100 = vector.extract_strided_slice %93 {offsets = [0, 0], sizes = [8, 16], strides = [1, 1]} : vector<16x16xf32> to vector<8x16xf32>
    %101 = arith.truncf %100 : vector<8x16xf32> to vector<8x16xbf16>
    %cst_61 = arith.constant dense<0.000000e+00> : vector<8x8xf32>
    %102 = tpu.matmul %97, %99, %cst_61 {dimension_numbers = #tpu.dot_dimension_numbers<[1], [1], [0], [0], [0, 0, 1, 0], [], []>} : vector<8x16xbf16>, vector<8x16xbf16>, vector<8x8xf32> -> vector<8x8xf32>
    %cst_62 = arith.constant dense<0xFF800000> : vector<8xf32>
    %103 = vector.multi_reduction <maximumf>, %102, %cst_62 [1] : vector<8x8xf32> to vector<8xf32>
    %104 = vector.shape_cast %103 : vector<8xf32> to vector<8x1xf32>
    %105 = vector.broadcast %104 : vector<8x1xf32> to vector<8x8xf32>
    %106 = arith.subf %102, %105 : vector<8x8xf32>
    %107 = math.exp %106 : vector<8x8xf32>
    %cst_63 = arith.constant dense<0.000000e+00> : vector<8xf32>
    %108 = vector.multi_reduction <add>, %107, %cst_63 [1] : vector<8x8xf32> to vector<8xf32>
    %109 = vector.shape_cast %108 : vector<8xf32> to vector<8x1xf32>
    %110 = tpu.reciprocal %109 {approx = true} : vector<8x1xf32> -> vector<8x1xf32>
    %111 = vector.broadcast %110 : vector<8x1xf32> to vector<8x8xf32>
    %112 = arith.mulf %107, %111 : vector<8x8xf32>
    %113 = arith.truncf %112 : vector<8x8xf32> to vector<8x8xbf16>
    %cst_64 = arith.constant dense<0.000000e+00> : vector<8x16xf32>
    %114 = tpu.matmul %113, %101, %cst_64 {dimension_numbers = #tpu.dot_dimension_numbers<[1], [0], [0], [1], [0, 0, 1, 1], [], []>} : vector<8x8xbf16>, vector<8x16xbf16>, vector<8x16xf32> -> vector<8x16xf32>
    %115 = arith.truncf %114 : vector<8x16xf32> to vector<8x16xbf16>
    %cst_65 = arith.constant dense<0.000000e+00> : vector<8x32xf32>
    %116 = tpu.matmul %115, %95, %cst_65 {dimension_numbers = #tpu.dot_dimension_numbers<[1], [0], [0], [1], [0, 0, 1, 1], [], []>} : vector<8x16xbf16>, vector<16x32xbf16>, vector<8x32xf32> -> vector<8x32xf32>
    %117 = arith.addf %50, %116 : vector<8x32xf32>
    %118 = vector.extract_strided_slice %79 {offsets = [8, 0], sizes = [8, 16], strides = [1, 1]} : vector<16x16xf32> to vector<8x16xf32>
    %119 = arith.truncf %118 : vector<8x16xf32> to vector<8x16xbf16>
    %120 = vector.extract_strided_slice %86 {offsets = [8, 0], sizes = [8, 16], strides = [1, 1]} : vector<16x16xf32> to vector<8x16xf32>
    %121 = arith.truncf %120 : vector<8x16xf32> to vector<8x16xbf16>
    %122 = vector.extract_strided_slice %93 {offsets = [8, 0], sizes = [8, 16], strides = [1, 1]} : vector<16x16xf32> to vector<8x16xf32>
    %123 = arith.truncf %122 : vector<8x16xf32> to vector<8x16xbf16>
    %cst_66 = arith.constant dense<0.000000e+00> : vector<8x8xf32>
    %124 = tpu.matmul %119, %121, %cst_66 {dimension_numbers = #tpu.dot_dimension_numbers<[1], [1], [0], [0], [0, 0, 1, 0], [], []>} : vector<8x16xbf16>, vector<8x16xbf16>, vector<8x8xf32> -> vector<8x8xf32>
    %cst_67 = arith.constant dense<0xFF800000> : vector<8xf32>
    %125 = vector.multi_reduction <maximumf>, %124, %cst_67 [1] : vector<8x8xf32> to vector<8xf32>
    %126 = vector.shape_cast %125 : vector<8xf32> to vector<8x1xf32>
    %127 = vector.broadcast %126 : vector<8x1xf32> to vector<8x8xf32>
    %128 = arith.subf %124, %127 : vector<8x8xf32>
    %129 = math.exp %128 : vector<8x8xf32>
    %cst_68 = arith.constant dense<0.000000e+00> : vector<8xf32>
    %130 = vector.multi_reduction <add>, %129, %cst_68 [1] : vector<8x8xf32> to vector<8xf32>
    %131 = vector.shape_cast %130 : vector<8xf32> to vector<8x1xf32>
    %132 = tpu.reciprocal %131 {approx = true} : vector<8x1xf32> -> vector<8x1xf32>
    %133 = vector.broadcast %132 : vector<8x1xf32> to vector<8x8xf32>
    %134 = arith.mulf %129, %133 : vector<8x8xf32>
    %135 = arith.truncf %134 : vector<8x8xf32> to vector<8x8xbf16>
    %cst_69 = arith.constant dense<0.000000e+00> : vector<8x16xf32>
    %136 = tpu.matmul %135, %123, %cst_69 {dimension_numbers = #tpu.dot_dimension_numbers<[1], [0], [0], [1], [0, 0, 1, 1], [], []>} : vector<8x8xbf16>, vector<8x16xbf16>, vector<8x16xf32> -> vector<8x16xf32>
    %137 = arith.truncf %136 : vector<8x16xf32> to vector<8x16xbf16>
    %cst_70 = arith.constant dense<0.000000e+00> : vector<8x32xf32>
    %138 = tpu.matmul %137, %95, %cst_70 {dimension_numbers = #tpu.dot_dimension_numbers<[1], [0], [0], [1], [0, 0, 1, 1], [], []>} : vector<8x16xbf16>, vector<16x32xbf16>, vector<8x32xf32> -> vector<8x32xf32>
    %139 = arith.addf %72, %138 : vector<8x32xf32>
    %c0_71 = arith.constant 0 : index
    %c0_72 = arith.constant 0 : index
    %140 = vector.load %arg9[%c0_71, %c0_72] : memref<1x32xf32, #tpu.memory_space<vmem>>, vector<1x32xf32>
    %141 = vector.broadcast %140 : vector<1x32xf32> to vector<8x32xf32>
    %142 = arith.addf %117, %141 : vector<8x32xf32>
    %c0_73 = arith.constant 0 : index
    %c0_74 = arith.constant 0 : index
    %143 = vector.load %arg59[%c0_73, %c0_74] : memref<16x32xf32, #tpu.memory_space<vmem>>, vector<8x32xf32>
    tpu.vector_store %arg59[%c0_73, %c0_74], %142 {strides = array<i32>} : memref<16x32xf32, #tpu.memory_space<vmem>>, vector<8x32xf32>,
    %144 = vector.broadcast %140 : vector<1x32xf32> to vector<8x32xf32>
    %145 = arith.addf %139, %144 : vector<8x32xf32>
    %c8 = arith.constant 8 : index
    %c0_75 = arith.constant 0 : index
    %146 = vector.load %arg59[%c8, %c0_75] : memref<16x32xf32, #tpu.memory_space<vmem>>, vector<8x32xf32>
    tpu.vector_store %arg59[%c8, %c0_75], %145 {strides = array<i32>} : memref<16x32xf32, #tpu.memory_space<vmem>>, vector<8x32xf32>,
    %c0_76 = arith.constant 0 : index
    %c0_77 = arith.constant 0 : index
    %147 = vector.load %arg59[%c0_76, %c0_77] : memref<16x32xf32, #tpu.memory_space<vmem>>, vector<16x32xf32>
    %148 = arith.addf %0, %147 : vector<16x32xf32>
    %c0_78 = arith.constant 0 : index
    %c0_79 = arith.constant 0 : index
    %149 = vector.load %arg10[%c0_78, %c0_79] : memref<1x32xf32, #tpu.memory_space<vmem>>, vector<1x32xf32>
    %c0_80 = arith.constant 0 : index
    %c0_81 = arith.constant 0 : index
    %150 = vector.load %arg11[%c0_80, %c0_81] : memref<1x32xf32, #tpu.memory_space<vmem>>, vector<1x32xf32>
    %cst_82 = arith.constant dense<0.000000e+00> : vector<16xf32>
    %151 = vector.multi_reduction <add>, %148, %cst_82 [1] : vector<16x32xf32> to vector<16xf32>
    %152 = vector.shape_cast %151 : vector<16xf32> to vector<16x1xf32>
    %cst_83 = arith.constant 3.200000e+01 : f32
    %153 = vector.broadcast %cst_83 : f32 to vector<16x1xf32>
    %154 = arith.divf %152, %153 : vector<16x1xf32>
    %155 = vector.broadcast %154 : vector<16x1xf32> to vector<16x32xf32>
    %156 = arith.subf %148, %155 : vector<16x32xf32>
    %157 = arith.mulf %156, %156 : vector<16x32xf32>
    %cst_84 = arith.constant dense<0.000000e+00> : vector<16xf32>
    %158 = vector.multi_reduction <add>, %157, %cst_84 [1] : vector<16x32xf32> to vector<16xf32>
    %159 = vector.shape_cast %158 : vector<16xf32> to vector<16x1xf32>
    %cst_85 = arith.constant 3.200000e+01 : f32
    %160 = vector.broadcast %cst_85 : f32 to vector<16x1xf32>
    %161 = arith.divf %159, %160 : vector<16x1xf32>
    %162 = vector.broadcast %154 : vector<16x1xf32> to vector<16x32xf32>
    %163 = arith.subf %148, %162 : vector<16x32xf32>
    %cst_86 = arith.constant 9.99999974E-6 : f32
    %164 = vector.broadcast %cst_86 : f32 to vector<16x1xf32>
    %165 = arith.addf %161, %164 : vector<16x1xf32>
    %166 = math.rsqrt %165 : vector<16x1xf32>
    %167 = vector.broadcast %166 : vector<16x1xf32> to vector<16x32xf32>
    %168 = arith.mulf %163, %167 : vector<16x32xf32>
    %169 = vector.broadcast %149 : vector<1x32xf32> to vector<16x32xf32>
    %170 = arith.mulf %168, %169 : vector<16x32xf32>
    %171 = vector.broadcast %150 : vector<1x32xf32> to vector<16x32xf32>
    %172 = arith.addf %170, %171 : vector<16x32xf32>
    %173 = arith.truncf %172 : vector<16x32xf32> to vector<16x32xbf16>
    %174 = arith.truncf %1 : vector<16x32xf32> to vector<16x32xbf16>
    %cst_87 = arith.constant 0.000000e+00 : f32
    %175 = vector.broadcast %cst_87 : f32 to vector<8x32xf32>
    %cst_88 = arith.constant 0.000000e+00 : f32
    %176 = vector.broadcast %cst_88 : f32 to vector<8x32xf32>
    %c0_89 = arith.constant 0 : index
    %c0_90 = arith.constant 0 : index
    %c0_91 = arith.constant 0 : index
    %177 = vector.load %arg12[%c0_89, %c0_90, %c0_91] : memref<2x32x16xbf16, #tpu.memory_space<vmem>>, vector<1x32x16xbf16>
    %178 = vector.shape_cast %177 : vector<1x32x16xbf16> to vector<32x16xbf16>
    %cst_92 = arith.constant dense<0.000000e+00> : vector<16x16xf32>
    %179 = tpu.matmul %173, %178, %cst_92 {dimension_numbers = #tpu.dot_dimension_numbers<[1], [0], [0], [1], [0, 0, 1, 1], [], []>} : vector<16x32xbf16>, vector<32x16xbf16>, vector<16x16xf32> -> vector<16x16xf32>
    %c0_93 = arith.constant 0 : index
    %c0_94 = arith.constant 0 : index
    %c0_95 = arith.constant 0 : index
    %180 = vector.load %arg13[%c0_93, %c0_94, %c0_95] : memref<2x1x16xf32, #tpu.memory_space<vmem>>, vector<1x1x16xf32>
    %181 = vector.shape_cast %180 : vector<1x1x16xf32> to vector<1x16xf32>
    %182 = vector.broadcast %181 : vector<1x16xf32> to vector<16x16xf32>
    %183 = arith.addf %179, %182 : vector<16x16xf32>
    %c0_96 = arith.constant 0 : index
    %c0_97 = arith.constant 0 : index
    %c0_98 = arith.constant 0 : index
    %184 = vector.load %arg14[%c0_96, %c0_97, %c0_98] : memref<2x32x16xbf16, #tpu.memory_space<vmem>>, vector<1x32x16xbf16>
    %185 = vector.shape_cast %184 : vector<1x32x16xbf16> to vector<32x16xbf16>
    %cst_99 = arith.constant dense<0.000000e+00> : vector<16x16xf32>
    %186 = tpu.matmul %174, %185, %cst_99 {dimension_numbers = #tpu.dot_dimension_numbers<[1], [0], [0], [1], [0, 0, 1, 1], [], []>} : vector<16x32xbf16>, vector<32x16xbf16>, vector<16x16xf32> -> vector<16x16xf32>
    %c0_100 = arith.constant 0 : index
    %c0_101 = arith.constant 0 : index
    %c0_102 = arith.constant 0 : index
    %187 = vector.load %arg15[%c0_100, %c0_101, %c0_102] : memref<2x1x16xf32, #tpu.memory_space<vmem>>, vector<1x1x16xf32>
    %188 = vector.shape_cast %187 : vector<1x1x16xf32> to vector<1x16xf32>
    %189 = vector.broadcast %188 : vector<1x16xf32> to vector<16x16xf32>
    %190 = arith.addf %186, %189 : vector<16x16xf32>
    %c0_103 = arith.constant 0 : index
    %c0_104 = arith.constant 0 : index
    %c0_105 = arith.constant 0 : index
    %191 = vector.load %arg16[%c0_103, %c0_104, %c0_105] : memref<2x32x16xbf16, #tpu.memory_space<vmem>>, vector<1x32x16xbf16>
    %192 = vector.shape_cast %191 : vector<1x32x16xbf16> to vector<32x16xbf16>
    %cst_106 = arith.constant dense<0.000000e+00> : vector<16x16xf32>
    %193 = tpu.matmul %174, %192, %cst_106 {dimension_numbers = #tpu.dot_dimension_numbers<[1], [0], [0], [1], [0, 0, 1, 1], [], []>} : vector<16x32xbf16>, vector<32x16xbf16>, vector<16x16xf32> -> vector<16x16xf32>
    %c0_107 = arith.constant 0 : index
    %c0_108 = arith.constant 0 : index
    %c0_109 = arith.constant 0 : index
    %194 = vector.load %arg17[%c0_107, %c0_108, %c0_109] : memref<2x1x16xf32, #tpu.memory_space<vmem>>, vector<1x1x16xf32>
    %195 = vector.shape_cast %194 : vector<1x1x16xf32> to vector<1x16xf32>
    %196 = vector.broadcast %195 : vector<1x16xf32> to vector<16x16xf32>
    %197 = arith.addf %193, %196 : vector<16x16xf32>
    %c0_110 = arith.constant 0 : index
    %c0_111 = arith.constant 0 : index
    %c0_112 = arith.constant 0 : index
    %198 = vector.load %arg18[%c0_110, %c0_111, %c0_112] : memref<2x16x32xbf16, #tpu.memory_space<vmem>>, vector<1x16x32xbf16>
    %199 = vector.shape_cast %198 : vector<1x16x32xbf16> to vector<16x32xbf16>
    %200 = vector.extract_strided_slice %183 {offsets = [0, 0], sizes = [8, 16], strides = [1, 1]} : vector<16x16xf32> to vector<8x16xf32>
    %201 = arith.truncf %200 : vector<8x16xf32> to vector<8x16xbf16>
    %202 = vector.extract_strided_slice %190 {offsets = [0, 0], sizes = [8, 16], strides = [1, 1]} : vector<16x16xf32> to vector<8x16xf32>
    %203 = arith.truncf %202 : vector<8x16xf32> to vector<8x16xbf16>
    %204 = vector.extract_strided_slice %197 {offsets = [0, 0], sizes = [8, 16], strides = [1, 1]} : vector<16x16xf32> to vector<8x16xf32>
    %205 = arith.truncf %204 : vector<8x16xf32> to vector<8x16xbf16>
    %cst_113 = arith.constant dense<0.000000e+00> : vector<8x8xf32>
    %206 = tpu.matmul %201, %203, %cst_113 {dimension_numbers = #tpu.dot_dimension_numbers<[1], [1], [0], [0], [0, 0, 1, 0], [], []>} : vector<8x16xbf16>, vector<8x16xbf16>, vector<8x8xf32> -> vector<8x8xf32>
    %cst_114 = arith.constant dense<0xFF800000> : vector<8xf32>
    %207 = vector.multi_reduction <maximumf>, %206, %cst_114 [1] : vector<8x8xf32> to vector<8xf32>
    %208 = vector.shape_cast %207 : vector<8xf32> to vector<8x1xf32>
    %209 = vector.broadcast %208 : vector<8x1xf32> to vector<8x8xf32>
    %210 = arith.subf %206, %209 : vector<8x8xf32>
    %211 = math.exp %210 : vector<8x8xf32>
    %cst_115 = arith.constant dense<0.000000e+00> : vector<8xf32>
    %212 = vector.multi_reduction <add>, %211, %cst_115 [1] : vector<8x8xf32> to vector<8xf32>
    %213 = vector.shape_cast %212 : vector<8xf32> to vector<8x1xf32>
    %214 = tpu.reciprocal %213 {approx = true} : vector<8x1xf32> -> vector<8x1xf32>
    %215 = vector.broadcast %214 : vector<8x1xf32> to vector<8x8xf32>
    %216 = arith.mulf %211, %215 : vector<8x8xf32>
    %217 = arith.truncf %216 : vector<8x8xf32> to vector<8x8xbf16>
    %cst_116 = arith.constant dense<0.000000e+00> : vector<8x16xf32>
    %218 = tpu.matmul %217, %205, %cst_116 {dimension_numbers = #tpu.dot_dimension_numbers<[1], [0], [0], [1], [0, 0, 1, 1], [], []>} : vector<8x8xbf16>, vector<8x16xbf16>, vector<8x16xf32> -> vector<8x16xf32>
    %219 = arith.truncf %218 : vector<8x16xf32> to vector<8x16xbf16>
    %cst_117 = arith.constant dense<0.000000e+00> : vector<8x32xf32>
    %220 = tpu.matmul %219, %199, %cst_117 {dimension_numbers = #tpu.dot_dimension_numbers<[1], [0], [0], [1], [0, 0, 1, 1], [], []>} : vector<8x16xbf16>, vector<16x32xbf16>, vector<8x32xf32> -> vector<8x32xf32>
    %221 = arith.addf %175, %220 : vector<8x32xf32>
    %222 = vector.extract_strided_slice %183 {offsets = [8, 0], sizes = [8, 16], strides = [1, 1]} : vector<16x16xf32> to vector<8x16xf32>
    %223 = arith.truncf %222 : vector<8x16xf32> to vector<8x16xbf16>
    %224 = vector.extract_strided_slice %190 {offsets = [8, 0], sizes = [8, 16], strides = [1, 1]} : vector<16x16xf32> to vector<8x16xf32>
    %225 = arith.truncf %224 : vector<8x16xf32> to vector<8x16xbf16>
    %226 = vector.extract_strided_slice %197 {offsets = [8, 0], sizes = [8, 16], strides = [1, 1]} : vector<16x16xf32> to vector<8x16xf32>
    %227 = arith.truncf %226 : vector<8x16xf32> to vector<8x16xbf16>
    %cst_118 = arith.constant dense<0.000000e+00> : vector<8x8xf32>
    %228 = tpu.matmul %223, %225, %cst_118 {dimension_numbers = #tpu.dot_dimension_numbers<[1], [1], [0], [0], [0, 0, 1, 0], [], []>} : vector<8x16xbf16>, vector<8x16xbf16>, vector<8x8xf32> -> vector<8x8xf32>
    %cst_119 = arith.constant dense<0xFF800000> : vector<8xf32>
    %229 = vector.multi_reduction <maximumf>, %228, %cst_119 [1] : vector<8x8xf32> to vector<8xf32>
    %230 = vector.shape_cast %229 : vector<8xf32> to vector<8x1xf32>
    %231 = vector.broadcast %230 : vector<8x1xf32> to vector<8x8xf32>
    %232 = arith.subf %228, %231 : vector<8x8xf32>
    %233 = math.exp %232 : vector<8x8xf32>
    %cst_120 = arith.constant dense<0.000000e+00> : vector<8xf32>
    %234 = vector.multi_reduction <add>, %233, %cst_120 [1] : vector<8x8xf32> to vector<8xf32>
    %235 = vector.shape_cast %234 : vector<8xf32> to vector<8x1xf32>
    %236 = tpu.reciprocal %235 {approx = true} : vector<8x1xf32> -> vector<8x1xf32>
    %237 = vector.broadcast %236 : vector<8x1xf32> to vector<8x8xf32>
    %238 = arith.mulf %233, %237 : vector<8x8xf32>
    %239 = arith.truncf %238 : vector<8x8xf32> to vector<8x8xbf16>
    %cst_121 = arith.constant dense<0.000000e+00> : vector<8x16xf32>
    %240 = tpu.matmul %239, %227, %cst_121 {dimension_numbers = #tpu.dot_dimension_numbers<[1], [0], [0], [1], [0, 0, 1, 1], [], []>} : vector<8x8xbf16>, vector<8x16xbf16>, vector<8x16xf32> -> vector<8x16xf32>
    %241 = arith.truncf %240 : vector<8x16xf32> to vector<8x16xbf16>
    %cst_122 = arith.constant dense<0.000000e+00> : vector<8x32xf32>
    %242 = tpu.matmul %241, %199, %cst_122 {dimension_numbers = #tpu.dot_dimension_numbers<[1], [0], [0], [1], [0, 0, 1, 1], [], []>} : vector<8x16xbf16>, vector<16x32xbf16>, vector<8x32xf32> -> vector<8x32xf32>
    %243 = arith.addf %176, %242 : vector<8x32xf32>
    %c1_123 = arith.constant 1 : index
    %c0_124 = arith.constant 0 : index
    %c0_125 = arith.constant 0 : index
    %244 = vector.load %arg12[%c1_123, %c0_124, %c0_125] : memref<2x32x16xbf16, #tpu.memory_space<vmem>>, vector<1x32x16xbf16>
    %245 = vector.shape_cast %244 : vector<1x32x16xbf16> to vector<32x16xbf16>
    %cst_126 = arith.constant dense<0.000000e+00> : vector<16x16xf32>
    %246 = tpu.matmul %173, %245, %cst_126 {dimension_numbers = #tpu.dot_dimension_numbers<[1], [0], [0], [1], [0, 0, 1, 1], [], []>} : vector<16x32xbf16>, vector<32x16xbf16>, vector<16x16xf32> -> vector<16x16xf32>
    %c1_127 = arith.constant 1 : index
    %c0_128 = arith.constant 0 : index
    %c0_129 = arith.constant 0 : index
    %247 = vector.load %arg13[%c1_127, %c0_128, %c0_129] : memref<2x1x16xf32, #tpu.memory_space<vmem>>, vector<1x1x16xf32>
    %248 = vector.shape_cast %247 : vector<1x1x16xf32> to vector<1x16xf32>
    %249 = vector.broadcast %248 : vector<1x16xf32> to vector<16x16xf32>
    %250 = arith.addf %246, %249 : vector<16x16xf32>
    %c1_130 = arith.constant 1 : index
    %c0_131 = arith.constant 0 : index
    %c0_132 = arith.constant 0 : index
    %251 = vector.load %arg14[%c1_130, %c0_131, %c0_132] : memref<2x32x16xbf16, #tpu.memory_space<vmem>>, vector<1x32x16xbf16>
    %252 = vector.shape_cast %251 : vector<1x32x16xbf16> to vector<32x16xbf16>
    %cst_133 = arith.constant dense<0.000000e+00> : vector<16x16xf32>
    %253 = tpu.matmul %174, %252, %cst_133 {dimension_numbers = #tpu.dot_dimension_numbers<[1], [0], [0], [1], [0, 0, 1, 1], [], []>} : vector<16x32xbf16>, vector<32x16xbf16>, vector<16x16xf32> -> vector<16x16xf32>
    %c1_134 = arith.constant 1 : index
    %c0_135 = arith.constant 0 : index
    %c0_136 = arith.constant 0 : index
    %254 = vector.load %arg15[%c1_134, %c0_135, %c0_136] : memref<2x1x16xf32, #tpu.memory_space<vmem>>, vector<1x1x16xf32>
    %255 = vector.shape_cast %254 : vector<1x1x16xf32> to vector<1x16xf32>
    %256 = vector.broadcast %255 : vector<1x16xf32> to vector<16x16xf32>
    %257 = arith.addf %253, %256 : vector<16x16xf32>
    %c1_137 = arith.constant 1 : index
    %c0_138 = arith.constant 0 : index
    %c0_139 = arith.constant 0 : index
    %258 = vector.load %arg16[%c1_137, %c0_138, %c0_139] : memref<2x32x16xbf16, #tpu.memory_space<vmem>>, vector<1x32x16xbf16>
    %259 = vector.shape_cast %258 : vector<1x32x16xbf16> to vector<32x16xbf16>
    %cst_140 = arith.constant dense<0.000000e+00> : vector<16x16xf32>
    %260 = tpu.matmul %174, %259, %cst_140 {dimension_numbers = #tpu.dot_dimension_numbers<[1], [0], [0], [1], [0, 0, 1, 1], [], []>} : vector<16x32xbf16>, vector<32x16xbf16>, vector<16x16xf32> -> vector<16x16xf32>
    %c1_141 = arith.constant 1 : index
    %c0_142 = arith.constant 0 : index
    %c0_143 = arith.constant 0 : index
    %261 = vector.load %arg17[%c1_141, %c0_142, %c0_143] : memref<2x1x16xf32, #tpu.memory_space<vmem>>, vector<1x1x16xf32>
    %262 = vector.shape_cast %261 : vector<1x1x16xf32> to vector<1x16xf32>
    %263 = vector.broadcast %262 : vector<1x16xf32> to vector<16x16xf32>
    %264 = arith.addf %260, %263 : vector<16x16xf32>
    %c1_144 = arith.constant 1 : index
    %c0_145 = arith.constant 0 : index
    %c0_146 = arith.constant 0 : index
    %265 = vector.load %arg18[%c1_144, %c0_145, %c0_146] : memref<2x16x32xbf16, #tpu.memory_space<vmem>>, vector<1x16x32xbf16>
    %266 = vector.shape_cast %265 : vector<1x16x32xbf16> to vector<16x32xbf16>
    %267 = vector.extract_strided_slice %250 {offsets = [0, 0], sizes = [8, 16], strides = [1, 1]} : vector<16x16xf32> to vector<8x16xf32>
    %268 = arith.truncf %267 : vector<8x16xf32> to vector<8x16xbf16>
    %269 = vector.extract_strided_slice %257 {offsets = [0, 0], sizes = [8, 16], strides = [1, 1]} : vector<16x16xf32> to vector<8x16xf32>
    %270 = arith.truncf %269 : vector<8x16xf32> to vector<8x16xbf16>
    %271 = vector.extract_strided_slice %264 {offsets = [0, 0], sizes = [8, 16], strides = [1, 1]} : vector<16x16xf32> to vector<8x16xf32>
    %272 = arith.truncf %271 : vector<8x16xf32> to vector<8x16xbf16>
    %cst_147 = arith.constant dense<0.000000e+00> : vector<8x8xf32>
    %273 = tpu.matmul %268, %270, %cst_147 {dimension_numbers = #tpu.dot_dimension_numbers<[1], [1], [0], [0], [0, 0, 1, 0], [], []>} : vector<8x16xbf16>, vector<8x16xbf16>, vector<8x8xf32> -> vector<8x8xf32>
    %cst_148 = arith.constant dense<0xFF800000> : vector<8xf32>
    %274 = vector.multi_reduction <maximumf>, %273, %cst_148 [1] : vector<8x8xf32> to vector<8xf32>
    %275 = vector.shape_cast %274 : vector<8xf32> to vector<8x1xf32>
    %276 = vector.broadcast %275 : vector<8x1xf32> to vector<8x8xf32>
    %277 = arith.subf %273, %276 : vector<8x8xf32>
    %278 = math.exp %277 : vector<8x8xf32>
    %cst_149 = arith.constant dense<0.000000e+00> : vector<8xf32>
    %279 = vector.multi_reduction <add>, %278, %cst_149 [1] : vector<8x8xf32> to vector<8xf32>
    %280 = vector.shape_cast %279 : vector<8xf32> to vector<8x1xf32>
    %281 = tpu.reciprocal %280 {approx = true} : vector<8x1xf32> -> vector<8x1xf32>
    %282 = vector.broadcast %281 : vector<8x1xf32> to vector<8x8xf32>
    %283 = arith.mulf %278, %282 : vector<8x8xf32>
    %284 = arith.truncf %283 : vector<8x8xf32> to vector<8x8xbf16>
    %cst_150 = arith.constant dense<0.000000e+00> : vector<8x16xf32>
    %285 = tpu.matmul %284, %272, %cst_150 {dimension_numbers = #tpu.dot_dimension_numbers<[1], [0], [0], [1], [0, 0, 1, 1], [], []>} : vector<8x8xbf16>, vector<8x16xbf16>, vector<8x16xf32> -> vector<8x16xf32>
    %286 = arith.truncf %285 : vector<8x16xf32> to vector<8x16xbf16>
    %cst_151 = arith.constant dense<0.000000e+00> : vector<8x32xf32>
    %287 = tpu.matmul %286, %266, %cst_151 {dimension_numbers = #tpu.dot_dimension_numbers<[1], [0], [0], [1], [0, 0, 1, 1], [], []>} : vector<8x16xbf16>, vector<16x32xbf16>, vector<8x32xf32> -> vector<8x32xf32>
    %288 = arith.addf %221, %287 : vector<8x32xf32>
    %289 = vector.extract_strided_slice %250 {offsets = [8, 0], sizes = [8, 16], strides = [1, 1]} : vector<16x16xf32> to vector<8x16xf32>
    %290 = arith.truncf %289 : vector<8x16xf32> to vector<8x16xbf16>
    %291 = vector.extract_strided_slice %257 {offsets = [8, 0], sizes = [8, 16], strides = [1, 1]} : vector<16x16xf32> to vector<8x16xf32>
    %292 = arith.truncf %291 : vector<8x16xf32> to vector<8x16xbf16>
    %293 = vector.extract_strided_slice %264 {offsets = [8, 0], sizes = [8, 16], strides = [1, 1]} : vector<16x16xf32> to vector<8x16xf32>
    %294 = arith.truncf %293 : vector<8x16xf32> to vector<8x16xbf16>
    %cst_152 = arith.constant dense<0.000000e+00> : vector<8x8xf32>
    %295 = tpu.matmul %290, %292, %cst_152 {dimension_numbers = #tpu.dot_dimension_numbers<[1], [1], [0], [0], [0, 0, 1, 0], [], []>} : vector<8x16xbf16>, vector<8x16xbf16>, vector<8x8xf32> -> vector<8x8xf32>
    %cst_153 = arith.constant dense<0xFF800000> : vector<8xf32>
    %296 = vector.multi_reduction <maximumf>, %295, %cst_153 [1] : vector<8x8xf32> to vector<8xf32>
    %297 = vector.shape_cast %296 : vector<8xf32> to vector<8x1xf32>
    %298 = vector.broadcast %297 : vector<8x1xf32> to vector<8x8xf32>
    %299 = arith.subf %295, %298 : vector<8x8xf32>
    %300 = math.exp %299 : vector<8x8xf32>
    %cst_154 = arith.constant dense<0.000000e+00> : vector<8xf32>
    %301 = vector.multi_reduction <add>, %300, %cst_154 [1] : vector<8x8xf32> to vector<8xf32>
    %302 = vector.shape_cast %301 : vector<8xf32> to vector<8x1xf32>
    %303 = tpu.reciprocal %302 {approx = true} : vector<8x1xf32> -> vector<8x1xf32>
    %304 = vector.broadcast %303 : vector<8x1xf32> to vector<8x8xf32>
    %305 = arith.mulf %300, %304 : vector<8x8xf32>
    %306 = arith.truncf %305 : vector<8x8xf32> to vector<8x8xbf16>
    %cst_155 = arith.constant dense<0.000000e+00> : vector<8x16xf32>
    %307 = tpu.matmul %306, %294, %cst_155 {dimension_numbers = #tpu.dot_dimension_numbers<[1], [0], [0], [1], [0, 0, 1, 1], [], []>} : vector<8x8xbf16>, vector<8x16xbf16>, vector<8x16xf32> -> vector<8x16xf32>
    %308 = arith.truncf %307 : vector<8x16xf32> to vector<8x16xbf16>
    %cst_156 = arith.constant dense<0.000000e+00> : vector<8x32xf32>
    %309 = tpu.matmul %308, %266, %cst_156 {dimension_numbers = #tpu.dot_dimension_numbers<[1], [0], [0], [1], [0, 0, 1, 1], [], []>} : vector<8x16xbf16>, vector<16x32xbf16>, vector<8x32xf32> -> vector<8x32xf32>
    %310 = arith.addf %243, %309 : vector<8x32xf32>
    %c0_157 = arith.constant 0 : index
    %c0_158 = arith.constant 0 : index
    %311 = vector.load %arg19[%c0_157, %c0_158] : memref<1x32xf32, #tpu.memory_space<vmem>>, vector<1x32xf32>
    %312 = vector.broadcast %311 : vector<1x32xf32> to vector<8x32xf32>
    %313 = arith.addf %288, %312 : vector<8x32xf32>
    %c0_159 = arith.constant 0 : index
    %c0_160 = arith.constant 0 : index
    %314 = vector.load %arg59[%c0_159, %c0_160] : memref<16x32xf32, #tpu.memory_space<vmem>>, vector<8x32xf32>
    tpu.vector_store %arg59[%c0_159, %c0_160], %313 {strides = array<i32>} : memref<16x32xf32, #tpu.memory_space<vmem>>, vector<8x32xf32>,
    %315 = vector.broadcast %311 : vector<1x32xf32> to vector<8x32xf32>
    %316 = arith.addf %310, %315 : vector<8x32xf32>
    %c8_161 = arith.constant 8 : index
    %c0_162 = arith.constant 0 : index
    %317 = vector.load %arg59[%c8_161, %c0_162] : memref<16x32xf32, #tpu.memory_space<vmem>>, vector<8x32xf32>
    tpu.vector_store %arg59[%c8_161, %c0_162], %316 {strides = array<i32>} : memref<16x32xf32, #tpu.memory_space<vmem>>, vector<8x32xf32>,
    %c0_163 = arith.constant 0 : index
    %c0_164 = arith.constant 0 : index
    %318 = vector.load %arg59[%c0_163, %c0_164] : memref<16x32xf32, #tpu.memory_space<vmem>>, vector<16x32xf32>
    %319 = arith.addf %172, %318 : vector<16x32xf32>
    %c0_165 = arith.constant 0 : index
    %c0_166 = arith.constant 0 : index
    %320 = vector.load %arg20[%c0_165, %c0_166] : memref<1x32xf32, #tpu.memory_space<vmem>>, vector<1x32xf32>
    %c0_167 = arith.constant 0 : index
    %c0_168 = arith.constant 0 : index
    %321 = vector.load %arg21[%c0_167, %c0_168] : memref<1x32xf32, #tpu.memory_space<vmem>>, vector<1x32xf32>
    %cst_169 = arith.constant dense<0.000000e+00> : vector<16xf32>
    %322 = vector.multi_reduction <add>, %319, %cst_169 [1] : vector<16x32xf32> to vector<16xf32>
    %323 = vector.shape_cast %322 : vector<16xf32> to vector<16x1xf32>
    %cst_170 = arith.constant 3.200000e+01 : f32
    %324 = vector.broadcast %cst_170 : f32 to vector<16x1xf32>
    %325 = arith.divf %323, %324 : vector<16x1xf32>
    %326 = vector.broadcast %325 : vector<16x1xf32> to vector<16x32xf32>
    %327 = arith.subf %319, %326 : vector<16x32xf32>
    %328 = arith.mulf %327, %327 : vector<16x32xf32>
    %cst_171 = arith.constant dense<0.000000e+00> : vector<16xf32>
    %329 = vector.multi_reduction <add>, %328, %cst_171 [1] : vector<16x32xf32> to vector<16xf32>
    %330 = vector.shape_cast %329 : vector<16xf32> to vector<16x1xf32>
    %cst_172 = arith.constant 3.200000e+01 : f32
    %331 = vector.broadcast %cst_172 : f32 to vector<16x1xf32>
    %332 = arith.divf %330, %331 : vector<16x1xf32>
    %333 = vector.broadcast %325 : vector<16x1xf32> to vector<16x32xf32>
    %334 = arith.subf %319, %333 : vector<16x32xf32>
    %cst_173 = arith.constant 9.99999974E-6 : f32
    %335 = vector.broadcast %cst_173 : f32 to vector<16x1xf32>
    %336 = arith.addf %332, %335 : vector<16x1xf32>
    %337 = math.rsqrt %336 : vector<16x1xf32>
    %338 = vector.broadcast %337 : vector<16x1xf32> to vector<16x32xf32>
    %339 = arith.mulf %334, %338 : vector<16x32xf32>
    %340 = vector.broadcast %320 : vector<1x32xf32> to vector<16x32xf32>
    %341 = arith.mulf %339, %340 : vector<16x32xf32>
    %342 = vector.broadcast %321 : vector<1x32xf32> to vector<16x32xf32>
    %343 = arith.addf %341, %342 : vector<16x32xf32>
    %c0_174 = arith.constant 0 : index
    %c0_175 = arith.constant 0 : index
    %344 = vector.load %arg22[%c0_174, %c0_175] : memref<32x32xbf16, #tpu.memory_space<vmem>>, vector<32x32xbf16>
    %c0_176 = arith.constant 0 : index
    %c0_177 = arith.constant 0 : index
    %345 = vector.load %arg23[%c0_176, %c0_177] : memref<1x32xf32, #tpu.memory_space<vmem>>, vector<1x32xf32>
    %c0_178 = arith.constant 0 : index
    %c0_179 = arith.constant 0 : index
    %346 = vector.load %arg24[%c0_178, %c0_179] : memref<32x32xbf16, #tpu.memory_space<vmem>>, vector<32x32xbf16>
    %c0_180 = arith.constant 0 : index
    %c0_181 = arith.constant 0 : index
    %347 = vector.load %arg25[%c0_180, %c0_181] : memref<1x32xf32, #tpu.memory_space<vmem>>, vector<1x32xf32>
    %348 = arith.truncf %343 : vector<16x32xf32> to vector<16x32xbf16>
    %cst_182 = arith.constant dense<0.000000e+00> : vector<16x32xf32>
    %349 = tpu.matmul %348, %344, %cst_182 {dimension_numbers = #tpu.dot_dimension_numbers<[1], [0], [0], [1], [0, 0, 1, 1], [], []>} : vector<16x32xbf16>, vector<32x32xbf16>, vector<16x32xf32> -> vector<16x32xf32>
    %350 = vector.broadcast %345 : vector<1x32xf32> to vector<16x32xf32>
    %351 = arith.addf %349, %350 : vector<16x32xf32>
    %cst_183 = arith.constant 0.000000e+00 : f32
    %352 = vector.broadcast %cst_183 : f32 to vector<16x32xf32>
    %353 = arith.maximumf %351, %352 : vector<16x32xf32>
    %354 = arith.truncf %353 : vector<16x32xf32> to vector<16x32xbf16>
    %cst_184 = arith.constant dense<0.000000e+00> : vector<16x32xf32>
    %355 = tpu.matmul %354, %346, %cst_184 {dimension_numbers = #tpu.dot_dimension_numbers<[1], [0], [0], [1], [0, 0, 1, 1], [], []>} : vector<16x32xbf16>, vector<32x32xbf16>, vector<16x32xf32> -> vector<16x32xf32>
    %356 = vector.broadcast %347 : vector<1x32xf32> to vector<16x32xf32>
    %357 = arith.addf %355, %356 : vector<16x32xf32>
    %358 = arith.addf %343, %357 : vector<16x32xf32>
    %c0_185 = arith.constant 0 : index
    %c0_186 = arith.constant 0 : index
    %359 = vector.load %arg26[%c0_185, %c0_186] : memref<1x32xf32, #tpu.memory_space<vmem>>, vector<1x32xf32>
    %c0_187 = arith.constant 0 : index
    %c0_188 = arith.constant 0 : index
    %360 = vector.load %arg27[%c0_187, %c0_188] : memref<1x32xf32, #tpu.memory_space<vmem>>, vector<1x32xf32>
    %cst_189 = arith.constant dense<0.000000e+00> : vector<16xf32>
    %361 = vector.multi_reduction <add>, %358, %cst_189 [1] : vector<16x32xf32> to vector<16xf32>
    %362 = vector.shape_cast %361 : vector<16xf32> to vector<16x1xf32>
    %cst_190 = arith.constant 3.200000e+01 : f32
    %363 = vector.broadcast %cst_190 : f32 to vector<16x1xf32>
    %364 = arith.divf %362, %363 : vector<16x1xf32>
    %365 = vector.broadcast %364 : vector<16x1xf32> to vector<16x32xf32>
    %366 = arith.subf %358, %365 : vector<16x32xf32>
    %367 = arith.mulf %366, %366 : vector<16x32xf32>
    %cst_191 = arith.constant dense<0.000000e+00> : vector<16xf32>
    %368 = vector.multi_reduction <add>, %367, %cst_191 [1] : vector<16x32xf32> to vector<16xf32>
    %369 = vector.shape_cast %368 : vector<16xf32> to vector<16x1xf32>
    %cst_192 = arith.constant 3.200000e+01 : f32
    %370 = vector.broadcast %cst_192 : f32 to vector<16x1xf32>
    %371 = arith.divf %369, %370 : vector<16x1xf32>
    %372 = vector.broadcast %364 : vector<16x1xf32> to vector<16x32xf32>
    %373 = arith.subf %358, %372 : vector<16x32xf32>
    %cst_193 = arith.constant 9.99999974E-6 : f32
    %374 = vector.broadcast %cst_193 : f32 to vector<16x1xf32>
    %375 = arith.addf %371, %374 : vector<16x1xf32>
    %376 = math.rsqrt %375 : vector<16x1xf32>
    %377 = vector.broadcast %376 : vector<16x1xf32> to vector<16x32xf32>
    %378 = arith.mulf %373, %377 : vector<16x32xf32>
    %379 = vector.broadcast %359 : vector<1x32xf32> to vector<16x32xf32>
    %380 = arith.mulf %378, %379 : vector<16x32xf32>
    %381 = vector.broadcast %360 : vector<1x32xf32> to vector<16x32xf32>
    %382 = arith.addf %380, %381 : vector<16x32xf32>
    %383 = arith.truncf %382 : vector<16x32xf32> to vector<16x32xbf16>
    %384 = arith.truncf %382 : vector<16x32xf32> to vector<16x32xbf16>
    %cst_194 = arith.constant 0.000000e+00 : f32
    %385 = vector.broadcast %cst_194 : f32 to vector<8x32xf32>
    %cst_195 = arith.constant 0.000000e+00 : f32
    %386 = vector.broadcast %cst_195 : f32 to vector<8x32xf32>
    %c0_196 = arith.constant 0 : index
    %c0_197 = arith.constant 0 : index
    %c0_198 = arith.constant 0 : index
    %387 = vector.load %arg28[%c0_196, %c0_197, %c0_198] : memref<2x32x16xbf16, #tpu.memory_space<vmem>>, vector<1x32x16xbf16>
    %388 = vector.shape_cast %387 : vector<1x32x16xbf16> to vector<32x16xbf16>
    %cst_199 = arith.constant dense<0.000000e+00> : vector<16x16xf32>
    %389 = tpu.matmul %383, %388, %cst_199 {dimension_numbers = #tpu.dot_dimension_numbers<[1], [0], [0], [1], [0, 0, 1, 1], [], []>} : vector<16x32xbf16>, vector<32x16xbf16>, vector<16x16xf32> -> vector<16x16xf32>
    %c0_200 = arith.constant 0 : index
    %c0_201 = arith.constant 0 : index
    %c0_202 = arith.constant 0 : index
    %390 = vector.load %arg29[%c0_200, %c0_201, %c0_202] : memref<2x1x16xf32, #tpu.memory_space<vmem>>, vector<1x1x16xf32>
    %391 = vector.shape_cast %390 : vector<1x1x16xf32> to vector<1x16xf32>
    %392 = vector.broadcast %391 : vector<1x16xf32> to vector<16x16xf32>
    %393 = arith.addf %389, %392 : vector<16x16xf32>
    %c0_203 = arith.constant 0 : index
    %c0_204 = arith.constant 0 : index
    %c0_205 = arith.constant 0 : index
    %394 = vector.load %arg30[%c0_203, %c0_204, %c0_205] : memref<2x32x16xbf16, #tpu.memory_space<vmem>>, vector<1x32x16xbf16>
    %395 = vector.shape_cast %394 : vector<1x32x16xbf16> to vector<32x16xbf16>
    %cst_206 = arith.constant dense<0.000000e+00> : vector<16x16xf32>
    %396 = tpu.matmul %384, %395, %cst_206 {dimension_numbers = #tpu.dot_dimension_numbers<[1], [0], [0], [1], [0, 0, 1, 1], [], []>} : vector<16x32xbf16>, vector<32x16xbf16>, vector<16x16xf32> -> vector<16x16xf32>
    %c0_207 = arith.constant 0 : index
    %c0_208 = arith.constant 0 : index
    %c0_209 = arith.constant 0 : index
    %397 = vector.load %arg31[%c0_207, %c0_208, %c0_209] : memref<2x1x16xf32, #tpu.memory_space<vmem>>, vector<1x1x16xf32>
    %398 = vector.shape_cast %397 : vector<1x1x16xf32> to vector<1x16xf32>
    %399 = vector.broadcast %398 : vector<1x16xf32> to vector<16x16xf32>
    %400 = arith.addf %396, %399 : vector<16x16xf32>
    %c0_210 = arith.constant 0 : index
    %c0_211 = arith.constant 0 : index
    %c0_212 = arith.constant 0 : index
    %401 = vector.load %arg32[%c0_210, %c0_211, %c0_212] : memref<2x32x16xbf16, #tpu.memory_space<vmem>>, vector<1x32x16xbf16>
    %402 = vector.shape_cast %401 : vector<1x32x16xbf16> to vector<32x16xbf16>
    %cst_213 = arith.constant dense<0.000000e+00> : vector<16x16xf32>
    %403 = tpu.matmul %384, %402, %cst_213 {dimension_numbers = #tpu.dot_dimension_numbers<[1], [0], [0], [1], [0, 0, 1, 1], [], []>} : vector<16x32xbf16>, vector<32x16xbf16>, vector<16x16xf32> -> vector<16x16xf32>
    %c0_214 = arith.constant 0 : index
    %c0_215 = arith.constant 0 : index
    %c0_216 = arith.constant 0 : index
    %404 = vector.load %arg33[%c0_214, %c0_215, %c0_216] : memref<2x1x16xf32, #tpu.memory_space<vmem>>, vector<1x1x16xf32>
    %405 = vector.shape_cast %404 : vector<1x1x16xf32> to vector<1x16xf32>
    %406 = vector.broadcast %405 : vector<1x16xf32> to vector<16x16xf32>
    %407 = arith.addf %403, %406 : vector<16x16xf32>
    %c0_217 = arith.constant 0 : index
    %c0_218 = arith.constant 0 : index
    %c0_219 = arith.constant 0 : index
    %408 = vector.load %arg34[%c0_217, %c0_218, %c0_219] : memref<2x16x32xbf16, #tpu.memory_space<vmem>>, vector<1x16x32xbf16>
    %409 = vector.shape_cast %408 : vector<1x16x32xbf16> to vector<16x32xbf16>
    %410 = vector.extract_strided_slice %393 {offsets = [0, 0], sizes = [8, 16], strides = [1, 1]} : vector<16x16xf32> to vector<8x16xf32>
    %411 = arith.truncf %410 : vector<8x16xf32> to vector<8x16xbf16>
    %412 = vector.extract_strided_slice %400 {offsets = [0, 0], sizes = [8, 16], strides = [1, 1]} : vector<16x16xf32> to vector<8x16xf32>
    %413 = arith.truncf %412 : vector<8x16xf32> to vector<8x16xbf16>
    %414 = vector.extract_strided_slice %407 {offsets = [0, 0], sizes = [8, 16], strides = [1, 1]} : vector<16x16xf32> to vector<8x16xf32>
    %415 = arith.truncf %414 : vector<8x16xf32> to vector<8x16xbf16>
    %cst_220 = arith.constant dense<0.000000e+00> : vector<8x8xf32>
    %416 = tpu.matmul %411, %413, %cst_220 {dimension_numbers = #tpu.dot_dimension_numbers<[1], [1], [0], [0], [0, 0, 1, 0], [], []>} : vector<8x16xbf16>, vector<8x16xbf16>, vector<8x8xf32> -> vector<8x8xf32>
    %cst_221 = arith.constant dense<0xFF800000> : vector<8xf32>
    %417 = vector.multi_reduction <maximumf>, %416, %cst_221 [1] : vector<8x8xf32> to vector<8xf32>
    %418 = vector.shape_cast %417 : vector<8xf32> to vector<8x1xf32>
    %419 = vector.broadcast %418 : vector<8x1xf32> to vector<8x8xf32>
    %420 = arith.subf %416, %419 : vector<8x8xf32>
    %421 = math.exp %420 : vector<8x8xf32>
    %cst_222 = arith.constant dense<0.000000e+00> : vector<8xf32>
    %422 = vector.multi_reduction <add>, %421, %cst_222 [1] : vector<8x8xf32> to vector<8xf32>
    %423 = vector.shape_cast %422 : vector<8xf32> to vector<8x1xf32>
    %424 = tpu.reciprocal %423 {approx = true} : vector<8x1xf32> -> vector<8x1xf32>
    %425 = vector.broadcast %424 : vector<8x1xf32> to vector<8x8xf32>
    %426 = arith.mulf %421, %425 : vector<8x8xf32>
    %427 = arith.truncf %426 : vector<8x8xf32> to vector<8x8xbf16>
    %cst_223 = arith.constant dense<0.000000e+00> : vector<8x16xf32>
    %428 = tpu.matmul %427, %415, %cst_223 {dimension_numbers = #tpu.dot_dimension_numbers<[1], [0], [0], [1], [0, 0, 1, 1], [], []>} : vector<8x8xbf16>, vector<8x16xbf16>, vector<8x16xf32> -> vector<8x16xf32>
    %429 = arith.truncf %428 : vector<8x16xf32> to vector<8x16xbf16>
    %cst_224 = arith.constant dense<0.000000e+00> : vector<8x32xf32>
    %430 = tpu.matmul %429, %409, %cst_224 {dimension_numbers = #tpu.dot_dimension_numbers<[1], [0], [0], [1], [0, 0, 1, 1], [], []>} : vector<8x16xbf16>, vector<16x32xbf16>, vector<8x32xf32> -> vector<8x32xf32>
    %431 = arith.addf %385, %430 : vector<8x32xf32>
    %432 = vector.extract_strided_slice %393 {offsets = [8, 0], sizes = [8, 16], strides = [1, 1]} : vector<16x16xf32> to vector<8x16xf32>
    %433 = arith.truncf %432 : vector<8x16xf32> to vector<8x16xbf16>
    %434 = vector.extract_strided_slice %400 {offsets = [8, 0], sizes = [8, 16], strides = [1, 1]} : vector<16x16xf32> to vector<8x16xf32>
    %435 = arith.truncf %434 : vector<8x16xf32> to vector<8x16xbf16>
    %436 = vector.extract_strided_slice %407 {offsets = [8, 0], sizes = [8, 16], strides = [1, 1]} : vector<16x16xf32> to vector<8x16xf32>
    %437 = arith.truncf %436 : vector<8x16xf32> to vector<8x16xbf16>
    %cst_225 = arith.constant dense<0.000000e+00> : vector<8x8xf32>
    %438 = tpu.matmul %433, %435, %cst_225 {dimension_numbers = #tpu.dot_dimension_numbers<[1], [1], [0], [0], [0, 0, 1, 0], [], []>} : vector<8x16xbf16>, vector<8x16xbf16>, vector<8x8xf32> -> vector<8x8xf32>
    %cst_226 = arith.constant dense<0xFF800000> : vector<8xf32>
    %439 = vector.multi_reduction <maximumf>, %438, %cst_226 [1] : vector<8x8xf32> to vector<8xf32>
    %440 = vector.shape_cast %439 : vector<8xf32> to vector<8x1xf32>
    %441 = vector.broadcast %440 : vector<8x1xf32> to vector<8x8xf32>
    %442 = arith.subf %438, %441 : vector<8x8xf32>
    %443 = math.exp %442 : vector<8x8xf32>
    %cst_227 = arith.constant dense<0.000000e+00> : vector<8xf32>
    %444 = vector.multi_reduction <add>, %443, %cst_227 [1] : vector<8x8xf32> to vector<8xf32>
    %445 = vector.shape_cast %444 : vector<8xf32> to vector<8x1xf32>
    %446 = tpu.reciprocal %445 {approx = true} : vector<8x1xf32> -> vector<8x1xf32>
    %447 = vector.broadcast %446 : vector<8x1xf32> to vector<8x8xf32>
    %448 = arith.mulf %443, %447 : vector<8x8xf32>
    %449 = arith.truncf %448 : vector<8x8xf32> to vector<8x8xbf16>
    %cst_228 = arith.constant dense<0.000000e+00> : vector<8x16xf32>
    %450 = tpu.matmul %449, %437, %cst_228 {dimension_numbers = #tpu.dot_dimension_numbers<[1], [0], [0], [1], [0, 0, 1, 1], [], []>} : vector<8x8xbf16>, vector<8x16xbf16>, vector<8x16xf32> -> vector<8x16xf32>
    %451 = arith.truncf %450 : vector<8x16xf32> to vector<8x16xbf16>
    %cst_229 = arith.constant dense<0.000000e+00> : vector<8x32xf32>
    %452 = tpu.matmul %451, %409, %cst_229 {dimension_numbers = #tpu.dot_dimension_numbers<[1], [0], [0], [1], [0, 0, 1, 1], [], []>} : vector<8x16xbf16>, vector<16x32xbf16>, vector<8x32xf32> -> vector<8x32xf32>
    %453 = arith.addf %386, %452 : vector<8x32xf32>
    %c1_230 = arith.constant 1 : index
    %c0_231 = arith.constant 0 : index
    %c0_232 = arith.constant 0 : index
    %454 = vector.load %arg28[%c1_230, %c0_231, %c0_232] : memref<2x32x16xbf16, #tpu.memory_space<vmem>>, vector<1x32x16xbf16>
    %455 = vector.shape_cast %454 : vector<1x32x16xbf16> to vector<32x16xbf16>
    %cst_233 = arith.constant dense<0.000000e+00> : vector<16x16xf32>
    %456 = tpu.matmul %383, %455, %cst_233 {dimension_numbers = #tpu.dot_dimension_numbers<[1], [0], [0], [1], [0, 0, 1, 1], [], []>} : vector<16x32xbf16>, vector<32x16xbf16>, vector<16x16xf32> -> vector<16x16xf32>
    %c1_234 = arith.constant 1 : index
    %c0_235 = arith.constant 0 : index
    %c0_236 = arith.constant 0 : index
    %457 = vector.load %arg29[%c1_234, %c0_235, %c0_236] : memref<2x1x16xf32, #tpu.memory_space<vmem>>, vector<1x1x16xf32>
    %458 = vector.shape_cast %457 : vector<1x1x16xf32> to vector<1x16xf32>
    %459 = vector.broadcast %458 : vector<1x16xf32> to vector<16x16xf32>
    %460 = arith.addf %456, %459 : vector<16x16xf32>
    %c1_237 = arith.constant 1 : index
    %c0_238 = arith.constant 0 : index
    %c0_239 = arith.constant 0 : index
    %461 = vector.load %arg30[%c1_237, %c0_238, %c0_239] : memref<2x32x16xbf16, #tpu.memory_space<vmem>>, vector<1x32x16xbf16>
    %462 = vector.shape_cast %461 : vector<1x32x16xbf16> to vector<32x16xbf16>
    %cst_240 = arith.constant dense<0.000000e+00> : vector<16x16xf32>
    %463 = tpu.matmul %384, %462, %cst_240 {dimension_numbers = #tpu.dot_dimension_numbers<[1], [0], [0], [1], [0, 0, 1, 1], [], []>} : vector<16x32xbf16>, vector<32x16xbf16>, vector<16x16xf32> -> vector<16x16xf32>
    %c1_241 = arith.constant 1 : index
    %c0_242 = arith.constant 0 : index
    %c0_243 = arith.constant 0 : index
    %464 = vector.load %arg31[%c1_241, %c0_242, %c0_243] : memref<2x1x16xf32, #tpu.memory_space<vmem>>, vector<1x1x16xf32>
    %465 = vector.shape_cast %464 : vector<1x1x16xf32> to vector<1x16xf32>
    %466 = vector.broadcast %465 : vector<1x16xf32> to vector<16x16xf32>
    %467 = arith.addf %463, %466 : vector<16x16xf32>
    %c1_244 = arith.constant 1 : index
    %c0_245 = arith.constant 0 : index
    %c0_246 = arith.constant 0 : index
    %468 = vector.load %arg32[%c1_244, %c0_245, %c0_246] : memref<2x32x16xbf16, #tpu.memory_space<vmem>>, vector<1x32x16xbf16>
    %469 = vector.shape_cast %468 : vector<1x32x16xbf16> to vector<32x16xbf16>
    %cst_247 = arith.constant dense<0.000000e+00> : vector<16x16xf32>
    %470 = tpu.matmul %384, %469, %cst_247 {dimension_numbers = #tpu.dot_dimension_numbers<[1], [0], [0], [1], [0, 0, 1, 1], [], []>} : vector<16x32xbf16>, vector<32x16xbf16>, vector<16x16xf32> -> vector<16x16xf32>
    %c1_248 = arith.constant 1 : index
    %c0_249 = arith.constant 0 : index
    %c0_250 = arith.constant 0 : index
    %471 = vector.load %arg33[%c1_248, %c0_249, %c0_250] : memref<2x1x16xf32, #tpu.memory_space<vmem>>, vector<1x1x16xf32>
    %472 = vector.shape_cast %471 : vector<1x1x16xf32> to vector<1x16xf32>
    %473 = vector.broadcast %472 : vector<1x16xf32> to vector<16x16xf32>
    %474 = arith.addf %470, %473 : vector<16x16xf32>
    %c1_251 = arith.constant 1 : index
    %c0_252 = arith.constant 0 : index
    %c0_253 = arith.constant 0 : index
    %475 = vector.load %arg34[%c1_251, %c0_252, %c0_253] : memref<2x16x32xbf16, #tpu.memory_space<vmem>>, vector<1x16x32xbf16>
    %476 = vector.shape_cast %475 : vector<1x16x32xbf16> to vector<16x32xbf16>
    %477 = vector.extract_strided_slice %460 {offsets = [0, 0], sizes = [8, 16], strides = [1, 1]} : vector<16x16xf32> to vector<8x16xf32>
    %478 = arith.truncf %477 : vector<8x16xf32> to vector<8x16xbf16>
    %479 = vector.extract_strided_slice %467 {offsets = [0, 0], sizes = [8, 16], strides = [1, 1]} : vector<16x16xf32> to vector<8x16xf32>
    %480 = arith.truncf %479 : vector<8x16xf32> to vector<8x16xbf16>
    %481 = vector.extract_strided_slice %474 {offsets = [0, 0], sizes = [8, 16], strides = [1, 1]} : vector<16x16xf32> to vector<8x16xf32>
    %482 = arith.truncf %481 : vector<8x16xf32> to vector<8x16xbf16>
    %cst_254 = arith.constant dense<0.000000e+00> : vector<8x8xf32>
    %483 = tpu.matmul %478, %480, %cst_254 {dimension_numbers = #tpu.dot_dimension_numbers<[1], [1], [0], [0], [0, 0, 1, 0], [], []>} : vector<8x16xbf16>, vector<8x16xbf16>, vector<8x8xf32> -> vector<8x8xf32>
    %cst_255 = arith.constant dense<0xFF800000> : vector<8xf32>
    %484 = vector.multi_reduction <maximumf>, %483, %cst_255 [1] : vector<8x8xf32> to vector<8xf32>
    %485 = vector.shape_cast %484 : vector<8xf32> to vector<8x1xf32>
    %486 = vector.broadcast %485 : vector<8x1xf32> to vector<8x8xf32>
    %487 = arith.subf %483, %486 : vector<8x8xf32>
    %488 = math.exp %487 : vector<8x8xf32>
    %cst_256 = arith.constant dense<0.000000e+00> : vector<8xf32>
    %489 = vector.multi_reduction <add>, %488, %cst_256 [1] : vector<8x8xf32> to vector<8xf32>
    %490 = vector.shape_cast %489 : vector<8xf32> to vector<8x1xf32>
    %491 = tpu.reciprocal %490 {approx = true} : vector<8x1xf32> -> vector<8x1xf32>
    %492 = vector.broadcast %491 : vector<8x1xf32> to vector<8x8xf32>
    %493 = arith.mulf %488, %492 : vector<8x8xf32>
    %494 = arith.truncf %493 : vector<8x8xf32> to vector<8x8xbf16>
    %cst_257 = arith.constant dense<0.000000e+00> : vector<8x16xf32>
    %495 = tpu.matmul %494, %482, %cst_257 {dimension_numbers = #tpu.dot_dimension_numbers<[1], [0], [0], [1], [0, 0, 1, 1], [], []>} : vector<8x8xbf16>, vector<8x16xbf16>, vector<8x16xf32> -> vector<8x16xf32>
    %496 = arith.truncf %495 : vector<8x16xf32> to vector<8x16xbf16>
    %cst_258 = arith.constant dense<0.000000e+00> : vector<8x32xf32>
    %497 = tpu.matmul %496, %476, %cst_258 {dimension_numbers = #tpu.dot_dimension_numbers<[1], [0], [0], [1], [0, 0, 1, 1], [], []>} : vector<8x16xbf16>, vector<16x32xbf16>, vector<8x32xf32> -> vector<8x32xf32>
    %498 = arith.addf %431, %497 : vector<8x32xf32>
    %499 = vector.extract_strided_slice %460 {offsets = [8, 0], sizes = [8, 16], strides = [1, 1]} : vector<16x16xf32> to vector<8x16xf32>
    %500 = arith.truncf %499 : vector<8x16xf32> to vector<8x16xbf16>
    %501 = vector.extract_strided_slice %467 {offsets = [8, 0], sizes = [8, 16], strides = [1, 1]} : vector<16x16xf32> to vector<8x16xf32>
    %502 = arith.truncf %501 : vector<8x16xf32> to vector<8x16xbf16>
    %503 = vector.extract_strided_slice %474 {offsets = [8, 0], sizes = [8, 16], strides = [1, 1]} : vector<16x16xf32> to vector<8x16xf32>
    %504 = arith.truncf %503 : vector<8x16xf32> to vector<8x16xbf16>
    %cst_259 = arith.constant dense<0.000000e+00> : vector<8x8xf32>
    %505 = tpu.matmul %500, %502, %cst_259 {dimension_numbers = #tpu.dot_dimension_numbers<[1], [1], [0], [0], [0, 0, 1, 0], [], []>} : vector<8x16xbf16>, vector<8x16xbf16>, vector<8x8xf32> -> vector<8x8xf32>
    %cst_260 = arith.constant dense<0xFF800000> : vector<8xf32>
    %506 = vector.multi_reduction <maximumf>, %505, %cst_260 [1] : vector<8x8xf32> to vector<8xf32>
    %507 = vector.shape_cast %506 : vector<8xf32> to vector<8x1xf32>
    %508 = vector.broadcast %507 : vector<8x1xf32> to vector<8x8xf32>
    %509 = arith.subf %505, %508 : vector<8x8xf32>
    %510 = math.exp %509 : vector<8x8xf32>
    %cst_261 = arith.constant dense<0.000000e+00> : vector<8xf32>
    %511 = vector.multi_reduction <add>, %510, %cst_261 [1] : vector<8x8xf32> to vector<8xf32>
    %512 = vector.shape_cast %511 : vector<8xf32> to vector<8x1xf32>
    %513 = tpu.reciprocal %512 {approx = true} : vector<8x1xf32> -> vector<8x1xf32>
    %514 = vector.broadcast %513 : vector<8x1xf32> to vector<8x8xf32>
    %515 = arith.mulf %510, %514 : vector<8x8xf32>
    %516 = arith.truncf %515 : vector<8x8xf32> to vector<8x8xbf16>
    %cst_262 = arith.constant dense<0.000000e+00> : vector<8x16xf32>
    %517 = tpu.matmul %516, %504, %cst_262 {dimension_numbers = #tpu.dot_dimension_numbers<[1], [0], [0], [1], [0, 0, 1, 1], [], []>} : vector<8x8xbf16>, vector<8x16xbf16>, vector<8x16xf32> -> vector<8x16xf32>
    %518 = arith.truncf %517 : vector<8x16xf32> to vector<8x16xbf16>
    %cst_263 = arith.constant dense<0.000000e+00> : vector<8x32xf32>
    %519 = tpu.matmul %518, %476, %cst_263 {dimension_numbers = #tpu.dot_dimension_numbers<[1], [0], [0], [1], [0, 0, 1, 1], [], []>} : vector<8x16xbf16>, vector<16x32xbf16>, vector<8x32xf32> -> vector<8x32xf32>
    %520 = arith.addf %453, %519 : vector<8x32xf32>
    %c0_264 = arith.constant 0 : index
    %c0_265 = arith.constant 0 : index
    %521 = vector.load %arg35[%c0_264, %c0_265] : memref<1x32xf32, #tpu.memory_space<vmem>>, vector<1x32xf32>
    %522 = vector.broadcast %521 : vector<1x32xf32> to vector<8x32xf32>
    %523 = arith.addf %498, %522 : vector<8x32xf32>
    %c0_266 = arith.constant 0 : index
    %c0_267 = arith.constant 0 : index
    %524 = vector.load %arg59[%c0_266, %c0_267] : memref<16x32xf32, #tpu.memory_space<vmem>>, vector<8x32xf32>
    tpu.vector_store %arg59[%c0_266, %c0_267], %523 {strides = array<i32>} : memref<16x32xf32, #tpu.memory_space<vmem>>, vector<8x32xf32>,
    %525 = vector.broadcast %521 : vector<1x32xf32> to vector<8x32xf32>
    %526 = arith.addf %520, %525 : vector<8x32xf32>
    %c8_268 = arith.constant 8 : index
    %c0_269 = arith.constant 0 : index
    %527 = vector.load %arg59[%c8_268, %c0_269] : memref<16x32xf32, #tpu.memory_space<vmem>>, vector<8x32xf32>
    tpu.vector_store %arg59[%c8_268, %c0_269], %526 {strides = array<i32>} : memref<16x32xf32, #tpu.memory_space<vmem>>, vector<8x32xf32>,
    %c0_270 = arith.constant 0 : index
    %c0_271 = arith.constant 0 : index
    %528 = vector.load %arg59[%c0_270, %c0_271] : memref<16x32xf32, #tpu.memory_space<vmem>>, vector<16x32xf32>
    %529 = arith.addf %382, %528 : vector<16x32xf32>
    %c0_272 = arith.constant 0 : index
    %c0_273 = arith.constant 0 : index
    %530 = vector.load %arg36[%c0_272, %c0_273] : memref<1x32xf32, #tpu.memory_space<vmem>>, vector<1x32xf32>
    %c0_274 = arith.constant 0 : index
    %c0_275 = arith.constant 0 : index
    %531 = vector.load %arg37[%c0_274, %c0_275] : memref<1x32xf32, #tpu.memory_space<vmem>>, vector<1x32xf32>
    %cst_276 = arith.constant dense<0.000000e+00> : vector<16xf32>
    %532 = vector.multi_reduction <add>, %529, %cst_276 [1] : vector<16x32xf32> to vector<16xf32>
    %533 = vector.shape_cast %532 : vector<16xf32> to vector<16x1xf32>
    %cst_277 = arith.constant 3.200000e+01 : f32
    %534 = vector.broadcast %cst_277 : f32 to vector<16x1xf32>
    %535 = arith.divf %533, %534 : vector<16x1xf32>
    %536 = vector.broadcast %535 : vector<16x1xf32> to vector<16x32xf32>
    %537 = arith.subf %529, %536 : vector<16x32xf32>
    %538 = arith.mulf %537, %537 : vector<16x32xf32>
    %cst_278 = arith.constant dense<0.000000e+00> : vector<16xf32>
    %539 = vector.multi_reduction <add>, %538, %cst_278 [1] : vector<16x32xf32> to vector<16xf32>
    %540 = vector.shape_cast %539 : vector<16xf32> to vector<16x1xf32>
    %cst_279 = arith.constant 3.200000e+01 : f32
    %541 = vector.broadcast %cst_279 : f32 to vector<16x1xf32>
    %542 = arith.divf %540, %541 : vector<16x1xf32>
    %543 = vector.broadcast %535 : vector<16x1xf32> to vector<16x32xf32>
    %544 = arith.subf %529, %543 : vector<16x32xf32>
    %cst_280 = arith.constant 9.99999974E-6 : f32
    %545 = vector.broadcast %cst_280 : f32 to vector<16x1xf32>
    %546 = arith.addf %542, %545 : vector<16x1xf32>
    %547 = math.rsqrt %546 : vector<16x1xf32>
    %548 = vector.broadcast %547 : vector<16x1xf32> to vector<16x32xf32>
    %549 = arith.mulf %544, %548 : vector<16x32xf32>
    %550 = vector.broadcast %530 : vector<1x32xf32> to vector<16x32xf32>
    %551 = arith.mulf %549, %550 : vector<16x32xf32>
    %552 = vector.broadcast %531 : vector<1x32xf32> to vector<16x32xf32>
    %553 = arith.addf %551, %552 : vector<16x32xf32>
    %554 = arith.truncf %553 : vector<16x32xf32> to vector<16x32xbf16>
    %555 = arith.truncf %1 : vector<16x32xf32> to vector<16x32xbf16>
    %cst_281 = arith.constant 0.000000e+00 : f32
    %556 = vector.broadcast %cst_281 : f32 to vector<8x32xf32>
    %cst_282 = arith.constant 0.000000e+00 : f32
    %557 = vector.broadcast %cst_282 : f32 to vector<8x32xf32>
    %c0_283 = arith.constant 0 : index
    %c0_284 = arith.constant 0 : index
    %c0_285 = arith.constant 0 : index
    %558 = vector.load %arg38[%c0_283, %c0_284, %c0_285] : memref<2x32x16xbf16, #tpu.memory_space<vmem>>, vector<1x32x16xbf16>
    %559 = vector.shape_cast %558 : vector<1x32x16xbf16> to vector<32x16xbf16>
    %cst_286 = arith.constant dense<0.000000e+00> : vector<16x16xf32>
    %560 = tpu.matmul %554, %559, %cst_286 {dimension_numbers = #tpu.dot_dimension_numbers<[1], [0], [0], [1], [0, 0, 1, 1], [], []>} : vector<16x32xbf16>, vector<32x16xbf16>, vector<16x16xf32> -> vector<16x16xf32>
    %c0_287 = arith.constant 0 : index
    %c0_288 = arith.constant 0 : index
    %c0_289 = arith.constant 0 : index
    %561 = vector.load %arg39[%c0_287, %c0_288, %c0_289] : memref<2x1x16xf32, #tpu.memory_space<vmem>>, vector<1x1x16xf32>
    %562 = vector.shape_cast %561 : vector<1x1x16xf32> to vector<1x16xf32>
    %563 = vector.broadcast %562 : vector<1x16xf32> to vector<16x16xf32>
    %564 = arith.addf %560, %563 : vector<16x16xf32>
    %c0_290 = arith.constant 0 : index
    %c0_291 = arith.constant 0 : index
    %c0_292 = arith.constant 0 : index
    %565 = vector.load %arg40[%c0_290, %c0_291, %c0_292] : memref<2x32x16xbf16, #tpu.memory_space<vmem>>, vector<1x32x16xbf16>
    %566 = vector.shape_cast %565 : vector<1x32x16xbf16> to vector<32x16xbf16>
    %cst_293 = arith.constant dense<0.000000e+00> : vector<16x16xf32>
    %567 = tpu.matmul %555, %566, %cst_293 {dimension_numbers = #tpu.dot_dimension_numbers<[1], [0], [0], [1], [0, 0, 1, 1], [], []>} : vector<16x32xbf16>, vector<32x16xbf16>, vector<16x16xf32> -> vector<16x16xf32>
    %c0_294 = arith.constant 0 : index
    %c0_295 = arith.constant 0 : index
    %c0_296 = arith.constant 0 : index
    %568 = vector.load %arg41[%c0_294, %c0_295, %c0_296] : memref<2x1x16xf32, #tpu.memory_space<vmem>>, vector<1x1x16xf32>
    %569 = vector.shape_cast %568 : vector<1x1x16xf32> to vector<1x16xf32>
    %570 = vector.broadcast %569 : vector<1x16xf32> to vector<16x16xf32>
    %571 = arith.addf %567, %570 : vector<16x16xf32>
    %c0_297 = arith.constant 0 : index
    %c0_298 = arith.constant 0 : index
    %c0_299 = arith.constant 0 : index
    %572 = vector.load %arg42[%c0_297, %c0_298, %c0_299] : memref<2x32x16xbf16, #tpu.memory_space<vmem>>, vector<1x32x16xbf16>
    %573 = vector.shape_cast %572 : vector<1x32x16xbf16> to vector<32x16xbf16>
    %cst_300 = arith.constant dense<0.000000e+00> : vector<16x16xf32>
    %574 = tpu.matmul %555, %573, %cst_300 {dimension_numbers = #tpu.dot_dimension_numbers<[1], [0], [0], [1], [0, 0, 1, 1], [], []>} : vector<16x32xbf16>, vector<32x16xbf16>, vector<16x16xf32> -> vector<16x16xf32>
    %c0_301 = arith.constant 0 : index
    %c0_302 = arith.constant 0 : index
    %c0_303 = arith.constant 0 : index
    %575 = vector.load %arg43[%c0_301, %c0_302, %c0_303] : memref<2x1x16xf32, #tpu.memory_space<vmem>>, vector<1x1x16xf32>
    %576 = vector.shape_cast %575 : vector<1x1x16xf32> to vector<1x16xf32>
    %577 = vector.broadcast %576 : vector<1x16xf32> to vector<16x16xf32>
    %578 = arith.addf %574, %577 : vector<16x16xf32>
    %c0_304 = arith.constant 0 : index
    %c0_305 = arith.constant 0 : index
    %c0_306 = arith.constant 0 : index
    %579 = vector.load %arg44[%c0_304, %c0_305, %c0_306] : memref<2x16x32xbf16, #tpu.memory_space<vmem>>, vector<1x16x32xbf16>
    %580 = vector.shape_cast %579 : vector<1x16x32xbf16> to vector<16x32xbf16>
    %581 = vector.extract_strided_slice %564 {offsets = [0, 0], sizes = [8, 16], strides = [1, 1]} : vector<16x16xf32> to vector<8x16xf32>
    %582 = arith.truncf %581 : vector<8x16xf32> to vector<8x16xbf16>
    %583 = vector.extract_strided_slice %571 {offsets = [0, 0], sizes = [8, 16], strides = [1, 1]} : vector<16x16xf32> to vector<8x16xf32>
    %584 = arith.truncf %583 : vector<8x16xf32> to vector<8x16xbf16>
    %585 = vector.extract_strided_slice %578 {offsets = [0, 0], sizes = [8, 16], strides = [1, 1]} : vector<16x16xf32> to vector<8x16xf32>
    %586 = arith.truncf %585 : vector<8x16xf32> to vector<8x16xbf16>
    %cst_307 = arith.constant dense<0.000000e+00> : vector<8x8xf32>
    %587 = tpu.matmul %582, %584, %cst_307 {dimension_numbers = #tpu.dot_dimension_numbers<[1], [1], [0], [0], [0, 0, 1, 0], [], []>} : vector<8x16xbf16>, vector<8x16xbf16>, vector<8x8xf32> -> vector<8x8xf32>
    %cst_308 = arith.constant dense<0xFF800000> : vector<8xf32>
    %588 = vector.multi_reduction <maximumf>, %587, %cst_308 [1] : vector<8x8xf32> to vector<8xf32>
    %589 = vector.shape_cast %588 : vector<8xf32> to vector<8x1xf32>
    %590 = vector.broadcast %589 : vector<8x1xf32> to vector<8x8xf32>
    %591 = arith.subf %587, %590 : vector<8x8xf32>
    %592 = math.exp %591 : vector<8x8xf32>
    %cst_309 = arith.constant dense<0.000000e+00> : vector<8xf32>
    %593 = vector.multi_reduction <add>, %592, %cst_309 [1] : vector<8x8xf32> to vector<8xf32>
    %594 = vector.shape_cast %593 : vector<8xf32> to vector<8x1xf32>
    %595 = tpu.reciprocal %594 {approx = true} : vector<8x1xf32> -> vector<8x1xf32>
    %596 = vector.broadcast %595 : vector<8x1xf32> to vector<8x8xf32>
    %597 = arith.mulf %592, %596 : vector<8x8xf32>
    %598 = arith.truncf %597 : vector<8x8xf32> to vector<8x8xbf16>
    %cst_310 = arith.constant dense<0.000000e+00> : vector<8x16xf32>
    %599 = tpu.matmul %598, %586, %cst_310 {dimension_numbers = #tpu.dot_dimension_numbers<[1], [0], [0], [1], [0, 0, 1, 1], [], []>} : vector<8x8xbf16>, vector<8x16xbf16>, vector<8x16xf32> -> vector<8x16xf32>
    %600 = arith.truncf %599 : vector<8x16xf32> to vector<8x16xbf16>
    %cst_311 = arith.constant dense<0.000000e+00> : vector<8x32xf32>
    %601 = tpu.matmul %600, %580, %cst_311 {dimension_numbers = #tpu.dot_dimension_numbers<[1], [0], [0], [1], [0, 0, 1, 1], [], []>} : vector<8x16xbf16>, vector<16x32xbf16>, vector<8x32xf32> -> vector<8x32xf32>
    %602 = arith.addf %556, %601 : vector<8x32xf32>
    %603 = vector.extract_strided_slice %564 {offsets = [8, 0], sizes = [8, 16], strides = [1, 1]} : vector<16x16xf32> to vector<8x16xf32>
    %604 = arith.truncf %603 : vector<8x16xf32> to vector<8x16xbf16>
    %605 = vector.extract_strided_slice %571 {offsets = [8, 0], sizes = [8, 16], strides = [1, 1]} : vector<16x16xf32> to vector<8x16xf32>
    %606 = arith.truncf %605 : vector<8x16xf32> to vector<8x16xbf16>
    %607 = vector.extract_strided_slice %578 {offsets = [8, 0], sizes = [8, 16], strides = [1, 1]} : vector<16x16xf32> to vector<8x16xf32>
    %608 = arith.truncf %607 : vector<8x16xf32> to vector<8x16xbf16>
    %cst_312 = arith.constant dense<0.000000e+00> : vector<8x8xf32>
    %609 = tpu.matmul %604, %606, %cst_312 {dimension_numbers = #tpu.dot_dimension_numbers<[1], [1], [0], [0], [0, 0, 1, 0], [], []>} : vector<8x16xbf16>, vector<8x16xbf16>, vector<8x8xf32> -> vector<8x8xf32>
    %cst_313 = arith.constant dense<0xFF800000> : vector<8xf32>
    %610 = vector.multi_reduction <maximumf>, %609, %cst_313 [1] : vector<8x8xf32> to vector<8xf32>
    %611 = vector.shape_cast %610 : vector<8xf32> to vector<8x1xf32>
    %612 = vector.broadcast %611 : vector<8x1xf32> to vector<8x8xf32>
    %613 = arith.subf %609, %612 : vector<8x8xf32>
    %614 = math.exp %613 : vector<8x8xf32>
    %cst_314 = arith.constant dense<0.000000e+00> : vector<8xf32>
    %615 = vector.multi_reduction <add>, %614, %cst_314 [1] : vector<8x8xf32> to vector<8xf32>
    %616 = vector.shape_cast %615 : vector<8xf32> to vector<8x1xf32>
    %617 = tpu.reciprocal %616 {approx = true} : vector<8x1xf32> -> vector<8x1xf32>
    %618 = vector.broadcast %617 : vector<8x1xf32> to vector<8x8xf32>
    %619 = arith.mulf %614, %618 : vector<8x8xf32>
    %620 = arith.truncf %619 : vector<8x8xf32> to vector<8x8xbf16>
    %cst_315 = arith.constant dense<0.000000e+00> : vector<8x16xf32>
    %621 = tpu.matmul %620, %608, %cst_315 {dimension_numbers = #tpu.dot_dimension_numbers<[1], [0], [0], [1], [0, 0, 1, 1], [], []>} : vector<8x8xbf16>, vector<8x16xbf16>, vector<8x16xf32> -> vector<8x16xf32>
    %622 = arith.truncf %621 : vector<8x16xf32> to vector<8x16xbf16>
    %cst_316 = arith.constant dense<0.000000e+00> : vector<8x32xf32>
    %623 = tpu.matmul %622, %580, %cst_316 {dimension_numbers = #tpu.dot_dimension_numbers<[1], [0], [0], [1], [0, 0, 1, 1], [], []>} : vector<8x16xbf16>, vector<16x32xbf16>, vector<8x32xf32> -> vector<8x32xf32>
    %624 = arith.addf %557, %623 : vector<8x32xf32>
    %c1_317 = arith.constant 1 : index
    %c0_318 = arith.constant 0 : index
    %c0_319 = arith.constant 0 : index
    %625 = vector.load %arg38[%c1_317, %c0_318, %c0_319] : memref<2x32x16xbf16, #tpu.memory_space<vmem>>, vector<1x32x16xbf16>
    %626 = vector.shape_cast %625 : vector<1x32x16xbf16> to vector<32x16xbf16>
    %cst_320 = arith.constant dense<0.000000e+00> : vector<16x16xf32>
    %627 = tpu.matmul %554, %626, %cst_320 {dimension_numbers = #tpu.dot_dimension_numbers<[1], [0], [0], [1], [0, 0, 1, 1], [], []>} : vector<16x32xbf16>, vector<32x16xbf16>, vector<16x16xf32> -> vector<16x16xf32>
    %c1_321 = arith.constant 1 : index
    %c0_322 = arith.constant 0 : index
    %c0_323 = arith.constant 0 : index
    %628 = vector.load %arg39[%c1_321, %c0_322, %c0_323] : memref<2x1x16xf32, #tpu.memory_space<vmem>>, vector<1x1x16xf32>
    %629 = vector.shape_cast %628 : vector<1x1x16xf32> to vector<1x16xf32>
    %630 = vector.broadcast %629 : vector<1x16xf32> to vector<16x16xf32>
    %631 = arith.addf %627, %630 : vector<16x16xf32>
    %c1_324 = arith.constant 1 : index
    %c0_325 = arith.constant 0 : index
    %c0_326 = arith.constant 0 : index
    %632 = vector.load %arg40[%c1_324, %c0_325, %c0_326] : memref<2x32x16xbf16, #tpu.memory_space<vmem>>, vector<1x32x16xbf16>
    %633 = vector.shape_cast %632 : vector<1x32x16xbf16> to vector<32x16xbf16>
    %cst_327 = arith.constant dense<0.000000e+00> : vector<16x16xf32>
    %634 = tpu.matmul %555, %633, %cst_327 {dimension_numbers = #tpu.dot_dimension_numbers<[1], [0], [0], [1], [0, 0, 1, 1], [], []>} : vector<16x32xbf16>, vector<32x16xbf16>, vector<16x16xf32> -> vector<16x16xf32>
    %c1_328 = arith.constant 1 : index
    %c0_329 = arith.constant 0 : index
    %c0_330 = arith.constant 0 : index
    %635 = vector.load %arg41[%c1_328, %c0_329, %c0_330] : memref<2x1x16xf32, #tpu.memory_space<vmem>>, vector<1x1x16xf32>
    %636 = vector.shape_cast %635 : vector<1x1x16xf32> to vector<1x16xf32>
    %637 = vector.broadcast %636 : vector<1x16xf32> to vector<16x16xf32>
    %638 = arith.addf %634, %637 : vector<16x16xf32>
    %c1_331 = arith.constant 1 : index
    %c0_332 = arith.constant 0 : index
    %c0_333 = arith.constant 0 : index
    %639 = vector.load %arg42[%c1_331, %c0_332, %c0_333] : memref<2x32x16xbf16, #tpu.memory_space<vmem>>, vector<1x32x16xbf16>
    %640 = vector.shape_cast %639 : vector<1x32x16xbf16> to vector<32x16xbf16>
    %cst_334 = arith.constant dense<0.000000e+00> : vector<16x16xf32>
    %641 = tpu.matmul %555, %640, %cst_334 {dimension_numbers = #tpu.dot_dimension_numbers<[1], [0], [0], [1], [0, 0, 1, 1], [], []>} : vector<16x32xbf16>, vector<32x16xbf16>, vector<16x16xf32> -> vector<16x16xf32>
    %c1_335 = arith.constant 1 : index
    %c0_336 = arith.constant 0 : index
    %c0_337 = arith.constant 0 : index
    %642 = vector.load %arg43[%c1_335, %c0_336, %c0_337] : memref<2x1x16xf32, #tpu.memory_space<vmem>>, vector<1x1x16xf32>
    %643 = vector.shape_cast %642 : vector<1x1x16xf32> to vector<1x16xf32>
    %644 = vector.broadcast %643 : vector<1x16xf32> to vector<16x16xf32>
    %645 = arith.addf %641, %644 : vector<16x16xf32>
    %c1_338 = arith.constant 1 : index
    %c0_339 = arith.constant 0 : index
    %c0_340 = arith.constant 0 : index
    %646 = vector.load %arg44[%c1_338, %c0_339, %c0_340] : memref<2x16x32xbf16, #tpu.memory_space<vmem>>, vector<1x16x32xbf16>
    %647 = vector.shape_cast %646 : vector<1x16x32xbf16> to vector<16x32xbf16>
    %648 = vector.extract_strided_slice %631 {offsets = [0, 0], sizes = [8, 16], strides = [1, 1]} : vector<16x16xf32> to vector<8x16xf32>
    %649 = arith.truncf %648 : vector<8x16xf32> to vector<8x16xbf16>
    %650 = vector.extract_strided_slice %638 {offsets = [0, 0], sizes = [8, 16], strides = [1, 1]} : vector<16x16xf32> to vector<8x16xf32>
    %651 = arith.truncf %650 : vector<8x16xf32> to vector<8x16xbf16>
    %652 = vector.extract_strided_slice %645 {offsets = [0, 0], sizes = [8, 16], strides = [1, 1]} : vector<16x16xf32> to vector<8x16xf32>
    %653 = arith.truncf %652 : vector<8x16xf32> to vector<8x16xbf16>
    %cst_341 = arith.constant dense<0.000000e+00> : vector<8x8xf32>
    %654 = tpu.matmul %649, %651, %cst_341 {dimension_numbers = #tpu.dot_dimension_numbers<[1], [1], [0], [0], [0, 0, 1, 0], [], []>} : vector<8x16xbf16>, vector<8x16xbf16>, vector<8x8xf32> -> vector<8x8xf32>
    %cst_342 = arith.constant dense<0xFF800000> : vector<8xf32>
    %655 = vector.multi_reduction <maximumf>, %654, %cst_342 [1] : vector<8x8xf32> to vector<8xf32>
    %656 = vector.shape_cast %655 : vector<8xf32> to vector<8x1xf32>
    %657 = vector.broadcast %656 : vector<8x1xf32> to vector<8x8xf32>
    %658 = arith.subf %654, %657 : vector<8x8xf32>
    %659 = math.exp %658 : vector<8x8xf32>
    %cst_343 = arith.constant dense<0.000000e+00> : vector<8xf32>
    %660 = vector.multi_reduction <add>, %659, %cst_343 [1] : vector<8x8xf32> to vector<8xf32>
    %661 = vector.shape_cast %660 : vector<8xf32> to vector<8x1xf32>
    %662 = tpu.reciprocal %661 {approx = true} : vector<8x1xf32> -> vector<8x1xf32>
    %663 = vector.broadcast %662 : vector<8x1xf32> to vector<8x8xf32>
    %664 = arith.mulf %659, %663 : vector<8x8xf32>
    %665 = arith.truncf %664 : vector<8x8xf32> to vector<8x8xbf16>
    %cst_344 = arith.constant dense<0.000000e+00> : vector<8x16xf32>
    %666 = tpu.matmul %665, %653, %cst_344 {dimension_numbers = #tpu.dot_dimension_numbers<[1], [0], [0], [1], [0, 0, 1, 1], [], []>} : vector<8x8xbf16>, vector<8x16xbf16>, vector<8x16xf32> -> vector<8x16xf32>
    %667 = arith.truncf %666 : vector<8x16xf32> to vector<8x16xbf16>
    %cst_345 = arith.constant dense<0.000000e+00> : vector<8x32xf32>
    %668 = tpu.matmul %667, %647, %cst_345 {dimension_numbers = #tpu.dot_dimension_numbers<[1], [0], [0], [1], [0, 0, 1, 1], [], []>} : vector<8x16xbf16>, vector<16x32xbf16>, vector<8x32xf32> -> vector<8x32xf32>
    %669 = arith.addf %602, %668 : vector<8x32xf32>
    %670 = vector.extract_strided_slice %631 {offsets = [8, 0], sizes = [8, 16], strides = [1, 1]} : vector<16x16xf32> to vector<8x16xf32>
    %671 = arith.truncf %670 : vector<8x16xf32> to vector<8x16xbf16>
    %672 = vector.extract_strided_slice %638 {offsets = [8, 0], sizes = [8, 16], strides = [1, 1]} : vector<16x16xf32> to vector<8x16xf32>
    %673 = arith.truncf %672 : vector<8x16xf32> to vector<8x16xbf16>
    %674 = vector.extract_strided_slice %645 {offsets = [8, 0], sizes = [8, 16], strides = [1, 1]} : vector<16x16xf32> to vector<8x16xf32>
    %675 = arith.truncf %674 : vector<8x16xf32> to vector<8x16xbf16>
    %cst_346 = arith.constant dense<0.000000e+00> : vector<8x8xf32>
    %676 = tpu.matmul %671, %673, %cst_346 {dimension_numbers = #tpu.dot_dimension_numbers<[1], [1], [0], [0], [0, 0, 1, 0], [], []>} : vector<8x16xbf16>, vector<8x16xbf16>, vector<8x8xf32> -> vector<8x8xf32>
    %cst_347 = arith.constant dense<0xFF800000> : vector<8xf32>
    %677 = vector.multi_reduction <maximumf>, %676, %cst_347 [1] : vector<8x8xf32> to vector<8xf32>
    %678 = vector.shape_cast %677 : vector<8xf32> to vector<8x1xf32>
    %679 = vector.broadcast %678 : vector<8x1xf32> to vector<8x8xf32>
    %680 = arith.subf %676, %679 : vector<8x8xf32>
    %681 = math.exp %680 : vector<8x8xf32>
    %cst_348 = arith.constant dense<0.000000e+00> : vector<8xf32>
    %682 = vector.multi_reduction <add>, %681, %cst_348 [1] : vector<8x8xf32> to vector<8xf32>
    %683 = vector.shape_cast %682 : vector<8xf32> to vector<8x1xf32>
    %684 = tpu.reciprocal %683 {approx = true} : vector<8x1xf32> -> vector<8x1xf32>
    %685 = vector.broadcast %684 : vector<8x1xf32> to vector<8x8xf32>
    %686 = arith.mulf %681, %685 : vector<8x8xf32>
    %687 = arith.truncf %686 : vector<8x8xf32> to vector<8x8xbf16>
    %cst_349 = arith.constant dense<0.000000e+00> : vector<8x16xf32>
    %688 = tpu.matmul %687, %675, %cst_349 {dimension_numbers = #tpu.dot_dimension_numbers<[1], [0], [0], [1], [0, 0, 1, 1], [], []>} : vector<8x8xbf16>, vector<8x16xbf16>, vector<8x16xf32> -> vector<8x16xf32>
    %689 = arith.truncf %688 : vector<8x16xf32> to vector<8x16xbf16>
    %cst_350 = arith.constant dense<0.000000e+00> : vector<8x32xf32>
    %690 = tpu.matmul %689, %647, %cst_350 {dimension_numbers = #tpu.dot_dimension_numbers<[1], [0], [0], [1], [0, 0, 1, 1], [], []>} : vector<8x16xbf16>, vector<16x32xbf16>, vector<8x32xf32> -> vector<8x32xf32>
    %691 = arith.addf %624, %690 : vector<8x32xf32>
    %c0_351 = arith.constant 0 : index
    %c0_352 = arith.constant 0 : index
    %692 = vector.load %arg45[%c0_351, %c0_352] : memref<1x32xf32, #tpu.memory_space<vmem>>, vector<1x32xf32>
    %693 = vector.broadcast %692 : vector<1x32xf32> to vector<8x32xf32>
    %694 = arith.addf %669, %693 : vector<8x32xf32>
    %c0_353 = arith.constant 0 : index
    %c0_354 = arith.constant 0 : index
    %695 = vector.load %arg59[%c0_353, %c0_354] : memref<16x32xf32, #tpu.memory_space<vmem>>, vector<8x32xf32>
    tpu.vector_store %arg59[%c0_353, %c0_354], %694 {strides = array<i32>} : memref<16x32xf32, #tpu.memory_space<vmem>>, vector<8x32xf32>,
    %696 = vector.broadcast %692 : vector<1x32xf32> to vector<8x32xf32>
    %697 = arith.addf %691, %696 : vector<8x32xf32>
    %c8_355 = arith.constant 8 : index
    %c0_356 = arith.constant 0 : index
    %698 = vector.load %arg59[%c8_355, %c0_356] : memref<16x32xf32, #tpu.memory_space<vmem>>, vector<8x32xf32>
    tpu.vector_store %arg59[%c8_355, %c0_356], %697 {strides = array<i32>} : memref<16x32xf32, #tpu.memory_space<vmem>>, vector<8x32xf32>,
    %c0_357 = arith.constant 0 : index
    %c0_358 = arith.constant 0 : index
    %699 = vector.load %arg59[%c0_357, %c0_358] : memref<16x32xf32, #tpu.memory_space<vmem>>, vector<16x32xf32>
    %700 = arith.addf %553, %699 : vector<16x32xf32>
    %c0_359 = arith.constant 0 : index
    %c0_360 = arith.constant 0 : index
    %701 = vector.load %arg46[%c0_359, %c0_360] : memref<1x32xf32, #tpu.memory_space<vmem>>, vector<1x32xf32>
    %c0_361 = arith.constant 0 : index
    %c0_362 = arith.constant 0 : index
    %702 = vector.load %arg47[%c0_361, %c0_362] : memref<1x32xf32, #tpu.memory_space<vmem>>, vector<1x32xf32>
    %cst_363 = arith.constant dense<0.000000e+00> : vector<16xf32>
    %703 = vector.multi_reduction <add>, %700, %cst_363 [1] : vector<16x32xf32> to vector<16xf32>
    %704 = vector.shape_cast %703 : vector<16xf32> to vector<16x1xf32>
    %cst_364 = arith.constant 3.200000e+01 : f32
    %705 = vector.broadcast %cst_364 : f32 to vector<16x1xf32>
    %706 = arith.divf %704, %705 : vector<16x1xf32>
    %707 = vector.broadcast %706 : vector<16x1xf32> to vector<16x32xf32>
    %708 = arith.subf %700, %707 : vector<16x32xf32>
    %709 = arith.mulf %708, %708 : vector<16x32xf32>
    %cst_365 = arith.constant dense<0.000000e+00> : vector<16xf32>
    %710 = vector.multi_reduction <add>, %709, %cst_365 [1] : vector<16x32xf32> to vector<16xf32>
    %711 = vector.shape_cast %710 : vector<16xf32> to vector<16x1xf32>
    %cst_366 = arith.constant 3.200000e+01 : f32
    %712 = vector.broadcast %cst_366 : f32 to vector<16x1xf32>
    %713 = arith.divf %711, %712 : vector<16x1xf32>
    %714 = vector.broadcast %706 : vector<16x1xf32> to vector<16x32xf32>
    %715 = arith.subf %700, %714 : vector<16x32xf32>
    %cst_367 = arith.constant 9.99999974E-6 : f32
    %716 = vector.broadcast %cst_367 : f32 to vector<16x1xf32>
    %717 = arith.addf %713, %716 : vector<16x1xf32>
    %718 = math.rsqrt %717 : vector<16x1xf32>
    %719 = vector.broadcast %718 : vector<16x1xf32> to vector<16x32xf32>
    %720 = arith.mulf %715, %719 : vector<16x32xf32>
    %721 = vector.broadcast %701 : vector<1x32xf32> to vector<16x32xf32>
    %722 = arith.mulf %720, %721 : vector<16x32xf32>
    %723 = vector.broadcast %702 : vector<1x32xf32> to vector<16x32xf32>
    %724 = arith.addf %722, %723 : vector<16x32xf32>
    %c0_368 = arith.constant 0 : index
    %c0_369 = arith.constant 0 : index
    %725 = vector.load %arg48[%c0_368, %c0_369] : memref<32x32xbf16, #tpu.memory_space<vmem>>, vector<32x32xbf16>
    %c0_370 = arith.constant 0 : index
    %c0_371 = arith.constant 0 : index
    %726 = vector.load %arg49[%c0_370, %c0_371] : memref<1x32xf32, #tpu.memory_space<vmem>>, vector<1x32xf32>
    %c0_372 = arith.constant 0 : index
    %c0_373 = arith.constant 0 : index
    %727 = vector.load %arg50[%c0_372, %c0_373] : memref<32x32xbf16, #tpu.memory_space<vmem>>, vector<32x32xbf16>
    %c0_374 = arith.constant 0 : index
    %c0_375 = arith.constant 0 : index
    %728 = vector.load %arg51[%c0_374, %c0_375] : memref<1x32xf32, #tpu.memory_space<vmem>>, vector<1x32xf32>
    %729 = arith.truncf %724 : vector<16x32xf32> to vector<16x32xbf16>
    %cst_376 = arith.constant dense<0.000000e+00> : vector<16x32xf32>
    %730 = tpu.matmul %729, %725, %cst_376 {dimension_numbers = #tpu.dot_dimension_numbers<[1], [0], [0], [1], [0, 0, 1, 1], [], []>} : vector<16x32xbf16>, vector<32x32xbf16>, vector<16x32xf32> -> vector<16x32xf32>
    %731 = vector.broadcast %726 : vector<1x32xf32> to vector<16x32xf32>
    %732 = arith.addf %730, %731 : vector<16x32xf32>
    %cst_377 = arith.constant 0.000000e+00 : f32
    %733 = vector.broadcast %cst_377 : f32 to vector<16x32xf32>
    %734 = arith.maximumf %732, %733 : vector<16x32xf32>
    %735 = arith.truncf %734 : vector<16x32xf32> to vector<16x32xbf16>
    %cst_378 = arith.constant dense<0.000000e+00> : vector<16x32xf32>
    %736 = tpu.matmul %735, %727, %cst_378 {dimension_numbers = #tpu.dot_dimension_numbers<[1], [0], [0], [1], [0, 0, 1, 1], [], []>} : vector<16x32xbf16>, vector<32x32xbf16>, vector<16x32xf32> -> vector<16x32xf32>
    %737 = vector.broadcast %728 : vector<1x32xf32> to vector<16x32xf32>
    %738 = arith.addf %736, %737 : vector<16x32xf32>
    %739 = arith.addf %724, %738 : vector<16x32xf32>
    %c0_379 = arith.constant 0 : index
    %c0_380 = arith.constant 0 : index
    %740 = vector.load %arg52[%c0_379, %c0_380] : memref<1x32xf32, #tpu.memory_space<vmem>>, vector<1x32xf32>
    %c0_381 = arith.constant 0 : index
    %c0_382 = arith.constant 0 : index
    %741 = vector.load %arg53[%c0_381, %c0_382] : memref<1x32xf32, #tpu.memory_space<vmem>>, vector<1x32xf32>
    %cst_383 = arith.constant dense<0.000000e+00> : vector<16xf32>
    %742 = vector.multi_reduction <add>, %739, %cst_383 [1] : vector<16x32xf32> to vector<16xf32>
    %743 = vector.shape_cast %742 : vector<16xf32> to vector<16x1xf32>
    %cst_384 = arith.constant 3.200000e+01 : f32
    %744 = vector.broadcast %cst_384 : f32 to vector<16x1xf32>
    %745 = arith.divf %743, %744 : vector<16x1xf32>
    %746 = vector.broadcast %745 : vector<16x1xf32> to vector<16x32xf32>
    %747 = arith.subf %739, %746 : vector<16x32xf32>
    %748 = arith.mulf %747, %747 : vector<16x32xf32>
    %cst_385 = arith.constant dense<0.000000e+00> : vector<16xf32>
    %749 = vector.multi_reduction <add>, %748, %cst_385 [1] : vector<16x32xf32> to vector<16xf32>
    %750 = vector.shape_cast %749 : vector<16xf32> to vector<16x1xf32>
    %cst_386 = arith.constant 3.200000e+01 : f32
    %751 = vector.broadcast %cst_386 : f32 to vector<16x1xf32>
    %752 = arith.divf %750, %751 : vector<16x1xf32>
    %753 = vector.broadcast %745 : vector<16x1xf32> to vector<16x32xf32>
    %754 = arith.subf %739, %753 : vector<16x32xf32>
    %cst_387 = arith.constant 9.99999974E-6 : f32
    %755 = vector.broadcast %cst_387 : f32 to vector<16x1xf32>
    %756 = arith.addf %752, %755 : vector<16x1xf32>
    %757 = math.rsqrt %756 : vector<16x1xf32>
    %758 = vector.broadcast %757 : vector<16x1xf32> to vector<16x32xf32>
    %759 = arith.mulf %754, %758 : vector<16x32xf32>
    %760 = vector.broadcast %740 : vector<1x32xf32> to vector<16x32xf32>
    %761 = arith.mulf %759, %760 : vector<16x32xf32>
    %762 = vector.broadcast %741 : vector<1x32xf32> to vector<16x32xf32>
    %763 = arith.addf %761, %762 : vector<16x32xf32>
    %c0_388 = arith.constant 0 : index
    %c0_389 = arith.constant 0 : index
    %764 = vector.load %arg54[%c0_388, %c0_389] : memref<1x32xf32, #tpu.memory_space<vmem>>, vector<1x32xf32>
    %c0_390 = arith.constant 0 : index
    %c0_391 = arith.constant 0 : index
    %765 = vector.load %arg55[%c0_390, %c0_391] : memref<1x32xf32, #tpu.memory_space<vmem>>, vector<1x32xf32>
    %cst_392 = arith.constant dense<0.000000e+00> : vector<16xf32>
    %766 = vector.multi_reduction <add>, %763, %cst_392 [1] : vector<16x32xf32> to vector<16xf32>
    %767 = vector.shape_cast %766 : vector<16xf32> to vector<16x1xf32>
    %cst_393 = arith.constant 3.200000e+01 : f32
    %768 = vector.broadcast %cst_393 : f32 to vector<16x1xf32>
    %769 = arith.divf %767, %768 : vector<16x1xf32>
    %770 = vector.broadcast %769 : vector<16x1xf32> to vector<16x32xf32>
    %771 = arith.subf %763, %770 : vector<16x32xf32>
    %772 = arith.mulf %771, %771 : vector<16x32xf32>
    %cst_394 = arith.constant dense<0.000000e+00> : vector<16xf32>
    %773 = vector.multi_reduction <add>, %772, %cst_394 [1] : vector<16x32xf32> to vector<16xf32>
    %774 = vector.shape_cast %773 : vector<16xf32> to vector<16x1xf32>
    %cst_395 = arith.constant 3.200000e+01 : f32
    %775 = vector.broadcast %cst_395 : f32 to vector<16x1xf32>
    %776 = arith.divf %774, %775 : vector<16x1xf32>
    %777 = vector.broadcast %769 : vector<16x1xf32> to vector<16x32xf32>
    %778 = arith.subf %763, %777 : vector<16x32xf32>
    %cst_396 = arith.constant 9.99999974E-6 : f32
    %779 = vector.broadcast %cst_396 : f32 to vector<16x1xf32>
    %780 = arith.addf %776, %779 : vector<16x1xf32>
    %781 = math.rsqrt %780 : vector<16x1xf32>
    %782 = vector.broadcast %781 : vector<16x1xf32> to vector<16x32xf32>
    %783 = arith.mulf %778, %782 : vector<16x32xf32>
    %784 = vector.broadcast %764 : vector<1x32xf32> to vector<16x32xf32>
    %785 = arith.mulf %783, %784 : vector<16x32xf32>
    %786 = vector.broadcast %765 : vector<1x32xf32> to vector<16x32xf32>
    %787 = arith.addf %785, %786 : vector<16x32xf32>
    %788 = arith.truncf %787 : vector<16x32xf32> to vector<16x32xbf16>
    %c0_397 = arith.constant 0 : index
    %c0_398 = arith.constant 0 : index
    %789 = vector.load %arg56[%c0_397, %c0_398] : memref<32x128xbf16, #tpu.memory_space<vmem>>, vector<32x128xbf16>
    %cst_399 = arith.constant dense<0.000000e+00> : vector<16x128xf32>
    %790 = tpu.matmul %788, %789, %cst_399 {dimension_numbers = #tpu.dot_dimension_numbers<[1], [0], [0], [1], [0, 0, 1, 1], [], []>} : vector<16x32xbf16>, vector<32x128xbf16>, vector<16x128xf32> -> vector<16x128xf32>
    %c0_400 = arith.constant 0 : index
    %c0_401 = arith.constant 0 : index
    %791 = vector.load %arg57[%c0_400, %c0_401] : memref<1x128xf32, #tpu.memory_space<vmem>>, vector<1x128xf32>
    %792 = vector.broadcast %791 : vector<1x128xf32> to vector<16x128xf32>
    %793 = arith.addf %790, %792 : vector<16x128xf32>
    %c0_402 = arith.constant 0 : index
    %c0_403 = arith.constant 0 : index
    %794 = vector.load %arg58[%c0_402, %c0_403] : memref<16x128xf32, #tpu.memory_space<vmem>>, vector<16x128xf32>
    tpu.vector_store %arg58[%c0_402, %c0_403], %793 {strides = array<i32>} : memref<16x128xf32, #tpu.memory_space<vmem>>, vector<16x128xf32>,
    return
  }
}

</mosaic_0001>

<bundles_post_ra>
// kernel: transformer_model_forward.2
= control target key start
LH: loop header
LB: loop body
LE: loop exit
PB: predicated region body
PF: predicated region fallthrough
CT: control target
= control target key end

     0   :  { %v3396_v0 = vmov 0.0   ;;  %s3397_s3 = smov 4   ;;  %s3398_s7 = smov 2   ;;  %vm3399_vm0 = vmmov 0   ;;  %vm181_vm1 = vcmask 261120   ;;  %vm359_vm2 = vcmask 130048   ;;  %s3933_s0 = inlined_call_operand.smem [shape: u32[37], index: -1, kind: input, shape index: {}] }
   0x1   :  { %3006 = vmatprep.subr.bf16.mxu1 %v3396_v0  ;;  %s3443_s6 = sld [smem:[%s3933_s0 + %s3397_s3]]   ;;  %2998 = vmatprep.subr.bf16.mxu0 %v3396_v0  ;;  %s3400_s14 = smov 1   ;;  %vm406_vm3 = vcmask 64512   ;;  %vm422_vm4 = vcmask 1043456  }
   0x2   :  { %s3449_s10 = sld [smem:[%s3933_s0 + %s3398_s7]]   ;;  %3010 = vmatprep.mubr.msk.bf16.mxu1 %vm3399_vm0, %v3396_v0  ;;  %3002 = vmatprep.mubr.msk.bf16.mxu0 %vm3399_vm0, %v3396_v0  ;;  %s3401_s18 = smov 5  }
   0x3   :  { %s1_s13 = sld [smem:[%s3933_s0]]   ;;  %s3402_s22 = smov 3  }
   0x4   :  { %s2728_s17 = sld [smem:[%s3933_s0 + %s3400_s14]]   ;;  %s3403_s26 = smov 6  }
   0x5   :  { %s3488_s21 = sld [smem:[%s3933_s0 + %s3401_s18]]   ;;  %s3404_s30 = smov 7  }
   0x6   :  { %s3493_s25 = sld [smem:[%s3933_s0 + %s3402_s22]]   ;;  %s3405_s4 = smov 8  }
   0x7   :  { %v3308_v1 = vld [vmem:[%s3443_s6 + $0x8] sm:$0xff]   ;;  %v3310_v3 = vld [vmem:[%s3443_s6] sm:$0xff]   ;;  %s3510_s29 = sld [smem:[%s3933_s0 + %s3403_s26]]   ;;  %s3406_s8 = smov 9  }
   0x8   :  { %v3309_v2 = vld [vmem:[%s3449_s10 + $0x8] sm:$0xff]   ;;  %3007 = vmatpush3.bf16.msra.mxu1 %v3308_v1  ;;  %v3311_v4 = vld [vmem:[%s3449_s10] sm:$0xff]   ;;  %s3527_s3 = sld [smem:[%s3933_s0 + %s3404_s30]]   ;;  %v3315_v63 = vld [vmem:[%s3449_s10 + $0x18] sm:$0xff]   ;;  %s3407_s12 = smov 12  }
   0x9   :  { %2999 = vmatpush3.bf16.msra.mxu0 %v3309_v2  ;;  %3008 = vmatprep.subr.bf16.mxu1 %v3396_v0  ;;  %v151_v5 = vld [vmem:[%s1_s13] sm:$0xff]  ;;  %v152_v6 = vld [vmem:[%s1_s13 + $0x8] sm:$0xff]  ;;  %v3317_v1 = vld [vmem:[%s3449_s10 + $0x10] sm:$0xff]   ;;  %s2735_s7 = sld [smem:[%s3933_s0 + %s3405_s4]]   ;;  %s3408_s16 = smov 10  }
   0xa   :  { %3000 = vmatprep.subr.bf16.mxu0 %v3396_v0  ;;  %v153_v7 = vld [vmem:[%s2728_s17] sm:$0xff]  ;;  %v154_v8 = vld [vmem:[%s2728_s17 + $0x8] sm:$0xff]  ;;  %s2736_s11 = sld [smem:[%s3933_s0 + %s3406_s8]]   ;;  %s3409_s20 = smov 11  }
   0xb   :  { %v3467_v9 = vadd.f32 %v153_v7, %v151_v5  ;;  %v3469_v10 = vadd.f32 %v154_v8, %v152_v6  ;;  %v2768_v12 = vld [vmem:[%s3488_s21] ss:$0 sm:$0xff]  ;;  %s2739_s15 = sld [smem:[%s3933_s0 + %s3407_s12]]   ;;  %s3410_s24 = smov 14  }
   0xc   :  { %3009 = vmatpush3.bf16.msra.mxu1 %v3310_v3  ;;  %v2764_v16 = vld [vmem:[%s3493_s25] ss:$0 sm:$0xff]  ;;  %s2737_s19 = sld [smem:[%s3933_s0 + %s3408_s16]]   ;;  %s3411_s28 = smov 13  }
   0xd   :  { %3001 = vmatpush3.bf16.msra.mxu0 %v3311_v4  ;;  %3022 = vmatprep.subr.bf16.mxu1 %v3396_v0  ;;  %v3474_v11 = vpack.c.bf16 %v3469_v10, %v3467_v9  ;;  %v3312_v32 = vld [vmem:[%s3510_s29 + $0x8] sm:$0xff]   ;;  %v3313_v33 = vld [vmem:[%s3510_s29] sm:$0xff]   ;;  %s2738_s23 = sld [smem:[%s3933_s0 + %s3409_s20]]   ;;  %s3412_s2 = smov 15  }
   0xe   :  { %3014 = vmatprep.subr.bf16.mxu0 %v3396_v0  ;;  %v2772_v58 = vld [vmem:[%s3527_s3] ss:$0 sm:$0xff]  ;;  %s2741_s27 = sld [smem:[%s3933_s0 + %s3410_s24]]   ;;  %s3414_s10 = smov 20  }
   0xf   :  { %3011 = vmatmul.mubr.msk.bf16.vlgmr.msra.gmra.mxu1 %vm181_vm1, %v3474_v11  ;;  %s2740_s1 = sld [smem:[%s3933_s0 + %s3411_s28]]   ;;  %s3415_s14 = smov 22  }
  0x10   :  { %3003 = vmatmul.mubr.msk.bf16.vlgmr.msra.gmra.mxu0 %vm181_vm1, %v3474_v11  ;;  %3024 = vmatprep.mubr.msk.bf16.mxu1 %vm3399_vm0, %v3396_v0  ;;  %s2742_s5 = sld [smem:[%s3933_s0 + %s3412_s2]]   ;;  %s3416_s18 = smov 16  }
  0x11   :  { %3018 = vmatprep.mubr.msk.bf16.mxu0 %vm3399_vm0, %v3396_v0  ;;  %3015 = vmatpush3.bf16.msra.mxu0 %v3312_v32  ;;  %s3686_s13 = sld [smem:[%s3933_s0 + %s3414_s10]]   ;;  %s3417_s22 = smov 17  }
  0x12   :  { %3016 = vmatprep.subr.bf16.mxu0 %v3396_v0  ;;  %s3694_s17 = sld [smem:[%s3933_s0 + %s3415_s14]]   ;;  %s3418_s26 = smov 21  }
  0x13   :  { %s3419_s30 = smov 19   ;;  %s3420_s4 = smov 23  }
  0x14   :  { %s3421_s8 = smov 24   ;;  %s3422_s12 = smov 25  }
  0x15   :  { %3017 = vmatpush3.bf16.msra.mxu0 %v3313_v33  ;;  %s3423_s16 = smov 28   ;;  %s3424_s20 = smov 26  }
  0x16   :  { %3028 = vmatprep.subr.bf16.mxu0 %v3396_v0  ;;  %s3425_s24 = smov 27   ;;  %s3426_s28 = smov 30  }
  0x17   :  { %s3427_s2 = smov 29   ;;  %s3429_s10 = smov 32  }
  0x18   :  { %3019 = vmatmul.mubr.msk.bf16.vlgmr.msra.gmra.mxu0 %vm181_vm1, %v3474_v11  ;;  %s3430_s14 = smov 33  }
  0x19   :  { %3030 = vmatprep.mubr.msk.bf16.mxu0 %vm3399_vm0, %v3396_v0 }
  0xcf   :  { %v283_v13 = vpop.f32.mrf.mxu1 }
  0xd0   :  { %v219_v14 = vpop.f32.mrf.mxu0  ;;  %v284_v15 = vadd.f32 %v2768_v12, %v283_v13 }
  0xd1   :  { %v3012_v17 = vpop.f32.mrf.mxu1  ;;  %v220_v23 = vadd.f32 %v2764_v16, %v219_v14  ;;  %v3314_v14 = vld [vmem:[%s3443_s6 + $0x18] sm:$0xff]  }
  0xd2   :  { %v3004_v18 = vpop.f32.mrf.mxu0  ;;  %v357_v19 = vpack.c.bf16 %v284_v15, %v284_v15 }
  0xd3   :  { %v286_v20 = vpop.f32.mrf.mxu1  ;;  %v356_v27 = vpack.c.bf16 %v220_v23, %v220_v23 }
  0xd4   :  { %v222_v21 = vpop.f32.mrf.mxu0  ;;  %v364_v22 = vsel %vm359_vm2, %v357_v19, 0  ;;  %v287_v24 = vadd.f32 %v2768_v12, %v286_v20  ;;  %v2785_v19 = vld [vmem:[%s3493_s25 + $0x1] ss:$0 sm:$0xff]  ;;  %s2744_s25 = sld [smem:[%s3933_s0 + %s3417_s22]]   ;;  %s3432_s22 = smov 35  }
  0xd5   :  { %v3013_v25 = vpop.f32.mrf.mxu1  ;;  %3023 = vmatpush3.bf16.xpose.msra.mxu1 %v364_v22  ;;  %v223_v30 = vadd.f32 %v2764_v16, %v222_v21  ;;  %v3316_v16 = vld [vmem:[%s3443_s6 + $0x10] sm:$0xff]   ;;  %s3413_s6 = smov 18  }
  0xd6   :  { %v3005_v26 = vpop.f32.mrf.mxu0  ;;  %3034 = vmatprep.subr.bf16.mxu1 %v3396_v0  ;;  %v468_v28 = vpack.c.bf16 %v287_v24, %v287_v24  ;;  %s3681_s9 = sld [smem:[%s3933_s0 + %s3413_s6]]   ;;  %s3428_s6 = smov 31  }
  0xd7   :  { %v467_v31 = vpack.c.bf16 %v223_v30, %v223_v30 }
  0xd8   :  { %v474_v29 = vsel %vm359_vm2, %v468_v28, 0  ;;  %v347_v54 = vpop.f32.mrf.mxu0 }
  0xd9   :  { %v348_v59 = vadd.f32 %v2772_v58, %v347_v54 }
  0xda   :  { %v3020_v55 = vpop.f32.mrf.mxu0 }
  0xdb   :  { %v358_v61 = vpack.c.bf16 %v348_v59, %v348_v59 }
  0xdc   :  { %3025 = vmatmul.mubr.msk.bf16.vlgmr.msra.gmra.mxu1 %vm359_vm2, %v356_v27  ;;  %v350_v56 = vpop.f32.mrf.mxu0 }
  0xdd   :  { %3035 = vmatpush3.bf16.xpose.msra.mxu1 %v474_v29  ;;  %3036 = vmatprep.mubr.msk.bf16.mxu1 %vm3399_vm0, %v3396_v0  ;;  %v351_v60 = vadd.f32 %v2772_v58, %v350_v56  ;;  %v424_v62 = vsel %vm422_vm4, %v358_v61, 0  ;;  %v3321_v61 = vld [vmem:[%s2735_s7 + $0x8] sm:$0xff]  }
  0xde   :  { %3046 = vmatprep.subr.bf16.mxu1 %v3396_v0  ;;  %v3021_v57 = vpop.f32.mrf.mxu0  ;;  %3029 = vmatpush3.bf16.msra.mxu0 %v424_v62 }
  0xdf   :  { %3040 = vmatprep.subr.bf16.mxu0 %v3396_v0  ;;  %v469_v5 = vpack.c.bf16 %v351_v60, %v351_v60 }
  0xe1   :  { %v532_v8 = vsel %vm422_vm4, %v469_v5, 0 }
  0xe4   :  { %3037 = vmatmul.mubr.msk.bf16.vlgmr.msra.gmra.mxu1 %vm359_vm2, %v467_v31  ;;  %v2794_v31 = vld [vmem:[%s3488_s21 + $0x1] ss:$0 sm:$0xff]  ;;  %s2743_s21 = sld [smem:[%s3933_s0 + %s3416_s18]]   ;;  %s3431_s18 = smov 34  }
  0xe5   :  { %3050 = vmatprep.mubr.msk.bf16.mxu1 %vm3399_vm0, %v3396_v0  ;;  %3047 = vmatpush3.bf16.msra.mxu1 %v3315_v63 }
  0xe6   :  { %3048 = vmatprep.subr.bf16.mxu1 %v3396_v0 }
  0xe9   :  { %3049 = vmatpush3.bf16.msra.mxu1 %v3317_v1 }
  0xea   :  { %3062 = vmatprep.subr.bf16.mxu1 %v3396_v0 }
  0xec   :  { %3051 = vmatmul.mubr.msk.bf16.vlgmr.msra.gmra.mxu1 %vm181_vm1, %v3474_v11 }
  0xed   :  { %3066 = vmatprep.mubr.msk.bf16.mxu1 %vm3399_vm0, %v3396_v0 }
 0x19c   :  { %v400_v34 = vpop.f32.mrf.mxu1 }
 0x19d   :  { %v407_v35 = vsel %vm406_vm3, %v400_v34, -inf }
 0x19e   :  { %408 = vmax.xlane.f32.xlu0 %v407_v35  ;;  %v3026_v36 = vpop.f32.mrf.mxu1 }
 0x1a0   :  { %v403_v37 = vpop.f32.mrf.mxu1 }
 0x1a2   :  { %v3027_v38 = vpop.f32.mrf.mxu1 }
 0x1a4   :  { %v510_v39 = vpop.f32.mrf.mxu1 }
 0x1a5   :  { %v516_v40 = vsel %vm406_vm3, %v510_v39, -inf }
 0x1a6   :  { %517 = vmax.xlane.f32.xlu0 %v516_v40  ;;  %v3038_v41 = vpop.f32.mrf.mxu1 }
 0x1a8   :  { %v513_v42 = vpop.f32.mrf.mxu1 }
 0x1a9   :  { %v3318_v42 = vld [vmem:[%s3510_s29 + $0x18] sm:$0xff]  }
 0x1aa   :  { %v3039_v43 = vpop.f32.mrf.mxu1  ;;  %3063 = vmatpush3.bf16.msra.mxu1 %v3318_v42 }
 0x1ab   :  { %v3319_v43 = vld [vmem:[%s3510_s29 + $0x10] sm:$0xff]   ;;  %3064 = vmatprep.subr.bf16.mxu1 %v3396_v0  ;;  %s3734_s29 = sld [smem:[%s3933_s0 + %s3418_s26]]   ;;  %s3433_s26 = smov 36  }
 0x1ac   :  { %v634_v17 = vpop.f32.mrf.mxu1 }
 0x1ad   :  { %v635_v38 = vadd.f32 %v2785_v19, %v634_v17 }
 0x1ae   :  { %v3052_v18 = vpop.f32.mrf.mxu1  ;;  %3065 = vmatpush3.bf16.msra.mxu1 %v3319_v43 }
 0x1af   :  { %v776_v41 = vpack.c.bf16 %v635_v38, %v635_v38  ;;  %3076 = vmatprep.subr.bf16.mxu1 %v3396_v0 }
 0x1b0   :  { %v637_v20 = vpop.f32.mrf.mxu1 }
 0x1b1   :  { %v3557_v21 = vadd.f32 %v2785_v19, %v637_v20  ;;  %3067 = vmatmul.mubr.msk.bf16.vlgmr.msra.gmra.mxu1 %vm181_vm1, %v3474_v11 }
 0x1b2   :  { %v3053_v22 = vpop.f32.mrf.mxu1  ;;  %3078 = vmatprep.mubr.msk.bf16.mxu1 %vm3399_vm0, %v3396_v0 }
 0x1b3   :  { %v982_v19 = vpack.c.bf16 %v3557_v21, %v3557_v21 }
 0x227   :  { %v409_v44 = vpop.xlane.xlu0 %408 }
 0x228   :  { %v410_v45 = vsub.f32 %v400_v34, %v409_v44 }
 0x22a   :  { %v411_v46 = vmul.f32 1.442695, %v410_v45 }
 0x22c   :  { %3344 = vpow2.f32 %v411_v46 }
 0x22f   :  { %v518_v47 = vpop.xlane.xlu0 %517 }
 0x230   :  { %v519_v48 = vsub.f32 %v510_v39, %v518_v47 }
 0x232   :  { %v520_v49 = vmul.f32 1.442695, %v519_v48 }
 0x234   :  { %3346 = vpow2.f32 %v520_v49  ;;  %v2803_v49 = vld [vmem:[%s3527_s3 + $0x1] ss:$0 sm:$0xff]  ;;  %s3739_s3 = sld [smem:[%s3933_s0 + %s3419_s30]]  }
 0x239   :  { %v3345_v50 = vpop.eup %3344 }
 0x23a   :  { %v413_v51 = vsel %vm406_vm3, %v3345_v50, 0.0 }
 0x23b   :  { %414 = vadd.xlane.f32.xlu1 %v413_v51 }
 0x241   :  { %v3347_v52 = vpop.eup %3346 }
 0x242   :  { %v522_v53 = vsel %vm406_vm3, %v3347_v52, 0.0 }
 0x243   :  { %523 = vadd.xlane.f32.xlu1 %v522_v53 }
 0x2c4   :  { %v415_v2 = vpop.xlane.xlu1 %414 }
 0x2c5   :  { %3348 = vrcp.f32 %v415_v2  ;;  %v3588_v2 = vld [vmem:[%s2735_s7] sm:$0xff]   ;;  %s3745_s7 = sld [smem:[%s3933_s0 + %s3420_s4]]  }
 0x2cc   :  { %v524_v3 = vpop.xlane.xlu1 %523 }
 0x2cd   :  { %3350 = vrcp.f32 %v524_v3 }
 0x2d2   :  { %v3349_v4 = vpop.eup %3348 }
 0x2d3   :  { %v417_v6 = vmul.f32 %v3349_v4, %v3345_v50  ;;  %v766_v50 = vpop.f32.mrf.mxu1 }
 0x2d4   :  { %v767_v51 = vadd.f32 %v2803_v49, %v766_v50 }
 0x2d5   :  { %v418_v7 = vpack.c.bf16 %v417_v6, %v417_v6 }
 0x2d6   :  { %v778_v53 = vpack.c.bf16 %v767_v51, %v767_v51 }
 0x2d7   :  { %3031 = vmatmul.mubr.msk.bf16.vlgmr.msra.gmra.mxu0 %vm406_vm3, %v418_v7 }
 0x2d8   :  { %3041 = vmatpush3.bf16.msra.mxu0 %v532_v8  ;;  %3042 = vmatprep.mubr.msk.bf16.mxu0 %vm3399_vm0, %v3396_v0  ;;  %v841_v54 = vsel %vm422_vm4, %v778_v53, 0 }
 0x2d9   :  { %3054 = vmatprep.subr.bf16.mxu0 %v3396_v0  ;;  %3077 = vmatpush3.bf16.msra.mxu1 %v841_v54 }
 0x2da   :  { %v3351_v12 = vpop.eup %3350  ;;  %3088 = vmatprep.subr.bf16.mxu1 %v3396_v0 }
 0x2db   :  { %v526_v13 = vmul.f32 %v3351_v12, %v3347_v52  ;;  %v3068_v52 = vpop.f32.mrf.mxu1 }
 0x2dd   :  { %v527_v15 = vpack.c.bf16 %v526_v13, %v526_v13  ;;  %v769_v59 = vpop.f32.mrf.mxu1 }
 0x2de   :  { %v770_v4 = vadd.f32 %v2803_v49, %v769_v59 }
 0x2df   :  { %3043 = vmatmul.mubr.msk.bf16.vlgmr.msra.gmra.mxu0 %vm406_vm3, %v527_v15  ;;  %v3069_v60 = vpop.f32.mrf.mxu1 }
 0x2e0   :  { %3055 = vmatpush3.bf16.msra.mxu0 %v3314_v14  ;;  %3058 = vmatprep.mubr.msk.bf16.mxu0 %vm3399_vm0, %v3396_v0  ;;  %v984_v5 = vpack.c.bf16 %v770_v4, %v770_v4 }
 0x2e1   :  { %3056 = vmatprep.subr.bf16.mxu0 %v3396_v0 }
 0x2e2   :  { %v1047_v7 = vsel %vm422_vm4, %v984_v5, 0 }
 0x2e4   :  { %3057 = vmatpush3.bf16.msra.mxu0 %v3316_v16 }
 0x2e5   :  { %3070 = vmatprep.subr.bf16.mxu0 %v3396_v0 }
 0x2e7   :  { %3059 = vmatmul.mubr.msk.bf16.vlgmr.msra.gmra.mxu0 %vm181_vm1, %v3474_v11 }
 0x2e8   :  { %3072 = vmatprep.mubr.msk.bf16.mxu0 %vm3399_vm0, %v3396_v0 }
 0x397   :  { %v3559_v23 = vpop.f32.mrf.mxu0 }
 0x398   :  { %v466_v6 = vpack.c.bf16 %v3559_v23, %v3559_v23 }
 0x399   :  { %v3032_v24 = vpop.f32.mrf.mxu0 }
 0x39b   :  { %v463_v25 = vpop.f32.mrf.mxu0 }
 0x39c   :  { %v2819_v25 = vld [vmem:[%s2736_s11] ss:$0 sm:$0xff]  ;;  %s2751_s11 = sld [smem:[%s3933_s0 + %s3421_s8]]  }
 0x39d   :  { %v3033_v26 = vpop.f32.mrf.mxu0 }
 0x39f   :  { %v3561_v27 = vpop.f32.mrf.mxu0 }
 0x3a0   :  { %v574_v52 = vpack.c.bf16 %v3561_v27, %v3561_v27 }
 0x3a1   :  { %v3044_v28 = vpop.f32.mrf.mxu0 }
 0x3a3   :  { %v571_v29 = vpop.f32.mrf.mxu0 }
 0x3a5   :  { %v3045_v30 = vpop.f32.mrf.mxu0 }
 0x3a7   :  { %v700_v32 = vpop.f32.mrf.mxu0 }
 0x3a8   :  { %v701_v33 = vadd.f32 %v2794_v31, %v700_v32 }
 0x3a9   :  { %v3060_v34 = vpop.f32.mrf.mxu0 }
 0x3aa   :  { %v777_v35 = vpack.c.bf16 %v701_v33, %v701_v33 }
 0x3ab   :  { %v703_v36 = vpop.f32.mrf.mxu0 }
 0x3ac   :  { %v783_v37 = vsel %vm359_vm2, %v777_v35, 0  ;;  %v3565_v39 = vadd.f32 %v2794_v31, %v703_v36 }
 0x3ad   :  { %v3061_v40 = vpop.f32.mrf.mxu0  ;;  %3071 = vmatpush3.bf16.xpose.msra.mxu0 %v783_v37 }
 0x3ae   :  { %3082 = vmatprep.subr.bf16.mxu0 %v3396_v0  ;;  %v983_v8 = vpack.c.bf16 %v3565_v39, %v3565_v39 }
 0x3b0   :  { %v989_v15 = vsel %vm359_vm2, %v983_v8, 0 }
 0x3b4   :  { %3073 = vmatmul.mubr.msk.bf16.vlgmr.msra.gmra.mxu0 %vm359_vm2, %v776_v41 }
 0x3b5   :  { %3084 = vmatprep.mubr.msk.bf16.mxu0 %vm3399_vm0, %v3396_v0  ;;  %3083 = vmatpush3.bf16.msra.mxu0 %v3321_v61 }
 0x3b6   :  { %3094 = vmatprep.subr.bf16.mxu0 %v3396_v0 }
 0x474   :  { %v819_v44 = vpop.f32.mrf.mxu0 }
 0x475   :  { %v825_v45 = vsel %vm406_vm3, %v819_v44, -inf }
 0x476   :  { %826 = vmax.xlane.f32.xlu0 %v825_v45  ;;  %v3074_v46 = vpop.f32.mrf.mxu0 }
 0x478   :  { %v822_v47 = vpop.f32.mrf.mxu0 }
 0x47a   :  { %v3075_v48 = vpop.f32.mrf.mxu0 }
 0x4ff   :  { %v827_v11 = vpop.xlane.xlu0 %826 }
 0x500   :  { %v828_v55 = vsub.f32 %v819_v44, %v827_v11 }
 0x502   :  { %v829_v56 = vmul.f32 1.442695, %v828_v55 }
 0x504   :  { %3352 = vpow2.f32 %v829_v56 }
 0x511   :  { %v3353_v57 = vpop.eup %3352 }
 0x512   :  { %v831_v58 = vsel %vm406_vm3, %v3353_v57, 0.0 }
 0x513   :  { %832 = vadd.xlane.f32.xlu1 %v831_v58 }
 0x59c   :  { %v833_v62 = vpop.xlane.xlu1 %832 }
 0x59d   :  { %3354 = vrcp.f32 %v833_v62 }
 0x5aa   :  { %v3355_v63 = vpop.eup %3354 }
 0x5ab   :  { %v835_v1 = vmul.f32 %v3355_v63, %v3353_v57 }
 0x5ad   :  { %v836_v3 = vpack.c.bf16 %v835_v1, %v835_v1 }
 0x5af   :  { %3079 = vmatmul.mubr.msk.bf16.vlgmr.msra.gmra.mxu1 %vm406_vm3, %v836_v3 }
 0x5b0   :  { %3089 = vmatpush3.bf16.msra.mxu1 %v3588_v2  ;;  %3090 = vmatprep.mubr.msk.bf16.mxu1 %vm3399_vm0, %v3396_v0 }
 0x5b1   :  { %3100 = vmatprep.subr.bf16.mxu1 %v3396_v0 }
 0x5b7   :  { %3091 = vmatmul.mubr.msk.bf16.vlgmr.msra.gmra.mxu1 %vm359_vm2, %v466_v6 }
 0x5b8   :  { %3101 = vmatpush3.bf16.msra.mxu1 %v1047_v7  ;;  %3102 = vmatprep.mubr.msk.bf16.mxu1 %vm3399_vm0, %v3396_v0 }
 0x5b9   :  { %3112 = vmatprep.subr.bf16.mxu1 %v3396_v0 }
 0x66f   :  { %v877_v12 = vpop.f32.mrf.mxu1 }
 0x670   :  { %v883_v13 = vpack.c.bf16 %v877_v12, %v877_v12 }
 0x671   :  { %v3080_v14 = vpop.f32.mrf.mxu1 }
 0x672   :  { %3085 = vmatmul.mubr.msk.bf16.vlgmr.msra.gmra.mxu0 %vm359_vm2, %v883_v13  ;;  %v3322_v14 = vld [vmem:[%s2739_s15 + $0x8] sm:$0xff]  }
 0x673   :  { %3095 = vmatpush3.bf16.xpose.msra.mxu0 %v989_v15  ;;  %v880_v16 = vpop.f32.mrf.mxu1  ;;  %3096 = vmatprep.mubr.msk.bf16.mxu0 %vm3399_vm0, %v3396_v0  ;;  %v3323_v15 = vld [vmem:[%s2739_s15] sm:$0xff]   ;;  %s2752_s15 = sld [smem:[%s3933_s0 + %s3422_s12]]  }
 0x674   :  { %3106 = vmatprep.subr.bf16.mxu0 %v3396_v0 }
 0x675   :  { %v3081_v17 = vpop.f32.mrf.mxu1 }
 0x677   :  { %v976_v18 = vpop.f32.mrf.mxu1 }
 0x679   :  { %v3092_v20 = vpop.f32.mrf.mxu1 }
 0x67a   :  { %3097 = vmatmul.mubr.msk.bf16.vlgmr.msra.gmra.mxu0 %vm359_vm2, %v982_v19 }
 0x67b   :  { %v979_v22 = vpop.f32.mrf.mxu1  ;;  %3107 = vmatpush3.bf16.msra.mxu0 %v3321_v61  ;;  %3108 = vmatprep.mubr.msk.bf16.mxu0 %vm3399_vm0, %v3396_v0 }
 0x67c   :  { %3118 = vmatprep.subr.bf16.mxu0 %v3396_v0 }
 0x67d   :  { %v3093_v23 = vpop.f32.mrf.mxu1 }
 0x732   :  { %v927_v24 = vpop.f32.mrf.mxu0 }
 0x733   :  { %v977_v26 = vadd.f32 %v976_v18, %v927_v24  ;;  %v2820_v24 = vld [vmem:[%s2737_s19] ss:$0 sm:$0xff]  ;;  %s2755_s19 = sld [smem:[%s3933_s0 + %s3423_s16]]  }
 0x734   :  { %v3086_v21 = vpop.f32.mrf.mxu0 }
 0x735   :  { %v1183_v28 = vadd.f32 %v2819_v25, %v977_v26 }
 0x736   :  { %v930_v29 = vpop.f32.mrf.mxu0 }
 0x737   :  { %1184 = vst.msk [vmem:[#allocation2] sm:$0xff] %vm181_vm1, %v1183_v28  ;;  %v2821_v28 = vld [vmem:[%s2738_s23] ss:$0 sm:$0xff]  ;;  %s2753_s23 = sld [smem:[%s3933_s0 + %s3424_s20]]  }
 0x738   :  { %v3087_v30 = vpop.f32.mrf.mxu0 }
 0x73a   :  { %v1025_v31 = vpop.f32.mrf.mxu0 }
 0x73b   :  { %v1031_v32 = vsel %vm406_vm3, %v1025_v31, -inf }
 0x73c   :  { %1032 = vmax.xlane.f32.xlu0 %v1031_v32  ;;  %v3098_v33 = vpop.f32.mrf.mxu0 }
 0x73d   :  { %v3324_v33 = vld [vmem:[%s2741_s27 + $0x8] sm:$0xff]  }
 0x73e   :  { %v1028_v34 = vpop.f32.mrf.mxu0  ;;  %v1187_v35 = vld [vmem:[#allocation2] sm:$0xff] }
 0x73f   :  { %v1189_v36 = vadd.f32 %v1187_v35, %v3467_v9  ;;  %v3325_v34 = vld [vmem:[%s2741_s27] sm:$0xff]   ;;  %s2754_s27 = sld [smem:[%s3933_s0 + %s3425_s24]]  }
 0x740   :  { %v3099_v37 = vpop.f32.mrf.mxu0  ;;  %v2822_v35 = vld [vmem:[%s2740_s1] ss:$0 sm:$0xff]  ;;  %s2757_s1 = sld [smem:[%s3933_s0 + %s3426_s28]]  }
 0x741   :  { %v1193_v38 = vsel %vm181_vm1, %v1189_v36, 0.0 }
 0x742   :  { %1194 = vadd.xlane.f32.xlu0 %v1193_v38 }
 0x7c5   :  { %v1033_v39 = vpop.xlane.xlu0 %1032 }
 0x7c6   :  { %v1034_v40 = vsub.f32 %v1025_v31, %v1033_v39 }
 0x7c8   :  { %v1035_v41 = vmul.f32 1.442695, %v1034_v40 }
 0x7ca   :  { %3356 = vpow2.f32 %v1035_v41 }
 0x7cb   :  { %v1195_v42 = vpop.xlane.xlu0 %1194 }
 0x7cc   :  { %v1200_v43 = vmul.f32 0.03125, %v1195_v42 }
 0x7ce   :  { %v3622_v44 = vsub.f32 %v1189_v36, %v1200_v43 }
 0x7d0   :  { %v1204_v45 = vmul.f32 %v3622_v44, %v3622_v44 }
 0x7d2   :  { %v1206_v46 = vsel %vm181_vm1, %v1204_v45, 0.0  ;;  %v2826_v45 = vld [vmem:[%s2742_s5] ss:$0 sm:$0xff]  ;;  %s2756_s5 = sld [smem:[%s3933_s0 + %s3427_s2]]  }
 0x7d3   :  { %1207 = vadd.xlane.f32.xlu0 %v1206_v46 }
 0x7d7   :  { %v3357_v47 = vpop.eup %3356 }
 0x7d8   :  { %v1037_v9 = vsel %vm406_vm3, %v3357_v47, 0.0 }
 0x7d9   :  { %1038 = vadd.xlane.f32.xlu1 %v1037_v9 }
 0x862   :  { %v1039_v48 = vpop.xlane.xlu1 %1038 }
 0x863   :  { %3358 = vrcp.f32 %v1039_v48 }
 0x870   :  { %v3359_v49 = vpop.eup %3358 }
 0x871   :  { %v1041_v50 = vmul.f32 %v3359_v49, %v3357_v47 }
 0x873   :  { %v1042_v51 = vpack.c.bf16 %v1041_v50, %v1041_v50 }
 0x875   :  { %3103 = vmatmul.mubr.msk.bf16.vlgmr.msra.gmra.mxu1 %vm406_vm3, %v1042_v51 }
 0x876   :  { %3113 = vmatpush3.bf16.msra.mxu1 %v3588_v2  ;;  %3114 = vmatprep.mubr.msk.bf16.mxu1 %vm3399_vm0, %v3396_v0 }
 0x877   :  { %3126 = vmatprep.subr.bf16.mxu1 %v3396_v0 }
 0x87d   :  { %3115 = vmatmul.mubr.msk.bf16.vlgmr.msra.gmra.mxu1 %vm359_vm2, %v574_v52 }
 0x87e   :  { %3130 = vmatprep.mubr.msk.bf16.mxu1 %vm3399_vm0, %v3396_v0  ;;  %3127 = vmatpush3.bf16.msra.mxu1 %v3324_v33  ;;  %v2832_v33 = vld [vmem:[%s3739_s3] ss:$0 sm:$0xff] }
 0x87f   :  { %3128 = vmatprep.subr.bf16.mxu1 %v3396_v0 }
 0x882   :  { %3129 = vmatpush3.bf16.msra.mxu1 %v3325_v34 }
 0x883   :  { %3142 = vmatprep.subr.bf16.mxu1 %v3396_v0 }
 0x935   :  { %v1083_v53 = vpop.f32.mrf.mxu1 }
 0x936   :  { %v1089_v54 = vpack.c.bf16 %v1083_v53, %v1083_v53 }
 0x937   :  { %v3104_v11 = vpop.f32.mrf.mxu1 }
 0x938   :  { %3109 = vmatmul.mubr.msk.bf16.vlgmr.msra.gmra.mxu0 %vm359_vm2, %v1089_v54 }
 0x939   :  { %v1086_v55 = vpop.f32.mrf.mxu1  ;;  %3122 = vmatprep.mubr.msk.bf16.mxu0 %vm3399_vm0, %v3396_v0  ;;  %3119 = vmatpush3.bf16.msra.mxu0 %v3322_v14 }
 0x93a   :  { %3120 = vmatprep.subr.bf16.mxu0 %v3396_v0 }
 0x93b   :  { %v3105_v56 = vpop.f32.mrf.mxu1 }
 0x93d   :  { %v1170_v57 = vpop.f32.mrf.mxu1  ;;  %3121 = vmatpush3.bf16.msra.mxu0 %v3323_v15  ;;  %v2830_v15 = vld [vmem:[%s2743_s21] ss:$0 sm:$0xff]  ;;  %s2761_s21 = sld [smem:[%s3933_s0 + %s3431_s18]]  }
 0x93e   :  { %3134 = vmatprep.subr.bf16.mxu0 %v3396_v0 }
 0x93f   :  { %v3116_v58 = vpop.f32.mrf.mxu1 }
 0x941   :  { %v1173_v59 = vpop.f32.mrf.mxu1 }
 0x943   :  { %v3117_v60 = vpop.f32.mrf.mxu1 }
 0x9f8   :  { %v1127_v27 = vpop.f32.mrf.mxu0 }
 0x9f9   :  { %v1171_v61 = vadd.f32 %v1170_v57, %v1127_v27 }
 0x9fa   :  { %v3110_v62 = vpop.f32.mrf.mxu0 }
 0x9fb   :  { %v1185_v63 = vadd.f32 %v2819_v25, %v1171_v61 }
 0x9fc   :  { %v1130_v1 = vpop.f32.mrf.mxu0 }
 0x9fd   :  { %1186 = vst.msk [vmem:[#allocation2 + $0x8] sm:$0xff] %vm181_vm1, %v1185_v63  ;;  %v3326_v63 = vld [vmem:[%s3681_s9 + $0x8] sm:$0xff]  }
 0x9fe   :  { %v3111_v2 = vpop.f32.mrf.mxu0  ;;  %v3327_v1 = vld [vmem:[%s3686_s13 + $0x8] sm:$0xff]  }
 0x9ff   :  { %v3328_v2 = vld [vmem:[%s3681_s9] sm:$0xff]  }
 0xa04   :  { %v1188_v3 = vld [vmem:[#allocation2 + $0x8] sm:$0xff] }
 0xa05   :  { %v1190_v4 = vadd.f32 %v1188_v3, %v3469_v10  ;;  %v1208_v10 = vpop.xlane.xlu0 %1207  ;;  %v3329_v3 = vld [vmem:[%s3686_s13] sm:$0xff]  }
 0xa06   :  { %v1212_v16 = vmul.f32 0.03125, %v1208_v10 }
 0xa07   :  { %v1196_v5 = vsel %vm181_vm1, %v1190_v4, 0.0 }
 0xa08   :  { %1197 = vadd.xlane.f32.xlu1 %v1196_v5  ;;  %v1214_v17 = vadd.f32 1e-05, %v1212_v16 }
 0xa0a   :  { %3360 = vrsqrt.f32 %v1214_v17 }
 0xa17   :  { %v3361_v22 = vpop.eup %3360 }
 0xa18   :  { %v1218_v23 = vmul.f32 %v3361_v22, %v3622_v44 }
 0xa1a   :  { %v1226_v21 = vmul.f32 %v2820_v24, %v1218_v23  ;;  %v3330_v23 = vld [vmem:[%s3694_s17 + $0x8] sm:$0xff]  }
 0xa1c   :  { %v1234_v30 = vadd.f32 %v2821_v28, %v1226_v21 }
 0xa91   :  { %v1198_v6 = vpop.xlane.xlu1 %1197 }
 0xa92   :  { %v1201_v7 = vmul.f32 0.03125, %v1198_v6 }
 0xa94   :  { %v1203_v8 = vsub.f32 %v1190_v4, %v1201_v7 }
 0xa96   :  { %v1205_v12 = vmul.f32 %v1203_v8, %v1203_v8 }
 0xa98   :  { %v1209_v13 = vsel %vm181_vm1, %v1205_v12, 0.0 }
 0xa99   :  { %1210 = vadd.xlane.f32.xlu1 %v1209_v13 }
 0xb22   :  { %v1211_v18 = vpop.xlane.xlu1 %1210 }
 0xb23   :  { %v1213_v19 = vmul.f32 0.03125, %v1211_v18  ;;  %v2831_v18 = vld [vmem:[%s2744_s25] ss:$0 sm:$0xff]  ;;  %s2762_s25 = sld [smem:[%s3933_s0 + %s3432_s22]]  }
 0xb25   :  { %v1215_v20 = vadd.f32 1e-05, %v1213_v19 }
 0xb27   :  { %3362 = vrsqrt.f32 %v1215_v20 }
 0xb34   :  { %v3363_v25 = vpop.eup %3362 }
 0xb35   :  { %v1219_v26 = vmul.f32 %v3363_v25, %v1203_v8  ;;  %v3331_v25 = vld [vmem:[%s3694_s17] sm:$0xff]  }
 0xb37   :  { %v1227_v29 = vmul.f32 %v2820_v24, %v1219_v26  ;;  %v2836_v26 = vld [vmem:[%s3734_s29] ss:$0 sm:$0xff] }
 0xb39   :  { %v1235_v31 = vadd.f32 %v2821_v28, %v1227_v29 }
 0xb3b   :  { %v1246_v32 = vpack.c.bf16 %v1235_v31, %v1234_v30 }
 0xb3d   :  { %3123 = vmatmul.mubr.msk.bf16.vlgmr.msra.gmra.mxu0 %vm181_vm1, %v1246_v32 }
 0xb3e   :  { %3138 = vmatprep.mubr.msk.bf16.mxu0 %vm3399_vm0, %v3396_v0  ;;  %3135 = vmatpush3.bf16.msra.mxu0 %v3326_v63 }
 0xb3f   :  { %3136 = vmatprep.subr.bf16.mxu0 %v3396_v0 }
 0xb42   :  { %3137 = vmatpush3.bf16.msra.mxu0 %v3328_v2 }
 0xb43   :  { %3150 = vmatprep.subr.bf16.mxu0 %v3396_v0 }
 0xbfd   :  { %v1302_v36 = vpop.f32.mrf.mxu0 }
 0xbfe   :  { %v1303_v38 = vadd.f32 %v2822_v35, %v1302_v36 }
 0xbff   :  { %v3124_v37 = vpop.f32.mrf.mxu0 }
 0xc00   :  { %v1309_v42 = vmax.f32 %v1303_v38, 0.0 }
 0xc01   :  { %v1305_v39 = vpop.f32.mrf.mxu0 }
 0xc02   :  { %v1306_v40 = vadd.f32 %v2822_v35, %v1305_v39 }
 0xc03   :  { %v3125_v41 = vpop.f32.mrf.mxu0 }
 0xc04   :  { %v1310_v43 = vmax.f32 %v1306_v40, 0.0  ;;  %v2840_v40 = vld [vmem:[%s3745_s7] ss:$0 sm:$0xff] }
 0xc06   :  { %v1311_v44 = vpack.c.bf16 %v1310_v43, %v1309_v42 }
 0xc08   :  { %3131 = vmatmul.mubr.msk.bf16.vlgmr.msra.gmra.mxu1 %vm181_vm1, %v1311_v44 }
 0xc09   :  { %3146 = vmatprep.mubr.msk.bf16.mxu1 %vm3399_vm0, %v3396_v0  ;;  %3143 = vmatpush3.bf16.msra.mxu1 %v3327_v1 }
 0xc0a   :  { %3144 = vmatprep.subr.bf16.mxu1 %v3396_v0 }
 0xc0d   :  { %3145 = vmatpush3.bf16.msra.mxu1 %v3329_v3 }
 0xc0e   :  { %3158 = vmatprep.subr.bf16.mxu1 %v3396_v0 }
 0xcc8   :  { %v1367_v46 = vpop.f32.mrf.mxu1 }
 0xcc9   :  { %v1368_v47 = vadd.f32 %v2826_v45, %v1367_v46 }
 0xcca   :  { %v3132_v9 = vpop.f32.mrf.mxu1 }
 0xccb   :  { %v1374_v48 = vadd.f32 %v1368_v47, %v1234_v30 }
 0xccc   :  { %v1370_v49 = vpop.f32.mrf.mxu1 }
 0xccd   :  { %v1371_v50 = vadd.f32 %v2826_v45, %v1370_v49  ;;  %v1378_v51 = vsel %vm181_vm1, %v1374_v48, 0.0 }
 0xcce   :  { %1379 = vadd.xlane.f32.xlu0 %v1378_v51  ;;  %v3133_v52 = vpop.f32.mrf.mxu1 }
 0xccf   :  { %v1375_v53 = vadd.f32 %v1371_v50, %v1235_v31 }
 0xcd1   :  { %v1381_v54 = vsel %vm181_vm1, %v1375_v53, 0.0 }
 0xcd2   :  { %1382 = vadd.xlane.f32.xlu1 %v1381_v54 }
 0xd57   :  { %v1380_v11 = vpop.xlane.xlu0 %1379 }
 0xd58   :  { %v1384_v55 = vmul.f32 0.03125, %v1380_v11  ;;  %v3333_v11 = vld [vmem:[%s3681_s9 + $0x10] sm:$0xff]  }
 0xd5a   :  { %v1386_v56 = vsub.f32 %v1374_v48, %v1384_v55  ;;  %v3334_v55 = vld [vmem:[%s3694_s17 + $0x18] sm:$0xff]  }
 0xd5b   :  { %v1383_v57 = vpop.xlane.xlu1 %1382 }
 0xd5c   :  { %v1385_v58 = vmul.f32 0.03125, %v1383_v57  ;;  %v1388_v59 = vmul.f32 %v1386_v56, %v1386_v56 }
 0xd5e   :  { %v1387_v60 = vsub.f32 %v1375_v53, %v1385_v58  ;;  %v1390_v27 = vsel %vm181_vm1, %v1388_v59, 0.0  ;;  %v3332_v53 = vld [vmem:[%s3681_s9 + $0x18] sm:$0xff]   ;;  %s2758_s9 = sld [smem:[%s3933_s0 + %s3428_s6]]  }
 0xd5f   :  { %1391 = vadd.xlane.f32.xlu0 %v1390_v27 }
 0xd60   :  { %v1389_v61 = vmul.f32 %v1387_v60, %v1387_v60 }
 0xd62   :  { %v1393_v62 = vsel %vm181_vm1, %v1389_v61, 0.0 }
 0xd63   :  { %1394 = vadd.xlane.f32.xlu1 %v1393_v62 }
 0xde8   :  { %v1392_v4 = vpop.xlane.xlu0 %1391 }
 0xde9   :  { %v1396_v5 = vmul.f32 0.03125, %v1392_v4 }
 0xdeb   :  { %v1398_v6 = vadd.f32 1e-05, %v1396_v5  ;;  %v3784_v5 = vld [vmem:[%s3739_s3 + $0x1] ss:$0 sm:$0xff] }
 0xdec   :  { %v1395_v7 = vpop.xlane.xlu1 %1394 }
 0xded   :  { %3364 = vrsqrt.f32 %v1398_v6  ;;  %v1397_v8 = vmul.f32 0.03125, %v1395_v7 }
 0xdef   :  { %v1399_v12 = vadd.f32 1e-05, %v1397_v8 }
 0xdf1   :  { %3366 = vrsqrt.f32 %v1399_v12  ;;  %v2871_v12 = vld [vmem:[%s3745_s7 + $0x1] ss:$0 sm:$0xff] }
 0xdfa   :  { %v3365_v13 = vpop.eup %3364 }
 0xdfb   :  { %v1402_v14 = vmul.f32 %v3365_v13, %v1386_v56  ;;  %v3335_v56 = vld [vmem:[%s3694_s17 + $0x10] sm:$0xff]   ;;  %s2760_s17 = sld [smem:[%s3933_s0 + %s3430_s14]]  }
 0xdfd   :  { %v1410_v16 = vmul.f32 %v2830_v15, %v1402_v14 }
 0xdfe   :  { %v3367_v10 = vpop.eup %3366 }
 0xdff   :  { %v1403_v17 = vmul.f32 %v3367_v10, %v1387_v60  ;;  %v3707_v20 = vadd.f32 %v2831_v18, %v1410_v16 }
 0xe01   :  { %v1411_v19 = vmul.f32 %v2830_v15, %v1403_v17 }
 0xe03   :  { %v3709_v22 = vadd.f32 %v2831_v18, %v1411_v19 }
 0xe05   :  { %v3714_v24 = vpack.c.bf16 %v3709_v22, %v3707_v20 }
 0xe07   :  { %3139 = vmatmul.mubr.msk.bf16.vlgmr.msra.gmra.mxu0 %vm181_vm1, %v3714_v24  ;;  %3147 = vmatmul.mubr.msk.bf16.vlgmr.msra.gmra.mxu1 %vm181_vm1, %v3714_v24 }
 0xe08   :  { %3151 = vmatpush3.bf16.msra.mxu0 %v3330_v23  ;;  %3154 = vmatprep.mubr.msk.bf16.mxu0 %vm3399_vm0, %v3396_v0 }
 0xe09   :  { %3152 = vmatprep.subr.bf16.mxu0 %v3396_v0  ;;  %3160 = vmatprep.mubr.msk.bf16.mxu1 %vm3399_vm0, %v3396_v0 }
 0xe0c   :  { %3153 = vmatpush3.bf16.msra.mxu0 %v3331_v25 }
 0xe0d   :  { %3164 = vmatprep.subr.bf16.mxu0 %v3396_v0 }
 0xe0f   :  { %3155 = vmatmul.mubr.msk.bf16.vlgmr.msra.gmra.mxu0 %vm181_vm1, %v3714_v24 }
 0xe10   :  { %3166 = vmatprep.mubr.msk.bf16.mxu0 %vm3399_vm0, %v3396_v0 }
 0xec7   :  { %v1481_v21 = vpop.f32.mrf.mxu0  ;;  %v1545_v28 = vpop.f32.mrf.mxu1 }
 0xec8   :  { %v1546_v29 = vadd.f32 %v2836_v26, %v1545_v28  ;;  %v1482_v41 = vadd.f32 %v2832_v33, %v1481_v21 }
 0xec9   :  { %v3140_v30 = vpop.f32.mrf.mxu0  ;;  %v3148_v31 = vpop.f32.mrf.mxu1 }
 0xeca   :  { %v1619_v32 = vpack.c.bf16 %v1546_v29, %v1546_v29  ;;  %v1618_v46 = vpack.c.bf16 %v1482_v41, %v1482_v41 }
 0xecb   :  { %v1484_v34 = vpop.f32.mrf.mxu0  ;;  %v1548_v35 = vpop.f32.mrf.mxu1 }
 0xecc   :  { %v1625_v36 = vsel %vm359_vm2, %v1619_v32, 0  ;;  %v1549_v37 = vadd.f32 %v2836_v26, %v1548_v35  ;;  %v1485_v52 = vadd.f32 %v2832_v33, %v1484_v34 }
 0xecd   :  { %v3141_v38 = vpop.f32.mrf.mxu0  ;;  %v3149_v39 = vpop.f32.mrf.mxu1  ;;  %3159 = vmatpush3.bf16.xpose.msra.mxu1 %v1625_v36 }
 0xece   :  { %3170 = vmatprep.subr.bf16.mxu1 %v3396_v0  ;;  %v1727_v43 = vpack.c.bf16 %v1549_v37, %v1549_v37  ;;  %v1726_v54 = vpack.c.bf16 %v1485_v52, %v1485_v52 }
 0xecf   :  { %v1609_v42 = vpop.f32.mrf.mxu0 }
 0xed0   :  { %v1610_v44 = vadd.f32 %v2840_v40, %v1609_v42  ;;  %v1733_v48 = vsel %vm359_vm2, %v1727_v43, 0  ;;  %v3336_v43 = vld [vmem:[%s3686_s13 + $0x18] sm:$0xff]  }
 0xed1   :  { %v3156_v45 = vpop.f32.mrf.mxu0 }
 0xed2   :  { %v1620_v47 = vpack.c.bf16 %v1610_v44, %v1610_v44  ;;  %v3337_v45 = vld [vmem:[%s3686_s13 + $0x10] sm:$0xff]   ;;  %s2759_s13 = sld [smem:[%s3933_s0 + %s3429_s10]]  }
 0xed3   :  { %v1612_v9 = vpop.f32.mrf.mxu0 }
 0xed4   :  { %v1683_v49 = vsel %vm422_vm4, %v1620_v47, 0  ;;  %v3753_v50 = vadd.f32 %v2840_v40, %v1612_v9  ;;  %3161 = vmatmul.mubr.msk.bf16.vlgmr.msra.gmra.mxu1 %vm359_vm2, %v1618_v46 }
 0xed5   :  { %v3157_v51 = vpop.f32.mrf.mxu0  ;;  %3165 = vmatpush3.bf16.msra.mxu0 %v1683_v49  ;;  %3171 = vmatpush3.bf16.xpose.msra.mxu1 %v1733_v48 }
 0xed6   :  { %3172 = vmatprep.mubr.msk.bf16.mxu1 %vm3399_vm0, %v3396_v0  ;;  %3182 = vmatprep.subr.bf16.mxu1 %v3396_v0  ;;  %v1728_v37 = vpack.c.bf16 %v3753_v50, %v3753_v50 }
 0xed7   :  { %3176 = vmatprep.subr.bf16.mxu0 %v3396_v0 }
 0xed8   :  { %v1791_v40 = vsel %vm422_vm4, %v1728_v37, 0  ;;  %v2887_v37 = vld [vmem:[%s2752_s15] ss:$0 sm:$0xff] }
 0xedc   :  { %3173 = vmatmul.mubr.msk.bf16.vlgmr.msra.gmra.mxu1 %vm359_vm2, %v1726_v54 }
 0xedd   :  { %3183 = vmatpush3.bf16.msra.mxu1 %v3332_v53  ;;  %3186 = vmatprep.mubr.msk.bf16.mxu1 %vm3399_vm0, %v3396_v0  ;;  %v2862_v53 = vld [vmem:[%s3734_s29 + $0x1] ss:$0 sm:$0xff]  ;;  %s2763_s29 = sld [smem:[%s3933_s0 + %s3433_s26]]  }
 0xede   :  { %3184 = vmatprep.subr.bf16.mxu1 %v3396_v0 }
 0xee1   :  { %3185 = vmatpush3.bf16.msra.mxu1 %v3333_v11 }
 0xee2   :  { %3198 = vmatprep.subr.bf16.mxu1 %v3396_v0 }
 0xee4   :  { %3187 = vmatmul.mubr.msk.bf16.vlgmr.msra.gmra.mxu1 %vm181_vm1, %v3714_v24 }
 0xee5   :  { %3199 = vmatpush3.bf16.msra.mxu1 %v3334_v55  ;;  %3202 = vmatprep.mubr.msk.bf16.mxu1 %vm3399_vm0, %v3396_v0 }
 0xee6   :  { %3200 = vmatprep.subr.bf16.mxu1 %v3396_v0 }
 0xee9   :  { %3201 = vmatpush3.bf16.msra.mxu1 %v3335_v56 }
 0xeea   :  { %3212 = vmatprep.subr.bf16.mxu1 %v3396_v0 }
 0xeec   :  { %3203 = vmatmul.mubr.msk.bf16.vlgmr.msra.gmra.mxu1 %vm181_vm1, %v3714_v24 }
 0xeed   :  { %3214 = vmatprep.mubr.msk.bf16.mxu1 %vm3399_vm0, %v3396_v0 }
 0xf94   :  { %v1661_v57 = vpop.f32.mrf.mxu1 }
 0xf95   :  { %v1667_v58 = vsel %vm406_vm3, %v1661_v57, -inf }
 0xf96   :  { %1668 = vmax.xlane.f32.xlu0 %v1667_v58  ;;  %v3162_v59 = vpop.f32.mrf.mxu1 }
 0xf98   :  { %v1664_v60 = vpop.f32.mrf.mxu1 }
 0xf9a   :  { %v3163_v27 = vpop.f32.mrf.mxu1 }
 0xf9c   :  { %v1769_v61 = vpop.f32.mrf.mxu1 }
 0xf9d   :  { %v1775_v62 = vsel %vm406_vm3, %v1769_v61, -inf }
 0xf9e   :  { %1776 = vmax.xlane.f32.xlu1 %v1775_v62  ;;  %v3174_v63 = vpop.f32.mrf.mxu1 }
 0xfa0   :  { %v1772_v1 = vpop.f32.mrf.mxu1 }
 0xfa2   :  { %v3175_v2 = vpop.f32.mrf.mxu1 }
 0xfa4   :  { %v3781_v3 = vpop.f32.mrf.mxu1 }
 0xfa5   :  { %v1894_v60 = vadd.f32 %v3784_v5, %v3781_v3 }
 0xfa6   :  { %v3188_v4 = vpop.f32.mrf.mxu1 }
 0xfa7   :  { %v2035_v27 = vpack.c.bf16 %v1894_v60, %v1894_v60 }
 0xfa8   :  { %v1896_v6 = vpop.f32.mrf.mxu1 }
 0xfa9   :  { %v3787_v7 = vadd.f32 %v3784_v5, %v1896_v6 }
 0xfaa   :  { %v3189_v8 = vpop.f32.mrf.mxu1 }
 0xfac   :  { %v2025_v13 = vpop.f32.mrf.mxu1 }
 0xfad   :  { %v2026_v14 = vadd.f32 %v2871_v12, %v2025_v13 }
 0xfae   :  { %v3204_v15 = vpop.f32.mrf.mxu1 }
 0xfaf   :  { %v2037_v10 = vpack.c.bf16 %v2026_v14, %v2026_v14 }
 0xfb0   :  { %v2028_v16 = vpop.f32.mrf.mxu1 }
 0xfb1   :  { %v2100_v17 = vsel %vm422_vm4, %v2037_v10, 0  ;;  %v3791_v18 = vadd.f32 %v2871_v12, %v2028_v16  ;;  %v3339_v12 = vld [vmem:[%s2751_s11 + $0x8] sm:$0xff]   ;;  %v3830_v10 = vld [vmem:[%s2751_s11] sm:$0xff]  }
 0xfb2   :  { %v3205_v19 = vpop.f32.mrf.mxu1  ;;  %3213 = vmatpush3.bf16.msra.mxu1 %v2100_v17 }
 0xfb3   :  { %3224 = vmatprep.subr.bf16.mxu1 %v3396_v0  ;;  %v2243_v17 = vpack.c.bf16 %v3791_v18, %v3791_v18 }
0x101f   :  { %v1669_v23 = vpop.xlane.xlu0 %1668 }
0x1020   :  { %v1670_v25 = vsub.f32 %v1661_v57, %v1669_v23  ;;  %v2306_v23 = vsel %vm422_vm4, %v2243_v17, 0 }
0x1022   :  { %v1671_v26 = vmul.f32 1.442695, %v1670_v25 }
0x1024   :  { %3368 = vpow2.f32 %v1671_v26 }
0x1027   :  { %v1777_v21 = vpop.xlane.xlu1 %1776 }
0x1028   :  { %v1778_v28 = vsub.f32 %v1769_v61, %v1777_v21 }
0x102a   :  { %v1779_v29 = vmul.f32 1.442695, %v1778_v28 }
0x102c   :  { %3370 = vpow2.f32 %v1779_v29 }
0x1031   :  { %v3369_v30 = vpop.eup %3368 }
0x1032   :  { %v1673_v31 = vsel %vm406_vm3, %v3369_v30, 0.0 }
0x1033   :  { %1674 = vadd.xlane.f32.xlu0 %v1673_v31 }
0x1039   :  { %v3371_v32 = vpop.eup %3370 }
0x103a   :  { %v1781_v33 = vsel %vm406_vm3, %v3371_v32, 0.0 }
0x103b   :  { %1782 = vadd.xlane.f32.xlu1 %v1781_v33 }
0x10bc   :  { %v1675_v34 = vpop.xlane.xlu0 %1674 }
0x10bd   :  { %3372 = vrcp.f32 %v1675_v34 }
0x10c4   :  { %v1783_v35 = vpop.xlane.xlu1 %1782 }
0x10c5   :  { %3374 = vrcp.f32 %v1783_v35 }
0x10ca   :  { %v3373_v36 = vpop.eup %3372 }
0x10cb   :  { %v1677_v38 = vmul.f32 %v3373_v36, %v3369_v30 }
0x10cd   :  { %v1678_v39 = vpack.c.bf16 %v1677_v38, %v1677_v38 }
0x10cf   :  { %3167 = vmatmul.mubr.msk.bf16.vlgmr.msra.gmra.mxu0 %vm406_vm3, %v1678_v39 }
0x10d0   :  { %3177 = vmatpush3.bf16.msra.mxu0 %v1791_v40  ;;  %3178 = vmatprep.mubr.msk.bf16.mxu0 %vm3399_vm0, %v3396_v0 }
0x10d1   :  { %3190 = vmatprep.subr.bf16.mxu0 %v3396_v0 }
0x10d2   :  { %v3375_v41 = vpop.eup %3374 }
0x10d3   :  { %v1785_v42 = vmul.f32 %v3375_v41, %v3371_v32  ;;  %v2241_v32 = vpack.c.bf16 %v3787_v7, %v3787_v7 }
0x10d5   :  { %v1786_v44 = vpack.c.bf16 %v1785_v42, %v1785_v42 }
0x10d7   :  { %3179 = vmatmul.mubr.msk.bf16.vlgmr.msra.gmra.mxu0 %vm406_vm3, %v1786_v44 }
0x10d8   :  { %3191 = vmatpush3.bf16.msra.mxu0 %v3336_v43  ;;  %3194 = vmatprep.mubr.msk.bf16.mxu0 %vm3399_vm0, %v3396_v0 }
0x10d9   :  { %3192 = vmatprep.subr.bf16.mxu0 %v3396_v0 }
0x10dc   :  { %3193 = vmatpush3.bf16.msra.mxu0 %v3337_v45 }
0x10dd   :  { %3206 = vmatprep.subr.bf16.mxu0 %v3396_v0 }
0x10df   :  { %3195 = vmatmul.mubr.msk.bf16.vlgmr.msra.gmra.mxu0 %vm181_vm1, %v3714_v24 }
0x10e0   :  { %3208 = vmatprep.mubr.msk.bf16.mxu0 %vm3399_vm0, %v3396_v0 }
0x118f   :  { %v1719_v46 = vpop.f32.mrf.mxu0 }
0x1190   :  { %v1725_v19 = vpack.c.bf16 %v1719_v46, %v1719_v46 }
0x1191   :  { %v3168_v47 = vpop.f32.mrf.mxu0 }
0x1193   :  { %v1722_v9 = vpop.f32.mrf.mxu0 }
0x1195   :  { %v3169_v48 = vpop.f32.mrf.mxu0 }
0x1197   :  { %v3814_v49 = vpop.f32.mrf.mxu0 }
0x1199   :  { %v3180_v50 = vpop.f32.mrf.mxu0 }
0x119b   :  { %v1830_v51 = vpop.f32.mrf.mxu0 }
0x119d   :  { %v3181_v52 = vpop.f32.mrf.mxu0 }
0x119f   :  { %v1959_v54 = vpop.f32.mrf.mxu0 }
0x11a0   :  { %v1960_v11 = vadd.f32 %v2862_v53, %v1959_v54 }
0x11a1   :  { %v3196_v55 = vpop.f32.mrf.mxu0 }
0x11a2   :  { %v2036_v56 = vpack.c.bf16 %v1960_v11, %v1960_v11 }
0x11a3   :  { %v1962_v57 = vpop.f32.mrf.mxu0 }
0x11a4   :  { %v2042_v24 = vsel %vm359_vm2, %v2036_v56, 0  ;;  %v1963_v58 = vadd.f32 %v2862_v53, %v1962_v57 }
0x11a5   :  { %v3197_v59 = vpop.f32.mrf.mxu0  ;;  %3207 = vmatpush3.bf16.xpose.msra.mxu0 %v2042_v24 }
0x11a6   :  { %3218 = vmatprep.subr.bf16.mxu0 %v3396_v0  ;;  %v2242_v25 = vpack.c.bf16 %v1963_v58, %v1963_v58 }
0x11a8   :  { %v2248_v29 = vsel %vm359_vm2, %v2242_v25, 0 }
0x11ac   :  { %3209 = vmatmul.mubr.msk.bf16.vlgmr.msra.gmra.mxu0 %vm359_vm2, %v2035_v27  ;;  %v1833_v27 = vpack.c.bf16 %v3814_v49, %v3814_v49 }
0x11ad   :  { %3220 = vmatprep.mubr.msk.bf16.mxu0 %vm3399_vm0, %v3396_v0  ;;  %3219 = vmatpush3.bf16.msra.mxu0 %v3339_v12 }
0x11ae   :  { %3230 = vmatprep.subr.bf16.mxu0 %v3396_v0 }
0x126c   :  { %v2078_v61 = vpop.f32.mrf.mxu0 }
0x126d   :  { %v2084_v62 = vsel %vm406_vm3, %v2078_v61, -inf }
0x126e   :  { %2085 = vmax.xlane.f32.xlu0 %v2084_v62  ;;  %v3210_v63 = vpop.f32.mrf.mxu0 }
0x1270   :  { %v2081_v1 = vpop.f32.mrf.mxu0 }
0x1272   :  { %v3211_v2 = vpop.f32.mrf.mxu0 }
0x12f7   :  { %v2086_v4 = vpop.xlane.xlu0 %2085 }
0x12f8   :  { %v2087_v6 = vsub.f32 %v2078_v61, %v2086_v4 }
0x12fa   :  { %v2088_v8 = vmul.f32 1.442695, %v2087_v6 }
0x12fc   :  { %3376 = vpow2.f32 %v2088_v8 }
0x1309   :  { %v3377_v3 = vpop.eup %3376 }
0x130a   :  { %v2090_v5 = vsel %vm406_vm3, %v3377_v3, 0.0 }
0x130b   :  { %2091 = vadd.xlane.f32.xlu1 %v2090_v5 }
0x1394   :  { %v2092_v13 = vpop.xlane.xlu1 %2091 }
0x1395   :  { %3378 = vrcp.f32 %v2092_v13 }
0x13a2   :  { %v3379_v14 = vpop.eup %3378 }
0x13a3   :  { %v2094_v15 = vmul.f32 %v3379_v14, %v3377_v3 }
0x13a5   :  { %v2095_v16 = vpack.c.bf16 %v2094_v15, %v2094_v15 }
0x13a7   :  { %3215 = vmatmul.mubr.msk.bf16.vlgmr.msra.gmra.mxu1 %vm406_vm3, %v2095_v16 }
0x13a8   :  { %3225 = vmatpush3.bf16.msra.mxu1 %v3830_v10  ;;  %3226 = vmatprep.mubr.msk.bf16.mxu1 %vm3399_vm0, %v3396_v0 }
0x13a9   :  { %3236 = vmatprep.subr.bf16.mxu1 %v3396_v0 }
0x13af   :  { %3227 = vmatmul.mubr.msk.bf16.vlgmr.msra.gmra.mxu1 %vm359_vm2, %v1725_v19 }
0x13b0   :  { %3237 = vmatpush3.bf16.msra.mxu1 %v2306_v23  ;;  %3238 = vmatprep.mubr.msk.bf16.mxu1 %vm3399_vm0, %v3396_v0 }
0x13b1   :  { %3248 = vmatprep.subr.bf16.mxu1 %v3396_v0 }
0x1467   :  { %v2136_v26 = vpop.f32.mrf.mxu1 }
0x1468   :  { %v2142_v21 = vpack.c.bf16 %v2136_v26, %v2136_v26 }
0x1469   :  { %v3216_v28 = vpop.f32.mrf.mxu1 }
0x146a   :  { %3221 = vmatmul.mubr.msk.bf16.vlgmr.msra.gmra.mxu0 %vm359_vm2, %v2142_v21  ;;  %v3340_v28 = vld [vmem:[%s2755_s19 + $0x8] sm:$0xff]  }
0x146b   :  { %3231 = vmatpush3.bf16.xpose.msra.mxu0 %v2248_v29  ;;  %v2139_v18 = vpop.f32.mrf.mxu1  ;;  %3232 = vmatprep.mubr.msk.bf16.mxu0 %vm3399_vm0, %v3396_v0  ;;  %v3341_v29 = vld [vmem:[%s2755_s19] sm:$0xff]  }
0x146c   :  { %3242 = vmatprep.subr.bf16.mxu0 %v3396_v0 }
0x146d   :  { %v3217_v30 = vpop.f32.mrf.mxu1 }
0x146f   :  { %v2235_v31 = vpop.f32.mrf.mxu1 }
0x1471   :  { %v3228_v33 = vpop.f32.mrf.mxu1 }
0x1472   :  { %3233 = vmatmul.mubr.msk.bf16.vlgmr.msra.gmra.mxu0 %vm359_vm2, %v2241_v32 }
0x1473   :  { %v2238_v34 = vpop.f32.mrf.mxu1  ;;  %3243 = vmatpush3.bf16.msra.mxu0 %v3339_v12  ;;  %3244 = vmatprep.mubr.msk.bf16.mxu0 %vm3399_vm0, %v3396_v0 }
0x1474   :  { %3254 = vmatprep.subr.bf16.mxu0 %v3396_v0 }
0x1475   :  { %v3229_v35 = vpop.f32.mrf.mxu1 }
0x152a   :  { %v2186_v36 = vpop.f32.mrf.mxu0 }
0x152b   :  { %v2236_v38 = vadd.f32 %v2235_v31, %v2186_v36  ;;  %v2888_v36 = vld [vmem:[%s2753_s23] ss:$0 sm:$0xff] }
0x152c   :  { %v3222_v7 = vpop.f32.mrf.mxu0 }
0x152d   :  { %v2442_v39 = vadd.f32 %v2887_v37, %v2236_v38 }
0x152e   :  { %v2189_v40 = vpop.f32.mrf.mxu0 }
0x152f   :  { %2443 = vst.msk [vmem:[#allocation2] sm:$0xff] %vm181_vm1, %v2442_v39  ;;  %v2889_v39 = vld [vmem:[%s2754_s27] ss:$0 sm:$0xff] }
0x1530   :  { %v3223_v41 = vpop.f32.mrf.mxu0 }
0x1532   :  { %v2284_v42 = vpop.f32.mrf.mxu0 }
0x1533   :  { %v2290_v43 = vsel %vm406_vm3, %v2284_v42, -inf }
0x1534   :  { %2291 = vmax.xlane.f32.xlu0 %v2290_v43  ;;  %v3234_v44 = vpop.f32.mrf.mxu0 }
0x1535   :  { %v3342_v44 = vld [vmem:[%s2757_s1 + $0x8] sm:$0xff]  }
0x1536   :  { %v2287_v45 = vpop.f32.mrf.mxu0  ;;  %v2446_v46 = vld [vmem:[#allocation2] sm:$0xff] }
0x1537   :  { %v2448_v47 = vadd.f32 %v2446_v46, %v3707_v20  ;;  %v3343_v45 = vld [vmem:[%s2757_s1] sm:$0xff]  }
0x1538   :  { %v3235_v9 = vpop.f32.mrf.mxu0  ;;  %v2890_v46 = vld [vmem:[%s2756_s5] ss:$0 sm:$0xff] }
0x1539   :  { %v2452_v48 = vsel %vm181_vm1, %v2448_v47, 0.0 }
0x153a   :  { %2453 = vadd.xlane.f32.xlu0 %v2452_v48 }
0x15bd   :  { %v2292_v50 = vpop.xlane.xlu0 %2291 }
0x15be   :  { %v2293_v51 = vsub.f32 %v2284_v42, %v2292_v50 }
0x15c0   :  { %v2294_v52 = vmul.f32 1.442695, %v2293_v51 }
0x15c2   :  { %3380 = vpow2.f32 %v2294_v52 }
0x15c3   :  { %v2454_v53 = vpop.xlane.xlu0 %2453 }
0x15c4   :  { %v2458_v54 = vmul.f32 0.03125, %v2454_v53 }
0x15c6   :  { %v3862_v11 = vsub.f32 %v2448_v47, %v2458_v54 }
0x15c8   :  { %v2462_v55 = vmul.f32 %v3862_v11, %v3862_v11 }
0x15ca   :  { %v2464_v56 = vsel %vm181_vm1, %v2462_v55, 0.0 }
0x15cb   :  { %2465 = vadd.xlane.f32.xlu0 %v2464_v56 }
0x15cf   :  { %v3381_v57 = vpop.eup %3380 }
0x15d0   :  { %v2296_v20 = vsel %vm406_vm3, %v3381_v57, 0.0 }
0x15d1   :  { %2297 = vadd.xlane.f32.xlu1 %v2296_v20 }
0x165a   :  { %v2298_v24 = vpop.xlane.xlu1 %2297 }
0x165b   :  { %3382 = vrcp.f32 %v2298_v24 }
0x1668   :  { %v3383_v58 = vpop.eup %3382 }
0x1669   :  { %v2300_v59 = vmul.f32 %v3383_v58, %v3381_v57 }
0x166b   :  { %v2301_v60 = vpack.c.bf16 %v2300_v59, %v2300_v59 }
0x166d   :  { %3239 = vmatmul.mubr.msk.bf16.vlgmr.msra.gmra.mxu1 %vm406_vm3, %v2301_v60 }
0x166e   :  { %3249 = vmatpush3.bf16.msra.mxu1 %v3830_v10  ;;  %3250 = vmatprep.mubr.msk.bf16.mxu1 %vm3399_vm0, %v3396_v0 }
0x166f   :  { %3262 = vmatprep.subr.bf16.mxu1 %v3396_v0 }
0x1675   :  { %3251 = vmatmul.mubr.msk.bf16.vlgmr.msra.gmra.mxu1 %vm359_vm2, %v1833_v27 }
0x1676   :  { %3266 = vmatprep.mubr.msk.bf16.mxu1 %vm3399_vm0, %v3396_v0  ;;  %3263 = vmatpush3.bf16.msra.mxu1 %v3342_v44 }
0x1677   :  { %3264 = vmatprep.subr.bf16.mxu1 %v3396_v0 }
0x167a   :  { %3265 = vmatpush3.bf16.msra.mxu1 %v3343_v45 }
0x172d   :  { %v2342_v61 = vpop.f32.mrf.mxu1 }
0x172e   :  { %v2348_v62 = vpack.c.bf16 %v2342_v61, %v2342_v61 }
0x172f   :  { %v3240_v63 = vpop.f32.mrf.mxu1 }
0x1730   :  { %3245 = vmatmul.mubr.msk.bf16.vlgmr.msra.gmra.mxu0 %vm359_vm2, %v2348_v62 }
0x1731   :  { %v2345_v1 = vpop.f32.mrf.mxu1  ;;  %3258 = vmatprep.mubr.msk.bf16.mxu0 %vm3399_vm0, %v3396_v0  ;;  %3255 = vmatpush3.bf16.msra.mxu0 %v3340_v28 }
0x1732   :  { %3256 = vmatprep.subr.bf16.mxu0 %v3396_v0  ;;  %v2894_v0 = vld [vmem:[%s2758_s9] ss:$0 sm:$0xff] }
0x1733   :  { %v3241_v2 = vpop.f32.mrf.mxu1 }
0x1735   :  { %v2429_v4 = vpop.f32.mrf.mxu1  ;;  %3257 = vmatpush3.bf16.msra.mxu0 %v3341_v29 }
0x1737   :  { %v3252_v6 = vpop.f32.mrf.mxu1 }
0x1739   :  { %v2432_v8 = vpop.f32.mrf.mxu1 }
0x173b   :  { %v3253_v3 = vpop.f32.mrf.mxu1 }
0x17f0   :  { %v2386_v49 = vpop.f32.mrf.mxu0 }
0x17f1   :  { %v2430_v5 = vadd.f32 %v2429_v4, %v2386_v49 }
0x17f2   :  { %v3246_v12 = vpop.f32.mrf.mxu0 }
0x17f3   :  { %v2444_v13 = vadd.f32 %v2887_v37, %v2430_v5 }
0x17f4   :  { %v2389_v14 = vpop.f32.mrf.mxu0 }
0x17f5   :  { %2445 = vst.msk [vmem:[#allocation2 + $0x8] sm:$0xff] %vm181_vm1, %v2444_v13 }
0x17f6   :  { %v3247_v15 = vpop.f32.mrf.mxu0 }
0x17fc   :  { %v2447_v10 = vld [vmem:[#allocation2 + $0x8] sm:$0xff] }
0x17fd   :  { %v2449_v16 = vadd.f32 %v2447_v10, %v3709_v22  ;;  %v2466_v22 = vpop.xlane.xlu0 %2465 }
0x17fe   :  { %v2470_v18 = vmul.f32 0.03125, %v2466_v22 }
0x17ff   :  { %v2455_v17 = vsel %vm181_vm1, %v2449_v16, 0.0 }
0x1800   :  { %2456 = vadd.xlane.f32.xlu1 %v2455_v17  ;;  %v2472_v30 = vadd.f32 1e-05, %v2470_v18 }
0x1802   :  { %3384 = vrsqrt.f32 %v2472_v30 }
0x180f   :  { %v3385_v34 = vpop.eup %3384 }
0x1810   :  { %v2476_v35 = vmul.f32 %v3385_v34, %v3862_v11 }
0x1812   :  { %v2484_v7 = vmul.f32 %v2888_v36, %v2476_v35 }
0x1814   :  { %v2492_v41 = vadd.f32 %v2889_v39, %v2484_v7 }
0x1889   :  { %v2457_v19 = vpop.xlane.xlu1 %2456 }
0x188a   :  { %v2459_v23 = vmul.f32 0.03125, %v2457_v19  ;;  %v2898_v19 = vld [vmem:[%s2759_s13] ss:$0 sm:$0xff] }
0x188c   :  { %v2461_v25 = vsub.f32 %v2449_v16, %v2459_v23 }
0x188e   :  { %v2463_v26 = vmul.f32 %v2461_v25, %v2461_v25 }
0x1890   :  { %v2467_v21 = vsel %vm181_vm1, %v2463_v26, 0.0 }
0x1891   :  { %2468 = vadd.xlane.f32.xlu1 %v2467_v21 }
0x191a   :  { %v2469_v31 = vpop.xlane.xlu1 %2468 }
0x191b   :  { %v2471_v32 = vmul.f32 0.03125, %v2469_v31 }
0x191d   :  { %v2473_v33 = vadd.f32 1e-05, %v2471_v32 }
0x191f   :  { %3386 = vrsqrt.f32 %v2473_v33 }
0x192c   :  { %v3387_v37 = vpop.eup %3386 }
0x192d   :  { %v2477_v38 = vmul.f32 %v3387_v37, %v2461_v25  ;;  %v2899_v25 = vld [vmem:[%s2760_s17] ss:$0 sm:$0xff] }
0x192f   :  { %v2485_v40 = vmul.f32 %v2888_v36, %v2477_v38 }
0x1931   :  { %v2493_v42 = vadd.f32 %v2889_v39, %v2485_v40 }
0x1933   :  { %v2504_v43 = vpack.c.bf16 %v2493_v42, %v2492_v41 }
0x1935   :  { %3259 = vmatmul.mubr.msk.bf16.vlgmr.msra.gmra.mxu0 %vm181_vm1, %v2504_v43 }
0x19f5   :  { %v2560_v47 = vpop.f32.mrf.mxu0 }
0x19f6   :  { %v2561_v48 = vadd.f32 %v2890_v46, %v2560_v47 }
0x19f7   :  { %v3260_v9 = vpop.f32.mrf.mxu0 }
0x19f8   :  { %v2567_v53 = vmax.f32 %v2561_v48, 0.0  ;;  %v2900_v9 = vld [vmem:[%s2761_s21] ss:$0 sm:$0xff] }
0x19f9   :  { %v2563_v50 = vpop.f32.mrf.mxu0 }
0x19fa   :  { %v2564_v51 = vadd.f32 %v2890_v46, %v2563_v50  ;;  %v2901_v50 = vld [vmem:[%s2762_s25] ss:$0 sm:$0xff] }
0x19fb   :  { %v3261_v52 = vpop.f32.mrf.mxu0 }
0x19fc   :  { %v2568_v54 = vmax.f32 %v2564_v51, 0.0 }
0x19fe   :  { %v2569_v11 = vpack.c.bf16 %v2568_v54, %v2567_v53 }
0x1a00   :  { %3267 = vmatmul.mubr.msk.bf16.vlgmr.msra.gmra.mxu1 %vm181_vm1, %v2569_v11 }
0x1ac0   :  { %v2625_v55 = vpop.f32.mrf.mxu1 }
0x1ac1   :  { %v2626_v56 = vadd.f32 %v2894_v0, %v2625_v55 }
0x1ac2   :  { %v3268_v57 = vpop.f32.mrf.mxu1 }
0x1ac3   :  { %v2632_v20 = vadd.f32 %v2626_v56, %v2492_v41 }
0x1ac4   :  { %v2628_v24 = vpop.f32.mrf.mxu1 }
0x1ac5   :  { %v2629_v58 = vadd.f32 %v2894_v0, %v2628_v24  ;;  %v2636_v59 = vsel %vm181_vm1, %v2632_v20, 0.0 }
0x1ac6   :  { %2637 = vadd.xlane.f32.xlu0 %v2636_v59  ;;  %v3269_v60 = vpop.f32.mrf.mxu1 }
0x1ac7   :  { %v2633_v27 = vadd.f32 %v2629_v58, %v2493_v42 }
0x1ac9   :  { %v2639_v61 = vsel %vm181_vm1, %v2633_v27, 0.0 }
0x1aca   :  { %2640 = vadd.xlane.f32.xlu1 %v2639_v61 }
0x1b4f   :  { %v2638_v62 = vpop.xlane.xlu0 %2637 }
0x1b50   :  { %v2642_v63 = vmul.f32 0.03125, %v2638_v62 }
0x1b52   :  { %v2644_v1 = vsub.f32 %v2632_v20, %v2642_v63 }
0x1b53   :  { %v2641_v2 = vpop.xlane.xlu1 %2640 }
0x1b54   :  { %v2643_v4 = vmul.f32 0.03125, %v2641_v2  ;;  %v2646_v6 = vmul.f32 %v2644_v1, %v2644_v1 }
0x1b56   :  { %v2645_v8 = vsub.f32 %v2633_v27, %v2643_v4  ;;  %v2648_v3 = vsel %vm181_vm1, %v2646_v6, 0.0 }
0x1b57   :  { %2649 = vadd.xlane.f32.xlu0 %v2648_v3 }
0x1b58   :  { %v2647_v49 = vmul.f32 %v2645_v8, %v2645_v8 }
0x1b5a   :  { %v2651_v5 = vsel %vm181_vm1, %v2647_v49, 0.0 }
0x1b5b   :  { %2652 = vadd.xlane.f32.xlu1 %v2651_v5 }
0x1be0   :  { %v2650_v12 = vpop.xlane.xlu0 %2649 }
0x1be1   :  { %v2654_v13 = vmul.f32 0.03125, %v2650_v12 }
0x1be3   :  { %v2656_v14 = vadd.f32 1e-05, %v2654_v13 }
0x1be4   :  { %v2653_v15 = vpop.xlane.xlu1 %2652 }
0x1be5   :  { %3388 = vrsqrt.f32 %v2656_v14  ;;  %v2655_v10 = vmul.f32 0.03125, %v2653_v15 }
0x1be7   :  { %v2657_v16 = vadd.f32 1e-05, %v2655_v10 }
0x1be9   :  { %3390 = vrsqrt.f32 %v2657_v16 }
0x1bf2   :  { %v3389_v17 = vpop.eup %3388 }
0x1bf3   :  { %v2660_v23 = vmul.f32 %v3389_v17, %v2644_v1 }
0x1bf5   :  { %v2668_v26 = vmul.f32 %v2898_v19, %v2660_v23 }
0x1bf6   :  { %v3391_v21 = vpop.eup %3390 }
0x1bf7   :  { %v2676_v28 = vadd.f32 %v2899_v25, %v2668_v26  ;;  %v2661_v29 = vmul.f32 %v3391_v21, %v2645_v8 }
0x1bf9   :  { %v2680_v22 = vsel %vm181_vm1, %v2676_v28, 0.0  ;;  %v2669_v18 = vmul.f32 %v2898_v19, %v2661_v29 }
0x1bfa   :  { %2681 = vadd.xlane.f32.xlu0 %v2680_v22 }
0x1bfb   :  { %v2677_v30 = vadd.f32 %v2899_v25, %v2669_v18 }
0x1bfd   :  { %v2683_v31 = vsel %vm181_vm1, %v2677_v30, 0.0 }
0x1bfe   :  { %2684 = vadd.xlane.f32.xlu1 %v2683_v31 }
0x1c83   :  { %v2682_v32 = vpop.xlane.xlu0 %2681 }
0x1c84   :  { %v2686_v33 = vmul.f32 0.03125, %v2682_v32 }
0x1c86   :  { %v2688_v34 = vsub.f32 %v2676_v28, %v2686_v33 }
0x1c87   :  { %v2685_v35 = vpop.xlane.xlu1 %2684 }
0x1c88   :  { %v2687_v36 = vmul.f32 0.03125, %v2685_v35  ;;  %v2690_v37 = vmul.f32 %v2688_v34, %v2688_v34 }
0x1c8a   :  { %v2689_v38 = vsub.f32 %v2677_v30, %v2687_v36  ;;  %v2692_v7 = vsel %vm181_vm1, %v2690_v37, 0.0 }
0x1c8b   :  { %2693 = vadd.xlane.f32.xlu0 %v2692_v7 }
0x1c8c   :  { %v2691_v39 = vmul.f32 %v2689_v38, %v2689_v38 }
0x1c8e   :  { %v2695_v40 = vsel %vm181_vm1, %v2691_v39, 0.0 }
0x1c8f   :  { %2696 = vadd.xlane.f32.xlu1 %v2695_v40 }
0x1d14   :  { %v2694_v41 = vpop.xlane.xlu0 %2693 }
0x1d15   :  { %v2698_v42 = vmul.f32 0.03125, %v2694_v41 }
0x1d17   :  { %v2700_v43 = vadd.f32 1e-05, %v2698_v42 }
0x1d18   :  { %v2697_v44 = vpop.xlane.xlu1 %2696 }
0x1d19   :  { %3392 = vrsqrt.f32 %v2700_v43  ;;  %v2699_v45 = vmul.f32 0.03125, %v2697_v44 }
0x1d1b   :  { %v2701_v46 = vadd.f32 1e-05, %v2699_v45 }
0x1d1d   :  { %3394 = vrsqrt.f32 %v2701_v46 }
0x1d26   :  { %v3393_v47 = vpop.eup %3392 }
0x1d27   :  { %v2704_v48 = vmul.f32 %v3393_v47, %v2688_v34 }
0x1d29   :  { %v2712_v51 = vmul.f32 %v2900_v9, %v2704_v48 }
0x1d2a   :  { %v3395_v52 = vpop.eup %3394 }
0x1d2b   :  { %v2720_v53 = vadd.f32 %v2901_v50, %v2712_v51  ;;  %v2705_v54 = vmul.f32 %v3395_v52, %v2689_v38 }
0x1d2d   :  { %2722 = vst.msk [vmem:[%s2763_s29] sm:$0xff] %vm181_vm1, %v2720_v53  ;;  %v2713_v11 = vmul.f32 %v2900_v9, %v2705_v54 }
0x1d2f   :  { %v2721_v0 = vadd.f32 %v2901_v50, %v2713_v11 }
0x1d31   :  { %2723 = vst.msk [vmem:[%s2763_s29 + $0x8] sm:$0xff] %vm181_vm1, %v2721_v0 }

// kernel: transformer_model_forward.3
= control target key start
LH: loop header
LB: loop body
LE: loop exit
PB: predicated region body
PF: predicated region fallthrough
CT: control target
= control target key end

     0   :  { %s6721_s6 = smov 1   ;;  %s6722_s10 = smov 2   ;;  %s7820_s0 = inlined_call_operand.smem [shape: u32[59], index: -1, kind: input, shape index: {}] }
   0x1   :  { %s6804_s5 = sld [smem:[%s7820_s0]]   ;;  %s6723_s14 = smov 3  }
   0x2   :  { %s6809_s9 = sld [smem:[%s7820_s0 + %s6721_s6]]   ;;  %s6724_s18 = smov 4  }
   0x3   :  { %s6814_s13 = sld [smem:[%s7820_s0 + %s6722_s10]]   ;;  %s6725_s22 = smov 5  }
   0x4   :  { %s6819_s17 = sld [smem:[%s7820_s0 + %s6723_s14]]   ;;  %s6726_s26 = smov 6  }
   0x5   :  { %s6824_s21 = sld [smem:[%s7820_s0 + %s6724_s18]]   ;;  %s6727_s30 = smov 7  }
   0x6   :  { %s6829_s25 = sld [smem:[%s7820_s0 + %s6725_s22]]   ;;  %s6728_s4 = smov 8  }
   0x7   :  { %s6834_s29 = sld [smem:[%s7820_s0 + %s6726_s26]]   ;;  %s6729_s10 = smov 9  }
   0x8   :  { %7851 = sst [smem:[#allocation32_spill]] %s6809_s9  ;;  %s6730_s15 = smov 10  }
   0x9   :  { %s6839_s3 = sld [smem:[%s7820_s0 + %s6727_s30]]   ;;  %s6731_s20 = smov 11  }
   0xa   :  { %7852 = sst [smem:[#allocation33_spill]] %s6819_s17  ;;  %s6732_s26 = smov 12  }
   0xb   :  { %s6844_s8 = sld [smem:[%s7820_s0 + %s6728_s4]]   ;;  %s6733_s1 = smov 13  }
   0xc   :  { %s6849_s14 = sld [smem:[%s7820_s0 + %s6729_s10]]   ;;  %s6734_s7 = smov 14  }
   0xd   :  { %7853 = sst [smem:[#allocation34_spill]] %s6834_s29  ;;  %s6736_s22 = smov 16  }
   0xe   :  { %s6854_s19 = sld [smem:[%s7820_s0 + %s6730_s15]]   ;;  %s6735_s15 = smov 15  }
   0xf   :  { %7854 = sst [smem:[#allocation35_spill]] %s6839_s3  ;;  %s6737_s28 = smov 17  }
  0x10   :  { %s6859_s24 = sld [smem:[%s7820_s0 + %s6731_s20]]  }
  0x11   :  { %7855 = sst [smem:[#allocation36_spill]] %s6844_s8 }
  0x12   :  { %7856 = sst [smem:[#allocation37_spill]] %s6849_s14 }
  0x13   :  { %s6864_s30 = sld [smem:[%s7820_s0 + %s6732_s26]]  }
  0x14   :  { %7857 = sst [smem:[#allocation38_spill]] %s6854_s19 }
  0x15   :  { %s6869_s6 = sld [smem:[%s7820_s0 + %s6733_s1]]  }
  0x16   :  { %7858 = sst [smem:[#allocation39_spill]] %s6859_s24 }
  0x17   :  { %s6874_s12 = sld [smem:[%s7820_s0 + %s6734_s7]]   ;;  %s6738_s7 = smov 18  }
  0x18   :  { %s6879_s20 = sld [smem:[%s7820_s0 + %s6735_s15]]   ;;  %s6739_s15 = smov 19  }
  0x19   :  { %7859 = sst [smem:[#allocation40_spill]] %s6864_s30 }
  0x1a   :  { %s6884_s27 = sld [smem:[%s7820_s0 + %s6736_s22]]   ;;  %s6740_s22 = smov 20  }
  0x1b   :  { %7860 = sst [smem:[#allocation41_spill]] %s6869_s6 }
  0x1c   :  { %s6889_s4 = sld [smem:[%s7820_s0 + %s6737_s28]]   ;;  %s6741_s28 = smov 21  }
  0x1d   :  { %7861 = sst [smem:[#allocation42_spill]] %s6874_s12 }
  0x1e   :  { %7862 = sst [smem:[#allocation43_spill]] %s6879_s20 }
  0x1f   :  { %s6894_s6 = sld [smem:[%s7820_s0 + %s6738_s7]]   ;;  %s6742_s7 = smov 22  }
  0x20   :  { %7863 = sst [smem:[#allocation44_spill]] %s6884_s27 }
  0x21   :  { %s6899_s20 = sld [smem:[%s7820_s0 + %s6739_s15]]   ;;  %s6743_s15 = smov 23  }
  0x22   :  { %7864 = sst [smem:[#allocation45_spill]] %s6889_s4 }
  0x23   :  { %s6904_s27 = sld [smem:[%s7820_s0 + %s6740_s22]]   ;;  %s6744_s22 = smov 24  }
  0x24   :  { %s6909_s4 = sld [smem:[%s7820_s0 + %s6741_s28]]   ;;  %s6745_s28 = smov 25  }
  0x25   :  { %7865 = sst [smem:[#allocation46_spill]] %s6894_s6 }
  0x26   :  { %s6914_s6 = sld [smem:[%s7820_s0 + %s6742_s7]]   ;;  %s6746_s7 = smov 26  }
  0x27   :  { %7866 = sst [smem:[#allocation47_spill]] %s6899_s20 }
  0x28   :  { %s6919_s20 = sld [smem:[%s7820_s0 + %s6743_s15]]   ;;  %s6747_s15 = smov 27  }
  0x29   :  { %7867 = sst [smem:[#allocation48_spill]] %s6904_s27 }
  0x2a   :  { %7868 = sst [smem:[#allocation49_spill]] %s6909_s4 }
  0x2b   :  { %s6924_s27 = sld [smem:[%s7820_s0 + %s6744_s22]]   ;;  %s6748_s22 = smov 28  }
  0x2c   :  { %7869 = sst [smem:[#allocation50_spill]] %s6914_s6 }
  0x2d   :  { %s6929_s4 = sld [smem:[%s7820_s0 + %s6745_s28]]   ;;  %s6749_s28 = smov 29  }
  0x2e   :  { %7870 = sst [smem:[#allocation51_spill]] %s6919_s20 }
  0x2f   :  { %s6934_s6 = sld [smem:[%s7820_s0 + %s6746_s7]]   ;;  %s6750_s7 = smov 30  }
  0x30   :  { %s6939_s20 = sld [smem:[%s7820_s0 + %s6747_s15]]   ;;  %s6751_s15 = smov 31  }
  0x31   :  { %7871 = sst [smem:[#allocation52_spill]] %s6924_s27 }
  0x32   :  { %s6944_s27 = sld [smem:[%s7820_s0 + %s6748_s22]]   ;;  %s6752_s22 = smov 32  }
  0x33   :  { %7872 = sst [smem:[#allocation53_spill]] %s6929_s4 }
  0x34   :  { %s6949_s4 = sld [smem:[%s7820_s0 + %s6749_s28]]   ;;  %s6753_s28 = smov 33  }
  0x35   :  { %7873 = sst [smem:[#allocation54_spill]] %s6934_s6 }
  0x36   :  { %7874 = sst [smem:[#allocation55_spill]] %s6939_s20 }
  0x37   :  { %s6954_s6 = sld [smem:[%s7820_s0 + %s6750_s7]]   ;;  %s6754_s7 = smov 34  }
  0x38   :  { %7875 = sst [smem:[#allocation56_spill]] %s6944_s27 }
  0x39   :  { %s6959_s20 = sld [smem:[%s7820_s0 + %s6751_s15]]   ;;  %s6755_s15 = smov 35  }
  0x3a   :  { %7876 = sst [smem:[#allocation57_spill]] %s6949_s4 }
  0x3b   :  { %s6964_s27 = sld [smem:[%s7820_s0 + %s6752_s22]]   ;;  %s6756_s22 = smov 36  }
  0x3c   :  { %s6969_s4 = sld [smem:[%s7820_s0 + %s6753_s28]]   ;;  %s6757_s28 = smov 37  }
  0x3d   :  { %7877 = sst [smem:[#allocation58_spill]] %s6954_s6 }
  0x3e   :  { %s6974_s6 = sld [smem:[%s7820_s0 + %s6754_s7]]   ;;  %s6758_s7 = smov 38  }
  0x3f   :  { %7878 = sst [smem:[#allocation59_spill]] %s6959_s20 }
  0x40   :  { %s6979_s20 = sld [smem:[%s7820_s0 + %s6755_s15]]   ;;  %s6759_s15 = smov 39  }
  0x41   :  { %7879 = sst [smem:[#allocation60_spill]] %s6964_s27 }
  0x42   :  { %7880 = sst [smem:[#allocation61_spill]] %s6969_s4 }
  0x43   :  { %s6984_s27 = sld [smem:[%s7820_s0 + %s6756_s22]]   ;;  %s6760_s22 = smov 40  }
  0x44   :  { %7881 = sst [smem:[#allocation62_spill]] %s6974_s6 }
  0x45   :  { %s6989_s4 = sld [smem:[%s7820_s0 + %s6757_s28]]   ;;  %s6761_s28 = smov 41  }
  0x46   :  { %7882 = sst [smem:[#allocation63_spill]] %s6979_s20 }
  0x47   :  { %s6994_s6 = sld [smem:[%s7820_s0 + %s6758_s7]]   ;;  %s6762_s7 = smov 42  }
  0x48   :  { %s6999_s20 = sld [smem:[%s7820_s0 + %s6759_s15]]   ;;  %s6763_s15 = smov 43  }
  0x49   :  { %s7004_s24 = sld [smem:[%s7820_s0 + %s6760_s22]]   ;;  %s6764_s22 = smov 44  }
  0x4a   :  { %s7009_s19 = sld [smem:[%s7820_s0 + %s6761_s28]]   ;;  %s6765_s28 = smov 45  }
  0x4d   :  { %7883 = sst [smem:[#allocation64_spill]] %s6994_s6 }
  0x4e   :  { %7884 = sst [smem:[#allocation65_spill]] %s6999_s20 }
  0x4f   :  { %7885 = sst [smem:[#allocation66_spill]] %s7004_s24 }
  0x50   :  { %7886 = sst [smem:[#allocation67_spill]] %s7009_s19 }
  0x51   :  { %s7014_s6 = sld [smem:[%s7820_s0 + %s6762_s7]]   ;;  %s6766_s7 = smov 46  }
  0x52   :  { %s7019_s20 = sld [smem:[%s7820_s0 + %s6763_s15]]   ;;  %s6767_s15 = smov 47  }
  0x53   :  { %s7024_s24 = sld [smem:[%s7820_s0 + %s6764_s22]]   ;;  %s6768_s22 = smov 48  }
  0x54   :  { %s7029_s19 = sld [smem:[%s7820_s0 + %s6765_s28]]   ;;  %s6769_s28 = smov 49  }
  0x55   :  { %s7049_s30 = sld [smem:[%s7820_s0 + %s6769_s28]]   ;;  %s6773_s28 = smov 53  }
  0x56   :  { %s7069_s14 = sld [smem:[%s7820_s0 + %s6773_s28]]   ;;  %s6777_s28 = smov 57  }
  0x57   :  { %7887 = sst [smem:[#allocation68_spill]] %s7014_s6 }
  0x58   :  { %7888 = sst [smem:[#allocation69_spill]] %s7019_s20 }
  0x59   :  { %7889 = sst [smem:[#allocation70_spill]] %s7024_s24 }
  0x5a   :  { %s7034_s6 = sld [smem:[%s7820_s0 + %s6766_s7]]   ;;  %s6770_s7 = smov 50  }
  0x5b   :  { %s7039_s20 = sld [smem:[%s7820_s0 + %s6767_s15]]   ;;  %s6771_s15 = smov 51  }
  0x5c   :  { %s7044_s24 = sld [smem:[%s7820_s0 + %s6768_s22]]   ;;  %s6772_s22 = smov 52  }
  0x5d   :  { %s7054_s9 = sld [smem:[%s7820_s0 + %s6770_s7]]   ;;  %s6774_s7 = smov 54  }
  0x5e   :  { %s7059_s12 = sld [smem:[%s7820_s0 + %s6771_s15]]   ;;  %s6775_s15 = smov 55  }
  0x5f   :  { %s7079_s8 = sld [smem:[%s7820_s0 + %s6775_s15]]  }
  0x60   :  { %s7089_s29 = sld [smem:[%s7820_s0 + %s6777_s28]]  }
  0x62   :  { %7890 = sst [smem:[#allocation71_spill]] %s7044_s24 }
  0x63   :  { %7891 = sst [smem:[#allocation72_spill]] %s7054_s9 }
  0x64   :  { %s7064_s24 = sld [smem:[%s7820_s0 + %s6772_s22]]   ;;  %s6776_s22 = smov 56  }
  0x65   :  { %s7074_s9 = sld [smem:[%s7820_s0 + %s6774_s7]]   ;;  %s6778_s7 = smov 58  }
  0x66   :  { %s7084_s3 = sld [smem:[%s7820_s0 + %s6776_s22]]  }
  0x67   :  { %s7094_s17 = sld [smem:[%s7820_s0 + %s6778_s7]]  }
  0x68   :  { %122 = vsyncpa [#allocation4], 0 }
  0x69   :  { %123 = vsyncpa [#allocation7], 0 }
  0x6a   :  { %124 = vsyncpa [#allocation10], 0 }
  0x6b   :  { %125 = vsyncpa [#allocation13], 0 }
  0x6c   :  { %126 = vsyncpa [#allocation16], 0 }
  0x6d   :  { %127 = vsyncpa [#allocation19], 0 }
  0x6e   :  { %128 = vsyncpa [#allocation22], 0 }
  0x6f   :  { %129 = vsyncpa [#allocation5], 0  ;;  %s6779_s15 = smov [#allocation6]   ;;  %s6780_s18 = smov [#allocation9]  }
  0x70   :  { %s218_s16 = sshll.u32 %s6779_s15, 4  ;;  %s252_s22 = sshll.u32 %s6780_s18, 4  ;;  %s219_s16 = int_to_ptr.vmem [resolvable:$true] %s218_s16  ;;  %s253_s22 = int_to_ptr.vmem [resolvable:$true] %s252_s22 }
  0x71   :  { %s6453_s23 = scalar_lea.vmem %s219_s16, 16  ;;  %s6457_s26 = scalar_lea.vmem %s219_s16, 32 }
  0x72   :  { %p6454_p0 = scmp.ne.s32.totalorder %s219_s16, %s6453_s23  ;;  %p6458_p1 = scmp.lt.s32.totalorder %s219_s16, %s219_s16 }
  0x73   :  { %p6459_p2 = scmp.lt.s32.totalorder %s6457_s26, %s6453_s23 }
  0x75   :  { %p6460_p3 = por %p6459_p2, %p6458_p1 }
  0x77   :  { %p6461_p4 = pnand %p6460_p3, %p6454_p0 }
  0x79   :  { %6464 = shalt.err (!%p6461_p4)
}
  0x7a   :  { %221 = dma.hbm_to_vmem [thread:$0]  %s6989_s4, 16, %s219_s16, [#allocation7]  }
  0x7b   :  { %s6473_s0 = scalar_lea.vmem %s253_s22, 16  ;;  %s6477_s28 = scalar_lea.vmem %s253_s22, 32 }
  0x7c   :  { %p6474_p5 = scmp.ne.s32.totalorder %s253_s22, %s6473_s0  ;;  %p6478_p6 = scmp.lt.s32.totalorder %s253_s22, %s253_s22 }
  0x7d   :  { %p6479_p7 = scmp.lt.s32.totalorder %s6477_s28, %s6473_s0 }
  0x7f   :  { %p6480_p8 = por %p6479_p7, %p6478_p6 }
  0x81   :  { %p6481_p9 = pnand %p6480_p8, %p6474_p5 }
  0x83   :  { %6484 = shalt.err (!%p6481_p9)
}
  0x84   :  { %255 = dma.hbm_to_vmem [thread:$0]  %s7034_s6, 16, %s253_s22, [#allocation10]  }
  0x85   :  { %s6781_s1 = smov [#allocation12]   ;;  %s6782_s7 = smov [#allocation15]  }
  0x86   :  { %s274_s2 = sshll.u32 %s6781_s1, 4  ;;  %s296_s10 = sshll.u32 %s6782_s7, 4  ;;  %s275_s2 = int_to_ptr.vmem [resolvable:$true] %s274_s2  ;;  %s297_s10 = int_to_ptr.vmem [resolvable:$true] %s296_s10 }
  0x87   :  { %s6493_s11 = scalar_lea.vmem %s275_s2, 16  ;;  %s6497_s15 = scalar_lea.vmem %s275_s2, 32 }
  0x88   :  { %p6494_p10 = scmp.ne.s32.totalorder %s275_s2, %s6493_s11  ;;  %p6498_p11 = scmp.lt.s32.totalorder %s275_s2, %s275_s2 }
  0x89   :  { %p6499_p12 = scmp.lt.s32.totalorder %s6497_s15, %s6493_s11 }
  0x8b   :  { %p6500_p13 = por %p6499_p12, %p6498_p11 }
  0x8d   :  { %p6501_p0 = pnand %p6500_p13, %p6494_p10 }
  0x8f   :  { %6504 = shalt.err (!%p6501_p0)
}
  0x90   :  { %277 = dma.hbm_to_vmem [thread:$0]  %s7049_s30, 16, %s275_s2, [#allocation13]  }
  0x91   :  { %s6513_s4 = scalar_lea.vmem %s297_s10, 16  ;;  %s6517_s16 = scalar_lea.vmem %s297_s10, 32 }
  0x92   :  { %p6514_p1 = scmp.ne.s32.totalorder %s297_s10, %s6513_s4  ;;  %p6518_p2 = scmp.lt.s32.totalorder %s297_s10, %s297_s10 }
  0x93   :  { %p6519_p3 = scmp.lt.s32.totalorder %s6517_s16, %s6513_s4 }
  0x95   :  { %p6520_p4 = por %p6519_p3, %p6518_p2 }
  0x97   :  { %p6521_p5 = pnand %p6520_p4, %p6514_p1 }
  0x99   :  { %6524 = shalt.err (!%p6521_p5)
}
  0x9a   :  { %299 = dma.hbm_to_vmem [thread:$0]  %s7064_s24, 16, %s297_s10, [#allocation16]  }
  0x9b   :  { %s6783_s6 = smov [#allocation18]   ;;  %s6784_s22 = smov [#allocation3]  }
  0x9c   :  { %s316_s18 = sshll.u32 %s6783_s6, 4  ;;  %s208_s23 = sshll.u32 %s6784_s22, 4  ;;  %s317_s18 = int_to_ptr.vmem [resolvable:$true] %s316_s18  ;;  %s209_s23 = int_to_ptr.vmem [resolvable:$true] %s208_s23 }
  0x9d   :  { %s6533_s26 = scalar_lea.vmem %s317_s18, 16  ;;  %s6537_s0 = scalar_lea.vmem %s317_s18, 32 }
  0x9e   :  { %p6534_p6 = scmp.ne.s32.totalorder %s317_s18, %s6533_s26  ;;  %p6538_p7 = scmp.lt.s32.totalorder %s317_s18, %s317_s18 }
  0x9f   :  { %p6539_p8 = scmp.lt.s32.totalorder %s6537_s0, %s6533_s26 }
  0xa1   :  { %p6540_p9 = por %p6539_p8, %p6538_p7 }
  0xa3   :  { %p6541_p10 = pnand %p6540_p9, %p6534_p6 }
  0xa5   :  { %6544 = shalt.err (!%p6541_p10)
}
  0xa6   :  { %319 = dma.hbm_to_vmem [thread:$0]  %s7074_s9, 16, %s317_s18, [#allocation19]  }
  0xa7   :  { %s6553_s30 = scalar_lea.vmem %s209_s23, 16  ;;  %s6557_s28 = scalar_lea.vmem %s209_s23, 32 }
  0xa8   :  { %p6554_p11 = scmp.ne.s32.totalorder %s209_s23, %s6553_s30  ;;  %p6558_p12 = scmp.lt.s32.totalorder %s209_s23, %s209_s23 }
  0xa9   :  { %p6559_p13 = scmp.lt.s32.totalorder %s6557_s28, %s6553_s30 }
  0xab   :  { %p6560_p0 = por %p6559_p13, %p6558_p12 }
  0xad   :  { %p6561_p1 = pnand %p6560_p0, %p6554_p11 }
  0xaf   :  { %6564 = shalt.err (!%p6561_p1)
}
  0xb0   :  { %211 = dma.hbm_to_vmem [thread:$0]  %s6984_s27, 16, %s209_s23, [#allocation4]  }
  0xb1   :  { %s6785_s24 = smov [#allocation8]   ;;  %s6786_s2 = smov [#allocation11]  }
  0xb2   :  { %s242_s1 = sshll.u32 %s6785_s24, 4  ;;  %s262_s7 = sshll.u32 %s6786_s2, 4  ;;  %s243_s1 = int_to_ptr.vmem [resolvable:$true] %s242_s1  ;;  %s263_s7 = int_to_ptr.vmem [resolvable:$true] %s262_s7 }
  0xb3   :  { %s6573_s10 = scalar_lea.vmem %s243_s1, 16  ;;  %s6577_s11 = scalar_lea.vmem %s243_s1, 32 }
  0xb4   :  { %p6574_p2 = scmp.ne.s32.totalorder %s243_s1, %s6573_s10  ;;  %p6578_p3 = scmp.lt.s32.totalorder %s243_s1, %s243_s1 }
  0xb5   :  { %p6579_p4 = scmp.lt.s32.totalorder %s6577_s11, %s6573_s10 }
  0xb7   :  { %p6580_p5 = por %p6579_p4, %p6578_p3 }
  0xb9   :  { %p6581_p6 = pnand %p6580_p5, %p6574_p2 }
  0xbb   :  { %6584 = shalt.err (!%p6581_p6)
}
  0xbc   :  { %245 = dma.hbm_to_vmem [thread:$0]  %s7029_s19, 16, %s243_s1, [#allocation7]  }
  0xbd   :  { %s6593_s9 = scalar_lea.vmem %s263_s7, 16  ;;  %s6597_s15 = scalar_lea.vmem %s263_s7, 32 }
  0xbe   :  { %p6594_p7 = scmp.ne.s32.totalorder %s263_s7, %s6593_s9  ;;  %p6598_p8 = scmp.lt.s32.totalorder %s263_s7, %s263_s7 }
  0xbf   :  { %p6599_p9 = scmp.lt.s32.totalorder %s6597_s15, %s6593_s9 }
  0xc1   :  { %p6600_p10 = por %p6599_p9, %p6598_p8 }
  0xc3   :  { %p6601_p11 = pnand %p6600_p10, %p6594_p7 }
  0xc5   :  { %6604 = shalt.err (!%p6601_p11)
}
  0xc6   :  { %265 = dma.hbm_to_vmem [thread:$0]  %s7039_s20, 16, %s263_s7, [#allocation10]  }
  0xc7   :  { %s6787_s27 = smov [#allocation14]   ;;  %s6788_s16 = smov [#allocation17]  }
  0xc8   :  { %s286_s4 = sshll.u32 %s6787_s27, 4  ;;  %s306_s6 = sshll.u32 %s6788_s16, 4  ;;  %s287_s4 = int_to_ptr.vmem [resolvable:$true] %s286_s4  ;;  %s307_s6 = int_to_ptr.vmem [resolvable:$true] %s306_s6 }
  0xc9   :  { %s6613_s18 = scalar_lea.vmem %s287_s4, 16  ;;  %s6617_s22 = scalar_lea.vmem %s287_s4, 32 }
  0xca   :  { %p6614_p12 = scmp.ne.s32.totalorder %s287_s4, %s6613_s18  ;;  %p6618_p13 = scmp.lt.s32.totalorder %s287_s4, %s287_s4 }
  0xcb   :  { %p6619_p0 = scmp.lt.s32.totalorder %s6617_s22, %s6613_s18 }
  0xcd   :  { %p6620_p1 = por %p6619_p0, %p6618_p13 }
  0xcf   :  { %p6621_p2 = pnand %p6620_p1, %p6614_p12 }
  0xd1   :  { %6624 = shalt.err (!%p6621_p2)
}
  0xd2   :  { %289 = dma.hbm_to_vmem [thread:$0]  %s7059_s12, 16, %s287_s4, [#allocation13]  }
  0xd3   :  { %s6633_s19 = scalar_lea.vmem %s307_s6, 16  ;;  %s6637_s23 = scalar_lea.vmem %s307_s6, 32 }
  0xd4   :  { %p6634_p3 = scmp.ne.s32.totalorder %s307_s6, %s6633_s19  ;;  %p6638_p4 = scmp.lt.s32.totalorder %s307_s6, %s307_s6 }
  0xd5   :  { %p6639_p5 = scmp.lt.s32.totalorder %s6637_s23, %s6633_s19 }
  0xd7   :  { %p6640_p6 = por %p6639_p5, %p6638_p4 }
  0xd9   :  { %p6641_p7 = pnand %p6640_p6, %p6634_p3 }
  0xdb   :  { %6644 = shalt.err (!%p6641_p7)
}
  0xdc   :  { %309 = dma.hbm_to_vmem [thread:$0]  %s7069_s14, 16, %s307_s6, [#allocation16]  }
  0xdd   :  { %s6789_s20 = smov [#allocation20]   ;;  %s6790_s0 = smov [#allocation21]  }
  0xde   :  { %s326_s26 = sshll.u32 %s6789_s20, 4  ;;  %s338_s30 = sshll.u32 %s6790_s0, 4  ;;  %s327_s26 = int_to_ptr.vmem [resolvable:$true] %s326_s26  ;;  %s339_s30 = int_to_ptr.vmem [resolvable:$true] %s338_s30 }
  0xdf   :  { %s6653_s28 = scalar_lea.vmem %s327_s26, 16  ;;  %s6657_s24 = scalar_lea.vmem %s327_s26, 32 }
  0xe0   :  { %p6654_p8 = scmp.ne.s32.totalorder %s327_s26, %s6653_s28  ;;  %p6658_p9 = scmp.lt.s32.totalorder %s327_s26, %s327_s26 }
  0xe1   :  { %p6659_p10 = scmp.lt.s32.totalorder %s6657_s24, %s6653_s28 }
  0xe3   :  { %p6660_p11 = por %p6659_p10, %p6658_p9 }
  0xe5   :  { %p6661_p12 = pnand %p6660_p11, %p6654_p8 }
  0xe7   :  { %6664 = shalt.err (!%p6661_p12)
}
  0xe8   :  { %329 = dma.hbm_to_vmem [thread:$0]  %s7079_s8, 16, %s327_s26, [#allocation19]  }
  0xe9   :  { %s6673_s12 = scalar_lea.vmem %s339_s30, 16  ;;  %s6677_s1 = scalar_lea.vmem %s339_s30, 32 }
  0xea   :  { %p6674_p13 = scmp.ne.s32.totalorder %s339_s30, %s6673_s12  ;;  %p6678_p0 = scmp.lt.s32.totalorder %s339_s30, %s339_s30 }
  0xeb   :  { %p6679_p1 = scmp.lt.s32.totalorder %s6677_s1, %s6673_s12 }
  0xed   :  { %p6680_p2 = por %p6679_p1, %p6678_p0 }
  0xef   :  { %p6681_p3 = pnand %p6680_p2, %p6674_p13 }
  0xf1   :  { %6684 = shalt.err (!%p6681_p3)
}
  0xf2   :  { %341 = dma.hbm_to_vmem [thread:$0]  %s7089_s29, 16, %s339_s30, [#allocation22]  }
  0xf3   :  { %6705 = dma.done.wait [#allocation4], 16  }
  0xf4   :  { %6706 = vsyncadd [#allocation4], 4294967280 }
  0xf5   :  { %6707 = dma.done.wait [#allocation7], 32  }
  0xf6   :  { %6708 = vsyncadd [#allocation7], 4294967264 }
  0xf7   :  { %6709 = dma.done.wait [#allocation10], 32  }
  0xf8   :  { %6710 = vsyncadd [#allocation10], 4294967264 }
  0xf9   :  { %6711 = dma.done.wait [#allocation13], 32  }
  0xfa   :  { %6712 = vsyncadd [#allocation13], 4294967264 }
  0xfb   :  { %6713 = dma.done.wait [#allocation16], 32  }
  0xfc   :  { %6714 = vsyncadd [#allocation16], 4294967264 }
  0xfd   :  { %6715 = dma.done.wait [#allocation19], 32  }
  0xfe   :  { %6716 = vsyncadd [#allocation19], 4294967264 }
  0xff   :  { %6717 = dma.done.wait [#allocation22], 16  }
 0x100   :  { %6718 = vsyncadd [#allocation22], 4294967280  ;;  %v6791_v0 = vmov 0.0   ;;  %vm6792_vm0 = vmmov 0   ;;  %v6287_v1 = vld [vmem:[%s6824_s21 + $0x8] sm:$0xff]   ;;  %v6289_v3 = vld [vmem:[%s6824_s21] sm:$0xff]  }
 0x101   :  { %5700 = vmatprep.subr.bf16.mxu1 %v6791_v0  ;;  %5692 = vmatprep.subr.bf16.mxu0 %v6791_v0  ;;  %v6288_v2 = vld [vmem:[%s6814_s13 + $0x8] sm:$0xff]   ;;  %v6290_v4 = vld [vmem:[%s6814_s13] sm:$0xff]   ;;  %s7892_s29 = sld [smem:[#allocation33_spill]]  ;;  %vm407_vm1 = vcmask 261120   ;;  %vm585_vm2 = vcmask 130048   ;;  %vm632_vm3 = vcmask 64512  }
 0x102   :  { %5704 = vmatprep.mubr.msk.bf16.mxu1 %vm6792_vm0, %v6791_v0  ;;  %5696 = vmatprep.mubr.msk.bf16.mxu0 %vm6792_vm0, %v6791_v0  ;;  %v7121_v5 = vld [vmem:[%s6804_s5] sm:$0xff]  ;;  %v7124_v6 = vld [vmem:[%s6804_s5 + $0x8] sm:$0xff]  ;;  %s7893_s5 = sld [smem:[#allocation34_spill]]  ;;  %vm648_vm4 = vcmask 1043456   ;;  %v6294_v59 = vld [vmem:[%s6814_s13 + $0x18] sm:$0xff]  }
 0x103   :  { %5701 = vmatpush3.bf16.msra.mxu1 %v6287_v1  ;;  %5693 = vmatpush3.bf16.msra.mxu0 %v6288_v2  ;;  %v7128_v7 = vpack.c.bf16 %v7124_v6, %v7121_v5  ;;  %v5255_v8 = vld [vmem:[%s6829_s25] ss:$0 sm:$0xff]  ;;  %s7894_s8 = sld [smem:[#allocation35_spill]]  ;;  %v6296_v60 = vld [vmem:[%s6814_s13 + $0x10] sm:$0xff]  }
 0x104   :  { %5702 = vmatprep.subr.bf16.mxu1 %v6791_v0  ;;  %5694 = vmatprep.subr.bf16.mxu0 %v6791_v0  ;;  %s7895_s13 = sld [smem:[#allocation36_spill]] }
 0x105   :  { %s7898_s14 = sld [smem:[#allocation32_spill]] }
 0x106   :  { %s7899_s2 = sld [smem:[#allocation40_spill]] }
 0x107   :  { %5703 = vmatpush3.bf16.msra.mxu1 %v6289_v3  ;;  %5695 = vmatpush3.bf16.msra.mxu0 %v6290_v4  ;;  %v5251_v12 = vld [vmem:[%s7892_s29] ss:$0 sm:$0xff]  ;;  %s7900_s7 = sld [smem:[#allocation38_spill]] }
 0x108   :  { %5716 = vmatprep.subr.bf16.mxu1 %v6791_v0  ;;  %5708 = vmatprep.subr.bf16.mxu0 %v6791_v0  ;;  %v6291_v28 = vld [vmem:[%s7893_s5 + $0x8] sm:$0xff]   ;;  %v6292_v29 = vld [vmem:[%s7893_s5] sm:$0xff]   ;;  %s7901_s10 = sld [smem:[#allocation39_spill]] }
 0x109   :  { %v5259_v50 = vld [vmem:[%s7894_s8] ss:$0 sm:$0xff]  ;;  %s7902_s11 = sld [smem:[#allocation43_spill]] }
 0x10a   :  { %5705 = vmatmul.mubr.msk.bf16.vlgmr.msra.gmra.mxu1 %vm407_vm1, %v7128_v7  ;;  %5697 = vmatmul.mubr.msk.bf16.vlgmr.msra.gmra.mxu0 %vm407_vm1, %v7128_v7  ;;  %s7903_s9 = sld [smem:[#allocation41_spill]] }
 0x10b   :  { %5718 = vmatprep.mubr.msk.bf16.mxu1 %vm6792_vm0, %v6791_v0  ;;  %5712 = vmatprep.mubr.msk.bf16.mxu0 %vm6792_vm0, %v6791_v0  ;;  %s7904_s15 = sld [smem:[#allocation44_spill]] }
 0x10c   :  { %5709 = vmatpush3.bf16.msra.mxu0 %v6291_v28  ;;  %s7905_s27 = sld [smem:[#allocation45_spill]] }
 0x10d   :  { %5710 = vmatprep.subr.bf16.mxu0 %v6791_v0  ;;  %s7906_s4 = sld [smem:[#allocation46_spill]] }
 0x10e   :  { %s7907_s16 = sld [smem:[#allocation47_spill]] }
 0x10f   :  { %s7908_s6 = sld [smem:[#allocation50_spill]] }
 0x110   :  { %5711 = vmatpush3.bf16.msra.mxu0 %v6292_v29  ;;  %s7909_s18 = sld [smem:[#allocation48_spill]] }
 0x111   :  { %5722 = vmatprep.subr.bf16.mxu0 %v6791_v0  ;;  %s7910_s22 = sld [smem:[#allocation49_spill]] }
 0x112   :  { %s7911_s19 = sld [smem:[#allocation52_spill]] }
 0x113   :  { %5713 = vmatmul.mubr.msk.bf16.vlgmr.msra.gmra.mxu0 %vm407_vm1, %v7128_v7  ;;  %s7912_s23 = sld [smem:[#allocation51_spill]] }
 0x114   :  { %5724 = vmatprep.mubr.msk.bf16.mxu0 %vm6792_vm0, %v6791_v0  ;;  %s7913_s20 = sld [smem:[#allocation53_spill]] }
 0x115   :  { %s7914_s26 = sld [smem:[#allocation56_spill]] }
 0x116   :  { %s7915_s0 = sld [smem:[#allocation58_spill]] }
 0x117   :  { %s7916_s30 = sld [smem:[#allocation54_spill]] }
 0x118   :  { %s7917_s28 = sld [smem:[#allocation55_spill]] }
 0x119   :  { %s7918_s24 = sld [smem:[#allocation60_spill]] }
 0x11a   :  { %s7919_s12 = sld [smem:[#allocation59_spill]] }
 0x11b   :  { %s7920_s1 = sld [smem:[#allocation57_spill]] }
 0x1ca   :  { %v509_v9 = vpop.f32.mrf.mxu1  ;;  %v445_v11 = vpop.f32.mrf.mxu0 }
 0x1cb   :  { %v510_v10 = vadd.f32 %v5255_v8, %v509_v9  ;;  %v446_v18 = vadd.f32 %v5251_v12, %v445_v11 }
 0x1cc   :  { %v5706_v13 = vpop.f32.mrf.mxu1  ;;  %v5698_v15 = vpop.f32.mrf.mxu0 }
 0x1cd   :  { %v583_v14 = vpack.c.bf16 %v510_v10, %v510_v10  ;;  %v582_v23 = vpack.c.bf16 %v446_v18, %v446_v18  ;;  %v6293_v10 = vld [vmem:[%s6824_s21 + $0x18] sm:$0xff]   ;;  %v5272_v15 = vld [vmem:[%s7892_s29 + $0x1] ss:$0 sm:$0xff]  ;;  %s7921_s29 = sld [smem:[#allocation61_spill]] }
 0x1ce   :  { %v512_v16 = vpop.f32.mrf.mxu1  ;;  %v448_v20 = vpop.f32.mrf.mxu0 }
 0x1cf   :  { %v590_v17 = vsel %vm585_vm2, %v583_v14, 0  ;;  %v513_v19 = vadd.f32 %v5255_v8, %v512_v16  ;;  %v449_v26 = vadd.f32 %v5251_v12, %v448_v20  ;;  %v6295_v12 = vld [vmem:[%s6824_s21 + $0x10] sm:$0xff]   ;;  %s7896_s21 = sld [smem:[#allocation37_spill]] }
 0x1d0   :  { %v5707_v21 = vpop.f32.mrf.mxu1  ;;  %5717 = vmatpush3.bf16.xpose.msra.mxu1 %v590_v17  ;;  %v5699_v22 = vpop.f32.mrf.mxu0 }
 0x1d1   :  { %5728 = vmatprep.subr.bf16.mxu1 %v6791_v0  ;;  %v694_v24 = vpack.c.bf16 %v513_v19, %v513_v19  ;;  %v693_v27 = vpack.c.bf16 %v449_v26, %v449_v26 }
 0x1d3   :  { %v700_v25 = vsel %vm585_vm2, %v694_v24, 0  ;;  %v573_v51 = vpop.f32.mrf.mxu0 }
 0x1d4   :  { %v574_v52 = vadd.f32 %v5259_v50, %v573_v51 }
 0x1d5   :  { %v5714_v53 = vpop.f32.mrf.mxu0 }
 0x1d6   :  { %v584_v54 = vpack.c.bf16 %v574_v52, %v574_v52 }
 0x1d7   :  { %5719 = vmatmul.mubr.msk.bf16.vlgmr.msra.gmra.mxu1 %vm585_vm2, %v582_v23  ;;  %v576_v55 = vpop.f32.mrf.mxu0 }
 0x1d8   :  { %5729 = vmatpush3.bf16.xpose.msra.mxu1 %v700_v25  ;;  %5730 = vmatprep.mubr.msk.bf16.mxu1 %vm6792_vm0, %v6791_v0  ;;  %v650_v56 = vsel %vm648_vm4, %v584_v54, 0  ;;  %v577_v57 = vadd.f32 %v5259_v50, %v576_v55 }
 0x1d9   :  { %5740 = vmatprep.subr.bf16.mxu1 %v6791_v0  ;;  %v5715_v58 = vpop.f32.mrf.mxu0  ;;  %5723 = vmatpush3.bf16.msra.mxu0 %v650_v56 }
 0x1da   :  { %5734 = vmatprep.subr.bf16.mxu0 %v6791_v0  ;;  %v695_v1 = vpack.c.bf16 %v577_v57, %v577_v57  ;;  %v6300_v57 = vld [vmem:[%s7895_s13 + $0x8] sm:$0xff]  }
 0x1dc   :  { %v758_v4 = vsel %vm648_vm4, %v695_v1, 0 }
 0x1df   :  { %5731 = vmatmul.mubr.msk.bf16.vlgmr.msra.gmra.mxu1 %vm585_vm2, %v693_v27  ;;  %v5281_v27 = vld [vmem:[%s6829_s25 + $0x1] ss:$0 sm:$0xff]  ;;  %s7897_s25 = sld [smem:[#allocation42_spill]] }
 0x1e0   :  { %5744 = vmatprep.mubr.msk.bf16.mxu1 %vm6792_vm0, %v6791_v0  ;;  %5741 = vmatpush3.bf16.msra.mxu1 %v6294_v59 }
 0x1e1   :  { %5742 = vmatprep.subr.bf16.mxu1 %v6791_v0 }
 0x1e4   :  { %5743 = vmatpush3.bf16.msra.mxu1 %v6296_v60 }
 0x1e5   :  { %5756 = vmatprep.subr.bf16.mxu1 %v6791_v0 }
 0x1e7   :  { %5745 = vmatmul.mubr.msk.bf16.vlgmr.msra.gmra.mxu1 %vm407_vm1, %v7128_v7 }
 0x1e8   :  { %5760 = vmatprep.mubr.msk.bf16.mxu1 %vm6792_vm0, %v6791_v0 }
 0x297   :  { %v626_v30 = vpop.f32.mrf.mxu1 }
 0x298   :  { %v633_v31 = vsel %vm632_vm3, %v626_v30, -inf }
 0x299   :  { %634 = vmax.xlane.f32.xlu0 %v633_v31  ;;  %v5720_v32 = vpop.f32.mrf.mxu1 }
 0x29b   :  { %v629_v33 = vpop.f32.mrf.mxu1 }
 0x29d   :  { %v5721_v34 = vpop.f32.mrf.mxu1 }
 0x29f   :  { %v736_v35 = vpop.f32.mrf.mxu1 }
 0x2a0   :  { %v742_v36 = vsel %vm632_vm3, %v736_v35, -inf }
 0x2a1   :  { %743 = vmax.xlane.f32.xlu0 %v742_v36  ;;  %v5732_v37 = vpop.f32.mrf.mxu1 }
 0x2a3   :  { %v739_v38 = vpop.f32.mrf.mxu1 }
 0x2a4   :  { %v6297_v38 = vld [vmem:[%s7893_s5 + $0x18] sm:$0xff]  }
 0x2a5   :  { %v5733_v39 = vpop.f32.mrf.mxu1  ;;  %5757 = vmatpush3.bf16.msra.mxu1 %v6297_v38 }
 0x2a6   :  { %v6298_v39 = vld [vmem:[%s7893_s5 + $0x10] sm:$0xff]   ;;  %5758 = vmatprep.subr.bf16.mxu1 %v6791_v0  ;;  %s7922_s5 = sld [smem:[#allocation62_spill]] }
 0x2a7   :  { %v860_v13 = vpop.f32.mrf.mxu1 }
 0x2a8   :  { %v861_v34 = vadd.f32 %v5272_v15, %v860_v13 }
 0x2a9   :  { %v5746_v14 = vpop.f32.mrf.mxu1  ;;  %5759 = vmatpush3.bf16.msra.mxu1 %v6298_v39 }
 0x2aa   :  { %v1002_v37 = vpack.c.bf16 %v861_v34, %v861_v34  ;;  %5770 = vmatprep.subr.bf16.mxu1 %v6791_v0 }
 0x2ab   :  { %v863_v16 = vpop.f32.mrf.mxu1 }
 0x2ac   :  { %v7192_v17 = vadd.f32 %v5272_v15, %v863_v16  ;;  %5761 = vmatmul.mubr.msk.bf16.vlgmr.msra.gmra.mxu1 %vm407_vm1, %v7128_v7 }
 0x2ad   :  { %v5747_v18 = vpop.f32.mrf.mxu1  ;;  %5772 = vmatprep.mubr.msk.bf16.mxu1 %vm6792_vm0, %v6791_v0 }
 0x2ae   :  { %v1208_v15 = vpack.c.bf16 %v7192_v17, %v7192_v17 }
 0x322   :  { %v635_v40 = vpop.xlane.xlu0 %634 }
 0x323   :  { %v636_v41 = vsub.f32 %v626_v30, %v635_v40 }
 0x325   :  { %v637_v42 = vmul.f32 1.442695, %v636_v41 }
 0x327   :  { %6353 = vpow2.f32 %v637_v42 }
 0x32a   :  { %v744_v43 = vpop.xlane.xlu0 %743 }
 0x32b   :  { %v745_v44 = vsub.f32 %v736_v35, %v744_v43 }
 0x32d   :  { %v746_v45 = vmul.f32 1.442695, %v745_v44 }
 0x32f   :  { %6355 = vpow2.f32 %v746_v45  ;;  %v5290_v45 = vld [vmem:[%s7894_s8 + $0x1] ss:$0 sm:$0xff]  ;;  %s7923_s8 = sld [smem:[#allocation63_spill]] }
 0x334   :  { %v6354_v46 = vpop.eup %6353 }
 0x335   :  { %v639_v47 = vsel %vm632_vm3, %v6354_v46, 0.0 }
 0x336   :  { %640 = vadd.xlane.f32.xlu1 %v639_v47 }
 0x33c   :  { %v6356_v48 = vpop.eup %6355 }
 0x33d   :  { %v748_v49 = vsel %vm632_vm3, %v6356_v48, 0.0 }
 0x33e   :  { %749 = vadd.xlane.f32.xlu1 %v748_v49 }
 0x3bf   :  { %v641_v61 = vpop.xlane.xlu1 %640 }
 0x3c0   :  { %6357 = vrcp.f32 %v641_v61  ;;  %v7222_v61 = vld [vmem:[%s7895_s13] sm:$0xff]   ;;  %s7924_s13 = sld [smem:[#allocation66_spill]] }
 0x3c7   :  { %v750_v62 = vpop.xlane.xlu1 %749 }
 0x3c8   :  { %6359 = vrcp.f32 %v750_v62 }
 0x3cd   :  { %v6358_v63 = vpop.eup %6357 }
 0x3ce   :  { %v643_v2 = vmul.f32 %v6358_v63, %v6354_v46  ;;  %v992_v46 = vpop.f32.mrf.mxu1 }
 0x3cf   :  { %v993_v47 = vadd.f32 %v5290_v45, %v992_v46 }
 0x3d0   :  { %v644_v3 = vpack.c.bf16 %v643_v2, %v643_v2 }
 0x3d1   :  { %v1004_v49 = vpack.c.bf16 %v993_v47, %v993_v47 }
 0x3d2   :  { %5725 = vmatmul.mubr.msk.bf16.vlgmr.msra.gmra.mxu0 %vm632_vm3, %v644_v3 }
 0x3d3   :  { %5735 = vmatpush3.bf16.msra.mxu0 %v758_v4  ;;  %5736 = vmatprep.mubr.msk.bf16.mxu0 %vm6792_vm0, %v6791_v0  ;;  %v1067_v50 = vsel %vm648_vm4, %v1004_v49, 0 }
 0x3d4   :  { %5748 = vmatprep.subr.bf16.mxu0 %v6791_v0  ;;  %5771 = vmatpush3.bf16.msra.mxu1 %v1067_v50 }
 0x3d5   :  { %v6360_v8 = vpop.eup %6359  ;;  %5782 = vmatprep.subr.bf16.mxu1 %v6791_v0 }
 0x3d6   :  { %v752_v9 = vmul.f32 %v6360_v8, %v6356_v48  ;;  %v5762_v48 = vpop.f32.mrf.mxu1 }
 0x3d8   :  { %v753_v11 = vpack.c.bf16 %v752_v9, %v752_v9  ;;  %v995_v55 = vpop.f32.mrf.mxu1 }
 0x3d9   :  { %v996_v63 = vadd.f32 %v5290_v45, %v995_v55 }
 0x3da   :  { %5737 = vmatmul.mubr.msk.bf16.vlgmr.msra.gmra.mxu0 %vm632_vm3, %v753_v11  ;;  %v5763_v56 = vpop.f32.mrf.mxu1 }
 0x3db   :  { %5749 = vmatpush3.bf16.msra.mxu0 %v6293_v10  ;;  %5752 = vmatprep.mubr.msk.bf16.mxu0 %vm6792_vm0, %v6791_v0  ;;  %v1210_v1 = vpack.c.bf16 %v996_v63, %v996_v63 }
 0x3dc   :  { %5750 = vmatprep.subr.bf16.mxu0 %v6791_v0 }
 0x3dd   :  { %v1273_v3 = vsel %vm648_vm4, %v1210_v1, 0 }
 0x3df   :  { %5751 = vmatpush3.bf16.msra.mxu0 %v6295_v12 }
 0x3e0   :  { %5764 = vmatprep.subr.bf16.mxu0 %v6791_v0 }
 0x3e2   :  { %5753 = vmatmul.mubr.msk.bf16.vlgmr.msra.gmra.mxu0 %vm407_vm1, %v7128_v7 }
 0x3e3   :  { %5766 = vmatprep.mubr.msk.bf16.mxu0 %vm6792_vm0, %v6791_v0 }
 0x492   :  { %v7194_v19 = vpop.f32.mrf.mxu0 }
 0x493   :  { %v692_v2 = vpack.c.bf16 %v7194_v19, %v7194_v19 }
 0x494   :  { %v5726_v20 = vpop.f32.mrf.mxu0 }
 0x496   :  { %v689_v21 = vpop.f32.mrf.mxu0 }
 0x497   :  { %v5306_v21 = vld [vmem:[%s7896_s21] ss:$0 sm:$0xff]  ;;  %s7925_s21 = sld [smem:[#allocation64_spill]] }
 0x498   :  { %v5727_v22 = vpop.f32.mrf.mxu0 }
 0x49a   :  { %v7196_v23 = vpop.f32.mrf.mxu0 }
 0x49b   :  { %v800_v48 = vpack.c.bf16 %v7196_v23, %v7196_v23 }
 0x49c   :  { %v5738_v24 = vpop.f32.mrf.mxu0 }
 0x49e   :  { %v797_v25 = vpop.f32.mrf.mxu0 }
 0x4a0   :  { %v5739_v26 = vpop.f32.mrf.mxu0 }
 0x4a2   :  { %v926_v28 = vpop.f32.mrf.mxu0 }
 0x4a3   :  { %v927_v29 = vadd.f32 %v5281_v27, %v926_v28 }
 0x4a4   :  { %v5754_v30 = vpop.f32.mrf.mxu0 }
 0x4a5   :  { %v1003_v31 = vpack.c.bf16 %v927_v29, %v927_v29 }
 0x4a6   :  { %v929_v32 = vpop.f32.mrf.mxu0 }
 0x4a7   :  { %v1009_v33 = vsel %vm585_vm2, %v1003_v31, 0  ;;  %v7200_v35 = vadd.f32 %v5281_v27, %v929_v32 }
 0x4a8   :  { %v5755_v36 = vpop.f32.mrf.mxu0  ;;  %5765 = vmatpush3.bf16.xpose.msra.mxu0 %v1009_v33 }
 0x4a9   :  { %5776 = vmatprep.subr.bf16.mxu0 %v6791_v0  ;;  %v1209_v4 = vpack.c.bf16 %v7200_v35, %v7200_v35 }
 0x4ab   :  { %v1215_v11 = vsel %vm585_vm2, %v1209_v4, 0 }
 0x4af   :  { %5767 = vmatmul.mubr.msk.bf16.vlgmr.msra.gmra.mxu0 %vm585_vm2, %v1002_v37 }
 0x4b0   :  { %5778 = vmatprep.mubr.msk.bf16.mxu0 %vm6792_vm0, %v6791_v0  ;;  %5777 = vmatpush3.bf16.msra.mxu0 %v6300_v57 }
 0x4b1   :  { %5788 = vmatprep.subr.bf16.mxu0 %v6791_v0 }
 0x56f   :  { %v1045_v40 = vpop.f32.mrf.mxu0 }
 0x570   :  { %v1051_v41 = vsel %vm632_vm3, %v1045_v40, -inf }
 0x571   :  { %1052 = vmax.xlane.f32.xlu0 %v1051_v41  ;;  %v5768_v42 = vpop.f32.mrf.mxu0 }
 0x573   :  { %v1048_v43 = vpop.f32.mrf.mxu0 }
 0x575   :  { %v5769_v44 = vpop.f32.mrf.mxu0 }
 0x5fa   :  { %v1053_v7 = vpop.xlane.xlu0 %1052 }
 0x5fb   :  { %v1054_v51 = vsub.f32 %v1045_v40, %v1053_v7 }
 0x5fd   :  { %v1055_v52 = vmul.f32 1.442695, %v1054_v51 }
 0x5ff   :  { %6361 = vpow2.f32 %v1055_v52 }
 0x60c   :  { %v6362_v53 = vpop.eup %6361 }
 0x60d   :  { %v1057_v54 = vsel %vm632_vm3, %v6362_v53, 0.0 }
 0x60e   :  { %1058 = vadd.xlane.f32.xlu1 %v1057_v54 }
 0x697   :  { %v1059_v58 = vpop.xlane.xlu1 %1058 }
 0x698   :  { %6363 = vrcp.f32 %v1059_v58 }
 0x6a5   :  { %v6364_v59 = vpop.eup %6363 }
 0x6a6   :  { %v1061_v60 = vmul.f32 %v6364_v59, %v6362_v53 }
 0x6a8   :  { %v1062_v62 = vpack.c.bf16 %v1061_v60, %v1061_v60 }
 0x6aa   :  { %5773 = vmatmul.mubr.msk.bf16.vlgmr.msra.gmra.mxu1 %vm632_vm3, %v1062_v62 }
 0x6ab   :  { %5783 = vmatpush3.bf16.msra.mxu1 %v7222_v61  ;;  %5784 = vmatprep.mubr.msk.bf16.mxu1 %vm6792_vm0, %v6791_v0 }
 0x6ac   :  { %5794 = vmatprep.subr.bf16.mxu1 %v6791_v0 }
 0x6b2   :  { %5785 = vmatmul.mubr.msk.bf16.vlgmr.msra.gmra.mxu1 %vm585_vm2, %v692_v2 }
 0x6b3   :  { %5795 = vmatpush3.bf16.msra.mxu1 %v1273_v3  ;;  %5796 = vmatprep.mubr.msk.bf16.mxu1 %vm6792_vm0, %v6791_v0 }
 0x6b4   :  { %5806 = vmatprep.subr.bf16.mxu1 %v6791_v0 }
 0x76a   :  { %v1103_v8 = vpop.f32.mrf.mxu1 }
 0x76b   :  { %v1109_v9 = vpack.c.bf16 %v1103_v8, %v1103_v8 }
 0x76c   :  { %v5774_v10 = vpop.f32.mrf.mxu1 }
 0x76d   :  { %5779 = vmatmul.mubr.msk.bf16.vlgmr.msra.gmra.mxu0 %vm585_vm2, %v1109_v9  ;;  %v6301_v10 = vld [vmem:[%s7897_s25 + $0x8] sm:$0xff]  }
 0x76e   :  { %5789 = vmatpush3.bf16.xpose.msra.mxu0 %v1215_v11  ;;  %v1106_v12 = vpop.f32.mrf.mxu1  ;;  %5790 = vmatprep.mubr.msk.bf16.mxu0 %vm6792_vm0, %v6791_v0  ;;  %v6302_v11 = vld [vmem:[%s7897_s25] sm:$0xff]  }
 0x76f   :  { %5800 = vmatprep.subr.bf16.mxu0 %v6791_v0  ;;  %v381_v12 = vld [vmem:[%s7898_s14] sm:$0xff] }
 0x770   :  { %v5775_v13 = vpop.f32.mrf.mxu1 }
 0x772   :  { %v1202_v14 = vpop.f32.mrf.mxu1 }
 0x774   :  { %v5786_v16 = vpop.f32.mrf.mxu1 }
 0x775   :  { %5791 = vmatmul.mubr.msk.bf16.vlgmr.msra.gmra.mxu0 %vm585_vm2, %v1208_v15  ;;  %v6304_v15 = vld [vmem:[%s7899_s2] sm:$0xff]  }
 0x776   :  { %v1205_v18 = vpop.f32.mrf.mxu1  ;;  %5801 = vmatpush3.bf16.msra.mxu0 %v6300_v57  ;;  %5802 = vmatprep.mubr.msk.bf16.mxu0 %vm6792_vm0, %v6791_v0 }
 0x777   :  { %5812 = vmatprep.subr.bf16.mxu0 %v6791_v0 }
 0x778   :  { %v5787_v19 = vpop.f32.mrf.mxu1 }
 0x82d   :  { %v1153_v20 = vpop.f32.mrf.mxu0 }
 0x82e   :  { %v1203_v22 = vadd.f32 %v1202_v14, %v1153_v20  ;;  %v6303_v14 = vld [vmem:[%s7899_s2 + $0x8] sm:$0xff]  }
 0x82f   :  { %v5780_v24 = vpop.f32.mrf.mxu0 }
 0x830   :  { %v1409_v25 = vadd.f32 %v5306_v21, %v1203_v22 }
 0x831   :  { %v1156_v26 = vpop.f32.mrf.mxu0 }
 0x832   :  { %1410 = vst.msk [vmem:[#allocation2] sm:$0xff] %vm407_vm1, %v1409_v25  ;;  %v5307_v26 = vld [vmem:[%s7900_s7] ss:$0 sm:$0xff]  ;;  %s7929_s7 = sld [smem:[#allocation69_spill]] }
 0x833   :  { %v5781_v17 = vpop.f32.mrf.mxu0 }
 0x835   :  { %v1251_v27 = vpop.f32.mrf.mxu0 }
 0x836   :  { %v1257_v28 = vsel %vm632_vm3, %v1251_v27, -inf }
 0x837   :  { %1258 = vmax.xlane.f32.xlu0 %v1257_v28  ;;  %v5792_v29 = vpop.f32.mrf.mxu0 }
 0x838   :  { %v5308_v29 = vld [vmem:[%s7901_s10] ss:$0 sm:$0xff]  ;;  %s7930_s10 = sld [smem:[#allocation70_spill]] }
 0x839   :  { %v1254_v30 = vpop.f32.mrf.mxu0  ;;  %v1413_v31 = vld [vmem:[#allocation2] sm:$0xff] }
 0x83a   :  { %v1415_v32 = vadd.f32 %v1413_v31, %v7121_v5 }
 0x83b   :  { %v5793_v33 = vpop.f32.mrf.mxu0 }
 0x83c   :  { %v1419_v34 = vsel %vm407_vm1, %v1415_v32, 0.0 }
 0x83d   :  { %1420 = vadd.xlane.f32.xlu0 %v1419_v34  ;;  %v5313_v34 = vld [vmem:[%s7902_s11] ss:$0 sm:$0xff] }
 0x8c0   :  { %v1259_v35 = vpop.xlane.xlu0 %1258 }
 0x8c1   :  { %v1260_v36 = vsub.f32 %v1251_v27, %v1259_v35 }
 0x8c3   :  { %v1261_v37 = vmul.f32 1.442695, %v1260_v36 }
 0x8c5   :  { %6365 = vpow2.f32 %v1261_v37 }
 0x8c6   :  { %v1421_v38 = vpop.xlane.xlu0 %1420 }
 0x8c7   :  { %v1426_v39 = vmul.f32 0.03125, %v1421_v38 }
 0x8c9   :  { %v7254_v40 = vsub.f32 %v1415_v32, %v1426_v39 }
 0x8cb   :  { %v1430_v41 = vmul.f32 %v7254_v40, %v7254_v40 }
 0x8cd   :  { %v1432_v42 = vsel %vm407_vm1, %v1430_v41, 0.0 }
 0x8ce   :  { %1433 = vadd.xlane.f32.xlu0 %v1432_v42 }
 0x8d2   :  { %v6366_v43 = vpop.eup %6365 }
 0x8d3   :  { %v1263_v5 = vsel %vm632_vm3, %v6366_v43, 0.0 }
 0x8d4   :  { %1264 = vadd.xlane.f32.xlu1 %v1263_v5 }
 0x957   :  { %v1434_v16 = vpop.xlane.xlu0 %1433 }
 0x958   :  { %v1438_v18 = vmul.f32 0.03125, %v1434_v16 }
 0x95a   :  { %v1440_v19 = vadd.f32 1e-05, %v1438_v18 }
 0x95d   :  { %v1265_v44 = vpop.xlane.xlu1 %1264 }
 0x95e   :  { %6367 = vrcp.f32 %v1265_v44 }
 0x95f   :  { %6369 = vrsqrt.f32 %v1440_v19 }
 0x96b   :  { %v6368_v45 = vpop.eup %6367 }
 0x96c   :  { %v1267_v46 = vmul.f32 %v6368_v45, %v6366_v43  ;;  %v6370_v24 = vpop.eup %6369  ;;  %v5309_v43 = vld [vmem:[%s7903_s9] ss:$0 sm:$0xff] }
 0x96d   :  { %v1444_v25 = vmul.f32 %v6370_v24, %v7254_v40 }
 0x96e   :  { %v1268_v47 = vpack.c.bf16 %v1267_v46, %v1267_v46 }
 0x96f   :  { %v1452_v28 = vmul.f32 %v5307_v26, %v1444_v25 }
 0x970   :  { %5797 = vmatmul.mubr.msk.bf16.vlgmr.msra.gmra.mxu1 %vm632_vm3, %v1268_v47 }
 0x971   :  { %5807 = vmatpush3.bf16.msra.mxu1 %v7222_v61  ;;  %5808 = vmatprep.mubr.msk.bf16.mxu1 %vm6792_vm0, %v6791_v0  ;;  %v7296_v31 = vadd.f32 %v5308_v29, %v1452_v28 }
 0x972   :  { %5820 = vmatprep.subr.bf16.mxu1 %v6791_v0 }
 0x978   :  { %5809 = vmatmul.mubr.msk.bf16.vlgmr.msra.gmra.mxu1 %vm585_vm2, %v800_v48 }
 0x979   :  { %5824 = vmatprep.mubr.msk.bf16.mxu1 %vm6792_vm0, %v6791_v0  ;;  %5821 = vmatpush3.bf16.msra.mxu1 %v6301_v10 }
 0x97a   :  { %5822 = vmatprep.subr.bf16.mxu1 %v6791_v0 }
 0x97d   :  { %5823 = vmatpush3.bf16.msra.mxu1 %v6302_v11 }
 0x97e   :  { %5836 = vmatprep.subr.bf16.mxu1 %v6791_v0 }
 0xa30   :  { %v1309_v49 = vpop.f32.mrf.mxu1 }
 0xa31   :  { %v1315_v50 = vpack.c.bf16 %v1309_v49, %v1309_v49 }
 0xa32   :  { %v5798_v7 = vpop.f32.mrf.mxu1 }
 0xa33   :  { %5803 = vmatmul.mubr.msk.bf16.vlgmr.msra.gmra.mxu0 %vm585_vm2, %v1315_v50 }
 0xa34   :  { %v1312_v51 = vpop.f32.mrf.mxu1  ;;  %5816 = vmatprep.mubr.msk.bf16.mxu0 %vm6792_vm0, %v6791_v0  ;;  %5813 = vmatpush3.bf16.msra.mxu0 %v6303_v14 }
 0xa35   :  { %5814 = vmatprep.subr.bf16.mxu0 %v6791_v0  ;;  %v6305_v51 = vld [vmem:[%s7899_s2 + $0x18] sm:$0xff]  }
 0xa36   :  { %v5799_v52 = vpop.f32.mrf.mxu1 }
 0xa38   :  { %v1396_v53 = vpop.f32.mrf.mxu1  ;;  %5815 = vmatpush3.bf16.msra.mxu0 %v6304_v15 }
 0xa39   :  { %5828 = vmatprep.subr.bf16.mxu0 %v6791_v0 }
 0xa3a   :  { %v5810_v54 = vpop.f32.mrf.mxu1 }
 0xa3b   :  { %v6307_v54 = vld [vmem:[%s7904_s15 + $0x8] sm:$0xff]  }
 0xa3c   :  { %v1399_v55 = vpop.f32.mrf.mxu1 }
 0xa3d   :  { %v6308_v55 = vld [vmem:[%s7904_s15] sm:$0xff]  }
 0xa3e   :  { %v5811_v56 = vpop.f32.mrf.mxu1 }
 0xaf3   :  { %v1353_v23 = vpop.f32.mrf.mxu0 }
 0xaf4   :  { %v1397_v57 = vadd.f32 %v1396_v53, %v1353_v23  ;;  %v6306_v53 = vld [vmem:[%s7899_s2 + $0x10] sm:$0xff]   ;;  %s7928_s2 = sld [smem:[#allocation68_spill]] }
 0xaf5   :  { %v5804_v58 = vpop.f32.mrf.mxu0 }
 0xaf6   :  { %v1411_v59 = vadd.f32 %v5306_v21, %v1397_v57 }
 0xaf7   :  { %v1356_v60 = vpop.f32.mrf.mxu0 }
 0xaf8   :  { %1412 = vst.msk [vmem:[#allocation2 + $0x8] sm:$0xff] %vm407_vm1, %v1411_v59 }
 0xaf9   :  { %v5805_v61 = vpop.f32.mrf.mxu0 }
 0xaff   :  { %v1414_v62 = vld [vmem:[#allocation2 + $0x8] sm:$0xff] }
 0xb00   :  { %v1416_v63 = vadd.f32 %v1414_v62, %v7124_v6  ;;  %v382_v6 = vld [vmem:[%s7898_s14 + $0x8] sm:$0xff]  ;;  %s7927_s14 = sld [smem:[#allocation65_spill]] }
 0xb01   :  { %v7282_v13 = vpack.c.bf16 %v382_v6, %v381_v12 }
 0xb02   :  { %v1422_v1 = vsel %vm407_vm1, %v1416_v63, 0.0 }
 0xb03   :  { %1423 = vadd.xlane.f32.xlu1 %v1422_v1  ;;  %5825 = vmatmul.mubr.msk.bf16.vlgmr.msra.gmra.mxu1 %vm407_vm1, %v7282_v13 }
 0xb04   :  { %5838 = vmatprep.mubr.msk.bf16.mxu1 %vm6792_vm0, %v6791_v0 }
 0xb8c   :  { %v1424_v2 = vpop.xlane.xlu1 %1423 }
 0xb8d   :  { %v1427_v3 = vmul.f32 0.03125, %v1424_v2 }
 0xb8f   :  { %v1429_v4 = vsub.f32 %v1416_v63, %v1427_v3 }
 0xb91   :  { %v1431_v8 = vmul.f32 %v1429_v4, %v1429_v4 }
 0xb93   :  { %v1435_v9 = vsel %vm407_vm1, %v1431_v8, 0.0 }
 0xb94   :  { %1436 = vadd.xlane.f32.xlu1 %v1435_v9 }
 0xbc3   :  { %v1591_v35 = vpop.f32.mrf.mxu1 }
 0xbc4   :  { %v1592_v36 = vadd.f32 %v5313_v34, %v1591_v35 }
 0xbc5   :  { %v5826_v37 = vpop.f32.mrf.mxu1 }
 0xbc6   :  { %v1665_v38 = vpack.c.bf16 %v1592_v36, %v1592_v36 }
 0xbc7   :  { %v1594_v39 = vpop.f32.mrf.mxu1 }
 0xbc8   :  { %v1671_v40 = vsel %vm585_vm2, %v1665_v38, 0  ;;  %v1595_v41 = vadd.f32 %v5313_v34, %v1594_v39 }
 0xbc9   :  { %v5827_v42 = vpop.f32.mrf.mxu1  ;;  %5837 = vmatpush3.bf16.xpose.msra.mxu1 %v1671_v40 }
 0xbca   :  { %5848 = vmatprep.subr.bf16.mxu1 %v6791_v0  ;;  %v1773_v44 = vpack.c.bf16 %v1595_v41, %v1595_v41  ;;  %v6309_v42 = vld [vmem:[%s7897_s25 + $0x18] sm:$0xff]  }
 0xbcc   :  { %v1779_v49 = vsel %vm585_vm2, %v1773_v44, 0 }
 0xc1d   :  { %v1437_v20 = vpop.xlane.xlu1 %1436 }
 0xc1e   :  { %v1439_v21 = vmul.f32 0.03125, %v1437_v20 }
 0xc20   :  { %v1441_v22 = vadd.f32 1e-05, %v1439_v21 }
 0xc22   :  { %6371 = vrsqrt.f32 %v1441_v22  ;;  %v5317_v22 = vld [vmem:[%s7905_s27] ss:$0 sm:$0xff] }
 0xc2f   :  { %v6372_v17 = vpop.eup %6371 }
 0xc30   :  { %v1445_v27 = vmul.f32 %v6372_v17, %v1429_v4  ;;  %v7337_v4 = vld [vmem:[%s7903_s9 + $0x1] ss:$0 sm:$0xff]  ;;  %s7932_s9 = sld [smem:[#allocation72_spill]] }
 0xc32   :  { %v1453_v30 = vmul.f32 %v5307_v26, %v1445_v27 }
 0xc34   :  { %v7298_v32 = vadd.f32 %v5308_v29, %v1453_v30 }
 0xc36   :  { %v1462_v33 = vpack.c.bf16 %v7298_v32, %v7296_v31 }
 0xc38   :  { %5817 = vmatmul.mubr.msk.bf16.vlgmr.msra.gmra.mxu0 %vm407_vm1, %v1462_v33 }
 0xc39   :  { %5832 = vmatprep.mubr.msk.bf16.mxu0 %vm6792_vm0, %v6791_v0  ;;  %5829 = vmatpush3.bf16.msra.mxu0 %v6307_v54 }
 0xc3a   :  { %5830 = vmatprep.subr.bf16.mxu0 %v6791_v0 }
 0xc3d   :  { %5831 = vmatpush3.bf16.msra.mxu0 %v6308_v55 }
 0xc3e   :  { %5842 = vmatprep.subr.bf16.mxu0 %v6791_v0 }
 0xc40   :  { %5833 = vmatmul.mubr.msk.bf16.vlgmr.msra.gmra.mxu0 %vm407_vm1, %v7282_v13 }
 0xc41   :  { %5844 = vmatprep.mubr.msk.bf16.mxu0 %vm6792_vm0, %v6791_v0 }
 0xcf8   :  { %v1524_v5 = vpop.f32.mrf.mxu0 }
 0xcf9   :  { %v1525_v45 = vadd.f32 %v5309_v43, %v1524_v5  ;;  %v6310_v5 = vld [vmem:[%s7897_s25 + $0x10] sm:$0xff]   ;;  %s7926_s25 = sld [smem:[#allocation67_spill]] }
 0xcfa   :  { %v5818_v46 = vpop.f32.mrf.mxu0 }
 0xcfb   :  { %v1664_v47 = vpack.c.bf16 %v1525_v45, %v1525_v45 }
 0xcfc   :  { %v1527_v48 = vpop.f32.mrf.mxu0 }
 0xcfd   :  { %5839 = vmatmul.mubr.msk.bf16.vlgmr.msra.gmra.mxu1 %vm585_vm2, %v1664_v47  ;;  %v1528_v7 = vadd.f32 %v5309_v43, %v1527_v48 }
 0xcfe   :  { %5849 = vmatpush3.bf16.xpose.msra.mxu1 %v1779_v49  ;;  %v5819_v50 = vpop.f32.mrf.mxu0  ;;  %5850 = vmatprep.mubr.msk.bf16.mxu1 %vm6792_vm0, %v6791_v0 }
 0xcff   :  { %5860 = vmatprep.subr.bf16.mxu1 %v6791_v0  ;;  %v1772_v52 = vpack.c.bf16 %v1528_v7, %v1528_v7 }
 0xd00   :  { %v1655_v24 = vpop.f32.mrf.mxu0 }
 0xd01   :  { %v1656_v25 = vadd.f32 %v5317_v22, %v1655_v24  ;;  %v6314_v24 = vld [vmem:[%s7906_s4 + $0x8] sm:$0xff]  }
 0xd02   :  { %v5834_v26 = vpop.f32.mrf.mxu0 }
 0xd03   :  { %v1666_v17 = vpack.c.bf16 %v1656_v25, %v1656_v25 }
 0xd04   :  { %v1658_v27 = vpop.f32.mrf.mxu0 }
 0xd05   :  { %5851 = vmatmul.mubr.msk.bf16.vlgmr.msra.gmra.mxu1 %vm585_vm2, %v1772_v52  ;;  %v1729_v28 = vsel %vm648_vm4, %v1666_v17, 0  ;;  %v1659_v29 = vadd.f32 %v5317_v22, %v1658_v27  ;;  %v7393_v27 = vld [vmem:[%s7906_s4] sm:$0xff]  }
 0xd06   :  { %5861 = vmatpush3.bf16.msra.mxu1 %v6305_v51  ;;  %5864 = vmatprep.mubr.msk.bf16.mxu1 %vm6792_vm0, %v6791_v0  ;;  %v5835_v30 = vpop.f32.mrf.mxu0  ;;  %v5339_v51 = vld [vmem:[%s7902_s11 + $0x1] ss:$0 sm:$0xff]  ;;  %s7931_s11 = sld [smem:[#allocation71_spill]] }
 0xd07   :  { %5862 = vmatprep.subr.bf16.mxu1 %v6791_v0  ;;  %5843 = vmatpush3.bf16.msra.mxu0 %v1729_v28  ;;  %v1774_v36 = vpack.c.bf16 %v1659_v29, %v1659_v29 }
 0xd08   :  { %5854 = vmatprep.subr.bf16.mxu0 %v6791_v0 }
 0xd09   :  { %v1837_v39 = vsel %vm648_vm4, %v1774_v36, 0 }
 0xd0a   :  { %5863 = vmatpush3.bf16.msra.mxu1 %v6306_v53 }
 0xd0b   :  { %5876 = vmatprep.subr.bf16.mxu1 %v6791_v0 }
 0xd0d   :  { %5865 = vmatmul.mubr.msk.bf16.vlgmr.msra.gmra.mxu1 %vm407_vm1, %v1462_v33 }
 0xd0e   :  { %5880 = vmatprep.mubr.msk.bf16.mxu1 %vm6792_vm0, %v6791_v0 }
 0xdbd   :  { %v1707_v56 = vpop.f32.mrf.mxu1 }
 0xdbe   :  { %v1713_v23 = vsel %vm632_vm3, %v1707_v56, -inf }
 0xdbf   :  { %1714 = vmax.xlane.f32.xlu0 %v1713_v23  ;;  %v5840_v57 = vpop.f32.mrf.mxu1 }
 0xdc1   :  { %v1710_v58 = vpop.f32.mrf.mxu1 }
 0xdc3   :  { %v5841_v59 = vpop.f32.mrf.mxu1 }
 0xdc5   :  { %v1815_v60 = vpop.f32.mrf.mxu1 }
 0xdc6   :  { %v1821_v61 = vsel %vm632_vm3, %v1815_v60, -inf }
 0xdc7   :  { %1822 = vmax.xlane.f32.xlu1 %v1821_v61  ;;  %v5852_v62 = vpop.f32.mrf.mxu1  ;;  %v6311_v61 = vld [vmem:[%s7904_s15 + $0x18] sm:$0xff]  }
 0xdc8   :  { %5877 = vmatpush3.bf16.msra.mxu1 %v6311_v61  ;;  %v6312_v62 = vld [vmem:[%s7904_s15 + $0x10] sm:$0xff]  }
 0xdc9   :  { %v1818_v63 = vpop.f32.mrf.mxu1  ;;  %5878 = vmatprep.subr.bf16.mxu1 %v6791_v0 }
 0xdcb   :  { %v5853_v1 = vpop.f32.mrf.mxu1 }
 0xdcc   :  { %5879 = vmatpush3.bf16.msra.mxu1 %v6312_v62 }
 0xdcd   :  { %v7334_v2 = vpop.f32.mrf.mxu1  ;;  %5890 = vmatprep.subr.bf16.mxu1 %v6791_v0 }
 0xdce   :  { %v1940_v59 = vadd.f32 %v7337_v4, %v7334_v2 }
 0xdcf   :  { %v5866_v3 = vpop.f32.mrf.mxu1  ;;  %5881 = vmatmul.mubr.msk.bf16.vlgmr.msra.gmra.mxu1 %vm407_vm1, %v7282_v13 }
 0xdd0   :  { %5892 = vmatprep.mubr.msk.bf16.mxu1 %vm6792_vm0, %v6791_v0 }
 0xdd1   :  { %v1942_v8 = vpop.f32.mrf.mxu1 }
 0xdd2   :  { %v7340_v9 = vadd.f32 %v7337_v4, %v1942_v8  ;;  %v5348_v8 = vld [vmem:[%s7905_s27 + $0x1] ss:$0 sm:$0xff] }
 0xdd3   :  { %v5867_v10 = vpop.f32.mrf.mxu1 }
 0xe48   :  { %v1715_v11 = vpop.xlane.xlu0 %1714 }
 0xe49   :  { %v1716_v12 = vsub.f32 %v1707_v56, %v1715_v11 }
 0xe4b   :  { %v1717_v6 = vmul.f32 1.442695, %v1716_v12 }
 0xe4d   :  { %6373 = vpow2.f32 %v1717_v6 }
 0xe50   :  { %v1823_v14 = vpop.xlane.xlu1 %1822 }
 0xe51   :  { %v1824_v15 = vsub.f32 %v1815_v60, %v1823_v14  ;;  %v2081_v60 = vpack.c.bf16 %v1940_v59, %v1940_v59 }
 0xe53   :  { %v1825_v16 = vmul.f32 1.442695, %v1824_v15 }
 0xe55   :  { %6375 = vpow2.f32 %v1825_v16 }
 0xe5a   :  { %v6374_v18 = vpop.eup %6373 }
 0xe5b   :  { %v1719_v19 = vsel %vm632_vm3, %v6374_v18, 0.0 }
 0xe5c   :  { %1720 = vadd.xlane.f32.xlu0 %v1719_v19 }
 0xe62   :  { %v6376_v20 = vpop.eup %6375 }
 0xe63   :  { %v1827_v21 = vsel %vm632_vm3, %v6376_v20, 0.0 }
 0xe64   :  { %1828 = vadd.xlane.f32.xlu1 %v1827_v21 }
 0xe8f   :  { %v2071_v10 = vpop.f32.mrf.mxu1 }
 0xe90   :  { %v2072_v11 = vadd.f32 %v5348_v8, %v2071_v10 }
 0xe91   :  { %v5882_v12 = vpop.f32.mrf.mxu1 }
 0xe92   :  { %v2083_v6 = vpack.c.bf16 %v2072_v11, %v2072_v11 }
 0xe93   :  { %v2074_v21 = vpop.f32.mrf.mxu1 }
 0xe94   :  { %v2146_v14 = vsel %vm648_vm4, %v2083_v6, 0  ;;  %v2075_v29 = vadd.f32 %v5348_v8, %v2074_v21 }
 0xe95   :  { %5891 = vmatpush3.bf16.msra.mxu1 %v2146_v14  ;;  %v5883_v22 = vpop.f32.mrf.mxu1 }
 0xe96   :  { %5902 = vmatprep.subr.bf16.mxu1 %v6791_v0  ;;  %v2289_v30 = vpack.c.bf16 %v2075_v29, %v2075_v29 }
 0xee5   :  { %v1721_v33 = vpop.xlane.xlu0 %1720 }
 0xee6   :  { %6377 = vrcp.f32 %v1721_v33 }
 0xeed   :  { %v1829_v34 = vpop.xlane.xlu1 %1828 }
 0xeee   :  { %6379 = vrcp.f32 %v1829_v34  ;;  %v2352_v34 = vsel %vm648_vm4, %v2289_v30, 0 }
 0xef3   :  { %v6378_v35 = vpop.eup %6377 }
 0xef4   :  { %v1723_v37 = vmul.f32 %v6378_v35, %v6374_v18 }
 0xef6   :  { %v1724_v38 = vpack.c.bf16 %v1723_v37, %v1723_v37 }
 0xef8   :  { %5845 = vmatmul.mubr.msk.bf16.vlgmr.msra.gmra.mxu0 %vm632_vm3, %v1724_v38 }
 0xef9   :  { %5855 = vmatpush3.bf16.msra.mxu0 %v1837_v39  ;;  %5856 = vmatprep.mubr.msk.bf16.mxu0 %vm6792_vm0, %v6791_v0 }
 0xefa   :  { %5868 = vmatprep.subr.bf16.mxu0 %v6791_v0 }
 0xefb   :  { %v6380_v40 = vpop.eup %6379 }
 0xefc   :  { %v1831_v41 = vmul.f32 %v6380_v40, %v6376_v20 }
 0xefe   :  { %v1832_v43 = vpack.c.bf16 %v1831_v41, %v1831_v41 }
 0xf00   :  { %5857 = vmatmul.mubr.msk.bf16.vlgmr.msra.gmra.mxu0 %vm632_vm3, %v1832_v43  ;;  %v2287_v43 = vpack.c.bf16 %v7340_v9, %v7340_v9 }
 0xf01   :  { %5869 = vmatpush3.bf16.msra.mxu0 %v6309_v42  ;;  %5872 = vmatprep.mubr.msk.bf16.mxu0 %vm6792_vm0, %v6791_v0 }
 0xf02   :  { %5870 = vmatprep.subr.bf16.mxu0 %v6791_v0 }
 0xf05   :  { %5871 = vmatpush3.bf16.msra.mxu0 %v6310_v5 }
 0xf06   :  { %5884 = vmatprep.subr.bf16.mxu0 %v6791_v0 }
 0xf08   :  { %5873 = vmatmul.mubr.msk.bf16.vlgmr.msra.gmra.mxu0 %vm407_vm1, %v7282_v13 }
 0xf09   :  { %5886 = vmatprep.mubr.msk.bf16.mxu0 %vm6792_vm0, %v6791_v0 }
 0xfb8   :  { %v7363_v44 = vpop.f32.mrf.mxu0 }
 0xfb9   :  { %v1771_v33 = vpack.c.bf16 %v7363_v44, %v7363_v44 }
 0xfba   :  { %v5846_v45 = vpop.f32.mrf.mxu0 }
 0xfbc   :  { %v1768_v46 = vpop.f32.mrf.mxu0 }
 0xfbe   :  { %v5847_v47 = vpop.f32.mrf.mxu0 }
 0xfbf   :  { %v5364_v47 = vld [vmem:[%s7907_s16] ss:$0 sm:$0xff] }
 0xfc0   :  { %v7365_v48 = vpop.f32.mrf.mxu0 }
 0xfc1   :  { %v1879_v6 = vpack.c.bf16 %v7365_v48, %v7365_v48 }
 0xfc2   :  { %v5858_v49 = vpop.f32.mrf.mxu0 }
 0xfc4   :  { %v1876_v50 = vpop.f32.mrf.mxu0 }
 0xfc6   :  { %v5859_v7 = vpop.f32.mrf.mxu0 }
 0xfc8   :  { %v2005_v52 = vpop.f32.mrf.mxu0 }
 0xfc9   :  { %v2006_v53 = vadd.f32 %v5339_v51, %v2005_v52 }
 0xfca   :  { %v5874_v54 = vpop.f32.mrf.mxu0 }
 0xfcb   :  { %v2082_v55 = vpack.c.bf16 %v2006_v53, %v2006_v53 }
 0xfcc   :  { %v2008_v56 = vpop.f32.mrf.mxu0 }
 0xfcd   :  { %v2088_v23 = vsel %vm585_vm2, %v2082_v55, 0  ;;  %v7369_v57 = vadd.f32 %v5339_v51, %v2008_v56 }
 0xfce   :  { %v5875_v58 = vpop.f32.mrf.mxu0  ;;  %5885 = vmatpush3.bf16.xpose.msra.mxu0 %v2088_v23 }
 0xfcf   :  { %5896 = vmatprep.subr.bf16.mxu0 %v6791_v0  ;;  %v2288_v35 = vpack.c.bf16 %v7369_v57, %v7369_v57 }
 0xfd1   :  { %v2294_v39 = vsel %vm585_vm2, %v2288_v35, 0 }
 0xfd5   :  { %5887 = vmatmul.mubr.msk.bf16.vlgmr.msra.gmra.mxu0 %vm585_vm2, %v2081_v60 }
 0xfd6   :  { %5898 = vmatprep.mubr.msk.bf16.mxu0 %vm6792_vm0, %v6791_v0  ;;  %5897 = vmatpush3.bf16.msra.mxu0 %v6314_v24 }
 0xfd7   :  { %5908 = vmatprep.subr.bf16.mxu0 %v6791_v0 }
0x1095   :  { %v2124_v63 = vpop.f32.mrf.mxu0 }
0x1096   :  { %v2130_v1 = vsel %vm632_vm3, %v2124_v63, -inf }
0x1097   :  { %2131 = vmax.xlane.f32.xlu0 %v2130_v1  ;;  %v5888_v2 = vpop.f32.mrf.mxu0 }
0x1099   :  { %v2127_v3 = vpop.f32.mrf.mxu0 }
0x109b   :  { %v5889_v4 = vpop.f32.mrf.mxu0 }
0x1120   :  { %v2132_v15 = vpop.xlane.xlu0 %2131 }
0x1121   :  { %v2133_v16 = vsub.f32 %v2124_v63, %v2132_v15 }
0x1123   :  { %v2134_v18 = vmul.f32 1.442695, %v2133_v16 }
0x1125   :  { %6381 = vpow2.f32 %v2134_v18 }
0x1132   :  { %v6382_v19 = vpop.eup %6381 }
0x1133   :  { %v2136_v20 = vsel %vm632_vm3, %v6382_v19, 0.0 }
0x1134   :  { %2137 = vadd.xlane.f32.xlu1 %v2136_v20 }
0x11bd   :  { %v2138_v25 = vpop.xlane.xlu1 %2137 }
0x11be   :  { %6383 = vrcp.f32 %v2138_v25 }
0x11cb   :  { %v6384_v26 = vpop.eup %6383 }
0x11cc   :  { %v2140_v17 = vmul.f32 %v6384_v26, %v6382_v19 }
0x11ce   :  { %v2141_v28 = vpack.c.bf16 %v2140_v17, %v2140_v17 }
0x11d0   :  { %5893 = vmatmul.mubr.msk.bf16.vlgmr.msra.gmra.mxu1 %vm632_vm3, %v2141_v28 }
0x11d1   :  { %5903 = vmatpush3.bf16.msra.mxu1 %v7393_v27  ;;  %5904 = vmatprep.mubr.msk.bf16.mxu1 %vm6792_vm0, %v6791_v0 }
0x11d2   :  { %5914 = vmatprep.subr.bf16.mxu1 %v6791_v0 }
0x11d8   :  { %5905 = vmatmul.mubr.msk.bf16.vlgmr.msra.gmra.mxu1 %vm585_vm2, %v1771_v33 }
0x11d9   :  { %5915 = vmatpush3.bf16.msra.mxu1 %v2352_v34  ;;  %5916 = vmatprep.mubr.msk.bf16.mxu1 %vm6792_vm0, %v6791_v0 }
0x11da   :  { %5926 = vmatprep.subr.bf16.mxu1 %v6791_v0 }
0x1290   :  { %v2182_v36 = vpop.f32.mrf.mxu1 }
0x1291   :  { %v2188_v37 = vpack.c.bf16 %v2182_v36, %v2182_v36 }
0x1292   :  { %v5894_v38 = vpop.f32.mrf.mxu1 }
0x1293   :  { %5899 = vmatmul.mubr.msk.bf16.vlgmr.msra.gmra.mxu0 %vm585_vm2, %v2188_v37 }
0x1294   :  { %5909 = vmatpush3.bf16.xpose.msra.mxu0 %v2294_v39  ;;  %v2185_v40 = vpop.f32.mrf.mxu1  ;;  %5910 = vmatprep.mubr.msk.bf16.mxu0 %vm6792_vm0, %v6791_v0  ;;  %v6315_v39 = vld [vmem:[%s7908_s6 + $0x8] sm:$0xff]  }
0x1295   :  { %5920 = vmatprep.subr.bf16.mxu0 %v6791_v0  ;;  %v6316_v40 = vld [vmem:[%s7908_s6] sm:$0xff]  }
0x1296   :  { %v5895_v41 = vpop.f32.mrf.mxu1 }
0x1298   :  { %v2281_v42 = vpop.f32.mrf.mxu1 }
0x129a   :  { %v5906_v5 = vpop.f32.mrf.mxu1 }
0x129b   :  { %5911 = vmatmul.mubr.msk.bf16.vlgmr.msra.gmra.mxu0 %vm585_vm2, %v2287_v43 }
0x129c   :  { %v2284_v44 = vpop.f32.mrf.mxu1  ;;  %5921 = vmatpush3.bf16.msra.mxu0 %v6314_v24  ;;  %5922 = vmatprep.mubr.msk.bf16.mxu0 %vm6792_vm0, %v6791_v0 }
0x129d   :  { %5932 = vmatprep.subr.bf16.mxu0 %v6791_v0 }
0x129e   :  { %v5907_v45 = vpop.f32.mrf.mxu1 }
0x1353   :  { %v2232_v46 = vpop.f32.mrf.mxu0 }
0x1354   :  { %v2282_v49 = vadd.f32 %v2281_v42, %v2232_v46 }
0x1355   :  { %v5900_v50 = vpop.f32.mrf.mxu0 }
0x1356   :  { %v2488_v7 = vadd.f32 %v5364_v47, %v2282_v49 }
0x1357   :  { %v2235_v51 = vpop.f32.mrf.mxu0 }
0x1358   :  { %2489 = vst.msk [vmem:[#allocation2] sm:$0xff] %vm407_vm1, %v2488_v7  ;;  %v5366_v51 = vld [vmem:[%s7910_s22] ss:$0 sm:$0xff] }
0x1359   :  { %v5901_v9 = vpop.f32.mrf.mxu0 }
0x135b   :  { %v2330_v52 = vpop.f32.mrf.mxu0 }
0x135c   :  { %v2336_v53 = vsel %vm632_vm3, %v2330_v52, -inf }
0x135d   :  { %2337 = vmax.xlane.f32.xlu0 %v2336_v53  ;;  %v5912_v54 = vpop.f32.mrf.mxu0 }
0x135f   :  { %v2333_v55 = vpop.f32.mrf.mxu0  ;;  %v2492_v56 = vld [vmem:[#allocation2] sm:$0xff] }
0x1360   :  { %v2494_v23 = vadd.f32 %v2492_v56, %v7296_v31  ;;  %v6317_v55 = vld [vmem:[%s7911_s19 + $0x8] sm:$0xff]   ;;  %v6318_v56 = vld [vmem:[%s7911_s19] sm:$0xff]  }
0x1361   :  { %v5913_v57 = vpop.f32.mrf.mxu0 }
0x1362   :  { %v2498_v58 = vsel %vm407_vm1, %v2494_v23, 0.0 }
0x1363   :  { %2499 = vadd.xlane.f32.xlu0 %v2498_v58 }
0x13e6   :  { %v2338_v59 = vpop.xlane.xlu0 %2337 }
0x13e7   :  { %v2339_v60 = vsub.f32 %v2330_v52, %v2338_v59 }
0x13e9   :  { %v2340_v61 = vmul.f32 1.442695, %v2339_v60 }
0x13eb   :  { %6385 = vpow2.f32 %v2340_v61 }
0x13ec   :  { %v2500_v62 = vpop.xlane.xlu0 %2499 }
0x13ed   :  { %v2504_v63 = vmul.f32 0.03125, %v2500_v62 }
0x13ef   :  { %v2506_v1 = vsub.f32 %v2494_v23, %v2504_v63  ;;  %v5367_v23 = vld [vmem:[%s7912_s23] ss:$0 sm:$0xff] }
0x13f1   :  { %v2508_v2 = vmul.f32 %v2506_v1, %v2506_v1 }
0x13f3   :  { %v2510_v3 = vsel %vm407_vm1, %v2508_v2, 0.0 }
0x13f4   :  { %2511 = vadd.xlane.f32.xlu0 %v2510_v3  ;;  %v5371_v3 = vld [vmem:[%s7913_s20] ss:$0 sm:$0xff] }
0x13f8   :  { %v6386_v4 = vpop.eup %6385 }
0x13f9   :  { %v2342_v8 = vsel %vm632_vm3, %v6386_v4, 0.0 }
0x13fa   :  { %2343 = vadd.xlane.f32.xlu1 %v2342_v8 }
0x1483   :  { %v2344_v31 = vpop.xlane.xlu1 %2343 }
0x1484   :  { %6387 = vrcp.f32 %v2344_v31 }
0x1491   :  { %v6388_v10 = vpop.eup %6387 }
0x1492   :  { %v2346_v11 = vmul.f32 %v6388_v10, %v6386_v4 }
0x1494   :  { %v2347_v12 = vpack.c.bf16 %v2346_v11, %v2346_v11 }
0x1496   :  { %5917 = vmatmul.mubr.msk.bf16.vlgmr.msra.gmra.mxu1 %vm632_vm3, %v2347_v12 }
0x1497   :  { %5927 = vmatpush3.bf16.msra.mxu1 %v7393_v27  ;;  %5928 = vmatprep.mubr.msk.bf16.mxu1 %vm6792_vm0, %v6791_v0 }
0x1498   :  { %5940 = vmatprep.subr.bf16.mxu1 %v6791_v0 }
0x149e   :  { %5929 = vmatmul.mubr.msk.bf16.vlgmr.msra.gmra.mxu1 %vm585_vm2, %v1879_v6 }
0x149f   :  { %5944 = vmatprep.mubr.msk.bf16.mxu1 %vm6792_vm0, %v6791_v0  ;;  %5941 = vmatpush3.bf16.msra.mxu1 %v6317_v55 }
0x14a0   :  { %5942 = vmatprep.subr.bf16.mxu1 %v6791_v0 }
0x14a3   :  { %5943 = vmatpush3.bf16.msra.mxu1 %v6318_v56  ;;  %v5377_v56 = vld [vmem:[%s7920_s1] ss:$0 sm:$0xff] }
0x14a4   :  { %5956 = vmatprep.subr.bf16.mxu1 %v6791_v0 }
0x1556   :  { %v2388_v14 = vpop.f32.mrf.mxu1 }
0x1557   :  { %v2394_v15 = vpack.c.bf16 %v2388_v14, %v2388_v14 }
0x1558   :  { %v5918_v16 = vpop.f32.mrf.mxu1 }
0x1559   :  { %5923 = vmatmul.mubr.msk.bf16.vlgmr.msra.gmra.mxu0 %vm585_vm2, %v2394_v15 }
0x155a   :  { %v2391_v18 = vpop.f32.mrf.mxu1  ;;  %5936 = vmatprep.mubr.msk.bf16.mxu0 %vm6792_vm0, %v6791_v0  ;;  %5933 = vmatpush3.bf16.msra.mxu0 %v6315_v39 }
0x155b   :  { %5934 = vmatprep.subr.bf16.mxu0 %v6791_v0 }
0x155c   :  { %v5919_v19 = vpop.f32.mrf.mxu1 }
0x155e   :  { %v2475_v20 = vpop.f32.mrf.mxu1  ;;  %5935 = vmatpush3.bf16.msra.mxu0 %v6316_v40 }
0x155f   :  { %5948 = vmatprep.subr.bf16.mxu0 %v6791_v0 }
0x1560   :  { %v5930_v21 = vpop.f32.mrf.mxu1 }
0x1562   :  { %v2478_v22 = vpop.f32.mrf.mxu1 }
0x1564   :  { %v5931_v24 = vpop.f32.mrf.mxu1 }
0x1619   :  { %v2432_v48 = vpop.f32.mrf.mxu0 }
0x161a   :  { %v2476_v25 = vadd.f32 %v2475_v20, %v2432_v48 }
0x161b   :  { %v5924_v26 = vpop.f32.mrf.mxu0 }
0x161c   :  { %v2490_v17 = vadd.f32 %v5364_v47, %v2476_v25  ;;  %v5365_v47 = vld [vmem:[%s7909_s18] ss:$0 sm:$0xff] }
0x161d   :  { %v2435_v27 = vpop.f32.mrf.mxu0 }
0x161e   :  { %2491 = vst.msk [vmem:[#allocation2 + $0x8] sm:$0xff] %vm407_vm1, %v2490_v17  ;;  %v6319_v27 = vld [vmem:[%s7914_s26 + $0x8] sm:$0xff]  }
0x161f   :  { %v5925_v28 = vpop.f32.mrf.mxu0 }
0x1620   :  { %v6320_v28 = vld [vmem:[%s7915_s0 + $0x8] sm:$0xff]  }
0x1625   :  { %v2493_v29 = vld [vmem:[#allocation2 + $0x8] sm:$0xff] }
0x1626   :  { %v2495_v30 = vadd.f32 %v2493_v29, %v7298_v32  ;;  %v2512_v32 = vpop.xlane.xlu0 %2511  ;;  %v6321_v29 = vld [vmem:[%s7914_s26] sm:$0xff]  }
0x1627   :  { %v2516_v41 = vmul.f32 0.03125, %v2512_v32  ;;  %v5375_v32 = vld [vmem:[%s7916_s30] ss:$0 sm:$0xff] }
0x1628   :  { %v2501_v33 = vsel %vm407_vm1, %v2495_v30, 0.0 }
0x1629   :  { %2502 = vadd.xlane.f32.xlu1 %v2501_v33  ;;  %v2518_v42 = vadd.f32 1e-05, %v2516_v41 }
0x162b   :  { %6389 = vrsqrt.f32 %v2518_v42 }
0x1638   :  { %v6390_v45 = vpop.eup %6389 }
0x1639   :  { %v2522_v46 = vmul.f32 %v6390_v45, %v2506_v1 }
0x163b   :  { %v2530_v7 = vmul.f32 %v5365_v47, %v2522_v46 }
0x163d   :  { %v2538_v52 = vadd.f32 %v5366_v51, %v2530_v7  ;;  %v5381_v7 = vld [vmem:[%s7919_s12] ss:$0 sm:$0xff] }
0x16b2   :  { %v2503_v34 = vpop.xlane.xlu1 %2502 }
0x16b3   :  { %v2505_v35 = vmul.f32 0.03125, %v2503_v34 }
0x16b5   :  { %v2507_v36 = vsub.f32 %v2495_v30, %v2505_v35  ;;  %v6322_v30 = vld [vmem:[%s7915_s0] sm:$0xff]  }
0x16b7   :  { %v2509_v37 = vmul.f32 %v2507_v36, %v2507_v36 }
0x16b9   :  { %v2513_v38 = vsel %vm407_vm1, %v2509_v37, 0.0 }
0x16ba   :  { %2514 = vadd.xlane.f32.xlu1 %v2513_v38 }
0x1743   :  { %v2515_v43 = vpop.xlane.xlu1 %2514 }
0x1744   :  { %v2517_v5 = vmul.f32 0.03125, %v2515_v43 }
0x1746   :  { %v2519_v44 = vadd.f32 1e-05, %v2517_v5  ;;  %v5376_v5 = vld [vmem:[%s7917_s28] ss:$0 sm:$0xff] }
0x1748   :  { %6391 = vrsqrt.f32 %v2519_v44 }
0x1755   :  { %v6392_v49 = vpop.eup %6391 }
0x1756   :  { %v2523_v50 = vmul.f32 %v6392_v49, %v2507_v36 }
0x1758   :  { %v2531_v9 = vmul.f32 %v5365_v47, %v2523_v50  ;;  %v6323_v47 = vld [vmem:[%s7918_s24 + $0x8] sm:$0xff]   ;;  %v6324_v50 = vld [vmem:[%s7918_s24] sm:$0xff]  }
0x175a   :  { %v2539_v53 = vadd.f32 %v5366_v51, %v2531_v9 }
0x175c   :  { %v2550_v54 = vpack.c.bf16 %v2539_v53, %v2538_v52 }
0x175e   :  { %5937 = vmatmul.mubr.msk.bf16.vlgmr.msra.gmra.mxu0 %vm407_vm1, %v2550_v54 }
0x175f   :  { %5952 = vmatprep.mubr.msk.bf16.mxu0 %vm6792_vm0, %v6791_v0  ;;  %5949 = vmatpush3.bf16.msra.mxu0 %v6319_v27 }
0x1760   :  { %5950 = vmatprep.subr.bf16.mxu0 %v6791_v0 }
0x1763   :  { %5951 = vmatpush3.bf16.msra.mxu0 %v6321_v29 }
0x1764   :  { %5964 = vmatprep.subr.bf16.mxu0 %v6791_v0 }
0x181e   :  { %v2606_v57 = vpop.f32.mrf.mxu0 }
0x181f   :  { %v2607_v59 = vadd.f32 %v5367_v23, %v2606_v57 }
0x1820   :  { %v5938_v58 = vpop.f32.mrf.mxu0 }
0x1821   :  { %v2613_v63 = vmax.f32 %v2607_v59, 0.0 }
0x1822   :  { %v2609_v60 = vpop.f32.mrf.mxu0 }
0x1823   :  { %v2610_v61 = vadd.f32 %v5367_v23, %v2609_v60 }
0x1824   :  { %v5939_v62 = vpop.f32.mrf.mxu0 }
0x1825   :  { %v2614_v1 = vmax.f32 %v2610_v61, 0.0  ;;  %v5385_v62 = vld [vmem:[%s7921_s29] ss:$0 sm:$0xff] }
0x1827   :  { %v2615_v2 = vpack.c.bf16 %v2614_v1, %v2613_v63 }
0x1829   :  { %5945 = vmatmul.mubr.msk.bf16.vlgmr.msra.gmra.mxu1 %vm407_vm1, %v2615_v2 }
0x182a   :  { %5960 = vmatprep.mubr.msk.bf16.mxu1 %vm6792_vm0, %v6791_v0  ;;  %5957 = vmatpush3.bf16.msra.mxu1 %v6320_v28 }
0x182b   :  { %5958 = vmatprep.subr.bf16.mxu1 %v6791_v0 }
0x182e   :  { %5959 = vmatpush3.bf16.msra.mxu1 %v6322_v30 }
0x182f   :  { %5972 = vmatprep.subr.bf16.mxu1 %v6791_v0 }
0x18e9   :  { %v2671_v4 = vpop.f32.mrf.mxu1 }
0x18ea   :  { %v2672_v8 = vadd.f32 %v5371_v3, %v2671_v4 }
0x18eb   :  { %v5946_v31 = vpop.f32.mrf.mxu1 }
0x18ec   :  { %v2678_v10 = vadd.f32 %v2672_v8, %v2538_v52 }
0x18ed   :  { %v2674_v11 = vpop.f32.mrf.mxu1 }
0x18ee   :  { %v2675_v12 = vadd.f32 %v5371_v3, %v2674_v11  ;;  %v2682_v6 = vsel %vm407_vm1, %v2678_v10, 0.0 }
0x18ef   :  { %2683 = vadd.xlane.f32.xlu0 %v2682_v6  ;;  %v5947_v14 = vpop.f32.mrf.mxu1 }
0x18f0   :  { %v2679_v15 = vadd.f32 %v2675_v12, %v2539_v53 }
0x18f2   :  { %v2685_v16 = vsel %vm407_vm1, %v2679_v15, 0.0 }
0x18f3   :  { %2686 = vadd.xlane.f32.xlu1 %v2685_v16  ;;  %v6325_v16 = vld [vmem:[%s7914_s26 + $0x18] sm:$0xff]  }
0x1978   :  { %v2684_v18 = vpop.xlane.xlu0 %2683 }
0x1979   :  { %v2688_v19 = vmul.f32 0.03125, %v2684_v18 }
0x197b   :  { %v2690_v20 = vsub.f32 %v2678_v10, %v2688_v19  ;;  %v6326_v19 = vld [vmem:[%s7914_s26 + $0x10] sm:$0xff]  }
0x197c   :  { %v2687_v21 = vpop.xlane.xlu1 %2686 }
0x197d   :  { %v2689_v22 = vmul.f32 0.03125, %v2687_v21  ;;  %v2692_v24 = vmul.f32 %v2690_v20, %v2690_v20  ;;  %v6328_v21 = vld [vmem:[%s7918_s24 + $0x10] sm:$0xff]  }
0x197f   :  { %v2691_v48 = vsub.f32 %v2679_v15, %v2689_v22  ;;  %v2694_v25 = vsel %vm407_vm1, %v2692_v24, 0.0 }
0x1980   :  { %2695 = vadd.xlane.f32.xlu0 %v2694_v25 }
0x1981   :  { %v2693_v26 = vmul.f32 %v2691_v48, %v2691_v48 }
0x1983   :  { %v2697_v17 = vsel %vm407_vm1, %v2693_v26, 0.0 }
0x1984   :  { %2698 = vadd.xlane.f32.xlu1 %v2697_v17 }
0x1a09   :  { %v2696_v33 = vpop.xlane.xlu0 %2695 }
0x1a0a   :  { %v2700_v34 = vmul.f32 0.03125, %v2696_v33 }
0x1a0c   :  { %v2702_v35 = vadd.f32 1e-05, %v2700_v34 }
0x1a0d   :  { %v2699_v36 = vpop.xlane.xlu1 %2698 }
0x1a0e   :  { %6393 = vrsqrt.f32 %v2702_v35  ;;  %v2701_v37 = vmul.f32 0.03125, %v2699_v36  ;;  %v7538_v35 = vld [vmem:[%s7920_s1 + $0x1] ss:$0 sm:$0xff] }
0x1a10   :  { %v2703_v38 = vadd.f32 1e-05, %v2701_v37 }
0x1a12   :  { %6395 = vrsqrt.f32 %v2703_v38 }
0x1a1b   :  { %v6394_v39 = vpop.eup %6393 }
0x1a1c   :  { %v2706_v40 = vmul.f32 %v6394_v39, %v2690_v20  ;;  %v6327_v20 = vld [vmem:[%s7918_s24 + $0x18] sm:$0xff]   ;;  %v5416_v39 = vld [vmem:[%s7921_s29 + $0x1] ss:$0 sm:$0xff] }
0x1a1e   :  { %v2714_v42 = vmul.f32 %v5375_v32, %v2706_v40 }
0x1a1f   :  { %v6396_v41 = vpop.eup %6395 }
0x1a20   :  { %v2707_v43 = vmul.f32 %v6396_v41, %v2691_v48  ;;  %v7476_v45 = vadd.f32 %v5376_v5, %v2714_v42 }
0x1a22   :  { %v2715_v44 = vmul.f32 %v5375_v32, %v2707_v43 }
0x1a24   :  { %v7478_v46 = vadd.f32 %v5376_v5, %v2715_v44 }
0x1a26   :  { %v7483_v49 = vpack.c.bf16 %v7478_v46, %v7476_v45 }
0x1a28   :  { %5953 = vmatmul.mubr.msk.bf16.vlgmr.msra.gmra.mxu0 %vm407_vm1, %v7483_v49  ;;  %5961 = vmatmul.mubr.msk.bf16.vlgmr.msra.gmra.mxu1 %vm407_vm1, %v7483_v49 }
0x1a29   :  { %5965 = vmatpush3.bf16.msra.mxu0 %v6323_v47  ;;  %5968 = vmatprep.mubr.msk.bf16.mxu0 %vm6792_vm0, %v6791_v0 }
0x1a2a   :  { %5966 = vmatprep.subr.bf16.mxu0 %v6791_v0  ;;  %5974 = vmatprep.mubr.msk.bf16.mxu1 %vm6792_vm0, %v6791_v0 }
0x1a2d   :  { %5967 = vmatpush3.bf16.msra.mxu0 %v6324_v50 }
0x1a2e   :  { %5978 = vmatprep.subr.bf16.mxu0 %v6791_v0 }
0x1a30   :  { %5969 = vmatmul.mubr.msk.bf16.vlgmr.msra.gmra.mxu0 %vm407_vm1, %v7483_v49 }
0x1a31   :  { %5980 = vmatprep.mubr.msk.bf16.mxu0 %vm6792_vm0, %v6791_v0 }
0x1ae8   :  { %v2785_v51 = vpop.f32.mrf.mxu0  ;;  %v2849_v9 = vpop.f32.mrf.mxu1 }
0x1ae9   :  { %v2850_v52 = vadd.f32 %v5381_v7, %v2849_v9  ;;  %v2786_v63 = vadd.f32 %v5377_v56, %v2785_v51 }
0x1aea   :  { %v5954_v53 = vpop.f32.mrf.mxu0  ;;  %v5962_v54 = vpop.f32.mrf.mxu1 }
0x1aeb   :  { %v2923_v55 = vpack.c.bf16 %v2850_v52, %v2850_v52  ;;  %v2922_v8 = vpack.c.bf16 %v2786_v63, %v2786_v63 }
0x1aec   :  { %v2788_v23 = vpop.f32.mrf.mxu0  ;;  %v2852_v57 = vpop.f32.mrf.mxu1 }
0x1aed   :  { %v2929_v58 = vsel %vm585_vm2, %v2923_v55, 0  ;;  %v2853_v59 = vadd.f32 %v5381_v7, %v2852_v57  ;;  %v2789_v15 = vadd.f32 %v5377_v56, %v2788_v23 }
0x1aee   :  { %v5955_v60 = vpop.f32.mrf.mxu0  ;;  %v5963_v61 = vpop.f32.mrf.mxu1  ;;  %5973 = vmatpush3.bf16.xpose.msra.mxu1 %v2929_v58 }
0x1aef   :  { %5984 = vmatprep.subr.bf16.mxu1 %v6791_v0  ;;  %v3031_v2 = vpack.c.bf16 %v2853_v59, %v2853_v59  ;;  %v3030_v18 = vpack.c.bf16 %v2789_v15, %v2789_v15 }
0x1af0   :  { %v2913_v1 = vpop.f32.mrf.mxu0 }
0x1af1   :  { %v2914_v3 = vadd.f32 %v5385_v62, %v2913_v1  ;;  %v3037_v11 = vsel %vm585_vm2, %v3031_v2, 0 }
0x1af2   :  { %v5970_v4 = vpop.f32.mrf.mxu0 }
0x1af3   :  { %v2924_v31 = vpack.c.bf16 %v2914_v3, %v2914_v3  ;;  %v6329_v3 = vld [vmem:[%s7915_s0 + $0x18] sm:$0xff]  }
0x1af4   :  { %v2916_v10 = vpop.f32.mrf.mxu0 }
0x1af5   :  { %v2987_v12 = vsel %vm648_vm4, %v2924_v31, 0  ;;  %v7507_v6 = vadd.f32 %v5385_v62, %v2916_v10  ;;  %5975 = vmatmul.mubr.msk.bf16.vlgmr.msra.gmra.mxu1 %vm585_vm2, %v2922_v8  ;;  %v6330_v8 = vld [vmem:[%s7915_s0 + $0x10] sm:$0xff]  }
0x1af6   :  { %v5971_v14 = vpop.f32.mrf.mxu0  ;;  %5979 = vmatpush3.bf16.msra.mxu0 %v2987_v12  ;;  %5985 = vmatpush3.bf16.xpose.msra.mxu1 %v3037_v11 }
0x1af7   :  { %5986 = vmatprep.mubr.msk.bf16.mxu1 %vm6792_vm0, %v6791_v0  ;;  %5996 = vmatprep.subr.bf16.mxu1 %v6791_v0  ;;  %v3032_v60 = vpack.c.bf16 %v7507_v6, %v7507_v6 }
0x1af8   :  { %5990 = vmatprep.subr.bf16.mxu0 %v6791_v0 }
0x1af9   :  { %v3095_v63 = vsel %vm648_vm4, %v3032_v60, 0 }
0x1afd   :  { %5987 = vmatmul.mubr.msk.bf16.vlgmr.msra.gmra.mxu1 %vm585_vm2, %v3030_v18  ;;  %v5407_v18 = vld [vmem:[%s7919_s12 + $0x1] ss:$0 sm:$0xff] }
0x1afe   :  { %5997 = vmatpush3.bf16.msra.mxu1 %v6325_v16  ;;  %6000 = vmatprep.mubr.msk.bf16.mxu1 %vm6792_vm0, %v6791_v0 }
0x1aff   :  { %5998 = vmatprep.subr.bf16.mxu1 %v6791_v0 }
0x1b02   :  { %5999 = vmatpush3.bf16.msra.mxu1 %v6326_v19 }
0x1b03   :  { %6012 = vmatprep.subr.bf16.mxu1 %v6791_v0 }
0x1b05   :  { %6001 = vmatmul.mubr.msk.bf16.vlgmr.msra.gmra.mxu1 %vm407_vm1, %v7483_v49 }
0x1b06   :  { %6013 = vmatpush3.bf16.msra.mxu1 %v6327_v20  ;;  %6016 = vmatprep.mubr.msk.bf16.mxu1 %vm6792_vm0, %v6791_v0 }
0x1b07   :  { %6014 = vmatprep.subr.bf16.mxu1 %v6791_v0 }
0x1b0a   :  { %6015 = vmatpush3.bf16.msra.mxu1 %v6328_v21 }
0x1b0b   :  { %6026 = vmatprep.subr.bf16.mxu1 %v6791_v0 }
0x1b0d   :  { %6017 = vmatmul.mubr.msk.bf16.vlgmr.msra.gmra.mxu1 %vm407_vm1, %v7483_v49 }
0x1b0e   :  { %6028 = vmatprep.mubr.msk.bf16.mxu1 %vm6792_vm0, %v6791_v0 }
0x1bb5   :  { %v2965_v22 = vpop.f32.mrf.mxu1 }
0x1bb6   :  { %v2971_v24 = vsel %vm632_vm3, %v2965_v22, -inf }
0x1bb7   :  { %2972 = vmax.xlane.f32.xlu0 %v2971_v24  ;;  %v5976_v48 = vpop.f32.mrf.mxu1 }
0x1bb9   :  { %v2968_v25 = vpop.f32.mrf.mxu1 }
0x1bbb   :  { %v5977_v26 = vpop.f32.mrf.mxu1 }
0x1bbd   :  { %v3073_v17 = vpop.f32.mrf.mxu1 }
0x1bbe   :  { %v3079_v27 = vsel %vm632_vm3, %v3073_v17, -inf }
0x1bbf   :  { %3080 = vmax.xlane.f32.xlu1 %v3079_v27  ;;  %v5988_v28 = vpop.f32.mrf.mxu1 }
0x1bc1   :  { %v3076_v29 = vpop.f32.mrf.mxu1 }
0x1bc3   :  { %v5989_v30 = vpop.f32.mrf.mxu1 }
0x1bc5   :  { %v7535_v33 = vpop.f32.mrf.mxu1 }
0x1bc6   :  { %v3198_v26 = vadd.f32 %v7538_v35, %v7535_v33 }
0x1bc7   :  { %v6002_v34 = vpop.f32.mrf.mxu1 }
0x1bc9   :  { %v3200_v36 = vpop.f32.mrf.mxu1 }
0x1bca   :  { %v7541_v37 = vadd.f32 %v7538_v35, %v3200_v36 }
0x1bcb   :  { %v6003_v38 = vpop.f32.mrf.mxu1 }
0x1bcd   :  { %v3329_v40 = vpop.f32.mrf.mxu1 }
0x1bce   :  { %v3330_v32 = vadd.f32 %v5416_v39, %v3329_v40  ;;  %v6332_v40 = vld [vmem:[%s7922_s5 + $0x8] sm:$0xff]  }
0x1bcf   :  { %v6018_v41 = vpop.f32.mrf.mxu1 }
0x1bd0   :  { %v3341_v42 = vpack.c.bf16 %v3330_v32, %v3330_v32 }
0x1bd1   :  { %v3332_v43 = vpop.f32.mrf.mxu1 }
0x1bd2   :  { %v3404_v5 = vsel %vm648_vm4, %v3341_v42, 0  ;;  %v7545_v44 = vadd.f32 %v5416_v39, %v3332_v43  ;;  %v7583_v43 = vld [vmem:[%s7922_s5] sm:$0xff]  }
0x1bd3   :  { %v6019_v47 = vpop.f32.mrf.mxu1  ;;  %6027 = vmatpush3.bf16.msra.mxu1 %v3404_v5 }
0x1bd4   :  { %6038 = vmatprep.subr.bf16.mxu1 %v6791_v0  ;;  %v3547_v47 = vpack.c.bf16 %v7545_v44, %v7545_v44 }
0x1c40   :  { %v2973_v50 = vpop.xlane.xlu0 %2972 }
0x1c41   :  { %v2974_v7 = vsub.f32 %v2965_v22, %v2973_v50 }
0x1c43   :  { %v2975_v51 = vmul.f32 1.442695, %v2974_v7  ;;  %v3610_v7 = vsel %vm648_vm4, %v3547_v47, 0 }
0x1c45   :  { %6397 = vpow2.f32 %v2975_v51 }
0x1c48   :  { %v3081_v9 = vpop.xlane.xlu1 %3080 }
0x1c49   :  { %v3082_v52 = vsub.f32 %v3073_v17, %v3081_v9  ;;  %v3339_v17 = vpack.c.bf16 %v3198_v26, %v3198_v26 }
0x1c4b   :  { %v3083_v53 = vmul.f32 1.442695, %v3082_v52 }
0x1c4d   :  { %6399 = vpow2.f32 %v3083_v53 }
0x1c52   :  { %v6398_v54 = vpop.eup %6397 }
0x1c53   :  { %v2977_v55 = vsel %vm632_vm3, %v6398_v54, 0.0 }
0x1c54   :  { %2978 = vadd.xlane.f32.xlu0 %v2977_v55 }
0x1c5a   :  { %v6400_v56 = vpop.eup %6399 }
0x1c5b   :  { %v3085_v23 = vsel %vm632_vm3, %v6400_v56, 0.0 }
0x1c5c   :  { %3086 = vadd.xlane.f32.xlu1 %v3085_v23  ;;  %v3545_v23 = vpack.c.bf16 %v7541_v37, %v7541_v37 }
0x1cdd   :  { %v2979_v57 = vpop.xlane.xlu0 %2978 }
0x1cde   :  { %6401 = vrcp.f32 %v2979_v57 }
0x1ce5   :  { %v3087_v58 = vpop.xlane.xlu1 %3086 }
0x1ce6   :  { %6403 = vrcp.f32 %v3087_v58 }
0x1ceb   :  { %v6402_v59 = vpop.eup %6401 }
0x1cec   :  { %v2981_v61 = vmul.f32 %v6402_v59, %v6398_v54 }
0x1cee   :  { %v2982_v62 = vpack.c.bf16 %v2981_v61, %v2981_v61  ;;  %v5432_v61 = vld [vmem:[%s7923_s8] ss:$0 sm:$0xff] }
0x1cf0   :  { %5981 = vmatmul.mubr.msk.bf16.vlgmr.msra.gmra.mxu0 %vm632_vm3, %v2982_v62 }
0x1cf1   :  { %5991 = vmatpush3.bf16.msra.mxu0 %v3095_v63  ;;  %5992 = vmatprep.mubr.msk.bf16.mxu0 %vm6792_vm0, %v6791_v0 }
0x1cf2   :  { %6004 = vmatprep.subr.bf16.mxu0 %v6791_v0 }
0x1cf3   :  { %v6404_v1 = vpop.eup %6403 }
0x1cf4   :  { %v3089_v2 = vmul.f32 %v6404_v1, %v6400_v56 }
0x1cf6   :  { %v3090_v4 = vpack.c.bf16 %v3089_v2, %v3089_v2 }
0x1cf8   :  { %5993 = vmatmul.mubr.msk.bf16.vlgmr.msra.gmra.mxu0 %vm632_vm3, %v3090_v4 }
0x1cf9   :  { %6005 = vmatpush3.bf16.msra.mxu0 %v6329_v3  ;;  %6008 = vmatprep.mubr.msk.bf16.mxu0 %vm6792_vm0, %v6791_v0 }
0x1cfa   :  { %6006 = vmatprep.subr.bf16.mxu0 %v6791_v0 }
0x1cfd   :  { %6007 = vmatpush3.bf16.msra.mxu0 %v6330_v8 }
0x1cfe   :  { %6020 = vmatprep.subr.bf16.mxu0 %v6791_v0 }
0x1d00   :  { %6009 = vmatmul.mubr.msk.bf16.vlgmr.msra.gmra.mxu0 %vm407_vm1, %v7483_v49 }
0x1d01   :  { %6022 = vmatprep.mubr.msk.bf16.mxu0 %vm6792_vm0, %v6791_v0 }
0x1db0   :  { %v3023_v31 = vpop.f32.mrf.mxu0 }
0x1db1   :  { %v3029_v50 = vpack.c.bf16 %v3023_v31, %v3023_v31 }
0x1db2   :  { %v5982_v10 = vpop.f32.mrf.mxu0 }
0x1db4   :  { %v3026_v11 = vpop.f32.mrf.mxu0 }
0x1db6   :  { %v5983_v12 = vpop.f32.mrf.mxu0 }
0x1db8   :  { %v7568_v6 = vpop.f32.mrf.mxu0 }
0x1dba   :  { %v5994_v14 = vpop.f32.mrf.mxu0 }
0x1dbc   :  { %v3134_v15 = vpop.f32.mrf.mxu0 }
0x1dbe   :  { %v5995_v16 = vpop.f32.mrf.mxu0 }
0x1dc0   :  { %v3263_v19 = vpop.f32.mrf.mxu0 }
0x1dc1   :  { %v3264_v20 = vadd.f32 %v5407_v18, %v3263_v19 }
0x1dc2   :  { %v6010_v21 = vpop.f32.mrf.mxu0 }
0x1dc3   :  { %v3340_v22 = vpack.c.bf16 %v3264_v20, %v3264_v20 }
0x1dc4   :  { %v3266_v24 = vpop.f32.mrf.mxu0 }
0x1dc5   :  { %v3346_v49 = vsel %vm585_vm2, %v3340_v22, 0  ;;  %v3267_v48 = vadd.f32 %v5407_v18, %v3266_v24 }
0x1dc6   :  { %v6011_v25 = vpop.f32.mrf.mxu0  ;;  %6021 = vmatpush3.bf16.xpose.msra.mxu0 %v3346_v49 }
0x1dc7   :  { %6032 = vmatprep.subr.bf16.mxu0 %v6791_v0  ;;  %v3546_v51 = vpack.c.bf16 %v3267_v48, %v3267_v48 }
0x1dc9   :  { %v3552_v54 = vsel %vm585_vm2, %v3546_v51, 0 }
0x1dcd   :  { %6023 = vmatmul.mubr.msk.bf16.vlgmr.msra.gmra.mxu0 %vm585_vm2, %v3339_v17 }
0x1dce   :  { %6034 = vmatprep.mubr.msk.bf16.mxu0 %vm6792_vm0, %v6791_v0  ;;  %6033 = vmatpush3.bf16.msra.mxu0 %v6332_v40 }
0x1dcf   :  { %6044 = vmatprep.subr.bf16.mxu0 %v6791_v0 }
0x1e8d   :  { %v3382_v27 = vpop.f32.mrf.mxu0 }
0x1e8e   :  { %v3388_v28 = vsel %vm632_vm3, %v3382_v27, -inf }
0x1e8f   :  { %3389 = vmax.xlane.f32.xlu0 %v3388_v28  ;;  %v6024_v29 = vpop.f32.mrf.mxu0 }
0x1e91   :  { %v3385_v30 = vpop.f32.mrf.mxu0 }
0x1e93   :  { %v6025_v34 = vpop.f32.mrf.mxu0 }
0x1f18   :  { %v3390_v36 = vpop.xlane.xlu0 %3389 }
0x1f19   :  { %v3391_v38 = vsub.f32 %v3382_v27, %v3390_v36  ;;  %v3137_v27 = vpack.c.bf16 %v7568_v6, %v7568_v6 }
0x1f1b   :  { %v3392_v33 = vmul.f32 1.442695, %v3391_v38 }
0x1f1d   :  { %6405 = vpow2.f32 %v3392_v33 }
0x1f2a   :  { %v6406_v35 = vpop.eup %6405 }
0x1f2b   :  { %v3394_v39 = vsel %vm632_vm3, %v6406_v35, 0.0 }
0x1f2c   :  { %3395 = vadd.xlane.f32.xlu1 %v3394_v39 }
0x1fb5   :  { %v3396_v32 = vpop.xlane.xlu1 %3395 }
0x1fb6   :  { %6407 = vrcp.f32 %v3396_v32 }
0x1fc3   :  { %v6408_v41 = vpop.eup %6407 }
0x1fc4   :  { %v3398_v42 = vmul.f32 %v6408_v41, %v6406_v35 }
0x1fc6   :  { %v3399_v5 = vpack.c.bf16 %v3398_v42, %v3398_v42 }
0x1fc8   :  { %6029 = vmatmul.mubr.msk.bf16.vlgmr.msra.gmra.mxu1 %vm632_vm3, %v3399_v5 }
0x1fc9   :  { %6039 = vmatpush3.bf16.msra.mxu1 %v7583_v43  ;;  %6040 = vmatprep.mubr.msk.bf16.mxu1 %vm6792_vm0, %v6791_v0 }
0x1fca   :  { %6050 = vmatprep.subr.bf16.mxu1 %v6791_v0 }
0x1fd0   :  { %6041 = vmatmul.mubr.msk.bf16.vlgmr.msra.gmra.mxu1 %vm585_vm2, %v3029_v50 }
0x1fd1   :  { %6051 = vmatpush3.bf16.msra.mxu1 %v3610_v7  ;;  %6052 = vmatprep.mubr.msk.bf16.mxu1 %vm6792_vm0, %v6791_v0 }
0x1fd2   :  { %6062 = vmatprep.subr.bf16.mxu1 %v6791_v0 }
0x2088   :  { %v3440_v9 = vpop.f32.mrf.mxu1 }
0x2089   :  { %v3446_v52 = vpack.c.bf16 %v3440_v9, %v3440_v9 }
0x208a   :  { %v6030_v53 = vpop.f32.mrf.mxu1 }
0x208b   :  { %6035 = vmatmul.mubr.msk.bf16.vlgmr.msra.gmra.mxu0 %vm585_vm2, %v3446_v52 }
0x208c   :  { %6045 = vmatpush3.bf16.xpose.msra.mxu0 %v3552_v54  ;;  %v3443_v44 = vpop.f32.mrf.mxu1  ;;  %6046 = vmatprep.mubr.msk.bf16.mxu0 %vm6792_vm0, %v6791_v0  ;;  %v6333_v54 = vld [vmem:[%s7924_s13 + $0x8] sm:$0xff]  }
0x208d   :  { %6056 = vmatprep.subr.bf16.mxu0 %v6791_v0  ;;  %v6334_v44 = vld [vmem:[%s7924_s13] sm:$0xff]  }
0x208e   :  { %v6031_v55 = vpop.f32.mrf.mxu1 }
0x208f   :  { %v6336_v55 = vld [vmem:[%s7925_s21] sm:$0xff]  }
0x2090   :  { %v3539_v56 = vpop.f32.mrf.mxu1 }
0x2092   :  { %v6042_v57 = vpop.f32.mrf.mxu1 }
0x2093   :  { %6047 = vmatmul.mubr.msk.bf16.vlgmr.msra.gmra.mxu0 %vm585_vm2, %v3545_v23 }
0x2094   :  { %v3542_v58 = vpop.f32.mrf.mxu1  ;;  %6057 = vmatpush3.bf16.msra.mxu0 %v6332_v40  ;;  %6058 = vmatprep.mubr.msk.bf16.mxu0 %vm6792_vm0, %v6791_v0 }
0x2095   :  { %6068 = vmatprep.subr.bf16.mxu0 %v6791_v0 }
0x2096   :  { %v6043_v59 = vpop.f32.mrf.mxu1 }
0x214b   :  { %v3490_v60 = vpop.f32.mrf.mxu0 }
0x214c   :  { %v3540_v62 = vadd.f32 %v3539_v56, %v3490_v60 }
0x214d   :  { %v6036_v63 = vpop.f32.mrf.mxu0 }
0x214e   :  { %v3746_v1 = vadd.f32 %v5432_v61, %v3540_v62  ;;  %v5433_v63 = vld [vmem:[#allocation3] ss:$0 sm:$0xff] }
0x214f   :  { %v3493_v2 = vpop.f32.mrf.mxu0 }
0x2150   :  { %3747 = vst.msk [vmem:[#allocation2] sm:$0xff] %vm407_vm1, %v3746_v1 }
0x2151   :  { %v6037_v37 = vpop.f32.mrf.mxu0 }
0x2153   :  { %v3588_v3 = vpop.f32.mrf.mxu0 }
0x2154   :  { %v3594_v4 = vsel %vm632_vm3, %v3588_v3, -inf }
0x2155   :  { %3595 = vmax.xlane.f32.xlu0 %v3594_v4  ;;  %v6048_v8 = vpop.f32.mrf.mxu0 }
0x2157   :  { %v3591_v31 = vpop.f32.mrf.mxu0  ;;  %v3750_v10 = vld [vmem:[#allocation2] sm:$0xff] }
0x2158   :  { %v3752_v11 = vadd.f32 %v3750_v10, %v7476_v45 }
0x2159   :  { %v6049_v12 = vpop.f32.mrf.mxu0 }
0x215a   :  { %v3756_v14 = vsel %vm407_vm1, %v3752_v11, 0.0 }
0x215b   :  { %3757 = vadd.xlane.f32.xlu0 %v3756_v14 }
0x21de   :  { %v3596_v15 = vpop.xlane.xlu0 %3595 }
0x21df   :  { %v3597_v16 = vsub.f32 %v3588_v3, %v3596_v15  ;;  %v5434_v3 = vld [vmem:[#allocation6] ss:$0 sm:$0xff] }
0x21e1   :  { %v3598_v18 = vmul.f32 1.442695, %v3597_v16 }
0x21e3   :  { %6409 = vpow2.f32 %v3598_v18 }
0x21e4   :  { %v3758_v19 = vpop.xlane.xlu0 %3757 }
0x21e5   :  { %v3762_v20 = vmul.f32 0.03125, %v3758_v19 }
0x21e7   :  { %v7613_v21 = vsub.f32 %v3752_v11, %v3762_v20  ;;  %v5439_v11 = vld [vmem:[%s7926_s25] ss:$0 sm:$0xff] }
0x21e9   :  { %v3766_v22 = vmul.f32 %v7613_v21, %v7613_v21 }
0x21eb   :  { %v3768_v24 = vsel %vm407_vm1, %v3766_v22, 0.0  ;;  %v5435_v22 = vld [vmem:[%s7927_s14] ss:$0 sm:$0xff] }
0x21ec   :  { %3769 = vadd.xlane.f32.xlu0 %v3768_v24 }
0x21f0   :  { %v6410_v49 = vpop.eup %6409 }
0x21f1   :  { %v3600_v45 = vsel %vm632_vm3, %v6410_v49, 0.0 }
0x21f2   :  { %3601 = vadd.xlane.f32.xlu1 %v3600_v45 }
0x2275   :  { %v3770_v56 = vpop.xlane.xlu0 %3769 }
0x2276   :  { %v3774_v23 = vmul.f32 0.03125, %v3770_v56 }
0x2278   :  { %v3776_v57 = vadd.f32 1e-05, %v3774_v23 }
0x227b   :  { %v3602_v48 = vpop.xlane.xlu1 %3601 }
0x227c   :  { %6411 = vrcp.f32 %v3602_v48 }
0x227d   :  { %6413 = vrsqrt.f32 %v3776_v57 }
0x2289   :  { %v6412_v25 = vpop.eup %6411 }
0x228a   :  { %v3604_v26 = vmul.f32 %v6412_v25, %v6410_v49 }
0x228c   :  { %v3605_v17 = vpack.c.bf16 %v3604_v26, %v3604_v26 }
0x228e   :  { %6053 = vmatmul.mubr.msk.bf16.vlgmr.msra.gmra.mxu1 %vm632_vm3, %v3605_v17 }
0x228f   :  { %6063 = vmatpush3.bf16.msra.mxu1 %v7583_v43  ;;  %6064 = vmatprep.mubr.msk.bf16.mxu1 %vm6792_vm0, %v6791_v0 }
0x2290   :  { %6076 = vmatprep.subr.bf16.mxu1 %v6791_v0 }
0x2296   :  { %6065 = vmatmul.mubr.msk.bf16.vlgmr.msra.gmra.mxu1 %vm585_vm2, %v3137_v27 }
0x2297   :  { %6080 = vmatprep.mubr.msk.bf16.mxu1 %vm6792_vm0, %v6791_v0  ;;  %6077 = vmatpush3.bf16.msra.mxu1 %v6333_v54 }
0x2298   :  { %6078 = vmatprep.subr.bf16.mxu1 %v6791_v0 }
0x229b   :  { %6079 = vmatpush3.bf16.msra.mxu1 %v6334_v44 }
0x229c   :  { %6092 = vmatprep.subr.bf16.mxu1 %v6791_v0 }
0x229e   :  { %6081 = vmatmul.mubr.msk.bf16.vlgmr.msra.gmra.mxu1 %vm407_vm1, %v7282_v13 }
0x229f   :  { %6094 = vmatprep.mubr.msk.bf16.mxu1 %vm6792_vm0, %v6791_v0 }
0x234e   :  { %v3646_v28 = vpop.f32.mrf.mxu1 }
0x234f   :  { %v3652_v29 = vpack.c.bf16 %v3646_v28, %v3646_v28 }
0x2350   :  { %v6054_v30 = vpop.f32.mrf.mxu1 }
0x2351   :  { %6059 = vmatmul.mubr.msk.bf16.vlgmr.msra.gmra.mxu0 %vm585_vm2, %v3652_v29  ;;  %v6337_v29 = vld [vmem:[%s7925_s21 + $0x18] sm:$0xff]  }
0x2352   :  { %v3649_v34 = vpop.f32.mrf.mxu1  ;;  %6072 = vmatprep.mubr.msk.bf16.mxu0 %vm6792_vm0, %v6791_v0 }
0x2353   :  { %v6338_v34 = vld [vmem:[%s7925_s21 + $0x10] sm:$0xff]  }
0x2354   :  { %v6055_v36 = vpop.f32.mrf.mxu1 }
0x2355   :  { %v6339_v36 = vld [vmem:[%s7928_s2 + $0x8] sm:$0xff]  }
0x2356   :  { %v3733_v38 = vpop.f32.mrf.mxu1 }
0x2358   :  { %v6066_v33 = vpop.f32.mrf.mxu1 }
0x235a   :  { %v3736_v35 = vpop.f32.mrf.mxu1 }
0x235c   :  { %v6067_v39 = vpop.f32.mrf.mxu1 }
0x235e   :  { %v3923_v12 = vpop.f32.mrf.mxu1 }
0x235f   :  { %v3924_v14 = vadd.f32 %v5439_v11, %v3923_v12 }
0x2360   :  { %v6082_v15 = vpop.f32.mrf.mxu1 }
0x2361   :  { %v3997_v16 = vpack.c.bf16 %v3924_v14, %v3924_v14 }
0x2362   :  { %v3926_v18 = vpop.f32.mrf.mxu1 }
0x2363   :  { %v4003_v19 = vsel %vm585_vm2, %v3997_v16, 0  ;;  %v3927_v20 = vadd.f32 %v5439_v11, %v3926_v18 }
0x2364   :  { %6093 = vmatpush3.bf16.xpose.msra.mxu1 %v4003_v19 }
0x2365   :  { %6104 = vmatprep.subr.bf16.mxu1 %v6791_v0  ;;  %v4105_v49 = vpack.c.bf16 %v3927_v20, %v3927_v20 }
0x2367   :  { %v4111_v17 = vsel %vm585_vm2, %v4105_v49, 0 }
0x2411   :  { %v3690_v6 = vpop.f32.mrf.mxu0 }
0x2412   :  { %v3734_v40 = vadd.f32 %v3733_v38, %v3690_v6  ;;  %v6340_v38 = vld [vmem:[%s7928_s2] sm:$0xff]  }
0x2413   :  { %v6060_v32 = vpop.f32.mrf.mxu0 }
0x2414   :  { %v3748_v41 = vadd.f32 %v5432_v61, %v3734_v40  ;;  %v6414_v61 = vpop.eup %6413 }
0x2415   :  { %v3693_v42 = vpop.f32.mrf.mxu0  ;;  %v3780_v62 = vmul.f32 %v6414_v61, %v7613_v21  ;;  %v6083_v21 = vpop.f32.mrf.mxu1 }
0x2416   :  { %3749 = vst.msk [vmem:[#allocation2 + $0x8] sm:$0xff] %vm407_vm1, %v3748_v41  ;;  %v6341_v21 = vld [vmem:[%s7924_s13 + $0x18] sm:$0xff]  }
0x2417   :  { %v6061_v43 = vpop.f32.mrf.mxu0  ;;  %v3788_v2 = vmul.f32 %v5433_v63, %v3780_v62 }
0x2419   :  { %v7649_v8 = vadd.f32 %v5434_v3, %v3788_v2 }
0x241d   :  { %v3751_v5 = vld [vmem:[#allocation2 + $0x8] sm:$0xff] }
0x241e   :  { %v3753_v47 = vadd.f32 %v3751_v5, %v7478_v46  ;;  %v6335_v46 = vld [vmem:[%s7925_s21 + $0x8] sm:$0xff]  }
0x241f   :  { %6069 = vmatpush3.bf16.msra.mxu0 %v6335_v46 }
0x2420   :  { %v3759_v50 = vsel %vm407_vm1, %v3753_v47, 0.0  ;;  %6070 = vmatprep.subr.bf16.mxu0 %v6791_v0 }
0x2421   :  { %3760 = vadd.xlane.f32.xlu1 %v3759_v50 }
0x2423   :  { %6071 = vmatpush3.bf16.msra.mxu0 %v6336_v55 }
0x2424   :  { %6084 = vmatprep.subr.bf16.mxu0 %v6791_v0 }
0x24aa   :  { %v3761_v7 = vpop.xlane.xlu1 %3760 }
0x24ab   :  { %v3763_v51 = vmul.f32 0.03125, %v3761_v7  ;;  %v7690_v7 = vld [vmem:[%s7927_s14 + $0x1] ss:$0 sm:$0xff] }
0x24ad   :  { %v3765_v9 = vsub.f32 %v3753_v47, %v3763_v51 }
0x24af   :  { %v3767_v52 = vmul.f32 %v3765_v9, %v3765_v9 }
0x24b1   :  { %v3771_v53 = vsel %vm407_vm1, %v3767_v52, 0.0 }
0x24b2   :  { %3772 = vadd.xlane.f32.xlu1 %v3771_v53 }
0x253b   :  { %v3773_v58 = vpop.xlane.xlu1 %3772 }
0x253c   :  { %v3775_v59 = vmul.f32 0.03125, %v3773_v58 }
0x253e   :  { %v3777_v60 = vadd.f32 1e-05, %v3775_v59 }
0x2540   :  { %6415 = vrsqrt.f32 %v3777_v60 }
0x254d   :  { %v6416_v1 = vpop.eup %6415 }
0x254e   :  { %v3781_v37 = vmul.f32 %v6416_v1, %v3765_v9 }
0x2550   :  { %v3789_v4 = vmul.f32 %v5433_v63, %v3781_v37  ;;  %v5443_v63 = vld [vmem:[%s7929_s7] ss:$0 sm:$0xff] }
0x2552   :  { %v7651_v31 = vadd.f32 %v5434_v3, %v3789_v4 }
0x2554   :  { %v3798_v10 = vpack.c.bf16 %v7651_v31, %v7649_v8 }
0x2556   :  { %6073 = vmatmul.mubr.msk.bf16.vlgmr.msra.gmra.mxu0 %vm407_vm1, %v3798_v10 }
0x2557   :  { %6088 = vmatprep.mubr.msk.bf16.mxu0 %vm6792_vm0, %v6791_v0  ;;  %6085 = vmatpush3.bf16.msra.mxu0 %v6339_v36 }
0x2558   :  { %6086 = vmatprep.subr.bf16.mxu0 %v6791_v0 }
0x255b   :  { %6087 = vmatpush3.bf16.msra.mxu0 %v6340_v38 }
0x255c   :  { %6098 = vmatprep.subr.bf16.mxu0 %v6791_v0 }
0x255e   :  { %6089 = vmatmul.mubr.msk.bf16.vlgmr.msra.gmra.mxu0 %vm407_vm1, %v7282_v13 }
0x255f   :  { %6100 = vmatprep.mubr.msk.bf16.mxu0 %vm6792_vm0, %v6791_v0 }
0x2616   :  { %v3859_v24 = vpop.f32.mrf.mxu0 }
0x2617   :  { %v3860_v45 = vadd.f32 %v5435_v22, %v3859_v24  ;;  %v6342_v24 = vld [vmem:[%s7924_s13 + $0x10] sm:$0xff]  }
0x2618   :  { %v6074_v48 = vpop.f32.mrf.mxu0 }
0x2619   :  { %v3996_v25 = vpack.c.bf16 %v3860_v45, %v3860_v45 }
0x261a   :  { %v3862_v26 = vpop.f32.mrf.mxu0 }
0x261b   :  { %6095 = vmatmul.mubr.msk.bf16.vlgmr.msra.gmra.mxu1 %vm585_vm2, %v3996_v25  ;;  %v3863_v28 = vadd.f32 %v5435_v22, %v3862_v26 }
0x261c   :  { %6105 = vmatpush3.bf16.xpose.msra.mxu1 %v4111_v17  ;;  %v6075_v27 = vpop.f32.mrf.mxu0  ;;  %6106 = vmatprep.mubr.msk.bf16.mxu1 %vm6792_vm0, %v6791_v0 }
0x261d   :  { %6116 = vmatprep.subr.bf16.mxu1 %v6791_v0  ;;  %v4104_v30 = vpack.c.bf16 %v3863_v28, %v3863_v28 }
0x261e   :  { %v3987_v60 = vpop.f32.mrf.mxu0 }
0x261f   :  { %v3988_v1 = vadd.f32 %v5443_v63, %v3987_v60  ;;  %v6346_v60 = vld [vmem:[%s7930_s10 + $0x8] sm:$0xff]  }
0x2620   :  { %v6090_v61 = vpop.f32.mrf.mxu0 }
0x2621   :  { %v3998_v3 = vpack.c.bf16 %v3988_v1, %v3988_v1  ;;  %v7746_v1 = vld [vmem:[%s7930_s10] sm:$0xff]  }
0x2622   :  { %v3990_v62 = vpop.f32.mrf.mxu0 }
0x2623   :  { %6107 = vmatmul.mubr.msk.bf16.vlgmr.msra.gmra.mxu1 %vm585_vm2, %v4104_v30  ;;  %v3991_v37 = vadd.f32 %v5443_v63, %v3990_v62  ;;  %v4061_v4 = vsel %vm648_vm4, %v3998_v3, 0 }
0x2624   :  { %6117 = vmatpush3.bf16.msra.mxu1 %v6337_v29  ;;  %6120 = vmatprep.mubr.msk.bf16.mxu1 %vm6792_vm0, %v6791_v0  ;;  %v6091_v2 = vpop.f32.mrf.mxu0  ;;  %v5465_v29 = vld [vmem:[%s7926_s25 + $0x1] ss:$0 sm:$0xff] }
0x2625   :  { %6118 = vmatprep.subr.bf16.mxu1 %v6791_v0  ;;  %6099 = vmatpush3.bf16.msra.mxu0 %v4061_v4  ;;  %v4106_v15 = vpack.c.bf16 %v3991_v37, %v3991_v37 }
0x2626   :  { %6110 = vmatprep.subr.bf16.mxu0 %v6791_v0 }
0x2627   :  { %v4169_v18 = vsel %vm648_vm4, %v4106_v15, 0 }
0x2628   :  { %6119 = vmatpush3.bf16.msra.mxu1 %v6338_v34 }
0x2629   :  { %6132 = vmatprep.subr.bf16.mxu1 %v6791_v0 }
0x262b   :  { %6121 = vmatmul.mubr.msk.bf16.vlgmr.msra.gmra.mxu1 %vm407_vm1, %v3798_v10 }
0x262c   :  { %6136 = vmatprep.mubr.msk.bf16.mxu1 %vm6792_vm0, %v6791_v0 }
0x26db   :  { %v4039_v33 = vpop.f32.mrf.mxu1 }
0x26dc   :  { %v4045_v35 = vsel %vm632_vm3, %v4039_v33, -inf }
0x26dd   :  { %4046 = vmax.xlane.f32.xlu0 %v4045_v35  ;;  %v6096_v39 = vpop.f32.mrf.mxu1 }
0x26df   :  { %v4042_v6 = vpop.f32.mrf.mxu1 }
0x26e1   :  { %v6097_v40 = vpop.f32.mrf.mxu1 }
0x26e3   :  { %v4147_v32 = vpop.f32.mrf.mxu1 }
0x26e4   :  { %v4153_v41 = vsel %vm632_vm3, %v4147_v32, -inf }
0x26e5   :  { %4154 = vmax.xlane.f32.xlu1 %v4153_v41  ;;  %v6108_v42 = vpop.f32.mrf.mxu1  ;;  %v6343_v41 = vld [vmem:[%s7928_s2 + $0x18] sm:$0xff]  }
0x26e6   :  { %6133 = vmatpush3.bf16.msra.mxu1 %v6343_v41  ;;  %v6344_v42 = vld [vmem:[%s7928_s2 + $0x10] sm:$0xff]  }
0x26e7   :  { %v4150_v43 = vpop.f32.mrf.mxu1  ;;  %6134 = vmatprep.subr.bf16.mxu1 %v6791_v0 }
0x26e9   :  { %v6109_v5 = vpop.f32.mrf.mxu1 }
0x26ea   :  { %6135 = vmatpush3.bf16.msra.mxu1 %v6344_v42 }
0x26eb   :  { %v7687_v47 = vpop.f32.mrf.mxu1  ;;  %6146 = vmatprep.subr.bf16.mxu1 %v6791_v0 }
0x26ec   :  { %v4272_v40 = vadd.f32 %v7690_v7, %v7687_v47 }
0x26ed   :  { %v6122_v50 = vpop.f32.mrf.mxu1  ;;  %6137 = vmatmul.mubr.msk.bf16.vlgmr.msra.gmra.mxu1 %vm407_vm1, %v7282_v13 }
0x26ee   :  { %6148 = vmatprep.mubr.msk.bf16.mxu1 %vm6792_vm0, %v6791_v0 }
0x26ef   :  { %v4274_v51 = vpop.f32.mrf.mxu1 }
0x26f0   :  { %v7693_v9 = vadd.f32 %v7690_v7, %v4274_v51  ;;  %v5474_v51 = vld [vmem:[%s7929_s7 + $0x1] ss:$0 sm:$0xff] }
0x26f1   :  { %v6123_v52 = vpop.f32.mrf.mxu1 }
0x2766   :  { %v4047_v53 = vpop.xlane.xlu0 %4046 }
0x2767   :  { %v4048_v54 = vsub.f32 %v4039_v33, %v4047_v53 }
0x2769   :  { %v4049_v44 = vmul.f32 1.442695, %v4048_v54 }
0x276b   :  { %6417 = vpow2.f32 %v4049_v44 }
0x276e   :  { %v4155_v46 = vpop.xlane.xlu1 %4154 }
0x276f   :  { %v4156_v55 = vsub.f32 %v4147_v32, %v4155_v46  ;;  %v4413_v32 = vpack.c.bf16 %v4272_v40, %v4272_v40 }
0x2771   :  { %v4157_v56 = vmul.f32 1.442695, %v4156_v55 }
0x2773   :  { %6419 = vpow2.f32 %v4157_v56 }
0x2778   :  { %v6418_v23 = vpop.eup %6417 }
0x2779   :  { %v4051_v57 = vsel %vm632_vm3, %v6418_v23, 0.0 }
0x277a   :  { %4052 = vadd.xlane.f32.xlu0 %v4051_v57 }
0x2780   :  { %v6420_v58 = vpop.eup %6419 }
0x2781   :  { %v4159_v59 = vsel %vm632_vm3, %v6420_v58, 0.0 }
0x2782   :  { %4160 = vadd.xlane.f32.xlu1 %v4159_v59 }
0x27ad   :  { %v4403_v52 = vpop.f32.mrf.mxu1 }
0x27ae   :  { %v4404_v53 = vadd.f32 %v5474_v51, %v4403_v52 }
0x27af   :  { %v6138_v54 = vpop.f32.mrf.mxu1 }
0x27b0   :  { %v4415_v44 = vpack.c.bf16 %v4404_v53, %v4404_v53 }
0x27b2   :  { %v4478_v46 = vsel %vm648_vm4, %v4415_v44, 0 }
0x27b3   :  { %6147 = vmatpush3.bf16.msra.mxu1 %v4478_v46 }
0x27b4   :  { %6158 = vmatprep.subr.bf16.mxu1 %v6791_v0 }
0x2803   :  { %v4053_v10 = vpop.xlane.xlu0 %4052 }
0x2804   :  { %6421 = vrcp.f32 %v4053_v10 }
0x280b   :  { %v4161_v11 = vpop.xlane.xlu1 %4160 }
0x280c   :  { %6423 = vrcp.f32 %v4161_v11 }
0x2811   :  { %v6422_v12 = vpop.eup %6421 }
0x2812   :  { %v4055_v14 = vmul.f32 %v6422_v12, %v6418_v23 }
0x2814   :  { %v4056_v16 = vpack.c.bf16 %v4055_v14, %v4055_v14 }
0x2816   :  { %6101 = vmatmul.mubr.msk.bf16.vlgmr.msra.gmra.mxu0 %vm632_vm3, %v4056_v16 }
0x2817   :  { %6111 = vmatpush3.bf16.msra.mxu0 %v4169_v18  ;;  %6112 = vmatprep.mubr.msk.bf16.mxu0 %vm6792_vm0, %v6791_v0 }
0x2818   :  { %6124 = vmatprep.subr.bf16.mxu0 %v6791_v0 }
0x2819   :  { %v6424_v19 = vpop.eup %6423 }
0x281a   :  { %v4163_v20 = vmul.f32 %v6424_v19, %v6420_v58  ;;  %v4406_v58 = vpop.f32.mrf.mxu1 }
0x281b   :  { %v4407_v37 = vadd.f32 %v5474_v51, %v4406_v58 }
0x281c   :  { %v4164_v22 = vpack.c.bf16 %v4163_v20, %v4163_v20  ;;  %v6139_v59 = vpop.f32.mrf.mxu1 }
0x281d   :  { %v4621_v3 = vpack.c.bf16 %v4407_v37, %v4407_v37 }
0x281e   :  { %6113 = vmatmul.mubr.msk.bf16.vlgmr.msra.gmra.mxu0 %vm632_vm3, %v4164_v22 }
0x281f   :  { %6125 = vmatpush3.bf16.msra.mxu0 %v6341_v21  ;;  %6128 = vmatprep.mubr.msk.bf16.mxu0 %vm6792_vm0, %v6791_v0  ;;  %v4684_v10 = vsel %vm648_vm4, %v4621_v3, 0  ;;  %v4619_v21 = vpack.c.bf16 %v7693_v9, %v7693_v9 }
0x2820   :  { %6126 = vmatprep.subr.bf16.mxu0 %v6791_v0 }
0x2823   :  { %6127 = vmatpush3.bf16.msra.mxu0 %v6342_v24 }
0x2824   :  { %6140 = vmatprep.subr.bf16.mxu0 %v6791_v0 }
0x2826   :  { %6129 = vmatmul.mubr.msk.bf16.vlgmr.msra.gmra.mxu0 %vm407_vm1, %v7282_v13 }
0x2827   :  { %6142 = vmatprep.mubr.msk.bf16.mxu0 %vm6792_vm0, %v6791_v0 }
0x28d6   :  { %v7716_v49 = vpop.f32.mrf.mxu0 }
0x28d7   :  { %v4103_v4 = vpack.c.bf16 %v7716_v49, %v7716_v49 }
0x28d8   :  { %v6102_v45 = vpop.f32.mrf.mxu0 }
0x28da   :  { %v4100_v48 = vpop.f32.mrf.mxu0 }
0x28db   :  { %v5490_v48 = vld [vmem:[#allocation8] ss:$0 sm:$0xff] }
0x28dc   :  { %v6103_v25 = vpop.f32.mrf.mxu0 }
0x28de   :  { %v7718_v26 = vpop.f32.mrf.mxu0 }
0x28df   :  { %v4211_v54 = vpack.c.bf16 %v7718_v26, %v7718_v26 }
0x28e0   :  { %v6114_v17 = vpop.f32.mrf.mxu0 }
0x28e2   :  { %v4208_v27 = vpop.f32.mrf.mxu0 }
0x28e4   :  { %v6115_v28 = vpop.f32.mrf.mxu0 }
0x28e6   :  { %v4337_v30 = vpop.f32.mrf.mxu0 }
0x28e7   :  { %v4338_v34 = vadd.f32 %v5465_v29, %v4337_v30 }
0x28e8   :  { %v6130_v36 = vpop.f32.mrf.mxu0 }
0x28e9   :  { %v4414_v38 = vpack.c.bf16 %v4338_v34, %v4338_v34 }
0x28ea   :  { %v4340_v33 = vpop.f32.mrf.mxu0 }
0x28eb   :  { %v4420_v35 = vsel %vm585_vm2, %v4414_v38, 0  ;;  %v7722_v39 = vadd.f32 %v5465_v29, %v4340_v33 }
0x28ec   :  { %v6131_v6 = vpop.f32.mrf.mxu0  ;;  %6141 = vmatpush3.bf16.xpose.msra.mxu0 %v4420_v35 }
0x28ed   :  { %6152 = vmatprep.subr.bf16.mxu0 %v6791_v0  ;;  %v4620_v11 = vpack.c.bf16 %v7722_v39, %v7722_v39 }
0x28ef   :  { %v4626_v16 = vsel %vm585_vm2, %v4620_v11, 0 }
0x28f3   :  { %6143 = vmatmul.mubr.msk.bf16.vlgmr.msra.gmra.mxu0 %vm585_vm2, %v4413_v32 }
0x28f4   :  { %6154 = vmatprep.mubr.msk.bf16.mxu0 %vm6792_vm0, %v6791_v0  ;;  %6153 = vmatpush3.bf16.msra.mxu0 %v6346_v60 }
0x28f5   :  { %6164 = vmatprep.subr.bf16.mxu0 %v6791_v0 }
0x29b3   :  { %v4456_v43 = vpop.f32.mrf.mxu0 }
0x29b4   :  { %v4462_v5 = vsel %vm632_vm3, %v4456_v43, -inf }
0x29b5   :  { %4463 = vmax.xlane.f32.xlu0 %v4462_v5  ;;  %v6144_v47 = vpop.f32.mrf.mxu0 }
0x29b7   :  { %v4459_v50 = vpop.f32.mrf.mxu0 }
0x29b9   :  { %v6145_v7 = vpop.f32.mrf.mxu0 }
0x2a3e   :  { %v4464_v13 = vpop.xlane.xlu0 %4463 }
0x2a3f   :  { %v4465_v55 = vsub.f32 %v4456_v43, %v4464_v13 }
0x2a41   :  { %v4466_v56 = vmul.f32 1.442695, %v4465_v55 }
0x2a43   :  { %6425 = vpow2.f32 %v4466_v56 }
0x2a50   :  { %v6426_v23 = vpop.eup %6425 }
0x2a51   :  { %v4468_v57 = vsel %vm632_vm3, %v6426_v23, 0.0 }
0x2a52   :  { %4469 = vadd.xlane.f32.xlu1 %v4468_v57 }
0x2adb   :  { %v4470_v61 = vpop.xlane.xlu1 %4469 }
0x2adc   :  { %6427 = vrcp.f32 %v4470_v61 }
0x2ae9   :  { %v6428_v62 = vpop.eup %6427 }
0x2aea   :  { %v4472_v63 = vmul.f32 %v6428_v62, %v6426_v23 }
0x2aec   :  { %v4473_v2 = vpack.c.bf16 %v4472_v63, %v4472_v63 }
0x2aee   :  { %6149 = vmatmul.mubr.msk.bf16.vlgmr.msra.gmra.mxu1 %vm632_vm3, %v4473_v2 }
0x2aef   :  { %6159 = vmatpush3.bf16.msra.mxu1 %v7746_v1  ;;  %6160 = vmatprep.mubr.msk.bf16.mxu1 %vm6792_vm0, %v6791_v0 }
0x2af0   :  { %6170 = vmatprep.subr.bf16.mxu1 %v6791_v0 }
0x2af6   :  { %6161 = vmatmul.mubr.msk.bf16.vlgmr.msra.gmra.mxu1 %vm585_vm2, %v4103_v4 }
0x2af7   :  { %6171 = vmatpush3.bf16.msra.mxu1 %v4684_v10  ;;  %6172 = vmatprep.mubr.msk.bf16.mxu1 %vm6792_vm0, %v6791_v0 }
0x2af8   :  { %6182 = vmatprep.subr.bf16.mxu1 %v6791_v0 }
0x2bae   :  { %v4514_v12 = vpop.f32.mrf.mxu1 }
0x2baf   :  { %v4520_v14 = vpack.c.bf16 %v4514_v12, %v4514_v12 }
0x2bb0   :  { %v6150_v15 = vpop.f32.mrf.mxu1 }
0x2bb1   :  { %6155 = vmatmul.mubr.msk.bf16.vlgmr.msra.gmra.mxu0 %vm585_vm2, %v4520_v14  ;;  %v6347_v15 = vld [vmem:[%s7931_s11 + $0x8] sm:$0xff]  }
0x2bb2   :  { %6165 = vmatpush3.bf16.xpose.msra.mxu0 %v4626_v16  ;;  %v4517_v18 = vpop.f32.mrf.mxu1  ;;  %6166 = vmatprep.mubr.msk.bf16.mxu0 %vm6792_vm0, %v6791_v0  ;;  %v6348_v16 = vld [vmem:[%s7931_s11] sm:$0xff]  }
0x2bb3   :  { %6176 = vmatprep.subr.bf16.mxu0 %v6791_v0 }
0x2bb4   :  { %v6151_v19 = vpop.f32.mrf.mxu1 }
0x2bb6   :  { %v4613_v20 = vpop.f32.mrf.mxu1 }
0x2bb8   :  { %v6162_v22 = vpop.f32.mrf.mxu1 }
0x2bb9   :  { %6167 = vmatmul.mubr.msk.bf16.vlgmr.msra.gmra.mxu0 %vm585_vm2, %v4619_v21 }
0x2bba   :  { %v4616_v24 = vpop.f32.mrf.mxu1  ;;  %6177 = vmatpush3.bf16.msra.mxu0 %v6346_v60  ;;  %6178 = vmatprep.mubr.msk.bf16.mxu0 %vm6792_vm0, %v6791_v0 }
0x2bbb   :  { %6188 = vmatprep.subr.bf16.mxu0 %v6791_v0 }
0x2bbc   :  { %v6163_v49 = vpop.f32.mrf.mxu1 }
0x2c71   :  { %v4564_v45 = vpop.f32.mrf.mxu0 }
0x2c72   :  { %v4614_v25 = vadd.f32 %v4613_v20, %v4564_v45  ;;  %v5491_v45 = vld [vmem:[#allocation9] ss:$0 sm:$0xff] }
0x2c73   :  { %v6156_v17 = vpop.f32.mrf.mxu0 }
0x2c74   :  { %v4820_v27 = vadd.f32 %v5490_v48, %v4614_v25 }
0x2c75   :  { %v4567_v28 = vpop.f32.mrf.mxu0 }
0x2c76   :  { %4821 = vst.msk [vmem:[#allocation2] sm:$0xff] %vm407_vm1, %v4820_v27  ;;  %v5492_v27 = vld [vmem:[#allocation11] ss:$0 sm:$0xff] }
0x2c77   :  { %v6157_v9 = vpop.f32.mrf.mxu0 }
0x2c79   :  { %v4662_v29 = vpop.f32.mrf.mxu0 }
0x2c7a   :  { %v4668_v30 = vsel %vm632_vm3, %v4662_v29, -inf }
0x2c7b   :  { %4669 = vmax.xlane.f32.xlu0 %v4668_v30  ;;  %v6168_v34 = vpop.f32.mrf.mxu0 }
0x2c7c   :  { %v6349_v34 = vld [vmem:[%s7932_s9 + $0x8] sm:$0xff]  }
0x2c7d   :  { %v4665_v36 = vpop.f32.mrf.mxu0  ;;  %v4824_v38 = vld [vmem:[#allocation2] sm:$0xff] }
0x2c7e   :  { %v4826_v33 = vadd.f32 %v4824_v38, %v7649_v8  ;;  %v6350_v36 = vld [vmem:[%s7932_s9] sm:$0xff]   ;;  %v5493_v38 = vld [vmem:[#allocation12] ss:$0 sm:$0xff] }
0x2c7f   :  { %v6169_v35 = vpop.f32.mrf.mxu0 }
0x2c80   :  { %v4830_v39 = vsel %vm407_vm1, %v4826_v33, 0.0 }
0x2c81   :  { %4831 = vadd.xlane.f32.xlu0 %v4830_v39 }
0x2d04   :  { %v4670_v6 = vpop.xlane.xlu0 %4669 }
0x2d05   :  { %v4671_v40 = vsub.f32 %v4662_v29, %v4670_v6 }
0x2d07   :  { %v4672_v32 = vmul.f32 1.442695, %v4671_v40 }
0x2d09   :  { %6429 = vpow2.f32 %v4672_v32 }
0x2d0a   :  { %v4832_v41 = vpop.xlane.xlu0 %4831 }
0x2d0b   :  { %v4836_v42 = vmul.f32 0.03125, %v4832_v41 }
0x2d0d   :  { %v4838_v43 = vsub.f32 %v4826_v33, %v4836_v42 }
0x2d0f   :  { %v4840_v5 = vmul.f32 %v4838_v43, %v4838_v43 }
0x2d11   :  { %v4842_v47 = vsel %vm407_vm1, %v4840_v5, 0.0  ;;  %v5497_v5 = vld [vmem:[#allocation14] ss:$0 sm:$0xff] }
0x2d12   :  { %4843 = vadd.xlane.f32.xlu0 %v4842_v47 }
0x2d16   :  { %v6430_v50 = vpop.eup %6429 }
0x2d17   :  { %v4674_v7 = vsel %vm632_vm3, %v6430_v50, 0.0 }
0x2d18   :  { %4675 = vadd.xlane.f32.xlu1 %v4674_v7 }
0x2d9b   :  { %v4844_v18 = vpop.xlane.xlu0 %4843 }
0x2da1   :  { %v4676_v8 = vpop.xlane.xlu1 %4675 }
0x2da2   :  { %6431 = vrcp.f32 %v4676_v8 }
0x2daf   :  { %v6432_v51 = vpop.eup %6431 }
0x2db0   :  { %v4678_v52 = vmul.f32 %v6432_v51, %v6430_v50 }
0x2db2   :  { %v4679_v53 = vpack.c.bf16 %v4678_v52, %v4678_v52 }
0x2db4   :  { %6173 = vmatmul.mubr.msk.bf16.vlgmr.msra.gmra.mxu1 %vm632_vm3, %v4679_v53 }
0x2db5   :  { %6183 = vmatpush3.bf16.msra.mxu1 %v7746_v1  ;;  %6184 = vmatprep.mubr.msk.bf16.mxu1 %vm6792_vm0, %v6791_v0 }
0x2db6   :  { %6196 = vmatprep.subr.bf16.mxu1 %v6791_v0 }
0x2dbc   :  { %6185 = vmatmul.mubr.msk.bf16.vlgmr.msra.gmra.mxu1 %vm585_vm2, %v4211_v54 }
0x2dbd   :  { %6200 = vmatprep.mubr.msk.bf16.mxu1 %vm6792_vm0, %v6791_v0  ;;  %6197 = vmatpush3.bf16.msra.mxu1 %v6349_v34 }
0x2dbe   :  { %6198 = vmatprep.subr.bf16.mxu1 %v6791_v0 }
0x2dc1   :  { %6199 = vmatpush3.bf16.msra.mxu1 %v6350_v36 }
0x2e74   :  { %v4720_v44 = vpop.f32.mrf.mxu1 }
0x2e75   :  { %v4726_v46 = vpack.c.bf16 %v4720_v44, %v4720_v44 }
0x2e76   :  { %v6174_v13 = vpop.f32.mrf.mxu1 }
0x2e77   :  { %6179 = vmatmul.mubr.msk.bf16.vlgmr.msra.gmra.mxu0 %vm585_vm2, %v4726_v46 }
0x2e78   :  { %v4723_v55 = vpop.f32.mrf.mxu1  ;;  %6192 = vmatprep.mubr.msk.bf16.mxu0 %vm6792_vm0, %v6791_v0  ;;  %6189 = vmatpush3.bf16.msra.mxu0 %v6347_v15 }
0x2e79   :  { %6190 = vmatprep.subr.bf16.mxu0 %v6791_v0 }
0x2e7a   :  { %v6175_v56 = vpop.f32.mrf.mxu1 }
0x2e7c   :  { %v4807_v23 = vpop.f32.mrf.mxu1  ;;  %6191 = vmatpush3.bf16.msra.mxu0 %v6348_v16 }
0x2e7d   :  { %6204 = vmatprep.subr.bf16.mxu0 %v6791_v0 }
0x2e7e   :  { %v6186_v57 = vpop.f32.mrf.mxu1 }
0x2e80   :  { %v4810_v58 = vpop.f32.mrf.mxu1 }
0x2e82   :  { %v6187_v59 = vpop.f32.mrf.mxu1 }
0x2f37   :  { %v4764_v26 = vpop.f32.mrf.mxu0 }
0x2f38   :  { %v4808_v60 = vadd.f32 %v4807_v23, %v4764_v26 }
0x2f39   :  { %v6180_v61 = vpop.f32.mrf.mxu0 }
0x2f3a   :  { %v4822_v62 = vadd.f32 %v5490_v48, %v4808_v60 }
0x2f3b   :  { %v4767_v63 = vpop.f32.mrf.mxu0 }
0x2f3c   :  { %4823 = vst.msk [vmem:[#allocation2 + $0x8] sm:$0xff] %vm407_vm1, %v4822_v62 }
0x2f3d   :  { %v6181_v1 = vpop.f32.mrf.mxu0 }
0x2f43   :  { %v4825_v2 = vld [vmem:[#allocation2 + $0x8] sm:$0xff] }
0x2f44   :  { %v4827_v37 = vadd.f32 %v4825_v2, %v7651_v31  ;;  %v4848_v31 = vmul.f32 0.03125, %v4844_v18 }
0x2f46   :  { %v4833_v3 = vsel %vm407_vm1, %v4827_v37, 0.0  ;;  %v4850_v19 = vadd.f32 1e-05, %v4848_v31 }
0x2f47   :  { %4834 = vadd.xlane.f32.xlu1 %v4833_v3 }
0x2f48   :  { %6433 = vrsqrt.f32 %v4850_v19 }
0x2f55   :  { %v6434_v24 = vpop.eup %6433 }
0x2f56   :  { %v4854_v49 = vmul.f32 %v6434_v24, %v4838_v43 }
0x2f58   :  { %v4862_v25 = vmul.f32 %v5491_v45, %v4854_v49 }
0x2f5a   :  { %v4870_v9 = vadd.f32 %v5492_v27, %v4862_v25 }
0x2fd0   :  { %v4835_v4 = vpop.xlane.xlu1 %4834 }
0x2fd1   :  { %v4837_v10 = vmul.f32 0.03125, %v4835_v4 }
0x2fd3   :  { %v4839_v11 = vsub.f32 %v4827_v37, %v4837_v10  ;;  %v5501_v10 = vld [vmem:[#allocation15] ss:$0 sm:$0xff] }
0x2fd5   :  { %v4841_v12 = vmul.f32 %v4839_v11, %v4839_v11 }
0x2fd7   :  { %v4845_v14 = vsel %vm407_vm1, %v4841_v12, 0.0  ;;  %v5502_v12 = vld [vmem:[#allocation17] ss:$0 sm:$0xff] }
0x2fd8   :  { %4846 = vadd.xlane.f32.xlu1 %v4845_v14 }
0x3061   :  { %v4847_v20 = vpop.xlane.xlu1 %4846 }
0x3062   :  { %v4849_v21 = vmul.f32 0.03125, %v4847_v20 }
0x3064   :  { %v4851_v22 = vadd.f32 1e-05, %v4849_v21 }
0x3066   :  { %6435 = vrsqrt.f32 %v4851_v22 }
0x3073   :  { %v6436_v48 = vpop.eup %6435 }
0x3074   :  { %v4855_v17 = vmul.f32 %v6436_v48, %v4839_v11 }
0x3076   :  { %v4863_v28 = vmul.f32 %v5491_v45, %v4855_v17 }
0x3078   :  { %v4871_v29 = vadd.f32 %v5492_v27, %v4863_v28 }
0x307a   :  { %v4882_v30 = vpack.c.bf16 %v4871_v29, %v4870_v9 }
0x307c   :  { %6193 = vmatmul.mubr.msk.bf16.vlgmr.msra.gmra.mxu0 %vm407_vm1, %v4882_v30  ;;  %v6352_v30 = vld [vmem:[%s7084_s3] sm:$0xff]  }
0x307d   :  { %6208 = vmatprep.mubr.msk.bf16.mxu0 %vm6792_vm0, %v6791_v0 }
0x313c   :  { %v4938_v33 = vpop.f32.mrf.mxu0 }
0x313d   :  { %v4939_v39 = vadd.f32 %v5493_v38, %v4938_v33 }
0x313e   :  { %v6194_v35 = vpop.f32.mrf.mxu0 }
0x313f   :  { %v4945_v41 = vmax.f32 %v4939_v39, 0.0 }
0x3140   :  { %v4941_v6 = vpop.f32.mrf.mxu0 }
0x3141   :  { %v4942_v40 = vadd.f32 %v5493_v38, %v4941_v6 }
0x3142   :  { %v6195_v32 = vpop.f32.mrf.mxu0 }
0x3143   :  { %v4946_v42 = vmax.f32 %v4942_v40, 0.0  ;;  %v5503_v32 = vld [vmem:[#allocation18] ss:$0 sm:$0xff] }
0x3145   :  { %v4947_v43 = vpack.c.bf16 %v4946_v42, %v4945_v41 }
0x3147   :  { %6201 = vmatmul.mubr.msk.bf16.vlgmr.msra.gmra.mxu1 %vm407_vm1, %v4947_v43 }
0x3207   :  { %v5003_v47 = vpop.f32.mrf.mxu1 }
0x3208   :  { %v5004_v50 = vadd.f32 %v5497_v5, %v5003_v47 }
0x3209   :  { %v6202_v7 = vpop.f32.mrf.mxu1 }
0x320a   :  { %v5010_v8 = vadd.f32 %v5004_v50, %v4870_v9 }
0x320b   :  { %v5006_v51 = vpop.f32.mrf.mxu1 }
0x320c   :  { %v5007_v52 = vadd.f32 %v5497_v5, %v5006_v51  ;;  %v5014_v53 = vsel %vm407_vm1, %v5010_v8, 0.0  ;;  %v5504_v5 = vld [vmem:[#allocation20] ss:$0 sm:$0xff] }
0x320d   :  { %5015 = vadd.xlane.f32.xlu0 %v5014_v53  ;;  %v6203_v54 = vpop.f32.mrf.mxu1 }
0x320e   :  { %v5011_v44 = vadd.f32 %v5007_v52, %v4871_v29  ;;  %v6351_v29 = vld [vmem:[%s7084_s3 + $0x8] sm:$0xff]   ;;  %s6793_s3 = smov [#allocation23]  }
0x320f   :  { %6205 = vmatpush3.bf16.msra.mxu0 %v6351_v29  ;;  %s5175_s15 = sshll.u32 %s6793_s3, 4  ;;  %s5176_s15 = int_to_ptr.vmem [resolvable:$true] %s5175_s15 }
0x3210   :  { %v5017_v46 = vsel %vm407_vm1, %v5011_v44, 0.0  ;;  %6206 = vmatprep.subr.bf16.mxu0 %v6791_v0  ;;  %s6685_s27 = scalar_lea.vmem %s5176_s15, 256  ;;  %p6690_p5 = scmp.lt.s32.totalorder %s5176_s15, %s5176_s15 }
0x3211   :  { %5018 = vadd.xlane.f32.xlu1 %v5017_v46  ;;  %p6686_p4 = scmp.ne.s32.totalorder %s5176_s15, %s6685_s27  ;;  %p6691_p6 = scmp.lt.s32.totalorder %s6685_s27, %s6685_s27 }
0x3213   :  { %6207 = vmatpush3.bf16.msra.mxu0 %v6352_v30  ;;  %p6692_p7 = por %p6691_p6, %p6690_p5 }
0x3215   :  { %p6693_p8 = pnand %p6692_p7, %p6686_p4 }
0x3296   :  { %v5016_v13 = vpop.xlane.xlu0 %5015 }
0x3297   :  { %v5020_v55 = vmul.f32 0.03125, %v5016_v13 }
0x3299   :  { %v5022_v56 = vsub.f32 %v5010_v8, %v5020_v55  ;;  %v5505_v8 = vld [vmem:[#allocation21] ss:$0 sm:$0xff] }
0x329a   :  { %v5019_v23 = vpop.xlane.xlu1 %5018 }
0x329b   :  { %v5021_v57 = vmul.f32 0.03125, %v5019_v23  ;;  %v5024_v58 = vmul.f32 %v5022_v56, %v5022_v56 }
0x329d   :  { %v5023_v59 = vsub.f32 %v5011_v44, %v5021_v57  ;;  %v5026_v26 = vsel %vm407_vm1, %v5024_v58, 0.0 }
0x329e   :  { %5027 = vadd.xlane.f32.xlu0 %v5026_v26 }
0x329f   :  { %v5025_v60 = vmul.f32 %v5023_v59, %v5023_v59 }
0x32a1   :  { %v5029_v61 = vsel %vm407_vm1, %v5025_v60, 0.0 }
0x32a2   :  { %5030 = vadd.xlane.f32.xlu1 %v5029_v61 }
0x3327   :  { %v5028_v62 = vpop.xlane.xlu0 %5027 }
0x3328   :  { %v5032_v63 = vmul.f32 0.03125, %v5028_v62 }
0x332a   :  { %v5034_v1 = vadd.f32 1e-05, %v5032_v63 }
0x332b   :  { %v5031_v2 = vpop.xlane.xlu1 %5030 }
0x332c   :  { %6437 = vrsqrt.f32 %v5034_v1  ;;  %v5033_v37 = vmul.f32 0.03125, %v5031_v2 }
0x332e   :  { %v5035_v3 = vadd.f32 1e-05, %v5033_v37 }
0x3330   :  { %6439 = vrsqrt.f32 %v5035_v3 }
0x3339   :  { %v6438_v4 = vpop.eup %6437 }
0x333a   :  { %v5038_v11 = vmul.f32 %v6438_v4, %v5022_v56 }
0x333c   :  { %v5046_v14 = vmul.f32 %v5501_v10, %v5038_v11 }
0x333d   :  { %v6440_v15 = vpop.eup %6439 }
0x333e   :  { %v5054_v16 = vadd.f32 %v5502_v12, %v5046_v14  ;;  %v5039_v18 = vmul.f32 %v6440_v15, %v5023_v59 }
0x3340   :  { %v5058_v31 = vsel %vm407_vm1, %v5054_v16, 0.0  ;;  %v5047_v19 = vmul.f32 %v5501_v10, %v5039_v18 }
0x3341   :  { %5059 = vadd.xlane.f32.xlu0 %v5058_v31 }
0x3342   :  { %v5055_v20 = vadd.f32 %v5502_v12, %v5047_v19 }
0x3344   :  { %v5061_v21 = vsel %vm407_vm1, %v5055_v20, 0.0 }
0x3345   :  { %5062 = vadd.xlane.f32.xlu1 %v5061_v21 }
0x33ca   :  { %v5060_v22 = vpop.xlane.xlu0 %5059 }
0x33cb   :  { %v5064_v24 = vmul.f32 0.03125, %v5060_v22 }
0x33cd   :  { %v5066_v49 = vsub.f32 %v5054_v16, %v5064_v24 }
0x33ce   :  { %v5063_v45 = vpop.xlane.xlu1 %5062 }
0x33cf   :  { %v5065_v48 = vmul.f32 0.03125, %v5063_v45  ;;  %v5068_v25 = vmul.f32 %v5066_v49, %v5066_v49 }
0x33d1   :  { %v5067_v17 = vsub.f32 %v5055_v20, %v5065_v48  ;;  %v5070_v27 = vsel %vm407_vm1, %v5068_v25, 0.0 }
0x33d2   :  { %5071 = vadd.xlane.f32.xlu0 %v5070_v27 }
0x33d3   :  { %v5069_v28 = vmul.f32 %v5067_v17, %v5067_v17 }
0x33d5   :  { %v5073_v9 = vsel %vm407_vm1, %v5069_v28, 0.0 }
0x33d6   :  { %5074 = vadd.xlane.f32.xlu1 %v5073_v9 }
0x345b   :  { %v5072_v34 = vpop.xlane.xlu0 %5071 }
0x345c   :  { %v5076_v36 = vmul.f32 0.03125, %v5072_v34 }
0x345e   :  { %v5078_v38 = vadd.f32 1e-05, %v5076_v36 }
0x345f   :  { %v5075_v33 = vpop.xlane.xlu1 %5074 }
0x3460   :  { %6441 = vrsqrt.f32 %v5078_v38  ;;  %v5077_v35 = vmul.f32 0.03125, %v5075_v33 }
0x3462   :  { %v5079_v39 = vadd.f32 1e-05, %v5077_v35 }
0x3464   :  { %6443 = vrsqrt.f32 %v5079_v39 }
0x346d   :  { %v6442_v6 = vpop.eup %6441 }
0x346e   :  { %v5082_v40 = vmul.f32 %v6442_v6, %v5066_v49 }
0x3470   :  { %v5090_v42 = vmul.f32 %v5503_v32, %v5082_v40 }
0x3471   :  { %v6444_v41 = vpop.eup %6443 }
0x3472   :  { %v5083_v43 = vmul.f32 %v6444_v41, %v5067_v17  ;;  %v5098_v50 = vadd.f32 %v5504_v5, %v5090_v42 }
0x3474   :  { %v5091_v47 = vmul.f32 %v5503_v32, %v5083_v43 }
0x3476   :  { %v5099_v0 = vadd.f32 %v5504_v5, %v5091_v47 }
0x3478   :  { %v5100_v7 = vpack.c.bf16 %v5099_v0, %v5098_v50 }
0x347a   :  { %6209 = vmatmul.mubr.msk.bf16.vlgmr.msra.gmra.mxu0 %vm407_vm1, %v5100_v7 }
0x353a   :  { %v5161_v51 = vpop.f32.mrf.mxu0 }
0x353b   :  { %v5162_v52 = vadd.f32 %v5505_v8, %v5161_v51 }
0x353c   :  { %v6210_v53 = vpop.f32.mrf.mxu0 }
0x353d   :  { %5168 = vst [vmem:[#allocation23] sm:$0xff] %v5162_v52 }
0x353e   :  { %v5164_v54 = vpop.f32.mrf.mxu0 }
0x353f   :  { %v5165_v44 = vadd.f32 %v5505_v8, %v5164_v54 }
0x3540   :  { %v6211_v46 = vpop.f32.mrf.mxu0 }
0x3541   :  { %5169 = vst [vmem:[#allocation23 + $0x8] sm:$0xff] %v5165_v44 }
0x3542   :  { %6696 = shalt.err (!%p6693_p8)
}
0x3543   :  { %s6794_s4 = smov 128   ;;  %s6795_s16 = smov 8  }
0x3544   :  { %5181 = dma.vmem_to_hbm [thread:$0]  %s5176_s15, 256, %s7094_s17, [#allocation5], %s6794_s4, %s6794_s4, %s6795_s16  }
0x3545   :  { %6719 = dma.done.wait [#allocation5], 256  }
0x3546   :  { %6720 = vsyncadd [#allocation5], 4294967040 }
0x3547   :  { %5185 = vsyncpa [#allocation4], 1 }
0x3548   :  { %5186 = vsyncpa [#allocation7], 1 }
0x3549   :  { %5187 = vsyncpa [#allocation10], 1 }
0x354a   :  { %5188 = vsyncpa [#allocation13], 1 }
0x354b   :  { %5189 = vsyncpa [#allocation16], 1 }
0x354c   :  { %5190 = vsyncpa [#allocation19], 1 }
0x354d   :  { %5191 = vsyncpa [#allocation22], 1 }
0x354e   :  { %5192 = vsyncpa [#allocation5], 1 }

</bundles_post_ra>
